<compile_context>
chip_gen: v7x
topology: tpu7x:2x2x1
jax: 0.10.0
libtpu: 0.0.40
codegen_flags: <defaults>
</compile_context>

<pallas_src>
import numpy as np
import jax
import jax.numpy as jnp
from jax.experimental import pallas as pl
from jax.experimental.pallas import tpu as pltpu

# ----------------------------- configuration ---------------------------------
NUM_QUBITS = 4          # n
NUM_LAYERS = 2          # ansatz = 'original_2'
FEATURES   = 2          # features_size of the input series (< num_qubits)
OUT_DIM    = 1          # data_label not lorenz/henon -> Linear(num_qubits, 1)
BATCH      = 4
SEQ_LEN    = 8
DIM        = 2 ** NUM_QUBITS


# ------------------------ host-side circuit algebra --------------------------
# (glue / parameter setup: build the fixed entangler unitary of each VQC)
def _kron_all(mats):
    out = mats[0]
    for m in mats[1:]:
        out = np.kron(out, m)
    return out


def _single_qubit_full(gate, wire, n):
    mats = [np.eye(2, dtype=np.complex128) for _ in range(n)]
    mats[wire] = gate
    return _kron_all(mats)          # wire 0 = most significant bit (PennyLane convention)


def _cnot_full(ctrl, tgt, n):
    d = 2 ** n
    m = np.zeros((d, d), dtype=np.complex128)
    for k in range(d):
        cbit = (k >> (n - 1 - ctrl)) & 1
        k2 = k ^ ((1 << (n - 1 - tgt)) if cbit else 0)
        m[k2, k] = 1.0
    return m


def _rot_gate(phi, theta, omega):
    # PennyLane Rot(phi, theta, omega) = RZ(omega) RY(theta) RZ(phi)
    c, s = np.cos(theta / 2.0), np.sin(theta / 2.0)
    return np.array(
        [[np.exp(-1j * (phi + omega) / 2.0) * c, -np.exp(1j * (phi - omega) / 2.0) * s],
         [np.exp(-1j * (phi - omega) / 2.0) * s,  np.exp(1j * (phi + omega) / 2.0) * c]],
        dtype=np.complex128)


def build_entangler_unitary(weights, n):
    """weights: (n, L, 3) numpy. Returns the fixed unitary applied after the encoding."""
    d = 2 ** n
    u = np.eye(d, dtype=np.complex128)
    L = weights.shape[1]
    for j in range(L):
        for _ in range(2):  # CNOT ring applied twice per layer
            for i in range(n - 1):
                u = _cnot_full(i, i + 1, n) @ u
            u = _cnot_full(n - 1, 0, n) @ u
        for i in range(n):
            g = _rot_gate(weights[i, j, 0], weights[i, j, 1], weights[i, j, 2])
            u = _single_qubit_full(g, i, n) @ u
    return u


def _complex_pack(U):
    """(D,D) complex U -> (2D,2D) real M so that [Re(psi)|Im(psi)] @ M
    = [Re(psi @ U^T) | Im(psi @ U^T)]."""
    UrT, UiT = np.real(U.T), np.imag(U.T)
    return np.block([[UrT, UiT], [-UiT, UrT]]).astype(np.float32)


# ------------------------------ Pallas kernel --------------------------------
def _qlstm_kernel(xpad_ref, bits_ref, mg_ref, zg_ref, mh_ref, wh_ref, bout_ref, y_ref):
    T, Bp, n = xpad_ref.shape
    D = bits_ref.shape[1]
    out_dim = wh_ref.shape[1] - n
    inv_sqrt2 = 0.7071067811865476

    # constants loaded / broadcast once, outside the unrolled time loop
    bits = bits_ref[...]                                   # (n, D) 0/1
    mg = mg_ref[...]                                       # (2D, 8D) packed f/i/g/o entanglers
    zg = zg_ref[...]                                       # (8D, 4n) |.|^2 + PauliZ fold (g cols x2)
    mh = mh_ref[...]                                       # (2D, 4D) packed vqc5|vqc6 entanglers
    wh = wh_ref[...]                                       # (4D, n+out_dim) folded zsign@pmat / zsign@wout
    masks = [jnp.broadcast_to(bits[q:q + 1, :], (Bp, D)) > 0.5 for q in range(n)]

    def wide_recip(d):
        # EUP approximate reciprocal + one Newton step -> full f32 accuracy,
        # without the special-case handling of the exact-divide lowering.
        r0 = pl.reciprocal(d, approx=True)
        return r0 * (2.0 - d * r0)

    def encode(v):
        # per qubit |psi_q> = RZ(arctan(v^2)) RY(arctan(v)) H |0>, via half-angle identities:
        #   theta = arctan(v):   cos(theta) = 1/sqrt(1+v^2)
        #   phi   = arctan(v^2): cos(phi)   = 1/sqrt(1+v^4)
        # All EUP args are lane-packed: 1 wide rsqrt + 1 wide sqrt per encode.
        w = jnp.concatenate([v, v * v], axis=1)            # (Bp, 2n): [v | v^2]
        cc = jax.lax.rsqrt(1.0 + w * w)                     # [cos(theta) | cos(phi)]
        half = jnp.concatenate([(1.0 + cc) * 0.5,
                                jnp.maximum((1.0 - cc) * 0.5, 0.0)], axis=1)   # (Bp, 4n)
        hs = jnp.sqrt(half)                                 # [cos(t/2) | cos(p/2) | |sin(t/2)| | sin(p/2)]
        cht = hs[:, 0:n]
        chp = hs[:, n:2 * n]
        sht = jnp.where(v >= 0.0, hs[:, 2 * n:3 * n], -hs[:, 2 * n:3 * n])
        shp = hs[:, 3 * n:4 * n]

        u0 = (cht - sht) * inv_sqrt2      # amplitude of |0> before RZ
        u1 = (cht + sht) * inv_sqrt2      # amplitude of |1> before RZ
        a0r, a0i = u0 * chp, -(u0 * shp)  # * exp(-i phi/2)
        a1r, a1i = u1 * chp,  u1 * shp    # * exp(+i phi/2)

        # per-qubit bit-selected amplitudes over the D basis states
        sel_r, sel_i = [], []
        for q in range(n):
            sel_r.append(jnp.where(masks[q],
                                   jnp.broadcast_to(a1r[:, q:q + 1], (Bp, D)),
                                   jnp.broadcast_to(a0r[:, q:q + 1], (Bp, D))))
            sel_i.append(jnp.where(masks[q],
                                   jnp.broadcast_to(a1i[:, q:q + 1], (Bp, D)),
                                   jnp.broadcast_to(a0i[:, q:q + 1], (Bp, D))))

        # balanced-tree complex product over qubits (shorter dependency chain)
        rs, is_ = sel_r, sel_i
        while len(rs) > 1:
            nr, ni = [], []
            for k in range(0, len(rs) - 1, 2):
                ar, ai, br, bi = rs[k], is_[k], rs[k + 1], is_[k + 1]
                nr.append(ar * br - ai * bi)
                ni.append(ar * bi + ai * br)
            if len(rs) % 2 == 1:
                nr.append(rs[-1])
                ni.append(is_[-1])
            rs, is_ = nr, ni
        return jnp.concatenate([rs[0], is_[0]], axis=1)    # packed [Re | Im], (Bp, 2D)

    hv = jnp.zeros((Bp, n), jnp.float32)      # h_t placed into its v_t slot (cols F..n-1)
    c = jnp.zeros((Bp, n), jnp.float32)
    ylin = jnp.zeros((Bp, out_dim), jnp.float32)

    # T is static -> fully unrolled recurrence (LLO gets cross-iteration visibility)
    # TODO(synk): on v5e the loop-invariant RHS (mg/zg/mh/wh) could be parked in the MXU
    # via pltpu.matmul_push_rhs / matmul_acc_lhs / matmul_pop; kept portable jnp.dot here.
    for t in range(T):
        v = xpad_ref[t] + hv                              # == concat(x_t, h_t)
        p = encode(v)                                     # (Bp, 2D), shared by f/i/g/o
        ph4 = jnp.dot(p, mg, preferred_element_type=jnp.float32)          # (Bp, 8D)
        z4 = jnp.dot(ph4 * ph4, zg, preferred_element_type=jnp.float32)   # (Bp, 4n), g cols pre-x2

        # fused activations: one wide exp + one EUP reciprocal for all four gates
        # (tanh(x) = 2*sigmoid(2x) - 1; the factor 2 is folded into zg on the host)
        e = jnp.exp(-z4)                                  # (Bp, 4n) single EUP dispatch
        sig = wide_recip(1.0 + e)                         # sigmoid of the whole block
        f = sig[:, 0:n]
        i = sig[:, n:2 * n]
        g = 2.0 * sig[:, 2 * n:3 * n] - 1.0
        o = sig[:, 3 * n:4 * n]

        c = f * c + i * g
        s = o * jnp.tanh(c)
        ph = encode(s)                                    # shared by vqc5 (h) and vqc6 (y)
        hz2 = jnp.dot(ph, mh, preferred_element_type=jnp.float32)         # (Bp, 4D)
        hz = jnp.dot(hz2 * hz2, wh, preferred_element_type=jnp.float32)   # (Bp, n+out_dim)
        hv = hz[:, 0:n]                                   # zsign@pmat folded: h already shifted
        ylin = hz[:, n:]                                  # zsign@wout folded: linear output pre-bias

    y_ref[...] = ylin + bout_ref[...]


def qlstm_paper_pallas(x, Us, wout, bout, num_qubits=NUM_QUBITS):
    """x: (batch, seq, features) float32 (PyTorch layout). Us: list of 6 (D,D) complex
    entangler unitaries. Returns (batch, out_dim)."""
    B, T, F = x.shape
    n = num_qubits
    D = 2 ** n
    wout_np = np.asarray(wout, np.float32)
    out_dim = wout_np.shape[1]
    Bp = int(-(-B // 8) * 8)                               # pad batch to a full sublane tile

    # time-major, feature- and batch-padded input (kernel layout)
    xpad = jnp.zeros((T, Bp, n), jnp.float32).at[:, :B, :F].set(
        jnp.transpose(x, (1, 0, 2)).astype(jnp.float32))

    # bit table and PauliZ sign table (wire 0 = MSB)
    bits_np = np.array([[(k >> (n - 1 - q)) & 1 for k in range(D)] for q in range(n)],
                       dtype=np.float32)                   # (n, D)
    zsign_np = (1.0 - 2.0 * bits_np.T).astype(np.float32)  # (D, n)

    # packed real matrices for the complex entangler of each VQC
    Ms = [_complex_pack(u) for u in Us]                    # 6 x (2D, 2D)

    # gates f/i/g/o: one lane-dense matmul (2D, 8D)=(32,128) + block-diag fold (8D, 4n).
    # The g-gate (index 2) columns are pre-scaled by 2 so the kernel can use the
    # tanh(x) = 2*sigmoid(2x) - 1 identity and fuse all four activations into one exp.
    mg_np = np.concatenate(Ms[0:4], axis=1).astype(np.float32)
    zg_np = np.zeros((8 * D, 4 * n), dtype=np.float32)
    gate_scale = [1.0, 1.0, 2.0, 1.0]                      # f, i, g(x2 for tanh), o
    for gi in range(4):
        zs = zsign_np * gate_scale[gi]
        zg_np[gi * 2 * D:gi * 2 * D + D, gi * n:(gi + 1) * n] = zs          # Re^2 part
        zg_np[gi * 2 * D + D:(gi + 1) * 2 * D, gi * n:(gi + 1) * n] = zs    # Im^2 part

    # vqc5 (h update, folded with the column-shift pmat) + vqc6 (folded with wout)
    pmat_np = np.zeros((n, n), dtype=np.float32)
    for j in range(n - F):
        pmat_np[j, F + j] = 1.0                            # place h5[:, :n-F] into cols F..n-1
    zpm = zsign_np @ pmat_np                               # (D, n)
    zw = zsign_np @ wout_np                                # (D, out_dim)
    mh_np = np.concatenate([Ms[4], Ms[5]], axis=1).astype(np.float32)  # (2D, 4D)
    wh_np = np.zeros((4 * D, n + out_dim), dtype=np.float32)
    wh_np[0:D, 0:n] = zpm
    wh_np[D:2 * D, 0:n] = zpm
    wh_np[2 * D:3 * D, n:] = zw
    wh_np[3 * D:4 * D, n:] = zw

    args = (xpad,
            jnp.asarray(bits_np), jnp.asarray(mg_np), jnp.asarray(zg_np),
            jnp.asarray(mh_np), jnp.asarray(wh_np),
            jnp.asarray(bout, jnp.float32).reshape(1, out_dim))

    vmem = pl.BlockSpec(memory_space=pltpu.MemorySpace.VMEM)
    y = pl.pallas_call(
        _qlstm_kernel,
        out_shape=jax.ShapeDtypeStruct((Bp, out_dim), jnp.float32),
        in_specs=[vmem] * len(args),
        out_specs=vmem,
    )(*args)
    return y[:B]


# --------------------------- numpy reference ---------------------------------
def _ref_vqc(v, U, n):
    theta = np.arctan(v)
    phi = np.arctan(v ** 2)
    ct, st = np.cos(theta / 2), np.sin(theta / 2)
    a0 = (ct - st) / np.sqrt(2) * np.exp(-1j * phi / 2)
    a1 = (ct + st) / np.sqrt(2) * np.exp(1j * phi / 2)
    B = v.shape[0]
    psi = np.ones((B, 1), dtype=np.complex128)
    for q in range(n):
        amps = np.stack([a0[:, q], a1[:, q]], axis=1)
        psi = (psi[:, :, None] * amps[:, None, :]).reshape(B, -1)
    out = psi @ U.T
    probs = np.abs(out) ** 2
    D = 2 ** n
    z = np.array([[1 - 2 * ((k >> (n - 1 - i)) & 1) for i in range(n)] for k in range(D)],
                 dtype=np.float64)
    return probs @ z


def _ref_forward(x, Us, wout, bout, n, F):
    def sig(z):
        return 1.0 / (1.0 + np.exp(-z))
    B, T, _ = x.shape
    h = np.zeros((B, n - F))
    c = np.zeros((B, n))
    o = np.zeros((B, n))
    for t in range(T):
        v = np.concatenate([x[:, t, :], h], axis=1)
        f = sig(_ref_vqc(v, Us[0], n))
        i = sig(_ref_vqc(v, Us[1], n))
        g = np.tanh(_ref_vqc(v, Us[2], n))
        o = sig(_ref_vqc(v, Us[3], n))
        c = f * c + i * g
        h = _ref_vqc(o * np.tanh(c), Us[4], n)[:, :n - F]
    y = _ref_vqc(o * np.tanh(c), Us[5], n)
    return y @ wout + bout


# ---------------------------------- main --------------------------------------
if __name__ == "__main__":
    key = jax.random.PRNGKey(0)
    k_x, k_w, k_lin_w, k_lin_b = jax.random.split(key, 4)

    # input series (batch, seq, features)
    x = (0.5 * jax.random.normal(k_x, (BATCH, SEQ_LEN, FEATURES))).astype(jnp.float32)

    # VQC trainable weights for vqc1..vqc6: uniform(0, 2*pi), shape (n, L, 3) each
    vqc_weights = jax.random.uniform(
        k_w, (6, NUM_QUBITS, NUM_LAYERS, 3), minval=0.0, maxval=2.0 * np.pi)
    vqc_weights_np = np.asarray(vqc_weights, dtype=np.float64)

    # precompute the fixed entangler unitary of each VQC (host glue / parameter setup)
    Us = [build_entangler_unitary(vqc_weights_np[i], NUM_QUBITS) for i in range(6)]

    # output Linear(num_qubits, out_dim)
    bound = 1.0 / np.sqrt(NUM_QUBITS)
    wout = jax.random.uniform(k_lin_w, (NUM_QUBITS, OUT_DIM), minval=-bound, maxval=bound)
    bout = jax.random.uniform(k_lin_b, (OUT_DIM,), minval=-bound, maxval=bound)

    # run Pallas kernel
    y = qlstm_paper_pallas(x, Us, wout, bout)
    y = jax.block_until_ready(y)

    # correctness check against a high-precision numpy statevector reference
    y_ref = _ref_forward(np.asarray(x, np.float64), Us,
                         np.asarray(wout, np.float64), np.asarray(bout, np.float64),
                         NUM_QUBITS, FEATURES)
    np.testing.assert_allclose(np.asarray(y), y_ref, rtol=2e-3, atol=2e-3)

    print("KERNEL_OK")
</pallas_src>

<mosaic_0001>
module attributes {stable_mosaic.version = 11 : i64} {
  func.func @_qlstm_kernel(%arg0: memref<8x8x4xf32, #tpu.memory_space<vmem>>, %arg1: memref<4x16xf32, #tpu.memory_space<vmem>>, %arg2: memref<32x128xf32, #tpu.memory_space<vmem>>, %arg3: memref<128x16xf32, #tpu.memory_space<vmem>>, %arg4: memref<32x64xf32, #tpu.memory_space<vmem>>, %arg5: memref<64x5xf32, #tpu.memory_space<vmem>>, %arg6: memref<1x1xf32, #tpu.memory_space<vmem>>, %arg7: memref<8x1xf32, #tpu.memory_space<vmem>>) attributes {dimension_semantics = [], scalar_prefetch = 0 : i64, scratch_operands = 0 : i64, tpu.core_type = #tpu.core_type<tc>} {
    %c0 = arith.constant 0 : index
    %c0_0 = arith.constant 0 : index
    %0 = vector.load %arg1[%c0, %c0_0] : memref<4x16xf32, #tpu.memory_space<vmem>>, vector<4x16xf32>
    %c0_1 = arith.constant 0 : index
    %c0_2 = arith.constant 0 : index
    %1 = vector.load %arg2[%c0_1, %c0_2] : memref<32x128xf32, #tpu.memory_space<vmem>>, vector<32x128xf32>
    %c0_3 = arith.constant 0 : index
    %c0_4 = arith.constant 0 : index
    %2 = vector.load %arg3[%c0_3, %c0_4] : memref<128x16xf32, #tpu.memory_space<vmem>>, vector<128x16xf32>
    %c0_5 = arith.constant 0 : index
    %c0_6 = arith.constant 0 : index
    %3 = vector.load %arg4[%c0_5, %c0_6] : memref<32x64xf32, #tpu.memory_space<vmem>>, vector<32x64xf32>
    %c0_7 = arith.constant 0 : index
    %c0_8 = arith.constant 0 : index
    %4 = vector.load %arg5[%c0_7, %c0_8] : memref<64x5xf32, #tpu.memory_space<vmem>>, vector<64x5xf32>
    %5 = vector.extract_strided_slice %0 {offsets = [0, 0], sizes = [1, 16], strides = [1, 1]} : vector<4x16xf32> to vector<1x16xf32>
    %6 = vector.shape_cast %5 : vector<1x16xf32> to vector<1x16xf32>
    %7 = vector.broadcast %6 : vector<1x16xf32> to vector<8x16xf32>
    %cst = arith.constant 5.000000e-01 : f32
    %8 = vector.broadcast %cst : f32 to vector<8x16xf32>
    %9 = arith.cmpf ogt, %7, %8 : vector<8x16xf32>
    %10 = vector.extract_strided_slice %0 {offsets = [1, 0], sizes = [1, 16], strides = [1, 1]} : vector<4x16xf32> to vector<1x16xf32>
    %11 = vector.shape_cast %10 : vector<1x16xf32> to vector<1x16xf32>
    %12 = vector.broadcast %11 : vector<1x16xf32> to vector<8x16xf32>
    %cst_9 = arith.constant 5.000000e-01 : f32
    %13 = vector.broadcast %cst_9 : f32 to vector<8x16xf32>
    %14 = arith.cmpf ogt, %12, %13 : vector<8x16xf32>
    %15 = vector.extract_strided_slice %0 {offsets = [2, 0], sizes = [1, 16], strides = [1, 1]} : vector<4x16xf32> to vector<1x16xf32>
    %16 = vector.shape_cast %15 : vector<1x16xf32> to vector<1x16xf32>
    %17 = vector.broadcast %16 : vector<1x16xf32> to vector<8x16xf32>
    %cst_10 = arith.constant 5.000000e-01 : f32
    %18 = vector.broadcast %cst_10 : f32 to vector<8x16xf32>
    %19 = arith.cmpf ogt, %17, %18 : vector<8x16xf32>
    %20 = vector.extract_strided_slice %0 {offsets = [3, 0], sizes = [1, 16], strides = [1, 1]} : vector<4x16xf32> to vector<1x16xf32>
    %21 = vector.shape_cast %20 : vector<1x16xf32> to vector<1x16xf32>
    %22 = vector.broadcast %21 : vector<1x16xf32> to vector<8x16xf32>
    %cst_11 = arith.constant 5.000000e-01 : f32
    %23 = vector.broadcast %cst_11 : f32 to vector<8x16xf32>
    %24 = arith.cmpf ogt, %22, %23 : vector<8x16xf32>
    %cst_12 = arith.constant 0.000000e+00 : f32
    %25 = vector.broadcast %cst_12 : f32 to vector<8x4xf32>
    %cst_13 = arith.constant 0.000000e+00 : f32
    %26 = vector.broadcast %cst_13 : f32 to vector<8x4xf32>
    %c0_14 = arith.constant 0 : index
    %c0_15 = arith.constant 0 : index
    %c0_16 = arith.constant 0 : index
    %27 = vector.load %arg0[%c0_14, %c0_15, %c0_16] : memref<8x8x4xf32, #tpu.memory_space<vmem>>, vector<1x8x4xf32>
    %28 = vector.shape_cast %27 : vector<1x8x4xf32> to vector<8x4xf32>
    %29 = arith.addf %28, %25 : vector<8x4xf32>
    %30 = arith.mulf %29, %29 : vector<8x4xf32>
    %31 = tpu.concatenate %29, %30 in 1 : vector<8x4xf32>, vector<8x4xf32> -> vector<8x8xf32>
    %32 = arith.mulf %31, %31 : vector<8x8xf32>
    %cst_17 = arith.constant 1.000000e+00 : f32
    %33 = vector.broadcast %cst_17 : f32 to vector<8x8xf32>
    %34 = arith.addf %33, %32 : vector<8x8xf32>
    %35 = math.rsqrt %34 : vector<8x8xf32>
    %cst_18 = arith.constant 1.000000e+00 : f32
    %36 = vector.broadcast %cst_18 : f32 to vector<8x8xf32>
    %37 = arith.addf %36, %35 : vector<8x8xf32>
    %cst_19 = arith.constant 5.000000e-01 : f32
    %38 = vector.broadcast %cst_19 : f32 to vector<8x8xf32>
    %39 = arith.mulf %37, %38 : vector<8x8xf32>
    %cst_20 = arith.constant 1.000000e+00 : f32
    %40 = vector.broadcast %cst_20 : f32 to vector<8x8xf32>
    %41 = arith.subf %40, %35 : vector<8x8xf32>
    %cst_21 = arith.constant 5.000000e-01 : f32
    %42 = vector.broadcast %cst_21 : f32 to vector<8x8xf32>
    %43 = arith.mulf %41, %42 : vector<8x8xf32>
    %cst_22 = arith.constant 0.000000e+00 : f32
    %44 = vector.broadcast %cst_22 : f32 to vector<8x8xf32>
    %45 = arith.maximumf %43, %44 : vector<8x8xf32>
    %46 = tpu.concatenate %39, %45 in 1 : vector<8x8xf32>, vector<8x8xf32> -> vector<8x16xf32>
    %47 = math.sqrt %46 : vector<8x16xf32>
    %48 = vector.extract_strided_slice %47 {offsets = [0, 0], sizes = [8, 4], strides = [1, 1]} : vector<8x16xf32> to vector<8x4xf32>
    %49 = vector.extract_strided_slice %47 {offsets = [0, 4], sizes = [8, 4], strides = [1, 1]} : vector<8x16xf32> to vector<8x4xf32>
    %cst_23 = arith.constant 0.000000e+00 : f32
    %50 = vector.broadcast %cst_23 : f32 to vector<8x4xf32>
    %51 = arith.cmpf oge, %29, %50 : vector<8x4xf32>
    %52 = vector.extract_strided_slice %47 {offsets = [0, 8], sizes = [8, 4], strides = [1, 1]} : vector<8x16xf32> to vector<8x4xf32>
    %53 = vector.extract_strided_slice %47 {offsets = [0, 8], sizes = [8, 4], strides = [1, 1]} : vector<8x16xf32> to vector<8x4xf32>
    %cst_24 = arith.constant 0.000000e+00 : f32
    %54 = vector.broadcast %cst_24 : f32 to vector<8x4xf32>
    %55 = arith.subf %54, %53 : vector<8x4xf32>
    %56 = arith.select %51, %52, %55 : vector<8x4xi1>, vector<8x4xf32>
    %57 = vector.extract_strided_slice %47 {offsets = [0, 12], sizes = [8, 4], strides = [1, 1]} : vector<8x16xf32> to vector<8x4xf32>
    %58 = arith.subf %48, %56 : vector<8x4xf32>
    %cst_25 = arith.constant 0.707106769 : f32
    %59 = vector.broadcast %cst_25 : f32 to vector<8x4xf32>
    %60 = arith.mulf %58, %59 : vector<8x4xf32>
    %61 = arith.addf %48, %56 : vector<8x4xf32>
    %cst_26 = arith.constant 0.707106769 : f32
    %62 = vector.broadcast %cst_26 : f32 to vector<8x4xf32>
    %63 = arith.mulf %61, %62 : vector<8x4xf32>
    %64 = arith.mulf %60, %49 : vector<8x4xf32>
    %65 = arith.mulf %60, %57 : vector<8x4xf32>
    %cst_27 = arith.constant 0.000000e+00 : f32
    %66 = vector.broadcast %cst_27 : f32 to vector<8x4xf32>
    %67 = arith.subf %66, %65 : vector<8x4xf32>
    %68 = arith.mulf %63, %49 : vector<8x4xf32>
    %69 = arith.mulf %63, %57 : vector<8x4xf32>
    %70 = vector.extract_strided_slice %68 {offsets = [0, 0], sizes = [8, 1], strides = [1, 1]} : vector<8x4xf32> to vector<8x1xf32>
    %71 = vector.shape_cast %70 : vector<8x1xf32> to vector<8x1xf32>
    %72 = vector.broadcast %71 : vector<8x1xf32> to vector<8x16xf32>
    %73 = vector.extract_strided_slice %64 {offsets = [0, 0], sizes = [8, 1], strides = [1, 1]} : vector<8x4xf32> to vector<8x1xf32>
    %74 = vector.shape_cast %73 : vector<8x1xf32> to vector<8x1xf32>
    %75 = vector.broadcast %74 : vector<8x1xf32> to vector<8x16xf32>
    %76 = arith.select %9, %72, %75 : vector<8x16xi1>, vector<8x16xf32>
    %77 = vector.extract_strided_slice %69 {offsets = [0, 0], sizes = [8, 1], strides = [1, 1]} : vector<8x4xf32> to vector<8x1xf32>
    %78 = vector.shape_cast %77 : vector<8x1xf32> to vector<8x1xf32>
    %79 = vector.broadcast %78 : vector<8x1xf32> to vector<8x16xf32>
    %80 = vector.extract_strided_slice %67 {offsets = [0, 0], sizes = [8, 1], strides = [1, 1]} : vector<8x4xf32> to vector<8x1xf32>
    %81 = vector.shape_cast %80 : vector<8x1xf32> to vector<8x1xf32>
    %82 = vector.broadcast %81 : vector<8x1xf32> to vector<8x16xf32>
    %83 = arith.select %9, %79, %82 : vector<8x16xi1>, vector<8x16xf32>
    %84 = vector.extract_strided_slice %68 {offsets = [0, 1], sizes = [8, 1], strides = [1, 1]} : vector<8x4xf32> to vector<8x1xf32>
    %85 = vector.shape_cast %84 : vector<8x1xf32> to vector<8x1xf32>
    %86 = vector.broadcast %85 : vector<8x1xf32> to vector<8x16xf32>
    %87 = vector.extract_strided_slice %64 {offsets = [0, 1], sizes = [8, 1], strides = [1, 1]} : vector<8x4xf32> to vector<8x1xf32>
    %88 = vector.shape_cast %87 : vector<8x1xf32> to vector<8x1xf32>
    %89 = vector.broadcast %88 : vector<8x1xf32> to vector<8x16xf32>
    %90 = arith.select %14, %86, %89 : vector<8x16xi1>, vector<8x16xf32>
    %91 = vector.extract_strided_slice %69 {offsets = [0, 1], sizes = [8, 1], strides = [1, 1]} : vector<8x4xf32> to vector<8x1xf32>
    %92 = vector.shape_cast %91 : vector<8x1xf32> to vector<8x1xf32>
    %93 = vector.broadcast %92 : vector<8x1xf32> to vector<8x16xf32>
    %94 = vector.extract_strided_slice %67 {offsets = [0, 1], sizes = [8, 1], strides = [1, 1]} : vector<8x4xf32> to vector<8x1xf32>
    %95 = vector.shape_cast %94 : vector<8x1xf32> to vector<8x1xf32>
    %96 = vector.broadcast %95 : vector<8x1xf32> to vector<8x16xf32>
    %97 = arith.select %14, %93, %96 : vector<8x16xi1>, vector<8x16xf32>
    %98 = vector.extract_strided_slice %68 {offsets = [0, 2], sizes = [8, 1], strides = [1, 1]} : vector<8x4xf32> to vector<8x1xf32>
    %99 = vector.shape_cast %98 : vector<8x1xf32> to vector<8x1xf32>
    %100 = vector.broadcast %99 : vector<8x1xf32> to vector<8x16xf32>
    %101 = vector.extract_strided_slice %64 {offsets = [0, 2], sizes = [8, 1], strides = [1, 1]} : vector<8x4xf32> to vector<8x1xf32>
    %102 = vector.shape_cast %101 : vector<8x1xf32> to vector<8x1xf32>
    %103 = vector.broadcast %102 : vector<8x1xf32> to vector<8x16xf32>
    %104 = arith.select %19, %100, %103 : vector<8x16xi1>, vector<8x16xf32>
    %105 = vector.extract_strided_slice %69 {offsets = [0, 2], sizes = [8, 1], strides = [1, 1]} : vector<8x4xf32> to vector<8x1xf32>
    %106 = vector.shape_cast %105 : vector<8x1xf32> to vector<8x1xf32>
    %107 = vector.broadcast %106 : vector<8x1xf32> to vector<8x16xf32>
    %108 = vector.extract_strided_slice %67 {offsets = [0, 2], sizes = [8, 1], strides = [1, 1]} : vector<8x4xf32> to vector<8x1xf32>
    %109 = vector.shape_cast %108 : vector<8x1xf32> to vector<8x1xf32>
    %110 = vector.broadcast %109 : vector<8x1xf32> to vector<8x16xf32>
    %111 = arith.select %19, %107, %110 : vector<8x16xi1>, vector<8x16xf32>
    %112 = vector.extract_strided_slice %68 {offsets = [0, 3], sizes = [8, 1], strides = [1, 1]} : vector<8x4xf32> to vector<8x1xf32>
    %113 = vector.shape_cast %112 : vector<8x1xf32> to vector<8x1xf32>
    %114 = vector.broadcast %113 : vector<8x1xf32> to vector<8x16xf32>
    %115 = vector.extract_strided_slice %64 {offsets = [0, 3], sizes = [8, 1], strides = [1, 1]} : vector<8x4xf32> to vector<8x1xf32>
    %116 = vector.shape_cast %115 : vector<8x1xf32> to vector<8x1xf32>
    %117 = vector.broadcast %116 : vector<8x1xf32> to vector<8x16xf32>
    %118 = arith.select %24, %114, %117 : vector<8x16xi1>, vector<8x16xf32>
    %119 = vector.extract_strided_slice %69 {offsets = [0, 3], sizes = [8, 1], strides = [1, 1]} : vector<8x4xf32> to vector<8x1xf32>
    %120 = vector.shape_cast %119 : vector<8x1xf32> to vector<8x1xf32>
    %121 = vector.broadcast %120 : vector<8x1xf32> to vector<8x16xf32>
    %122 = vector.extract_strided_slice %67 {offsets = [0, 3], sizes = [8, 1], strides = [1, 1]} : vector<8x4xf32> to vector<8x1xf32>
    %123 = vector.shape_cast %122 : vector<8x1xf32> to vector<8x1xf32>
    %124 = vector.broadcast %123 : vector<8x1xf32> to vector<8x16xf32>
    %125 = arith.select %24, %121, %124 : vector<8x16xi1>, vector<8x16xf32>
    %126 = arith.mulf %76, %90 : vector<8x16xf32>
    %127 = arith.mulf %83, %97 : vector<8x16xf32>
    %128 = arith.subf %126, %127 : vector<8x16xf32>
    %129 = arith.mulf %76, %97 : vector<8x16xf32>
    %130 = arith.mulf %83, %90 : vector<8x16xf32>
    %131 = arith.addf %129, %130 : vector<8x16xf32>
    %132 = arith.mulf %104, %118 : vector<8x16xf32>
    %133 = arith.mulf %111, %125 : vector<8x16xf32>
    %134 = arith.subf %132, %133 : vector<8x16xf32>
    %135 = arith.mulf %104, %125 : vector<8x16xf32>
    %136 = arith.mulf %111, %118 : vector<8x16xf32>
    %137 = arith.addf %135, %136 : vector<8x16xf32>
    %138 = arith.mulf %128, %134 : vector<8x16xf32>
    %139 = arith.mulf %131, %137 : vector<8x16xf32>
    %140 = arith.subf %138, %139 : vector<8x16xf32>
    %141 = arith.mulf %128, %137 : vector<8x16xf32>
    %142 = arith.mulf %131, %134 : vector<8x16xf32>
    %143 = arith.addf %141, %142 : vector<8x16xf32>
    %144 = tpu.concatenate %140, %143 in 1 : vector<8x16xf32>, vector<8x16xf32> -> vector<8x32xf32>
    %cst_28 = arith.constant dense<0.000000e+00> : vector<8x128xf32>
    %145 = tpu.matmul %144, %1, %cst_28 {dimension_numbers = #tpu.dot_dimension_numbers<[1], [0], [0], [1], [0, 0, 1, 1], [], []>} : vector<8x32xf32>, vector<32x128xf32>, vector<8x128xf32> -> vector<8x128xf32>
    %146 = arith.mulf %145, %145 : vector<8x128xf32>
    %cst_29 = arith.constant dense<0.000000e+00> : vector<8x16xf32>
    %147 = tpu.matmul %146, %2, %cst_29 {dimension_numbers = #tpu.dot_dimension_numbers<[1], [0], [0], [1], [0, 0, 1, 1], [], []>} : vector<8x128xf32>, vector<128x16xf32>, vector<8x16xf32> -> vector<8x16xf32>
    %cst_30 = arith.constant 0.000000e+00 : f32
    %148 = vector.broadcast %cst_30 : f32 to vector<8x16xf32>
    %149 = arith.subf %148, %147 : vector<8x16xf32>
    %150 = math.exp %149 : vector<8x16xf32>
    %cst_31 = arith.constant 1.000000e+00 : f32
    %151 = vector.broadcast %cst_31 : f32 to vector<8x16xf32>
    %152 = arith.addf %151, %150 : vector<8x16xf32>
    %153 = tpu.reciprocal %152 {approx = true} : vector<8x16xf32> -> vector<8x16xf32>
    %154 = arith.mulf %152, %153 : vector<8x16xf32>
    %cst_32 = arith.constant 2.000000e+00 : f32
    %155 = vector.broadcast %cst_32 : f32 to vector<8x16xf32>
    %156 = arith.subf %155, %154 : vector<8x16xf32>
    %157 = arith.mulf %153, %156 : vector<8x16xf32>
    %158 = vector.extract_strided_slice %157 {offsets = [0, 0], sizes = [8, 4], strides = [1, 1]} : vector<8x16xf32> to vector<8x4xf32>
    %159 = vector.extract_strided_slice %157 {offsets = [0, 4], sizes = [8, 4], strides = [1, 1]} : vector<8x16xf32> to vector<8x4xf32>
    %160 = vector.extract_strided_slice %157 {offsets = [0, 8], sizes = [8, 4], strides = [1, 1]} : vector<8x16xf32> to vector<8x4xf32>
    %cst_33 = arith.constant 2.000000e+00 : f32
    %161 = vector.broadcast %cst_33 : f32 to vector<8x4xf32>
    %162 = arith.mulf %161, %160 : vector<8x4xf32>
    %cst_34 = arith.constant 1.000000e+00 : f32
    %163 = vector.broadcast %cst_34 : f32 to vector<8x4xf32>
    %164 = arith.subf %162, %163 : vector<8x4xf32>
    %165 = vector.extract_strided_slice %157 {offsets = [0, 12], sizes = [8, 4], strides = [1, 1]} : vector<8x16xf32> to vector<8x4xf32>
    %166 = arith.mulf %158, %26 : vector<8x4xf32>
    %167 = arith.mulf %159, %164 : vector<8x4xf32>
    %168 = arith.addf %166, %167 : vector<8x4xf32>
    %169 = math.tanh %168 : vector<8x4xf32>
    %170 = arith.mulf %165, %169 : vector<8x4xf32>
    %171 = arith.mulf %170, %170 : vector<8x4xf32>
    %172 = tpu.concatenate %170, %171 in 1 : vector<8x4xf32>, vector<8x4xf32> -> vector<8x8xf32>
    %173 = arith.mulf %172, %172 : vector<8x8xf32>
    %cst_35 = arith.constant 1.000000e+00 : f32
    %174 = vector.broadcast %cst_35 : f32 to vector<8x8xf32>
    %175 = arith.addf %174, %173 : vector<8x8xf32>
    %176 = math.rsqrt %175 : vector<8x8xf32>
    %cst_36 = arith.constant 1.000000e+00 : f32
    %177 = vector.broadcast %cst_36 : f32 to vector<8x8xf32>
    %178 = arith.addf %177, %176 : vector<8x8xf32>
    %cst_37 = arith.constant 5.000000e-01 : f32
    %179 = vector.broadcast %cst_37 : f32 to vector<8x8xf32>
    %180 = arith.mulf %178, %179 : vector<8x8xf32>
    %cst_38 = arith.constant 1.000000e+00 : f32
    %181 = vector.broadcast %cst_38 : f32 to vector<8x8xf32>
    %182 = arith.subf %181, %176 : vector<8x8xf32>
    %cst_39 = arith.constant 5.000000e-01 : f32
    %183 = vector.broadcast %cst_39 : f32 to vector<8x8xf32>
    %184 = arith.mulf %182, %183 : vector<8x8xf32>
    %cst_40 = arith.constant 0.000000e+00 : f32
    %185 = vector.broadcast %cst_40 : f32 to vector<8x8xf32>
    %186 = arith.maximumf %184, %185 : vector<8x8xf32>
    %187 = tpu.concatenate %180, %186 in 1 : vector<8x8xf32>, vector<8x8xf32> -> vector<8x16xf32>
    %188 = math.sqrt %187 : vector<8x16xf32>
    %189 = vector.extract_strided_slice %188 {offsets = [0, 0], sizes = [8, 4], strides = [1, 1]} : vector<8x16xf32> to vector<8x4xf32>
    %190 = vector.extract_strided_slice %188 {offsets = [0, 4], sizes = [8, 4], strides = [1, 1]} : vector<8x16xf32> to vector<8x4xf32>
    %cst_41 = arith.constant 0.000000e+00 : f32
    %191 = vector.broadcast %cst_41 : f32 to vector<8x4xf32>
    %192 = arith.cmpf oge, %170, %191 : vector<8x4xf32>
    %193 = vector.extract_strided_slice %188 {offsets = [0, 8], sizes = [8, 4], strides = [1, 1]} : vector<8x16xf32> to vector<8x4xf32>
    %194 = vector.extract_strided_slice %188 {offsets = [0, 8], sizes = [8, 4], strides = [1, 1]} : vector<8x16xf32> to vector<8x4xf32>
    %cst_42 = arith.constant 0.000000e+00 : f32
    %195 = vector.broadcast %cst_42 : f32 to vector<8x4xf32>
    %196 = arith.subf %195, %194 : vector<8x4xf32>
    %197 = arith.select %192, %193, %196 : vector<8x4xi1>, vector<8x4xf32>
    %198 = vector.extract_strided_slice %188 {offsets = [0, 12], sizes = [8, 4], strides = [1, 1]} : vector<8x16xf32> to vector<8x4xf32>
    %199 = arith.subf %189, %197 : vector<8x4xf32>
    %cst_43 = arith.constant 0.707106769 : f32
    %200 = vector.broadcast %cst_43 : f32 to vector<8x4xf32>
    %201 = arith.mulf %199, %200 : vector<8x4xf32>
    %202 = arith.addf %189, %197 : vector<8x4xf32>
    %cst_44 = arith.constant 0.707106769 : f32
    %203 = vector.broadcast %cst_44 : f32 to vector<8x4xf32>
    %204 = arith.mulf %202, %203 : vector<8x4xf32>
    %205 = arith.mulf %201, %190 : vector<8x4xf32>
    %206 = arith.mulf %201, %198 : vector<8x4xf32>
    %cst_45 = arith.constant 0.000000e+00 : f32
    %207 = vector.broadcast %cst_45 : f32 to vector<8x4xf32>
    %208 = arith.subf %207, %206 : vector<8x4xf32>
    %209 = arith.mulf %204, %190 : vector<8x4xf32>
    %210 = arith.mulf %204, %198 : vector<8x4xf32>
    %211 = vector.extract_strided_slice %209 {offsets = [0, 0], sizes = [8, 1], strides = [1, 1]} : vector<8x4xf32> to vector<8x1xf32>
    %212 = vector.shape_cast %211 : vector<8x1xf32> to vector<8x1xf32>
    %213 = vector.broadcast %212 : vector<8x1xf32> to vector<8x16xf32>
    %214 = vector.extract_strided_slice %205 {offsets = [0, 0], sizes = [8, 1], strides = [1, 1]} : vector<8x4xf32> to vector<8x1xf32>
    %215 = vector.shape_cast %214 : vector<8x1xf32> to vector<8x1xf32>
    %216 = vector.broadcast %215 : vector<8x1xf32> to vector<8x16xf32>
    %217 = arith.select %9, %213, %216 : vector<8x16xi1>, vector<8x16xf32>
    %218 = vector.extract_strided_slice %210 {offsets = [0, 0], sizes = [8, 1], strides = [1, 1]} : vector<8x4xf32> to vector<8x1xf32>
    %219 = vector.shape_cast %218 : vector<8x1xf32> to vector<8x1xf32>
    %220 = vector.broadcast %219 : vector<8x1xf32> to vector<8x16xf32>
    %221 = vector.extract_strided_slice %208 {offsets = [0, 0], sizes = [8, 1], strides = [1, 1]} : vector<8x4xf32> to vector<8x1xf32>
    %222 = vector.shape_cast %221 : vector<8x1xf32> to vector<8x1xf32>
    %223 = vector.broadcast %222 : vector<8x1xf32> to vector<8x16xf32>
    %224 = arith.select %9, %220, %223 : vector<8x16xi1>, vector<8x16xf32>
    %225 = vector.extract_strided_slice %209 {offsets = [0, 1], sizes = [8, 1], strides = [1, 1]} : vector<8x4xf32> to vector<8x1xf32>
    %226 = vector.shape_cast %225 : vector<8x1xf32> to vector<8x1xf32>
    %227 = vector.broadcast %226 : vector<8x1xf32> to vector<8x16xf32>
    %228 = vector.extract_strided_slice %205 {offsets = [0, 1], sizes = [8, 1], strides = [1, 1]} : vector<8x4xf32> to vector<8x1xf32>
    %229 = vector.shape_cast %228 : vector<8x1xf32> to vector<8x1xf32>
    %230 = vector.broadcast %229 : vector<8x1xf32> to vector<8x16xf32>
    %231 = arith.select %14, %227, %230 : vector<8x16xi1>, vector<8x16xf32>
    %232 = vector.extract_strided_slice %210 {offsets = [0, 1], sizes = [8, 1], strides = [1, 1]} : vector<8x4xf32> to vector<8x1xf32>
    %233 = vector.shape_cast %232 : vector<8x1xf32> to vector<8x1xf32>
    %234 = vector.broadcast %233 : vector<8x1xf32> to vector<8x16xf32>
    %235 = vector.extract_strided_slice %208 {offsets = [0, 1], sizes = [8, 1], strides = [1, 1]} : vector<8x4xf32> to vector<8x1xf32>
    %236 = vector.shape_cast %235 : vector<8x1xf32> to vector<8x1xf32>
    %237 = vector.broadcast %236 : vector<8x1xf32> to vector<8x16xf32>
    %238 = arith.select %14, %234, %237 : vector<8x16xi1>, vector<8x16xf32>
    %239 = vector.extract_strided_slice %209 {offsets = [0, 2], sizes = [8, 1], strides = [1, 1]} : vector<8x4xf32> to vector<8x1xf32>
    %240 = vector.shape_cast %239 : vector<8x1xf32> to vector<8x1xf32>
    %241 = vector.broadcast %240 : vector<8x1xf32> to vector<8x16xf32>
    %242 = vector.extract_strided_slice %205 {offsets = [0, 2], sizes = [8, 1], strides = [1, 1]} : vector<8x4xf32> to vector<8x1xf32>
    %243 = vector.shape_cast %242 : vector<8x1xf32> to vector<8x1xf32>
    %244 = vector.broadcast %243 : vector<8x1xf32> to vector<8x16xf32>
    %245 = arith.select %19, %241, %244 : vector<8x16xi1>, vector<8x16xf32>
    %246 = vector.extract_strided_slice %210 {offsets = [0, 2], sizes = [8, 1], strides = [1, 1]} : vector<8x4xf32> to vector<8x1xf32>
    %247 = vector.shape_cast %246 : vector<8x1xf32> to vector<8x1xf32>
    %248 = vector.broadcast %247 : vector<8x1xf32> to vector<8x16xf32>
    %249 = vector.extract_strided_slice %208 {offsets = [0, 2], sizes = [8, 1], strides = [1, 1]} : vector<8x4xf32> to vector<8x1xf32>
    %250 = vector.shape_cast %249 : vector<8x1xf32> to vector<8x1xf32>
    %251 = vector.broadcast %250 : vector<8x1xf32> to vector<8x16xf32>
    %252 = arith.select %19, %248, %251 : vector<8x16xi1>, vector<8x16xf32>
    %253 = vector.extract_strided_slice %209 {offsets = [0, 3], sizes = [8, 1], strides = [1, 1]} : vector<8x4xf32> to vector<8x1xf32>
    %254 = vector.shape_cast %253 : vector<8x1xf32> to vector<8x1xf32>
    %255 = vector.broadcast %254 : vector<8x1xf32> to vector<8x16xf32>
    %256 = vector.extract_strided_slice %205 {offsets = [0, 3], sizes = [8, 1], strides = [1, 1]} : vector<8x4xf32> to vector<8x1xf32>
    %257 = vector.shape_cast %256 : vector<8x1xf32> to vector<8x1xf32>
    %258 = vector.broadcast %257 : vector<8x1xf32> to vector<8x16xf32>
    %259 = arith.select %24, %255, %258 : vector<8x16xi1>, vector<8x16xf32>
    %260 = vector.extract_strided_slice %210 {offsets = [0, 3], sizes = [8, 1], strides = [1, 1]} : vector<8x4xf32> to vector<8x1xf32>
    %261 = vector.shape_cast %260 : vector<8x1xf32> to vector<8x1xf32>
    %262 = vector.broadcast %261 : vector<8x1xf32> to vector<8x16xf32>
    %263 = vector.extract_strided_slice %208 {offsets = [0, 3], sizes = [8, 1], strides = [1, 1]} : vector<8x4xf32> to vector<8x1xf32>
    %264 = vector.shape_cast %263 : vector<8x1xf32> to vector<8x1xf32>
    %265 = vector.broadcast %264 : vector<8x1xf32> to vector<8x16xf32>
    %266 = arith.select %24, %262, %265 : vector<8x16xi1>, vector<8x16xf32>
    %267 = arith.mulf %217, %231 : vector<8x16xf32>
    %268 = arith.mulf %224, %238 : vector<8x16xf32>
    %269 = arith.subf %267, %268 : vector<8x16xf32>
    %270 = arith.mulf %217, %238 : vector<8x16xf32>
    %271 = arith.mulf %224, %231 : vector<8x16xf32>
    %272 = arith.addf %270, %271 : vector<8x16xf32>
    %273 = arith.mulf %245, %259 : vector<8x16xf32>
    %274 = arith.mulf %252, %266 : vector<8x16xf32>
    %275 = arith.subf %273, %274 : vector<8x16xf32>
    %276 = arith.mulf %245, %266 : vector<8x16xf32>
    %277 = arith.mulf %252, %259 : vector<8x16xf32>
    %278 = arith.addf %276, %277 : vector<8x16xf32>
    %279 = arith.mulf %269, %275 : vector<8x16xf32>
    %280 = arith.mulf %272, %278 : vector<8x16xf32>
    %281 = arith.subf %279, %280 : vector<8x16xf32>
    %282 = arith.mulf %269, %278 : vector<8x16xf32>
    %283 = arith.mulf %272, %275 : vector<8x16xf32>
    %284 = arith.addf %282, %283 : vector<8x16xf32>
    %285 = tpu.concatenate %281, %284 in 1 : vector<8x16xf32>, vector<8x16xf32> -> vector<8x32xf32>
    %cst_46 = arith.constant dense<0.000000e+00> : vector<8x64xf32>
    %286 = tpu.matmul %285, %3, %cst_46 {dimension_numbers = #tpu.dot_dimension_numbers<[1], [0], [0], [1], [0, 0, 1, 1], [], []>} : vector<8x32xf32>, vector<32x64xf32>, vector<8x64xf32> -> vector<8x64xf32>
    %287 = arith.mulf %286, %286 : vector<8x64xf32>
    %cst_47 = arith.constant dense<0.000000e+00> : vector<8x5xf32>
    %288 = tpu.matmul %287, %4, %cst_47 {dimension_numbers = #tpu.dot_dimension_numbers<[1], [0], [0], [1], [0, 0, 1, 1], [], []>} : vector<8x64xf32>, vector<64x5xf32>, vector<8x5xf32> -> vector<8x5xf32>
    %289 = vector.extract_strided_slice %288 {offsets = [0, 0], sizes = [8, 4], strides = [1, 1]} : vector<8x5xf32> to vector<8x4xf32>
    %c1 = arith.constant 1 : index
    %c0_48 = arith.constant 0 : index
    %c0_49 = arith.constant 0 : index
    %290 = vector.load %arg0[%c1, %c0_48, %c0_49] : memref<8x8x4xf32, #tpu.memory_space<vmem>>, vector<1x8x4xf32>
    %291 = vector.shape_cast %290 : vector<1x8x4xf32> to vector<8x4xf32>
    %292 = arith.addf %291, %289 : vector<8x4xf32>
    %293 = arith.mulf %292, %292 : vector<8x4xf32>
    %294 = tpu.concatenate %292, %293 in 1 : vector<8x4xf32>, vector<8x4xf32> -> vector<8x8xf32>
    %295 = arith.mulf %294, %294 : vector<8x8xf32>
    %cst_50 = arith.constant 1.000000e+00 : f32
    %296 = vector.broadcast %cst_50 : f32 to vector<8x8xf32>
    %297 = arith.addf %296, %295 : vector<8x8xf32>
    %298 = math.rsqrt %297 : vector<8x8xf32>
    %cst_51 = arith.constant 1.000000e+00 : f32
    %299 = vector.broadcast %cst_51 : f32 to vector<8x8xf32>
    %300 = arith.addf %299, %298 : vector<8x8xf32>
    %cst_52 = arith.constant 5.000000e-01 : f32
    %301 = vector.broadcast %cst_52 : f32 to vector<8x8xf32>
    %302 = arith.mulf %300, %301 : vector<8x8xf32>
    %cst_53 = arith.constant 1.000000e+00 : f32
    %303 = vector.broadcast %cst_53 : f32 to vector<8x8xf32>
    %304 = arith.subf %303, %298 : vector<8x8xf32>
    %cst_54 = arith.constant 5.000000e-01 : f32
    %305 = vector.broadcast %cst_54 : f32 to vector<8x8xf32>
    %306 = arith.mulf %304, %305 : vector<8x8xf32>
    %cst_55 = arith.constant 0.000000e+00 : f32
    %307 = vector.broadcast %cst_55 : f32 to vector<8x8xf32>
    %308 = arith.maximumf %306, %307 : vector<8x8xf32>
    %309 = tpu.concatenate %302, %308 in 1 : vector<8x8xf32>, vector<8x8xf32> -> vector<8x16xf32>
    %310 = math.sqrt %309 : vector<8x16xf32>
    %311 = vector.extract_strided_slice %310 {offsets = [0, 0], sizes = [8, 4], strides = [1, 1]} : vector<8x16xf32> to vector<8x4xf32>
    %312 = vector.extract_strided_slice %310 {offsets = [0, 4], sizes = [8, 4], strides = [1, 1]} : vector<8x16xf32> to vector<8x4xf32>
    %cst_56 = arith.constant 0.000000e+00 : f32
    %313 = vector.broadcast %cst_56 : f32 to vector<8x4xf32>
    %314 = arith.cmpf oge, %292, %313 : vector<8x4xf32>
    %315 = vector.extract_strided_slice %310 {offsets = [0, 8], sizes = [8, 4], strides = [1, 1]} : vector<8x16xf32> to vector<8x4xf32>
    %316 = vector.extract_strided_slice %310 {offsets = [0, 8], sizes = [8, 4], strides = [1, 1]} : vector<8x16xf32> to vector<8x4xf32>
    %cst_57 = arith.constant 0.000000e+00 : f32
    %317 = vector.broadcast %cst_57 : f32 to vector<8x4xf32>
    %318 = arith.subf %317, %316 : vector<8x4xf32>
    %319 = arith.select %314, %315, %318 : vector<8x4xi1>, vector<8x4xf32>
    %320 = vector.extract_strided_slice %310 {offsets = [0, 12], sizes = [8, 4], strides = [1, 1]} : vector<8x16xf32> to vector<8x4xf32>
    %321 = arith.subf %311, %319 : vector<8x4xf32>
    %cst_58 = arith.constant 0.707106769 : f32
    %322 = vector.broadcast %cst_58 : f32 to vector<8x4xf32>
    %323 = arith.mulf %321, %322 : vector<8x4xf32>
    %324 = arith.addf %311, %319 : vector<8x4xf32>
    %cst_59 = arith.constant 0.707106769 : f32
    %325 = vector.broadcast %cst_59 : f32 to vector<8x4xf32>
    %326 = arith.mulf %324, %325 : vector<8x4xf32>
    %327 = arith.mulf %323, %312 : vector<8x4xf32>
    %328 = arith.mulf %323, %320 : vector<8x4xf32>
    %cst_60 = arith.constant 0.000000e+00 : f32
    %329 = vector.broadcast %cst_60 : f32 to vector<8x4xf32>
    %330 = arith.subf %329, %328 : vector<8x4xf32>
    %331 = arith.mulf %326, %312 : vector<8x4xf32>
    %332 = arith.mulf %326, %320 : vector<8x4xf32>
    %333 = vector.extract_strided_slice %331 {offsets = [0, 0], sizes = [8, 1], strides = [1, 1]} : vector<8x4xf32> to vector<8x1xf32>
    %334 = vector.shape_cast %333 : vector<8x1xf32> to vector<8x1xf32>
    %335 = vector.broadcast %334 : vector<8x1xf32> to vector<8x16xf32>
    %336 = vector.extract_strided_slice %327 {offsets = [0, 0], sizes = [8, 1], strides = [1, 1]} : vector<8x4xf32> to vector<8x1xf32>
    %337 = vector.shape_cast %336 : vector<8x1xf32> to vector<8x1xf32>
    %338 = vector.broadcast %337 : vector<8x1xf32> to vector<8x16xf32>
    %339 = arith.select %9, %335, %338 : vector<8x16xi1>, vector<8x16xf32>
    %340 = vector.extract_strided_slice %332 {offsets = [0, 0], sizes = [8, 1], strides = [1, 1]} : vector<8x4xf32> to vector<8x1xf32>
    %341 = vector.shape_cast %340 : vector<8x1xf32> to vector<8x1xf32>
    %342 = vector.broadcast %341 : vector<8x1xf32> to vector<8x16xf32>
    %343 = vector.extract_strided_slice %330 {offsets = [0, 0], sizes = [8, 1], strides = [1, 1]} : vector<8x4xf32> to vector<8x1xf32>
    %344 = vector.shape_cast %343 : vector<8x1xf32> to vector<8x1xf32>
    %345 = vector.broadcast %344 : vector<8x1xf32> to vector<8x16xf32>
    %346 = arith.select %9, %342, %345 : vector<8x16xi1>, vector<8x16xf32>
    %347 = vector.extract_strided_slice %331 {offsets = [0, 1], sizes = [8, 1], strides = [1, 1]} : vector<8x4xf32> to vector<8x1xf32>
    %348 = vector.shape_cast %347 : vector<8x1xf32> to vector<8x1xf32>
    %349 = vector.broadcast %348 : vector<8x1xf32> to vector<8x16xf32>
    %350 = vector.extract_strided_slice %327 {offsets = [0, 1], sizes = [8, 1], strides = [1, 1]} : vector<8x4xf32> to vector<8x1xf32>
    %351 = vector.shape_cast %350 : vector<8x1xf32> to vector<8x1xf32>
    %352 = vector.broadcast %351 : vector<8x1xf32> to vector<8x16xf32>
    %353 = arith.select %14, %349, %352 : vector<8x16xi1>, vector<8x16xf32>
    %354 = vector.extract_strided_slice %332 {offsets = [0, 1], sizes = [8, 1], strides = [1, 1]} : vector<8x4xf32> to vector<8x1xf32>
    %355 = vector.shape_cast %354 : vector<8x1xf32> to vector<8x1xf32>
    %356 = vector.broadcast %355 : vector<8x1xf32> to vector<8x16xf32>
    %357 = vector.extract_strided_slice %330 {offsets = [0, 1], sizes = [8, 1], strides = [1, 1]} : vector<8x4xf32> to vector<8x1xf32>
    %358 = vector.shape_cast %357 : vector<8x1xf32> to vector<8x1xf32>
    %359 = vector.broadcast %358 : vector<8x1xf32> to vector<8x16xf32>
    %360 = arith.select %14, %356, %359 : vector<8x16xi1>, vector<8x16xf32>
    %361 = vector.extract_strided_slice %331 {offsets = [0, 2], sizes = [8, 1], strides = [1, 1]} : vector<8x4xf32> to vector<8x1xf32>
    %362 = vector.shape_cast %361 : vector<8x1xf32> to vector<8x1xf32>
    %363 = vector.broadcast %362 : vector<8x1xf32> to vector<8x16xf32>
    %364 = vector.extract_strided_slice %327 {offsets = [0, 2], sizes = [8, 1], strides = [1, 1]} : vector<8x4xf32> to vector<8x1xf32>
    %365 = vector.shape_cast %364 : vector<8x1xf32> to vector<8x1xf32>
    %366 = vector.broadcast %365 : vector<8x1xf32> to vector<8x16xf32>
    %367 = arith.select %19, %363, %366 : vector<8x16xi1>, vector<8x16xf32>
    %368 = vector.extract_strided_slice %332 {offsets = [0, 2], sizes = [8, 1], strides = [1, 1]} : vector<8x4xf32> to vector<8x1xf32>
    %369 = vector.shape_cast %368 : vector<8x1xf32> to vector<8x1xf32>
    %370 = vector.broadcast %369 : vector<8x1xf32> to vector<8x16xf32>
    %371 = vector.extract_strided_slice %330 {offsets = [0, 2], sizes = [8, 1], strides = [1, 1]} : vector<8x4xf32> to vector<8x1xf32>
    %372 = vector.shape_cast %371 : vector<8x1xf32> to vector<8x1xf32>
    %373 = vector.broadcast %372 : vector<8x1xf32> to vector<8x16xf32>
    %374 = arith.select %19, %370, %373 : vector<8x16xi1>, vector<8x16xf32>
    %375 = vector.extract_strided_slice %331 {offsets = [0, 3], sizes = [8, 1], strides = [1, 1]} : vector<8x4xf32> to vector<8x1xf32>
    %376 = vector.shape_cast %375 : vector<8x1xf32> to vector<8x1xf32>
    %377 = vector.broadcast %376 : vector<8x1xf32> to vector<8x16xf32>
    %378 = vector.extract_strided_slice %327 {offsets = [0, 3], sizes = [8, 1], strides = [1, 1]} : vector<8x4xf32> to vector<8x1xf32>
    %379 = vector.shape_cast %378 : vector<8x1xf32> to vector<8x1xf32>
    %380 = vector.broadcast %379 : vector<8x1xf32> to vector<8x16xf32>
    %381 = arith.select %24, %377, %380 : vector<8x16xi1>, vector<8x16xf32>
    %382 = vector.extract_strided_slice %332 {offsets = [0, 3], sizes = [8, 1], strides = [1, 1]} : vector<8x4xf32> to vector<8x1xf32>
    %383 = vector.shape_cast %382 : vector<8x1xf32> to vector<8x1xf32>
    %384 = vector.broadcast %383 : vector<8x1xf32> to vector<8x16xf32>
    %385 = vector.extract_strided_slice %330 {offsets = [0, 3], sizes = [8, 1], strides = [1, 1]} : vector<8x4xf32> to vector<8x1xf32>
    %386 = vector.shape_cast %385 : vector<8x1xf32> to vector<8x1xf32>
    %387 = vector.broadcast %386 : vector<8x1xf32> to vector<8x16xf32>
    %388 = arith.select %24, %384, %387 : vector<8x16xi1>, vector<8x16xf32>
    %389 = arith.mulf %339, %353 : vector<8x16xf32>
    %390 = arith.mulf %346, %360 : vector<8x16xf32>
    %391 = arith.subf %389, %390 : vector<8x16xf32>
    %392 = arith.mulf %339, %360 : vector<8x16xf32>
    %393 = arith.mulf %346, %353 : vector<8x16xf32>
    %394 = arith.addf %392, %393 : vector<8x16xf32>
    %395 = arith.mulf %367, %381 : vector<8x16xf32>
    %396 = arith.mulf %374, %388 : vector<8x16xf32>
    %397 = arith.subf %395, %396 : vector<8x16xf32>
    %398 = arith.mulf %367, %388 : vector<8x16xf32>
    %399 = arith.mulf %374, %381 : vector<8x16xf32>
    %400 = arith.addf %398, %399 : vector<8x16xf32>
    %401 = arith.mulf %391, %397 : vector<8x16xf32>
    %402 = arith.mulf %394, %400 : vector<8x16xf32>
    %403 = arith.subf %401, %402 : vector<8x16xf32>
    %404 = arith.mulf %391, %400 : vector<8x16xf32>
    %405 = arith.mulf %394, %397 : vector<8x16xf32>
    %406 = arith.addf %404, %405 : vector<8x16xf32>
    %407 = tpu.concatenate %403, %406 in 1 : vector<8x16xf32>, vector<8x16xf32> -> vector<8x32xf32>
    %cst_61 = arith.constant dense<0.000000e+00> : vector<8x128xf32>
    %408 = tpu.matmul %407, %1, %cst_61 {dimension_numbers = #tpu.dot_dimension_numbers<[1], [0], [0], [1], [0, 0, 1, 1], [], []>} : vector<8x32xf32>, vector<32x128xf32>, vector<8x128xf32> -> vector<8x128xf32>
    %409 = arith.mulf %408, %408 : vector<8x128xf32>
    %cst_62 = arith.constant dense<0.000000e+00> : vector<8x16xf32>
    %410 = tpu.matmul %409, %2, %cst_62 {dimension_numbers = #tpu.dot_dimension_numbers<[1], [0], [0], [1], [0, 0, 1, 1], [], []>} : vector<8x128xf32>, vector<128x16xf32>, vector<8x16xf32> -> vector<8x16xf32>
    %cst_63 = arith.constant 0.000000e+00 : f32
    %411 = vector.broadcast %cst_63 : f32 to vector<8x16xf32>
    %412 = arith.subf %411, %410 : vector<8x16xf32>
    %413 = math.exp %412 : vector<8x16xf32>
    %cst_64 = arith.constant 1.000000e+00 : f32
    %414 = vector.broadcast %cst_64 : f32 to vector<8x16xf32>
    %415 = arith.addf %414, %413 : vector<8x16xf32>
    %416 = tpu.reciprocal %415 {approx = true} : vector<8x16xf32> -> vector<8x16xf32>
    %417 = arith.mulf %415, %416 : vector<8x16xf32>
    %cst_65 = arith.constant 2.000000e+00 : f32
    %418 = vector.broadcast %cst_65 : f32 to vector<8x16xf32>
    %419 = arith.subf %418, %417 : vector<8x16xf32>
    %420 = arith.mulf %416, %419 : vector<8x16xf32>
    %421 = vector.extract_strided_slice %420 {offsets = [0, 0], sizes = [8, 4], strides = [1, 1]} : vector<8x16xf32> to vector<8x4xf32>
    %422 = vector.extract_strided_slice %420 {offsets = [0, 4], sizes = [8, 4], strides = [1, 1]} : vector<8x16xf32> to vector<8x4xf32>
    %423 = vector.extract_strided_slice %420 {offsets = [0, 8], sizes = [8, 4], strides = [1, 1]} : vector<8x16xf32> to vector<8x4xf32>
    %cst_66 = arith.constant 2.000000e+00 : f32
    %424 = vector.broadcast %cst_66 : f32 to vector<8x4xf32>
    %425 = arith.mulf %424, %423 : vector<8x4xf32>
    %cst_67 = arith.constant 1.000000e+00 : f32
    %426 = vector.broadcast %cst_67 : f32 to vector<8x4xf32>
    %427 = arith.subf %425, %426 : vector<8x4xf32>
    %428 = vector.extract_strided_slice %420 {offsets = [0, 12], sizes = [8, 4], strides = [1, 1]} : vector<8x16xf32> to vector<8x4xf32>
    %429 = arith.mulf %421, %168 : vector<8x4xf32>
    %430 = arith.mulf %422, %427 : vector<8x4xf32>
    %431 = arith.addf %429, %430 : vector<8x4xf32>
    %432 = math.tanh %431 : vector<8x4xf32>
    %433 = arith.mulf %428, %432 : vector<8x4xf32>
    %434 = arith.mulf %433, %433 : vector<8x4xf32>
    %435 = tpu.concatenate %433, %434 in 1 : vector<8x4xf32>, vector<8x4xf32> -> vector<8x8xf32>
    %436 = arith.mulf %435, %435 : vector<8x8xf32>
    %cst_68 = arith.constant 1.000000e+00 : f32
    %437 = vector.broadcast %cst_68 : f32 to vector<8x8xf32>
    %438 = arith.addf %437, %436 : vector<8x8xf32>
    %439 = math.rsqrt %438 : vector<8x8xf32>
    %cst_69 = arith.constant 1.000000e+00 : f32
    %440 = vector.broadcast %cst_69 : f32 to vector<8x8xf32>
    %441 = arith.addf %440, %439 : vector<8x8xf32>
    %cst_70 = arith.constant 5.000000e-01 : f32
    %442 = vector.broadcast %cst_70 : f32 to vector<8x8xf32>
    %443 = arith.mulf %441, %442 : vector<8x8xf32>
    %cst_71 = arith.constant 1.000000e+00 : f32
    %444 = vector.broadcast %cst_71 : f32 to vector<8x8xf32>
    %445 = arith.subf %444, %439 : vector<8x8xf32>
    %cst_72 = arith.constant 5.000000e-01 : f32
    %446 = vector.broadcast %cst_72 : f32 to vector<8x8xf32>
    %447 = arith.mulf %445, %446 : vector<8x8xf32>
    %cst_73 = arith.constant 0.000000e+00 : f32
    %448 = vector.broadcast %cst_73 : f32 to vector<8x8xf32>
    %449 = arith.maximumf %447, %448 : vector<8x8xf32>
    %450 = tpu.concatenate %443, %449 in 1 : vector<8x8xf32>, vector<8x8xf32> -> vector<8x16xf32>
    %451 = math.sqrt %450 : vector<8x16xf32>
    %452 = vector.extract_strided_slice %451 {offsets = [0, 0], sizes = [8, 4], strides = [1, 1]} : vector<8x16xf32> to vector<8x4xf32>
    %453 = vector.extract_strided_slice %451 {offsets = [0, 4], sizes = [8, 4], strides = [1, 1]} : vector<8x16xf32> to vector<8x4xf32>
    %cst_74 = arith.constant 0.000000e+00 : f32
    %454 = vector.broadcast %cst_74 : f32 to vector<8x4xf32>
    %455 = arith.cmpf oge, %433, %454 : vector<8x4xf32>
    %456 = vector.extract_strided_slice %451 {offsets = [0, 8], sizes = [8, 4], strides = [1, 1]} : vector<8x16xf32> to vector<8x4xf32>
    %457 = vector.extract_strided_slice %451 {offsets = [0, 8], sizes = [8, 4], strides = [1, 1]} : vector<8x16xf32> to vector<8x4xf32>
    %cst_75 = arith.constant 0.000000e+00 : f32
    %458 = vector.broadcast %cst_75 : f32 to vector<8x4xf32>
    %459 = arith.subf %458, %457 : vector<8x4xf32>
    %460 = arith.select %455, %456, %459 : vector<8x4xi1>, vector<8x4xf32>
    %461 = vector.extract_strided_slice %451 {offsets = [0, 12], sizes = [8, 4], strides = [1, 1]} : vector<8x16xf32> to vector<8x4xf32>
    %462 = arith.subf %452, %460 : vector<8x4xf32>
    %cst_76 = arith.constant 0.707106769 : f32
    %463 = vector.broadcast %cst_76 : f32 to vector<8x4xf32>
    %464 = arith.mulf %462, %463 : vector<8x4xf32>
    %465 = arith.addf %452, %460 : vector<8x4xf32>
    %cst_77 = arith.constant 0.707106769 : f32
    %466 = vector.broadcast %cst_77 : f32 to vector<8x4xf32>
    %467 = arith.mulf %465, %466 : vector<8x4xf32>
    %468 = arith.mulf %464, %453 : vector<8x4xf32>
    %469 = arith.mulf %464, %461 : vector<8x4xf32>
    %cst_78 = arith.constant 0.000000e+00 : f32
    %470 = vector.broadcast %cst_78 : f32 to vector<8x4xf32>
    %471 = arith.subf %470, %469 : vector<8x4xf32>
    %472 = arith.mulf %467, %453 : vector<8x4xf32>
    %473 = arith.mulf %467, %461 : vector<8x4xf32>
    %474 = vector.extract_strided_slice %472 {offsets = [0, 0], sizes = [8, 1], strides = [1, 1]} : vector<8x4xf32> to vector<8x1xf32>
    %475 = vector.shape_cast %474 : vector<8x1xf32> to vector<8x1xf32>
    %476 = vector.broadcast %475 : vector<8x1xf32> to vector<8x16xf32>
    %477 = vector.extract_strided_slice %468 {offsets = [0, 0], sizes = [8, 1], strides = [1, 1]} : vector<8x4xf32> to vector<8x1xf32>
    %478 = vector.shape_cast %477 : vector<8x1xf32> to vector<8x1xf32>
    %479 = vector.broadcast %478 : vector<8x1xf32> to vector<8x16xf32>
    %480 = arith.select %9, %476, %479 : vector<8x16xi1>, vector<8x16xf32>
    %481 = vector.extract_strided_slice %473 {offsets = [0, 0], sizes = [8, 1], strides = [1, 1]} : vector<8x4xf32> to vector<8x1xf32>
    %482 = vector.shape_cast %481 : vector<8x1xf32> to vector<8x1xf32>
    %483 = vector.broadcast %482 : vector<8x1xf32> to vector<8x16xf32>
    %484 = vector.extract_strided_slice %471 {offsets = [0, 0], sizes = [8, 1], strides = [1, 1]} : vector<8x4xf32> to vector<8x1xf32>
    %485 = vector.shape_cast %484 : vector<8x1xf32> to vector<8x1xf32>
    %486 = vector.broadcast %485 : vector<8x1xf32> to vector<8x16xf32>
    %487 = arith.select %9, %483, %486 : vector<8x16xi1>, vector<8x16xf32>
    %488 = vector.extract_strided_slice %472 {offsets = [0, 1], sizes = [8, 1], strides = [1, 1]} : vector<8x4xf32> to vector<8x1xf32>
    %489 = vector.shape_cast %488 : vector<8x1xf32> to vector<8x1xf32>
    %490 = vector.broadcast %489 : vector<8x1xf32> to vector<8x16xf32>
    %491 = vector.extract_strided_slice %468 {offsets = [0, 1], sizes = [8, 1], strides = [1, 1]} : vector<8x4xf32> to vector<8x1xf32>
    %492 = vector.shape_cast %491 : vector<8x1xf32> to vector<8x1xf32>
    %493 = vector.broadcast %492 : vector<8x1xf32> to vector<8x16xf32>
    %494 = arith.select %14, %490, %493 : vector<8x16xi1>, vector<8x16xf32>
    %495 = vector.extract_strided_slice %473 {offsets = [0, 1], sizes = [8, 1], strides = [1, 1]} : vector<8x4xf32> to vector<8x1xf32>
    %496 = vector.shape_cast %495 : vector<8x1xf32> to vector<8x1xf32>
    %497 = vector.broadcast %496 : vector<8x1xf32> to vector<8x16xf32>
    %498 = vector.extract_strided_slice %471 {offsets = [0, 1], sizes = [8, 1], strides = [1, 1]} : vector<8x4xf32> to vector<8x1xf32>
    %499 = vector.shape_cast %498 : vector<8x1xf32> to vector<8x1xf32>
    %500 = vector.broadcast %499 : vector<8x1xf32> to vector<8x16xf32>
    %501 = arith.select %14, %497, %500 : vector<8x16xi1>, vector<8x16xf32>
    %502 = vector.extract_strided_slice %472 {offsets = [0, 2], sizes = [8, 1], strides = [1, 1]} : vector<8x4xf32> to vector<8x1xf32>
    %503 = vector.shape_cast %502 : vector<8x1xf32> to vector<8x1xf32>
    %504 = vector.broadcast %503 : vector<8x1xf32> to vector<8x16xf32>
    %505 = vector.extract_strided_slice %468 {offsets = [0, 2], sizes = [8, 1], strides = [1, 1]} : vector<8x4xf32> to vector<8x1xf32>
    %506 = vector.shape_cast %505 : vector<8x1xf32> to vector<8x1xf32>
    %507 = vector.broadcast %506 : vector<8x1xf32> to vector<8x16xf32>
    %508 = arith.select %19, %504, %507 : vector<8x16xi1>, vector<8x16xf32>
    %509 = vector.extract_strided_slice %473 {offsets = [0, 2], sizes = [8, 1], strides = [1, 1]} : vector<8x4xf32> to vector<8x1xf32>
    %510 = vector.shape_cast %509 : vector<8x1xf32> to vector<8x1xf32>
    %511 = vector.broadcast %510 : vector<8x1xf32> to vector<8x16xf32>
    %512 = vector.extract_strided_slice %471 {offsets = [0, 2], sizes = [8, 1], strides = [1, 1]} : vector<8x4xf32> to vector<8x1xf32>
    %513 = vector.shape_cast %512 : vector<8x1xf32> to vector<8x1xf32>
    %514 = vector.broadcast %513 : vector<8x1xf32> to vector<8x16xf32>
    %515 = arith.select %19, %511, %514 : vector<8x16xi1>, vector<8x16xf32>
    %516 = vector.extract_strided_slice %472 {offsets = [0, 3], sizes = [8, 1], strides = [1, 1]} : vector<8x4xf32> to vector<8x1xf32>
    %517 = vector.shape_cast %516 : vector<8x1xf32> to vector<8x1xf32>
    %518 = vector.broadcast %517 : vector<8x1xf32> to vector<8x16xf32>
    %519 = vector.extract_strided_slice %468 {offsets = [0, 3], sizes = [8, 1], strides = [1, 1]} : vector<8x4xf32> to vector<8x1xf32>
    %520 = vector.shape_cast %519 : vector<8x1xf32> to vector<8x1xf32>
    %521 = vector.broadcast %520 : vector<8x1xf32> to vector<8x16xf32>
    %522 = arith.select %24, %518, %521 : vector<8x16xi1>, vector<8x16xf32>
    %523 = vector.extract_strided_slice %473 {offsets = [0, 3], sizes = [8, 1], strides = [1, 1]} : vector<8x4xf32> to vector<8x1xf32>
    %524 = vector.shape_cast %523 : vector<8x1xf32> to vector<8x1xf32>
    %525 = vector.broadcast %524 : vector<8x1xf32> to vector<8x16xf32>
    %526 = vector.extract_strided_slice %471 {offsets = [0, 3], sizes = [8, 1], strides = [1, 1]} : vector<8x4xf32> to vector<8x1xf32>
    %527 = vector.shape_cast %526 : vector<8x1xf32> to vector<8x1xf32>
    %528 = vector.broadcast %527 : vector<8x1xf32> to vector<8x16xf32>
    %529 = arith.select %24, %525, %528 : vector<8x16xi1>, vector<8x16xf32>
    %530 = arith.mulf %480, %494 : vector<8x16xf32>
    %531 = arith.mulf %487, %501 : vector<8x16xf32>
    %532 = arith.subf %530, %531 : vector<8x16xf32>
    %533 = arith.mulf %480, %501 : vector<8x16xf32>
    %534 = arith.mulf %487, %494 : vector<8x16xf32>
    %535 = arith.addf %533, %534 : vector<8x16xf32>
    %536 = arith.mulf %508, %522 : vector<8x16xf32>
    %537 = arith.mulf %515, %529 : vector<8x16xf32>
    %538 = arith.subf %536, %537 : vector<8x16xf32>
    %539 = arith.mulf %508, %529 : vector<8x16xf32>
    %540 = arith.mulf %515, %522 : vector<8x16xf32>
    %541 = arith.addf %539, %540 : vector<8x16xf32>
    %542 = arith.mulf %532, %538 : vector<8x16xf32>
    %543 = arith.mulf %535, %541 : vector<8x16xf32>
    %544 = arith.subf %542, %543 : vector<8x16xf32>
    %545 = arith.mulf %532, %541 : vector<8x16xf32>
    %546 = arith.mulf %535, %538 : vector<8x16xf32>
    %547 = arith.addf %545, %546 : vector<8x16xf32>
    %548 = tpu.concatenate %544, %547 in 1 : vector<8x16xf32>, vector<8x16xf32> -> vector<8x32xf32>
    %cst_79 = arith.constant dense<0.000000e+00> : vector<8x64xf32>
    %549 = tpu.matmul %548, %3, %cst_79 {dimension_numbers = #tpu.dot_dimension_numbers<[1], [0], [0], [1], [0, 0, 1, 1], [], []>} : vector<8x32xf32>, vector<32x64xf32>, vector<8x64xf32> -> vector<8x64xf32>
    %550 = arith.mulf %549, %549 : vector<8x64xf32>
    %cst_80 = arith.constant dense<0.000000e+00> : vector<8x5xf32>
    %551 = tpu.matmul %550, %4, %cst_80 {dimension_numbers = #tpu.dot_dimension_numbers<[1], [0], [0], [1], [0, 0, 1, 1], [], []>} : vector<8x64xf32>, vector<64x5xf32>, vector<8x5xf32> -> vector<8x5xf32>
    %552 = vector.extract_strided_slice %551 {offsets = [0, 0], sizes = [8, 4], strides = [1, 1]} : vector<8x5xf32> to vector<8x4xf32>
    %c2 = arith.constant 2 : index
    %c0_81 = arith.constant 0 : index
    %c0_82 = arith.constant 0 : index
    %553 = vector.load %arg0[%c2, %c0_81, %c0_82] : memref<8x8x4xf32, #tpu.memory_space<vmem>>, vector<1x8x4xf32>
    %554 = vector.shape_cast %553 : vector<1x8x4xf32> to vector<8x4xf32>
    %555 = arith.addf %554, %552 : vector<8x4xf32>
    %556 = arith.mulf %555, %555 : vector<8x4xf32>
    %557 = tpu.concatenate %555, %556 in 1 : vector<8x4xf32>, vector<8x4xf32> -> vector<8x8xf32>
    %558 = arith.mulf %557, %557 : vector<8x8xf32>
    %cst_83 = arith.constant 1.000000e+00 : f32
    %559 = vector.broadcast %cst_83 : f32 to vector<8x8xf32>
    %560 = arith.addf %559, %558 : vector<8x8xf32>
    %561 = math.rsqrt %560 : vector<8x8xf32>
    %cst_84 = arith.constant 1.000000e+00 : f32
    %562 = vector.broadcast %cst_84 : f32 to vector<8x8xf32>
    %563 = arith.addf %562, %561 : vector<8x8xf32>
    %cst_85 = arith.constant 5.000000e-01 : f32
    %564 = vector.broadcast %cst_85 : f32 to vector<8x8xf32>
    %565 = arith.mulf %563, %564 : vector<8x8xf32>
    %cst_86 = arith.constant 1.000000e+00 : f32
    %566 = vector.broadcast %cst_86 : f32 to vector<8x8xf32>
    %567 = arith.subf %566, %561 : vector<8x8xf32>
    %cst_87 = arith.constant 5.000000e-01 : f32
    %568 = vector.broadcast %cst_87 : f32 to vector<8x8xf32>
    %569 = arith.mulf %567, %568 : vector<8x8xf32>
    %cst_88 = arith.constant 0.000000e+00 : f32
    %570 = vector.broadcast %cst_88 : f32 to vector<8x8xf32>
    %571 = arith.maximumf %569, %570 : vector<8x8xf32>
    %572 = tpu.concatenate %565, %571 in 1 : vector<8x8xf32>, vector<8x8xf32> -> vector<8x16xf32>
    %573 = math.sqrt %572 : vector<8x16xf32>
    %574 = vector.extract_strided_slice %573 {offsets = [0, 0], sizes = [8, 4], strides = [1, 1]} : vector<8x16xf32> to vector<8x4xf32>
    %575 = vector.extract_strided_slice %573 {offsets = [0, 4], sizes = [8, 4], strides = [1, 1]} : vector<8x16xf32> to vector<8x4xf32>
    %cst_89 = arith.constant 0.000000e+00 : f32
    %576 = vector.broadcast %cst_89 : f32 to vector<8x4xf32>
    %577 = arith.cmpf oge, %555, %576 : vector<8x4xf32>
    %578 = vector.extract_strided_slice %573 {offsets = [0, 8], sizes = [8, 4], strides = [1, 1]} : vector<8x16xf32> to vector<8x4xf32>
    %579 = vector.extract_strided_slice %573 {offsets = [0, 8], sizes = [8, 4], strides = [1, 1]} : vector<8x16xf32> to vector<8x4xf32>
    %cst_90 = arith.constant 0.000000e+00 : f32
    %580 = vector.broadcast %cst_90 : f32 to vector<8x4xf32>
    %581 = arith.subf %580, %579 : vector<8x4xf32>
    %582 = arith.select %577, %578, %581 : vector<8x4xi1>, vector<8x4xf32>
    %583 = vector.extract_strided_slice %573 {offsets = [0, 12], sizes = [8, 4], strides = [1, 1]} : vector<8x16xf32> to vector<8x4xf32>
    %584 = arith.subf %574, %582 : vector<8x4xf32>
    %cst_91 = arith.constant 0.707106769 : f32
    %585 = vector.broadcast %cst_91 : f32 to vector<8x4xf32>
    %586 = arith.mulf %584, %585 : vector<8x4xf32>
    %587 = arith.addf %574, %582 : vector<8x4xf32>
    %cst_92 = arith.constant 0.707106769 : f32
    %588 = vector.broadcast %cst_92 : f32 to vector<8x4xf32>
    %589 = arith.mulf %587, %588 : vector<8x4xf32>
    %590 = arith.mulf %586, %575 : vector<8x4xf32>
    %591 = arith.mulf %586, %583 : vector<8x4xf32>
    %cst_93 = arith.constant 0.000000e+00 : f32
    %592 = vector.broadcast %cst_93 : f32 to vector<8x4xf32>
    %593 = arith.subf %592, %591 : vector<8x4xf32>
    %594 = arith.mulf %589, %575 : vector<8x4xf32>
    %595 = arith.mulf %589, %583 : vector<8x4xf32>
    %596 = vector.extract_strided_slice %594 {offsets = [0, 0], sizes = [8, 1], strides = [1, 1]} : vector<8x4xf32> to vector<8x1xf32>
    %597 = vector.shape_cast %596 : vector<8x1xf32> to vector<8x1xf32>
    %598 = vector.broadcast %597 : vector<8x1xf32> to vector<8x16xf32>
    %599 = vector.extract_strided_slice %590 {offsets = [0, 0], sizes = [8, 1], strides = [1, 1]} : vector<8x4xf32> to vector<8x1xf32>
    %600 = vector.shape_cast %599 : vector<8x1xf32> to vector<8x1xf32>
    %601 = vector.broadcast %600 : vector<8x1xf32> to vector<8x16xf32>
    %602 = arith.select %9, %598, %601 : vector<8x16xi1>, vector<8x16xf32>
    %603 = vector.extract_strided_slice %595 {offsets = [0, 0], sizes = [8, 1], strides = [1, 1]} : vector<8x4xf32> to vector<8x1xf32>
    %604 = vector.shape_cast %603 : vector<8x1xf32> to vector<8x1xf32>
    %605 = vector.broadcast %604 : vector<8x1xf32> to vector<8x16xf32>
    %606 = vector.extract_strided_slice %593 {offsets = [0, 0], sizes = [8, 1], strides = [1, 1]} : vector<8x4xf32> to vector<8x1xf32>
    %607 = vector.shape_cast %606 : vector<8x1xf32> to vector<8x1xf32>
    %608 = vector.broadcast %607 : vector<8x1xf32> to vector<8x16xf32>
    %609 = arith.select %9, %605, %608 : vector<8x16xi1>, vector<8x16xf32>
    %610 = vector.extract_strided_slice %594 {offsets = [0, 1], sizes = [8, 1], strides = [1, 1]} : vector<8x4xf32> to vector<8x1xf32>
    %611 = vector.shape_cast %610 : vector<8x1xf32> to vector<8x1xf32>
    %612 = vector.broadcast %611 : vector<8x1xf32> to vector<8x16xf32>
    %613 = vector.extract_strided_slice %590 {offsets = [0, 1], sizes = [8, 1], strides = [1, 1]} : vector<8x4xf32> to vector<8x1xf32>
    %614 = vector.shape_cast %613 : vector<8x1xf32> to vector<8x1xf32>
    %615 = vector.broadcast %614 : vector<8x1xf32> to vector<8x16xf32>
    %616 = arith.select %14, %612, %615 : vector<8x16xi1>, vector<8x16xf32>
    %617 = vector.extract_strided_slice %595 {offsets = [0, 1], sizes = [8, 1], strides = [1, 1]} : vector<8x4xf32> to vector<8x1xf32>
    %618 = vector.shape_cast %617 : vector<8x1xf32> to vector<8x1xf32>
    %619 = vector.broadcast %618 : vector<8x1xf32> to vector<8x16xf32>
    %620 = vector.extract_strided_slice %593 {offsets = [0, 1], sizes = [8, 1], strides = [1, 1]} : vector<8x4xf32> to vector<8x1xf32>
    %621 = vector.shape_cast %620 : vector<8x1xf32> to vector<8x1xf32>
    %622 = vector.broadcast %621 : vector<8x1xf32> to vector<8x16xf32>
    %623 = arith.select %14, %619, %622 : vector<8x16xi1>, vector<8x16xf32>
    %624 = vector.extract_strided_slice %594 {offsets = [0, 2], sizes = [8, 1], strides = [1, 1]} : vector<8x4xf32> to vector<8x1xf32>
    %625 = vector.shape_cast %624 : vector<8x1xf32> to vector<8x1xf32>
    %626 = vector.broadcast %625 : vector<8x1xf32> to vector<8x16xf32>
    %627 = vector.extract_strided_slice %590 {offsets = [0, 2], sizes = [8, 1], strides = [1, 1]} : vector<8x4xf32> to vector<8x1xf32>
    %628 = vector.shape_cast %627 : vector<8x1xf32> to vector<8x1xf32>
    %629 = vector.broadcast %628 : vector<8x1xf32> to vector<8x16xf32>
    %630 = arith.select %19, %626, %629 : vector<8x16xi1>, vector<8x16xf32>
    %631 = vector.extract_strided_slice %595 {offsets = [0, 2], sizes = [8, 1], strides = [1, 1]} : vector<8x4xf32> to vector<8x1xf32>
    %632 = vector.shape_cast %631 : vector<8x1xf32> to vector<8x1xf32>
    %633 = vector.broadcast %632 : vector<8x1xf32> to vector<8x16xf32>
    %634 = vector.extract_strided_slice %593 {offsets = [0, 2], sizes = [8, 1], strides = [1, 1]} : vector<8x4xf32> to vector<8x1xf32>
    %635 = vector.shape_cast %634 : vector<8x1xf32> to vector<8x1xf32>
    %636 = vector.broadcast %635 : vector<8x1xf32> to vector<8x16xf32>
    %637 = arith.select %19, %633, %636 : vector<8x16xi1>, vector<8x16xf32>
    %638 = vector.extract_strided_slice %594 {offsets = [0, 3], sizes = [8, 1], strides = [1, 1]} : vector<8x4xf32> to vector<8x1xf32>
    %639 = vector.shape_cast %638 : vector<8x1xf32> to vector<8x1xf32>
    %640 = vector.broadcast %639 : vector<8x1xf32> to vector<8x16xf32>
    %641 = vector.extract_strided_slice %590 {offsets = [0, 3], sizes = [8, 1], strides = [1, 1]} : vector<8x4xf32> to vector<8x1xf32>
    %642 = vector.shape_cast %641 : vector<8x1xf32> to vector<8x1xf32>
    %643 = vector.broadcast %642 : vector<8x1xf32> to vector<8x16xf32>
    %644 = arith.select %24, %640, %643 : vector<8x16xi1>, vector<8x16xf32>
    %645 = vector.extract_strided_slice %595 {offsets = [0, 3], sizes = [8, 1], strides = [1, 1]} : vector<8x4xf32> to vector<8x1xf32>
    %646 = vector.shape_cast %645 : vector<8x1xf32> to vector<8x1xf32>
    %647 = vector.broadcast %646 : vector<8x1xf32> to vector<8x16xf32>
    %648 = vector.extract_strided_slice %593 {offsets = [0, 3], sizes = [8, 1], strides = [1, 1]} : vector<8x4xf32> to vector<8x1xf32>
    %649 = vector.shape_cast %648 : vector<8x1xf32> to vector<8x1xf32>
    %650 = vector.broadcast %649 : vector<8x1xf32> to vector<8x16xf32>
    %651 = arith.select %24, %647, %650 : vector<8x16xi1>, vector<8x16xf32>
    %652 = arith.mulf %602, %616 : vector<8x16xf32>
    %653 = arith.mulf %609, %623 : vector<8x16xf32>
    %654 = arith.subf %652, %653 : vector<8x16xf32>
    %655 = arith.mulf %602, %623 : vector<8x16xf32>
    %656 = arith.mulf %609, %616 : vector<8x16xf32>
    %657 = arith.addf %655, %656 : vector<8x16xf32>
    %658 = arith.mulf %630, %644 : vector<8x16xf32>
    %659 = arith.mulf %637, %651 : vector<8x16xf32>
    %660 = arith.subf %658, %659 : vector<8x16xf32>
    %661 = arith.mulf %630, %651 : vector<8x16xf32>
    %662 = arith.mulf %637, %644 : vector<8x16xf32>
    %663 = arith.addf %661, %662 : vector<8x16xf32>
    %664 = arith.mulf %654, %660 : vector<8x16xf32>
    %665 = arith.mulf %657, %663 : vector<8x16xf32>
    %666 = arith.subf %664, %665 : vector<8x16xf32>
    %667 = arith.mulf %654, %663 : vector<8x16xf32>
    %668 = arith.mulf %657, %660 : vector<8x16xf32>
    %669 = arith.addf %667, %668 : vector<8x16xf32>
    %670 = tpu.concatenate %666, %669 in 1 : vector<8x16xf32>, vector<8x16xf32> -> vector<8x32xf32>
    %cst_94 = arith.constant dense<0.000000e+00> : vector<8x128xf32>
    %671 = tpu.matmul %670, %1, %cst_94 {dimension_numbers = #tpu.dot_dimension_numbers<[1], [0], [0], [1], [0, 0, 1, 1], [], []>} : vector<8x32xf32>, vector<32x128xf32>, vector<8x128xf32> -> vector<8x128xf32>
    %672 = arith.mulf %671, %671 : vector<8x128xf32>
    %cst_95 = arith.constant dense<0.000000e+00> : vector<8x16xf32>
    %673 = tpu.matmul %672, %2, %cst_95 {dimension_numbers = #tpu.dot_dimension_numbers<[1], [0], [0], [1], [0, 0, 1, 1], [], []>} : vector<8x128xf32>, vector<128x16xf32>, vector<8x16xf32> -> vector<8x16xf32>
    %cst_96 = arith.constant 0.000000e+00 : f32
    %674 = vector.broadcast %cst_96 : f32 to vector<8x16xf32>
    %675 = arith.subf %674, %673 : vector<8x16xf32>
    %676 = math.exp %675 : vector<8x16xf32>
    %cst_97 = arith.constant 1.000000e+00 : f32
    %677 = vector.broadcast %cst_97 : f32 to vector<8x16xf32>
    %678 = arith.addf %677, %676 : vector<8x16xf32>
    %679 = tpu.reciprocal %678 {approx = true} : vector<8x16xf32> -> vector<8x16xf32>
    %680 = arith.mulf %678, %679 : vector<8x16xf32>
    %cst_98 = arith.constant 2.000000e+00 : f32
    %681 = vector.broadcast %cst_98 : f32 to vector<8x16xf32>
    %682 = arith.subf %681, %680 : vector<8x16xf32>
    %683 = arith.mulf %679, %682 : vector<8x16xf32>
    %684 = vector.extract_strided_slice %683 {offsets = [0, 0], sizes = [8, 4], strides = [1, 1]} : vector<8x16xf32> to vector<8x4xf32>
    %685 = vector.extract_strided_slice %683 {offsets = [0, 4], sizes = [8, 4], strides = [1, 1]} : vector<8x16xf32> to vector<8x4xf32>
    %686 = vector.extract_strided_slice %683 {offsets = [0, 8], sizes = [8, 4], strides = [1, 1]} : vector<8x16xf32> to vector<8x4xf32>
    %cst_99 = arith.constant 2.000000e+00 : f32
    %687 = vector.broadcast %cst_99 : f32 to vector<8x4xf32>
    %688 = arith.mulf %687, %686 : vector<8x4xf32>
    %cst_100 = arith.constant 1.000000e+00 : f32
    %689 = vector.broadcast %cst_100 : f32 to vector<8x4xf32>
    %690 = arith.subf %688, %689 : vector<8x4xf32>
    %691 = vector.extract_strided_slice %683 {offsets = [0, 12], sizes = [8, 4], strides = [1, 1]} : vector<8x16xf32> to vector<8x4xf32>
    %692 = arith.mulf %684, %431 : vector<8x4xf32>
    %693 = arith.mulf %685, %690 : vector<8x4xf32>
    %694 = arith.addf %692, %693 : vector<8x4xf32>
    %695 = math.tanh %694 : vector<8x4xf32>
    %696 = arith.mulf %691, %695 : vector<8x4xf32>
    %697 = arith.mulf %696, %696 : vector<8x4xf32>
    %698 = tpu.concatenate %696, %697 in 1 : vector<8x4xf32>, vector<8x4xf32> -> vector<8x8xf32>
    %699 = arith.mulf %698, %698 : vector<8x8xf32>
    %cst_101 = arith.constant 1.000000e+00 : f32
    %700 = vector.broadcast %cst_101 : f32 to vector<8x8xf32>
    %701 = arith.addf %700, %699 : vector<8x8xf32>
    %702 = math.rsqrt %701 : vector<8x8xf32>
    %cst_102 = arith.constant 1.000000e+00 : f32
    %703 = vector.broadcast %cst_102 : f32 to vector<8x8xf32>
    %704 = arith.addf %703, %702 : vector<8x8xf32>
    %cst_103 = arith.constant 5.000000e-01 : f32
    %705 = vector.broadcast %cst_103 : f32 to vector<8x8xf32>
    %706 = arith.mulf %704, %705 : vector<8x8xf32>
    %cst_104 = arith.constant 1.000000e+00 : f32
    %707 = vector.broadcast %cst_104 : f32 to vector<8x8xf32>
    %708 = arith.subf %707, %702 : vector<8x8xf32>
    %cst_105 = arith.constant 5.000000e-01 : f32
    %709 = vector.broadcast %cst_105 : f32 to vector<8x8xf32>
    %710 = arith.mulf %708, %709 : vector<8x8xf32>
    %cst_106 = arith.constant 0.000000e+00 : f32
    %711 = vector.broadcast %cst_106 : f32 to vector<8x8xf32>
    %712 = arith.maximumf %710, %711 : vector<8x8xf32>
    %713 = tpu.concatenate %706, %712 in 1 : vector<8x8xf32>, vector<8x8xf32> -> vector<8x16xf32>
    %714 = math.sqrt %713 : vector<8x16xf32>
    %715 = vector.extract_strided_slice %714 {offsets = [0, 0], sizes = [8, 4], strides = [1, 1]} : vector<8x16xf32> to vector<8x4xf32>
    %716 = vector.extract_strided_slice %714 {offsets = [0, 4], sizes = [8, 4], strides = [1, 1]} : vector<8x16xf32> to vector<8x4xf32>
    %cst_107 = arith.constant 0.000000e+00 : f32
    %717 = vector.broadcast %cst_107 : f32 to vector<8x4xf32>
    %718 = arith.cmpf oge, %696, %717 : vector<8x4xf32>
    %719 = vector.extract_strided_slice %714 {offsets = [0, 8], sizes = [8, 4], strides = [1, 1]} : vector<8x16xf32> to vector<8x4xf32>
    %720 = vector.extract_strided_slice %714 {offsets = [0, 8], sizes = [8, 4], strides = [1, 1]} : vector<8x16xf32> to vector<8x4xf32>
    %cst_108 = arith.constant 0.000000e+00 : f32
    %721 = vector.broadcast %cst_108 : f32 to vector<8x4xf32>
    %722 = arith.subf %721, %720 : vector<8x4xf32>
    %723 = arith.select %718, %719, %722 : vector<8x4xi1>, vector<8x4xf32>
    %724 = vector.extract_strided_slice %714 {offsets = [0, 12], sizes = [8, 4], strides = [1, 1]} : vector<8x16xf32> to vector<8x4xf32>
    %725 = arith.subf %715, %723 : vector<8x4xf32>
    %cst_109 = arith.constant 0.707106769 : f32
    %726 = vector.broadcast %cst_109 : f32 to vector<8x4xf32>
    %727 = arith.mulf %725, %726 : vector<8x4xf32>
    %728 = arith.addf %715, %723 : vector<8x4xf32>
    %cst_110 = arith.constant 0.707106769 : f32
    %729 = vector.broadcast %cst_110 : f32 to vector<8x4xf32>
    %730 = arith.mulf %728, %729 : vector<8x4xf32>
    %731 = arith.mulf %727, %716 : vector<8x4xf32>
    %732 = arith.mulf %727, %724 : vector<8x4xf32>
    %cst_111 = arith.constant 0.000000e+00 : f32
    %733 = vector.broadcast %cst_111 : f32 to vector<8x4xf32>
    %734 = arith.subf %733, %732 : vector<8x4xf32>
    %735 = arith.mulf %730, %716 : vector<8x4xf32>
    %736 = arith.mulf %730, %724 : vector<8x4xf32>
    %737 = vector.extract_strided_slice %735 {offsets = [0, 0], sizes = [8, 1], strides = [1, 1]} : vector<8x4xf32> to vector<8x1xf32>
    %738 = vector.shape_cast %737 : vector<8x1xf32> to vector<8x1xf32>
    %739 = vector.broadcast %738 : vector<8x1xf32> to vector<8x16xf32>
    %740 = vector.extract_strided_slice %731 {offsets = [0, 0], sizes = [8, 1], strides = [1, 1]} : vector<8x4xf32> to vector<8x1xf32>
    %741 = vector.shape_cast %740 : vector<8x1xf32> to vector<8x1xf32>
    %742 = vector.broadcast %741 : vector<8x1xf32> to vector<8x16xf32>
    %743 = arith.select %9, %739, %742 : vector<8x16xi1>, vector<8x16xf32>
    %744 = vector.extract_strided_slice %736 {offsets = [0, 0], sizes = [8, 1], strides = [1, 1]} : vector<8x4xf32> to vector<8x1xf32>
    %745 = vector.shape_cast %744 : vector<8x1xf32> to vector<8x1xf32>
    %746 = vector.broadcast %745 : vector<8x1xf32> to vector<8x16xf32>
    %747 = vector.extract_strided_slice %734 {offsets = [0, 0], sizes = [8, 1], strides = [1, 1]} : vector<8x4xf32> to vector<8x1xf32>
    %748 = vector.shape_cast %747 : vector<8x1xf32> to vector<8x1xf32>
    %749 = vector.broadcast %748 : vector<8x1xf32> to vector<8x16xf32>
    %750 = arith.select %9, %746, %749 : vector<8x16xi1>, vector<8x16xf32>
    %751 = vector.extract_strided_slice %735 {offsets = [0, 1], sizes = [8, 1], strides = [1, 1]} : vector<8x4xf32> to vector<8x1xf32>
    %752 = vector.shape_cast %751 : vector<8x1xf32> to vector<8x1xf32>
    %753 = vector.broadcast %752 : vector<8x1xf32> to vector<8x16xf32>
    %754 = vector.extract_strided_slice %731 {offsets = [0, 1], sizes = [8, 1], strides = [1, 1]} : vector<8x4xf32> to vector<8x1xf32>
    %755 = vector.shape_cast %754 : vector<8x1xf32> to vector<8x1xf32>
    %756 = vector.broadcast %755 : vector<8x1xf32> to vector<8x16xf32>
    %757 = arith.select %14, %753, %756 : vector<8x16xi1>, vector<8x16xf32>
    %758 = vector.extract_strided_slice %736 {offsets = [0, 1], sizes = [8, 1], strides = [1, 1]} : vector<8x4xf32> to vector<8x1xf32>
    %759 = vector.shape_cast %758 : vector<8x1xf32> to vector<8x1xf32>
    %760 = vector.broadcast %759 : vector<8x1xf32> to vector<8x16xf32>
    %761 = vector.extract_strided_slice %734 {offsets = [0, 1], sizes = [8, 1], strides = [1, 1]} : vector<8x4xf32> to vector<8x1xf32>
    %762 = vector.shape_cast %761 : vector<8x1xf32> to vector<8x1xf32>
    %763 = vector.broadcast %762 : vector<8x1xf32> to vector<8x16xf32>
    %764 = arith.select %14, %760, %763 : vector<8x16xi1>, vector<8x16xf32>
    %765 = vector.extract_strided_slice %735 {offsets = [0, 2], sizes = [8, 1], strides = [1, 1]} : vector<8x4xf32> to vector<8x1xf32>
    %766 = vector.shape_cast %765 : vector<8x1xf32> to vector<8x1xf32>
    %767 = vector.broadcast %766 : vector<8x1xf32> to vector<8x16xf32>
    %768 = vector.extract_strided_slice %731 {offsets = [0, 2], sizes = [8, 1], strides = [1, 1]} : vector<8x4xf32> to vector<8x1xf32>
    %769 = vector.shape_cast %768 : vector<8x1xf32> to vector<8x1xf32>
    %770 = vector.broadcast %769 : vector<8x1xf32> to vector<8x16xf32>
    %771 = arith.select %19, %767, %770 : vector<8x16xi1>, vector<8x16xf32>
    %772 = vector.extract_strided_slice %736 {offsets = [0, 2], sizes = [8, 1], strides = [1, 1]} : vector<8x4xf32> to vector<8x1xf32>
    %773 = vector.shape_cast %772 : vector<8x1xf32> to vector<8x1xf32>
    %774 = vector.broadcast %773 : vector<8x1xf32> to vector<8x16xf32>
    %775 = vector.extract_strided_slice %734 {offsets = [0, 2], sizes = [8, 1], strides = [1, 1]} : vector<8x4xf32> to vector<8x1xf32>
    %776 = vector.shape_cast %775 : vector<8x1xf32> to vector<8x1xf32>
    %777 = vector.broadcast %776 : vector<8x1xf32> to vector<8x16xf32>
    %778 = arith.select %19, %774, %777 : vector<8x16xi1>, vector<8x16xf32>
    %779 = vector.extract_strided_slice %735 {offsets = [0, 3], sizes = [8, 1], strides = [1, 1]} : vector<8x4xf32> to vector<8x1xf32>
    %780 = vector.shape_cast %779 : vector<8x1xf32> to vector<8x1xf32>
    %781 = vector.broadcast %780 : vector<8x1xf32> to vector<8x16xf32>
    %782 = vector.extract_strided_slice %731 {offsets = [0, 3], sizes = [8, 1], strides = [1, 1]} : vector<8x4xf32> to vector<8x1xf32>
    %783 = vector.shape_cast %782 : vector<8x1xf32> to vector<8x1xf32>
    %784 = vector.broadcast %783 : vector<8x1xf32> to vector<8x16xf32>
    %785 = arith.select %24, %781, %784 : vector<8x16xi1>, vector<8x16xf32>
    %786 = vector.extract_strided_slice %736 {offsets = [0, 3], sizes = [8, 1], strides = [1, 1]} : vector<8x4xf32> to vector<8x1xf32>
    %787 = vector.shape_cast %786 : vector<8x1xf32> to vector<8x1xf32>
    %788 = vector.broadcast %787 : vector<8x1xf32> to vector<8x16xf32>
    %789 = vector.extract_strided_slice %734 {offsets = [0, 3], sizes = [8, 1], strides = [1, 1]} : vector<8x4xf32> to vector<8x1xf32>
    %790 = vector.shape_cast %789 : vector<8x1xf32> to vector<8x1xf32>
    %791 = vector.broadcast %790 : vector<8x1xf32> to vector<8x16xf32>
    %792 = arith.select %24, %788, %791 : vector<8x16xi1>, vector<8x16xf32>
    %793 = arith.mulf %743, %757 : vector<8x16xf32>
    %794 = arith.mulf %750, %764 : vector<8x16xf32>
    %795 = arith.subf %793, %794 : vector<8x16xf32>
    %796 = arith.mulf %743, %764 : vector<8x16xf32>
    %797 = arith.mulf %750, %757 : vector<8x16xf32>
    %798 = arith.addf %796, %797 : vector<8x16xf32>
    %799 = arith.mulf %771, %785 : vector<8x16xf32>
    %800 = arith.mulf %778, %792 : vector<8x16xf32>
    %801 = arith.subf %799, %800 : vector<8x16xf32>
    %802 = arith.mulf %771, %792 : vector<8x16xf32>
    %803 = arith.mulf %778, %785 : vector<8x16xf32>
    %804 = arith.addf %802, %803 : vector<8x16xf32>
    %805 = arith.mulf %795, %801 : vector<8x16xf32>
    %806 = arith.mulf %798, %804 : vector<8x16xf32>
    %807 = arith.subf %805, %806 : vector<8x16xf32>
    %808 = arith.mulf %795, %804 : vector<8x16xf32>
    %809 = arith.mulf %798, %801 : vector<8x16xf32>
    %810 = arith.addf %808, %809 : vector<8x16xf32>
    %811 = tpu.concatenate %807, %810 in 1 : vector<8x16xf32>, vector<8x16xf32> -> vector<8x32xf32>
    %cst_112 = arith.constant dense<0.000000e+00> : vector<8x64xf32>
    %812 = tpu.matmul %811, %3, %cst_112 {dimension_numbers = #tpu.dot_dimension_numbers<[1], [0], [0], [1], [0, 0, 1, 1], [], []>} : vector<8x32xf32>, vector<32x64xf32>, vector<8x64xf32> -> vector<8x64xf32>
    %813 = arith.mulf %812, %812 : vector<8x64xf32>
    %cst_113 = arith.constant dense<0.000000e+00> : vector<8x5xf32>
    %814 = tpu.matmul %813, %4, %cst_113 {dimension_numbers = #tpu.dot_dimension_numbers<[1], [0], [0], [1], [0, 0, 1, 1], [], []>} : vector<8x64xf32>, vector<64x5xf32>, vector<8x5xf32> -> vector<8x5xf32>
    %815 = vector.extract_strided_slice %814 {offsets = [0, 0], sizes = [8, 4], strides = [1, 1]} : vector<8x5xf32> to vector<8x4xf32>
    %c3 = arith.constant 3 : index
    %c0_114 = arith.constant 0 : index
    %c0_115 = arith.constant 0 : index
    %816 = vector.load %arg0[%c3, %c0_114, %c0_115] : memref<8x8x4xf32, #tpu.memory_space<vmem>>, vector<1x8x4xf32>
    %817 = vector.shape_cast %816 : vector<1x8x4xf32> to vector<8x4xf32>
    %818 = arith.addf %817, %815 : vector<8x4xf32>
    %819 = arith.mulf %818, %818 : vector<8x4xf32>
    %820 = tpu.concatenate %818, %819 in 1 : vector<8x4xf32>, vector<8x4xf32> -> vector<8x8xf32>
    %821 = arith.mulf %820, %820 : vector<8x8xf32>
    %cst_116 = arith.constant 1.000000e+00 : f32
    %822 = vector.broadcast %cst_116 : f32 to vector<8x8xf32>
    %823 = arith.addf %822, %821 : vector<8x8xf32>
    %824 = math.rsqrt %823 : vector<8x8xf32>
    %cst_117 = arith.constant 1.000000e+00 : f32
    %825 = vector.broadcast %cst_117 : f32 to vector<8x8xf32>
    %826 = arith.addf %825, %824 : vector<8x8xf32>
    %cst_118 = arith.constant 5.000000e-01 : f32
    %827 = vector.broadcast %cst_118 : f32 to vector<8x8xf32>
    %828 = arith.mulf %826, %827 : vector<8x8xf32>
    %cst_119 = arith.constant 1.000000e+00 : f32
    %829 = vector.broadcast %cst_119 : f32 to vector<8x8xf32>
    %830 = arith.subf %829, %824 : vector<8x8xf32>
    %cst_120 = arith.constant 5.000000e-01 : f32
    %831 = vector.broadcast %cst_120 : f32 to vector<8x8xf32>
    %832 = arith.mulf %830, %831 : vector<8x8xf32>
    %cst_121 = arith.constant 0.000000e+00 : f32
    %833 = vector.broadcast %cst_121 : f32 to vector<8x8xf32>
    %834 = arith.maximumf %832, %833 : vector<8x8xf32>
    %835 = tpu.concatenate %828, %834 in 1 : vector<8x8xf32>, vector<8x8xf32> -> vector<8x16xf32>
    %836 = math.sqrt %835 : vector<8x16xf32>
    %837 = vector.extract_strided_slice %836 {offsets = [0, 0], sizes = [8, 4], strides = [1, 1]} : vector<8x16xf32> to vector<8x4xf32>
    %838 = vector.extract_strided_slice %836 {offsets = [0, 4], sizes = [8, 4], strides = [1, 1]} : vector<8x16xf32> to vector<8x4xf32>
    %cst_122 = arith.constant 0.000000e+00 : f32
    %839 = vector.broadcast %cst_122 : f32 to vector<8x4xf32>
    %840 = arith.cmpf oge, %818, %839 : vector<8x4xf32>
    %841 = vector.extract_strided_slice %836 {offsets = [0, 8], sizes = [8, 4], strides = [1, 1]} : vector<8x16xf32> to vector<8x4xf32>
    %842 = vector.extract_strided_slice %836 {offsets = [0, 8], sizes = [8, 4], strides = [1, 1]} : vector<8x16xf32> to vector<8x4xf32>
    %cst_123 = arith.constant 0.000000e+00 : f32
    %843 = vector.broadcast %cst_123 : f32 to vector<8x4xf32>
    %844 = arith.subf %843, %842 : vector<8x4xf32>
    %845 = arith.select %840, %841, %844 : vector<8x4xi1>, vector<8x4xf32>
    %846 = vector.extract_strided_slice %836 {offsets = [0, 12], sizes = [8, 4], strides = [1, 1]} : vector<8x16xf32> to vector<8x4xf32>
    %847 = arith.subf %837, %845 : vector<8x4xf32>
    %cst_124 = arith.constant 0.707106769 : f32
    %848 = vector.broadcast %cst_124 : f32 to vector<8x4xf32>
    %849 = arith.mulf %847, %848 : vector<8x4xf32>
    %850 = arith.addf %837, %845 : vector<8x4xf32>
    %cst_125 = arith.constant 0.707106769 : f32
    %851 = vector.broadcast %cst_125 : f32 to vector<8x4xf32>
    %852 = arith.mulf %850, %851 : vector<8x4xf32>
    %853 = arith.mulf %849, %838 : vector<8x4xf32>
    %854 = arith.mulf %849, %846 : vector<8x4xf32>
    %cst_126 = arith.constant 0.000000e+00 : f32
    %855 = vector.broadcast %cst_126 : f32 to vector<8x4xf32>
    %856 = arith.subf %855, %854 : vector<8x4xf32>
    %857 = arith.mulf %852, %838 : vector<8x4xf32>
    %858 = arith.mulf %852, %846 : vector<8x4xf32>
    %859 = vector.extract_strided_slice %857 {offsets = [0, 0], sizes = [8, 1], strides = [1, 1]} : vector<8x4xf32> to vector<8x1xf32>
    %860 = vector.shape_cast %859 : vector<8x1xf32> to vector<8x1xf32>
    %861 = vector.broadcast %860 : vector<8x1xf32> to vector<8x16xf32>
    %862 = vector.extract_strided_slice %853 {offsets = [0, 0], sizes = [8, 1], strides = [1, 1]} : vector<8x4xf32> to vector<8x1xf32>
    %863 = vector.shape_cast %862 : vector<8x1xf32> to vector<8x1xf32>
    %864 = vector.broadcast %863 : vector<8x1xf32> to vector<8x16xf32>
    %865 = arith.select %9, %861, %864 : vector<8x16xi1>, vector<8x16xf32>
    %866 = vector.extract_strided_slice %858 {offsets = [0, 0], sizes = [8, 1], strides = [1, 1]} : vector<8x4xf32> to vector<8x1xf32>
    %867 = vector.shape_cast %866 : vector<8x1xf32> to vector<8x1xf32>
    %868 = vector.broadcast %867 : vector<8x1xf32> to vector<8x16xf32>
    %869 = vector.extract_strided_slice %856 {offsets = [0, 0], sizes = [8, 1], strides = [1, 1]} : vector<8x4xf32> to vector<8x1xf32>
    %870 = vector.shape_cast %869 : vector<8x1xf32> to vector<8x1xf32>
    %871 = vector.broadcast %870 : vector<8x1xf32> to vector<8x16xf32>
    %872 = arith.select %9, %868, %871 : vector<8x16xi1>, vector<8x16xf32>
    %873 = vector.extract_strided_slice %857 {offsets = [0, 1], sizes = [8, 1], strides = [1, 1]} : vector<8x4xf32> to vector<8x1xf32>
    %874 = vector.shape_cast %873 : vector<8x1xf32> to vector<8x1xf32>
    %875 = vector.broadcast %874 : vector<8x1xf32> to vector<8x16xf32>
    %876 = vector.extract_strided_slice %853 {offsets = [0, 1], sizes = [8, 1], strides = [1, 1]} : vector<8x4xf32> to vector<8x1xf32>
    %877 = vector.shape_cast %876 : vector<8x1xf32> to vector<8x1xf32>
    %878 = vector.broadcast %877 : vector<8x1xf32> to vector<8x16xf32>
    %879 = arith.select %14, %875, %878 : vector<8x16xi1>, vector<8x16xf32>
    %880 = vector.extract_strided_slice %858 {offsets = [0, 1], sizes = [8, 1], strides = [1, 1]} : vector<8x4xf32> to vector<8x1xf32>
    %881 = vector.shape_cast %880 : vector<8x1xf32> to vector<8x1xf32>
    %882 = vector.broadcast %881 : vector<8x1xf32> to vector<8x16xf32>
    %883 = vector.extract_strided_slice %856 {offsets = [0, 1], sizes = [8, 1], strides = [1, 1]} : vector<8x4xf32> to vector<8x1xf32>
    %884 = vector.shape_cast %883 : vector<8x1xf32> to vector<8x1xf32>
    %885 = vector.broadcast %884 : vector<8x1xf32> to vector<8x16xf32>
    %886 = arith.select %14, %882, %885 : vector<8x16xi1>, vector<8x16xf32>
    %887 = vector.extract_strided_slice %857 {offsets = [0, 2], sizes = [8, 1], strides = [1, 1]} : vector<8x4xf32> to vector<8x1xf32>
    %888 = vector.shape_cast %887 : vector<8x1xf32> to vector<8x1xf32>
    %889 = vector.broadcast %888 : vector<8x1xf32> to vector<8x16xf32>
    %890 = vector.extract_strided_slice %853 {offsets = [0, 2], sizes = [8, 1], strides = [1, 1]} : vector<8x4xf32> to vector<8x1xf32>
    %891 = vector.shape_cast %890 : vector<8x1xf32> to vector<8x1xf32>
    %892 = vector.broadcast %891 : vector<8x1xf32> to vector<8x16xf32>
    %893 = arith.select %19, %889, %892 : vector<8x16xi1>, vector<8x16xf32>
    %894 = vector.extract_strided_slice %858 {offsets = [0, 2], sizes = [8, 1], strides = [1, 1]} : vector<8x4xf32> to vector<8x1xf32>
    %895 = vector.shape_cast %894 : vector<8x1xf32> to vector<8x1xf32>
    %896 = vector.broadcast %895 : vector<8x1xf32> to vector<8x16xf32>
    %897 = vector.extract_strided_slice %856 {offsets = [0, 2], sizes = [8, 1], strides = [1, 1]} : vector<8x4xf32> to vector<8x1xf32>
    %898 = vector.shape_cast %897 : vector<8x1xf32> to vector<8x1xf32>
    %899 = vector.broadcast %898 : vector<8x1xf32> to vector<8x16xf32>
    %900 = arith.select %19, %896, %899 : vector<8x16xi1>, vector<8x16xf32>
    %901 = vector.extract_strided_slice %857 {offsets = [0, 3], sizes = [8, 1], strides = [1, 1]} : vector<8x4xf32> to vector<8x1xf32>
    %902 = vector.shape_cast %901 : vector<8x1xf32> to vector<8x1xf32>
    %903 = vector.broadcast %902 : vector<8x1xf32> to vector<8x16xf32>
    %904 = vector.extract_strided_slice %853 {offsets = [0, 3], sizes = [8, 1], strides = [1, 1]} : vector<8x4xf32> to vector<8x1xf32>
    %905 = vector.shape_cast %904 : vector<8x1xf32> to vector<8x1xf32>
    %906 = vector.broadcast %905 : vector<8x1xf32> to vector<8x16xf32>
    %907 = arith.select %24, %903, %906 : vector<8x16xi1>, vector<8x16xf32>
    %908 = vector.extract_strided_slice %858 {offsets = [0, 3], sizes = [8, 1], strides = [1, 1]} : vector<8x4xf32> to vector<8x1xf32>
    %909 = vector.shape_cast %908 : vector<8x1xf32> to vector<8x1xf32>
    %910 = vector.broadcast %909 : vector<8x1xf32> to vector<8x16xf32>
    %911 = vector.extract_strided_slice %856 {offsets = [0, 3], sizes = [8, 1], strides = [1, 1]} : vector<8x4xf32> to vector<8x1xf32>
    %912 = vector.shape_cast %911 : vector<8x1xf32> to vector<8x1xf32>
    %913 = vector.broadcast %912 : vector<8x1xf32> to vector<8x16xf32>
    %914 = arith.select %24, %910, %913 : vector<8x16xi1>, vector<8x16xf32>
    %915 = arith.mulf %865, %879 : vector<8x16xf32>
    %916 = arith.mulf %872, %886 : vector<8x16xf32>
    %917 = arith.subf %915, %916 : vector<8x16xf32>
    %918 = arith.mulf %865, %886 : vector<8x16xf32>
    %919 = arith.mulf %872, %879 : vector<8x16xf32>
    %920 = arith.addf %918, %919 : vector<8x16xf32>
    %921 = arith.mulf %893, %907 : vector<8x16xf32>
    %922 = arith.mulf %900, %914 : vector<8x16xf32>
    %923 = arith.subf %921, %922 : vector<8x16xf32>
    %924 = arith.mulf %893, %914 : vector<8x16xf32>
    %925 = arith.mulf %900, %907 : vector<8x16xf32>
    %926 = arith.addf %924, %925 : vector<8x16xf32>
    %927 = arith.mulf %917, %923 : vector<8x16xf32>
    %928 = arith.mulf %920, %926 : vector<8x16xf32>
    %929 = arith.subf %927, %928 : vector<8x16xf32>
    %930 = arith.mulf %917, %926 : vector<8x16xf32>
    %931 = arith.mulf %920, %923 : vector<8x16xf32>
    %932 = arith.addf %930, %931 : vector<8x16xf32>
    %933 = tpu.concatenate %929, %932 in 1 : vector<8x16xf32>, vector<8x16xf32> -> vector<8x32xf32>
    %cst_127 = arith.constant dense<0.000000e+00> : vector<8x128xf32>
    %934 = tpu.matmul %933, %1, %cst_127 {dimension_numbers = #tpu.dot_dimension_numbers<[1], [0], [0], [1], [0, 0, 1, 1], [], []>} : vector<8x32xf32>, vector<32x128xf32>, vector<8x128xf32> -> vector<8x128xf32>
    %935 = arith.mulf %934, %934 : vector<8x128xf32>
    %cst_128 = arith.constant dense<0.000000e+00> : vector<8x16xf32>
    %936 = tpu.matmul %935, %2, %cst_128 {dimension_numbers = #tpu.dot_dimension_numbers<[1], [0], [0], [1], [0, 0, 1, 1], [], []>} : vector<8x128xf32>, vector<128x16xf32>, vector<8x16xf32> -> vector<8x16xf32>
    %cst_129 = arith.constant 0.000000e+00 : f32
    %937 = vector.broadcast %cst_129 : f32 to vector<8x16xf32>
    %938 = arith.subf %937, %936 : vector<8x16xf32>
    %939 = math.exp %938 : vector<8x16xf32>
    %cst_130 = arith.constant 1.000000e+00 : f32
    %940 = vector.broadcast %cst_130 : f32 to vector<8x16xf32>
    %941 = arith.addf %940, %939 : vector<8x16xf32>
    %942 = tpu.reciprocal %941 {approx = true} : vector<8x16xf32> -> vector<8x16xf32>
    %943 = arith.mulf %941, %942 : vector<8x16xf32>
    %cst_131 = arith.constant 2.000000e+00 : f32
    %944 = vector.broadcast %cst_131 : f32 to vector<8x16xf32>
    %945 = arith.subf %944, %943 : vector<8x16xf32>
    %946 = arith.mulf %942, %945 : vector<8x16xf32>
    %947 = vector.extract_strided_slice %946 {offsets = [0, 0], sizes = [8, 4], strides = [1, 1]} : vector<8x16xf32> to vector<8x4xf32>
    %948 = vector.extract_strided_slice %946 {offsets = [0, 4], sizes = [8, 4], strides = [1, 1]} : vector<8x16xf32> to vector<8x4xf32>
    %949 = vector.extract_strided_slice %946 {offsets = [0, 8], sizes = [8, 4], strides = [1, 1]} : vector<8x16xf32> to vector<8x4xf32>
    %cst_132 = arith.constant 2.000000e+00 : f32
    %950 = vector.broadcast %cst_132 : f32 to vector<8x4xf32>
    %951 = arith.mulf %950, %949 : vector<8x4xf32>
    %cst_133 = arith.constant 1.000000e+00 : f32
    %952 = vector.broadcast %cst_133 : f32 to vector<8x4xf32>
    %953 = arith.subf %951, %952 : vector<8x4xf32>
    %954 = vector.extract_strided_slice %946 {offsets = [0, 12], sizes = [8, 4], strides = [1, 1]} : vector<8x16xf32> to vector<8x4xf32>
    %955 = arith.mulf %947, %694 : vector<8x4xf32>
    %956 = arith.mulf %948, %953 : vector<8x4xf32>
    %957 = arith.addf %955, %956 : vector<8x4xf32>
    %958 = math.tanh %957 : vector<8x4xf32>
    %959 = arith.mulf %954, %958 : vector<8x4xf32>
    %960 = arith.mulf %959, %959 : vector<8x4xf32>
    %961 = tpu.concatenate %959, %960 in 1 : vector<8x4xf32>, vector<8x4xf32> -> vector<8x8xf32>
    %962 = arith.mulf %961, %961 : vector<8x8xf32>
    %cst_134 = arith.constant 1.000000e+00 : f32
    %963 = vector.broadcast %cst_134 : f32 to vector<8x8xf32>
    %964 = arith.addf %963, %962 : vector<8x8xf32>
    %965 = math.rsqrt %964 : vector<8x8xf32>
    %cst_135 = arith.constant 1.000000e+00 : f32
    %966 = vector.broadcast %cst_135 : f32 to vector<8x8xf32>
    %967 = arith.addf %966, %965 : vector<8x8xf32>
    %cst_136 = arith.constant 5.000000e-01 : f32
    %968 = vector.broadcast %cst_136 : f32 to vector<8x8xf32>
    %969 = arith.mulf %967, %968 : vector<8x8xf32>
    %cst_137 = arith.constant 1.000000e+00 : f32
    %970 = vector.broadcast %cst_137 : f32 to vector<8x8xf32>
    %971 = arith.subf %970, %965 : vector<8x8xf32>
    %cst_138 = arith.constant 5.000000e-01 : f32
    %972 = vector.broadcast %cst_138 : f32 to vector<8x8xf32>
    %973 = arith.mulf %971, %972 : vector<8x8xf32>
    %cst_139 = arith.constant 0.000000e+00 : f32
    %974 = vector.broadcast %cst_139 : f32 to vector<8x8xf32>
    %975 = arith.maximumf %973, %974 : vector<8x8xf32>
    %976 = tpu.concatenate %969, %975 in 1 : vector<8x8xf32>, vector<8x8xf32> -> vector<8x16xf32>
    %977 = math.sqrt %976 : vector<8x16xf32>
    %978 = vector.extract_strided_slice %977 {offsets = [0, 0], sizes = [8, 4], strides = [1, 1]} : vector<8x16xf32> to vector<8x4xf32>
    %979 = vector.extract_strided_slice %977 {offsets = [0, 4], sizes = [8, 4], strides = [1, 1]} : vector<8x16xf32> to vector<8x4xf32>
    %cst_140 = arith.constant 0.000000e+00 : f32
    %980 = vector.broadcast %cst_140 : f32 to vector<8x4xf32>
    %981 = arith.cmpf oge, %959, %980 : vector<8x4xf32>
    %982 = vector.extract_strided_slice %977 {offsets = [0, 8], sizes = [8, 4], strides = [1, 1]} : vector<8x16xf32> to vector<8x4xf32>
    %983 = vector.extract_strided_slice %977 {offsets = [0, 8], sizes = [8, 4], strides = [1, 1]} : vector<8x16xf32> to vector<8x4xf32>
    %cst_141 = arith.constant 0.000000e+00 : f32
    %984 = vector.broadcast %cst_141 : f32 to vector<8x4xf32>
    %985 = arith.subf %984, %983 : vector<8x4xf32>
    %986 = arith.select %981, %982, %985 : vector<8x4xi1>, vector<8x4xf32>
    %987 = vector.extract_strided_slice %977 {offsets = [0, 12], sizes = [8, 4], strides = [1, 1]} : vector<8x16xf32> to vector<8x4xf32>
    %988 = arith.subf %978, %986 : vector<8x4xf32>
    %cst_142 = arith.constant 0.707106769 : f32
    %989 = vector.broadcast %cst_142 : f32 to vector<8x4xf32>
    %990 = arith.mulf %988, %989 : vector<8x4xf32>
    %991 = arith.addf %978, %986 : vector<8x4xf32>
    %cst_143 = arith.constant 0.707106769 : f32
    %992 = vector.broadcast %cst_143 : f32 to vector<8x4xf32>
    %993 = arith.mulf %991, %992 : vector<8x4xf32>
    %994 = arith.mulf %990, %979 : vector<8x4xf32>
    %995 = arith.mulf %990, %987 : vector<8x4xf32>
    %cst_144 = arith.constant 0.000000e+00 : f32
    %996 = vector.broadcast %cst_144 : f32 to vector<8x4xf32>
    %997 = arith.subf %996, %995 : vector<8x4xf32>
    %998 = arith.mulf %993, %979 : vector<8x4xf32>
    %999 = arith.mulf %993, %987 : vector<8x4xf32>
    %1000 = vector.extract_strided_slice %998 {offsets = [0, 0], sizes = [8, 1], strides = [1, 1]} : vector<8x4xf32> to vector<8x1xf32>
    %1001 = vector.shape_cast %1000 : vector<8x1xf32> to vector<8x1xf32>
    %1002 = vector.broadcast %1001 : vector<8x1xf32> to vector<8x16xf32>
    %1003 = vector.extract_strided_slice %994 {offsets = [0, 0], sizes = [8, 1], strides = [1, 1]} : vector<8x4xf32> to vector<8x1xf32>
    %1004 = vector.shape_cast %1003 : vector<8x1xf32> to vector<8x1xf32>
    %1005 = vector.broadcast %1004 : vector<8x1xf32> to vector<8x16xf32>
    %1006 = arith.select %9, %1002, %1005 : vector<8x16xi1>, vector<8x16xf32>
    %1007 = vector.extract_strided_slice %999 {offsets = [0, 0], sizes = [8, 1], strides = [1, 1]} : vector<8x4xf32> to vector<8x1xf32>
    %1008 = vector.shape_cast %1007 : vector<8x1xf32> to vector<8x1xf32>
    %1009 = vector.broadcast %1008 : vector<8x1xf32> to vector<8x16xf32>
    %1010 = vector.extract_strided_slice %997 {offsets = [0, 0], sizes = [8, 1], strides = [1, 1]} : vector<8x4xf32> to vector<8x1xf32>
    %1011 = vector.shape_cast %1010 : vector<8x1xf32> to vector<8x1xf32>
    %1012 = vector.broadcast %1011 : vector<8x1xf32> to vector<8x16xf32>
    %1013 = arith.select %9, %1009, %1012 : vector<8x16xi1>, vector<8x16xf32>
    %1014 = vector.extract_strided_slice %998 {offsets = [0, 1], sizes = [8, 1], strides = [1, 1]} : vector<8x4xf32> to vector<8x1xf32>
    %1015 = vector.shape_cast %1014 : vector<8x1xf32> to vector<8x1xf32>
    %1016 = vector.broadcast %1015 : vector<8x1xf32> to vector<8x16xf32>
    %1017 = vector.extract_strided_slice %994 {offsets = [0, 1], sizes = [8, 1], strides = [1, 1]} : vector<8x4xf32> to vector<8x1xf32>
    %1018 = vector.shape_cast %1017 : vector<8x1xf32> to vector<8x1xf32>
    %1019 = vector.broadcast %1018 : vector<8x1xf32> to vector<8x16xf32>
    %1020 = arith.select %14, %1016, %1019 : vector<8x16xi1>, vector<8x16xf32>
    %1021 = vector.extract_strided_slice %999 {offsets = [0, 1], sizes = [8, 1], strides = [1, 1]} : vector<8x4xf32> to vector<8x1xf32>
    %1022 = vector.shape_cast %1021 : vector<8x1xf32> to vector<8x1xf32>
    %1023 = vector.broadcast %1022 : vector<8x1xf32> to vector<8x16xf32>
    %1024 = vector.extract_strided_slice %997 {offsets = [0, 1], sizes = [8, 1], strides = [1, 1]} : vector<8x4xf32> to vector<8x1xf32>
    %1025 = vector.shape_cast %1024 : vector<8x1xf32> to vector<8x1xf32>
    %1026 = vector.broadcast %1025 : vector<8x1xf32> to vector<8x16xf32>
    %1027 = arith.select %14, %1023, %1026 : vector<8x16xi1>, vector<8x16xf32>
    %1028 = vector.extract_strided_slice %998 {offsets = [0, 2], sizes = [8, 1], strides = [1, 1]} : vector<8x4xf32> to vector<8x1xf32>
    %1029 = vector.shape_cast %1028 : vector<8x1xf32> to vector<8x1xf32>
    %1030 = vector.broadcast %1029 : vector<8x1xf32> to vector<8x16xf32>
    %1031 = vector.extract_strided_slice %994 {offsets = [0, 2], sizes = [8, 1], strides = [1, 1]} : vector<8x4xf32> to vector<8x1xf32>
    %1032 = vector.shape_cast %1031 : vector<8x1xf32> to vector<8x1xf32>
    %1033 = vector.broadcast %1032 : vector<8x1xf32> to vector<8x16xf32>
    %1034 = arith.select %19, %1030, %1033 : vector<8x16xi1>, vector<8x16xf32>
    %1035 = vector.extract_strided_slice %999 {offsets = [0, 2], sizes = [8, 1], strides = [1, 1]} : vector<8x4xf32> to vector<8x1xf32>
    %1036 = vector.shape_cast %1035 : vector<8x1xf32> to vector<8x1xf32>
    %1037 = vector.broadcast %1036 : vector<8x1xf32> to vector<8x16xf32>
    %1038 = vector.extract_strided_slice %997 {offsets = [0, 2], sizes = [8, 1], strides = [1, 1]} : vector<8x4xf32> to vector<8x1xf32>
    %1039 = vector.shape_cast %1038 : vector<8x1xf32> to vector<8x1xf32>
    %1040 = vector.broadcast %1039 : vector<8x1xf32> to vector<8x16xf32>
    %1041 = arith.select %19, %1037, %1040 : vector<8x16xi1>, vector<8x16xf32>
    %1042 = vector.extract_strided_slice %998 {offsets = [0, 3], sizes = [8, 1], strides = [1, 1]} : vector<8x4xf32> to vector<8x1xf32>
    %1043 = vector.shape_cast %1042 : vector<8x1xf32> to vector<8x1xf32>
    %1044 = vector.broadcast %1043 : vector<8x1xf32> to vector<8x16xf32>
    %1045 = vector.extract_strided_slice %994 {offsets = [0, 3], sizes = [8, 1], strides = [1, 1]} : vector<8x4xf32> to vector<8x1xf32>
    %1046 = vector.shape_cast %1045 : vector<8x1xf32> to vector<8x1xf32>
    %1047 = vector.broadcast %1046 : vector<8x1xf32> to vector<8x16xf32>
    %1048 = arith.select %24, %1044, %1047 : vector<8x16xi1>, vector<8x16xf32>
    %1049 = vector.extract_strided_slice %999 {offsets = [0, 3], sizes = [8, 1], strides = [1, 1]} : vector<8x4xf32> to vector<8x1xf32>
    %1050 = vector.shape_cast %1049 : vector<8x1xf32> to vector<8x1xf32>
    %1051 = vector.broadcast %1050 : vector<8x1xf32> to vector<8x16xf32>
    %1052 = vector.extract_strided_slice %997 {offsets = [0, 3], sizes = [8, 1], strides = [1, 1]} : vector<8x4xf32> to vector<8x1xf32>
    %1053 = vector.shape_cast %1052 : vector<8x1xf32> to vector<8x1xf32>
    %1054 = vector.broadcast %1053 : vector<8x1xf32> to vector<8x16xf32>
    %1055 = arith.select %24, %1051, %1054 : vector<8x16xi1>, vector<8x16xf32>
    %1056 = arith.mulf %1006, %1020 : vector<8x16xf32>
    %1057 = arith.mulf %1013, %1027 : vector<8x16xf32>
    %1058 = arith.subf %1056, %1057 : vector<8x16xf32>
    %1059 = arith.mulf %1006, %1027 : vector<8x16xf32>
    %1060 = arith.mulf %1013, %1020 : vector<8x16xf32>
    %1061 = arith.addf %1059, %1060 : vector<8x16xf32>
    %1062 = arith.mulf %1034, %1048 : vector<8x16xf32>
    %1063 = arith.mulf %1041, %1055 : vector<8x16xf32>
    %1064 = arith.subf %1062, %1063 : vector<8x16xf32>
    %1065 = arith.mulf %1034, %1055 : vector<8x16xf32>
    %1066 = arith.mulf %1041, %1048 : vector<8x16xf32>
    %1067 = arith.addf %1065, %1066 : vector<8x16xf32>
    %1068 = arith.mulf %1058, %1064 : vector<8x16xf32>
    %1069 = arith.mulf %1061, %1067 : vector<8x16xf32>
    %1070 = arith.subf %1068, %1069 : vector<8x16xf32>
    %1071 = arith.mulf %1058, %1067 : vector<8x16xf32>
    %1072 = arith.mulf %1061, %1064 : vector<8x16xf32>
    %1073 = arith.addf %1071, %1072 : vector<8x16xf32>
    %1074 = tpu.concatenate %1070, %1073 in 1 : vector<8x16xf32>, vector<8x16xf32> -> vector<8x32xf32>
    %cst_145 = arith.constant dense<0.000000e+00> : vector<8x64xf32>
    %1075 = tpu.matmul %1074, %3, %cst_145 {dimension_numbers = #tpu.dot_dimension_numbers<[1], [0], [0], [1], [0, 0, 1, 1], [], []>} : vector<8x32xf32>, vector<32x64xf32>, vector<8x64xf32> -> vector<8x64xf32>
    %1076 = arith.mulf %1075, %1075 : vector<8x64xf32>
    %cst_146 = arith.constant dense<0.000000e+00> : vector<8x5xf32>
    %1077 = tpu.matmul %1076, %4, %cst_146 {dimension_numbers = #tpu.dot_dimension_numbers<[1], [0], [0], [1], [0, 0, 1, 1], [], []>} : vector<8x64xf32>, vector<64x5xf32>, vector<8x5xf32> -> vector<8x5xf32>
    %1078 = vector.extract_strided_slice %1077 {offsets = [0, 0], sizes = [8, 4], strides = [1, 1]} : vector<8x5xf32> to vector<8x4xf32>
    %c4 = arith.constant 4 : index
    %c0_147 = arith.constant 0 : index
    %c0_148 = arith.constant 0 : index
    %1079 = vector.load %arg0[%c4, %c0_147, %c0_148] : memref<8x8x4xf32, #tpu.memory_space<vmem>>, vector<1x8x4xf32>
    %1080 = vector.shape_cast %1079 : vector<1x8x4xf32> to vector<8x4xf32>
    %1081 = arith.addf %1080, %1078 : vector<8x4xf32>
    %1082 = arith.mulf %1081, %1081 : vector<8x4xf32>
    %1083 = tpu.concatenate %1081, %1082 in 1 : vector<8x4xf32>, vector<8x4xf32> -> vector<8x8xf32>
    %1084 = arith.mulf %1083, %1083 : vector<8x8xf32>
    %cst_149 = arith.constant 1.000000e+00 : f32
    %1085 = vector.broadcast %cst_149 : f32 to vector<8x8xf32>
    %1086 = arith.addf %1085, %1084 : vector<8x8xf32>
    %1087 = math.rsqrt %1086 : vector<8x8xf32>
    %cst_150 = arith.constant 1.000000e+00 : f32
    %1088 = vector.broadcast %cst_150 : f32 to vector<8x8xf32>
    %1089 = arith.addf %1088, %1087 : vector<8x8xf32>
    %cst_151 = arith.constant 5.000000e-01 : f32
    %1090 = vector.broadcast %cst_151 : f32 to vector<8x8xf32>
    %1091 = arith.mulf %1089, %1090 : vector<8x8xf32>
    %cst_152 = arith.constant 1.000000e+00 : f32
    %1092 = vector.broadcast %cst_152 : f32 to vector<8x8xf32>
    %1093 = arith.subf %1092, %1087 : vector<8x8xf32>
    %cst_153 = arith.constant 5.000000e-01 : f32
    %1094 = vector.broadcast %cst_153 : f32 to vector<8x8xf32>
    %1095 = arith.mulf %1093, %1094 : vector<8x8xf32>
    %cst_154 = arith.constant 0.000000e+00 : f32
    %1096 = vector.broadcast %cst_154 : f32 to vector<8x8xf32>
    %1097 = arith.maximumf %1095, %1096 : vector<8x8xf32>
    %1098 = tpu.concatenate %1091, %1097 in 1 : vector<8x8xf32>, vector<8x8xf32> -> vector<8x16xf32>
    %1099 = math.sqrt %1098 : vector<8x16xf32>
    %1100 = vector.extract_strided_slice %1099 {offsets = [0, 0], sizes = [8, 4], strides = [1, 1]} : vector<8x16xf32> to vector<8x4xf32>
    %1101 = vector.extract_strided_slice %1099 {offsets = [0, 4], sizes = [8, 4], strides = [1, 1]} : vector<8x16xf32> to vector<8x4xf32>
    %cst_155 = arith.constant 0.000000e+00 : f32
    %1102 = vector.broadcast %cst_155 : f32 to vector<8x4xf32>
    %1103 = arith.cmpf oge, %1081, %1102 : vector<8x4xf32>
    %1104 = vector.extract_strided_slice %1099 {offsets = [0, 8], sizes = [8, 4], strides = [1, 1]} : vector<8x16xf32> to vector<8x4xf32>
    %1105 = vector.extract_strided_slice %1099 {offsets = [0, 8], sizes = [8, 4], strides = [1, 1]} : vector<8x16xf32> to vector<8x4xf32>
    %cst_156 = arith.constant 0.000000e+00 : f32
    %1106 = vector.broadcast %cst_156 : f32 to vector<8x4xf32>
    %1107 = arith.subf %1106, %1105 : vector<8x4xf32>
    %1108 = arith.select %1103, %1104, %1107 : vector<8x4xi1>, vector<8x4xf32>
    %1109 = vector.extract_strided_slice %1099 {offsets = [0, 12], sizes = [8, 4], strides = [1, 1]} : vector<8x16xf32> to vector<8x4xf32>
    %1110 = arith.subf %1100, %1108 : vector<8x4xf32>
    %cst_157 = arith.constant 0.707106769 : f32
    %1111 = vector.broadcast %cst_157 : f32 to vector<8x4xf32>
    %1112 = arith.mulf %1110, %1111 : vector<8x4xf32>
    %1113 = arith.addf %1100, %1108 : vector<8x4xf32>
    %cst_158 = arith.constant 0.707106769 : f32
    %1114 = vector.broadcast %cst_158 : f32 to vector<8x4xf32>
    %1115 = arith.mulf %1113, %1114 : vector<8x4xf32>
    %1116 = arith.mulf %1112, %1101 : vector<8x4xf32>
    %1117 = arith.mulf %1112, %1109 : vector<8x4xf32>
    %cst_159 = arith.constant 0.000000e+00 : f32
    %1118 = vector.broadcast %cst_159 : f32 to vector<8x4xf32>
    %1119 = arith.subf %1118, %1117 : vector<8x4xf32>
    %1120 = arith.mulf %1115, %1101 : vector<8x4xf32>
    %1121 = arith.mulf %1115, %1109 : vector<8x4xf32>
    %1122 = vector.extract_strided_slice %1120 {offsets = [0, 0], sizes = [8, 1], strides = [1, 1]} : vector<8x4xf32> to vector<8x1xf32>
    %1123 = vector.shape_cast %1122 : vector<8x1xf32> to vector<8x1xf32>
    %1124 = vector.broadcast %1123 : vector<8x1xf32> to vector<8x16xf32>
    %1125 = vector.extract_strided_slice %1116 {offsets = [0, 0], sizes = [8, 1], strides = [1, 1]} : vector<8x4xf32> to vector<8x1xf32>
    %1126 = vector.shape_cast %1125 : vector<8x1xf32> to vector<8x1xf32>
    %1127 = vector.broadcast %1126 : vector<8x1xf32> to vector<8x16xf32>
    %1128 = arith.select %9, %1124, %1127 : vector<8x16xi1>, vector<8x16xf32>
    %1129 = vector.extract_strided_slice %1121 {offsets = [0, 0], sizes = [8, 1], strides = [1, 1]} : vector<8x4xf32> to vector<8x1xf32>
    %1130 = vector.shape_cast %1129 : vector<8x1xf32> to vector<8x1xf32>
    %1131 = vector.broadcast %1130 : vector<8x1xf32> to vector<8x16xf32>
    %1132 = vector.extract_strided_slice %1119 {offsets = [0, 0], sizes = [8, 1], strides = [1, 1]} : vector<8x4xf32> to vector<8x1xf32>
    %1133 = vector.shape_cast %1132 : vector<8x1xf32> to vector<8x1xf32>
    %1134 = vector.broadcast %1133 : vector<8x1xf32> to vector<8x16xf32>
    %1135 = arith.select %9, %1131, %1134 : vector<8x16xi1>, vector<8x16xf32>
    %1136 = vector.extract_strided_slice %1120 {offsets = [0, 1], sizes = [8, 1], strides = [1, 1]} : vector<8x4xf32> to vector<8x1xf32>
    %1137 = vector.shape_cast %1136 : vector<8x1xf32> to vector<8x1xf32>
    %1138 = vector.broadcast %1137 : vector<8x1xf32> to vector<8x16xf32>
    %1139 = vector.extract_strided_slice %1116 {offsets = [0, 1], sizes = [8, 1], strides = [1, 1]} : vector<8x4xf32> to vector<8x1xf32>
    %1140 = vector.shape_cast %1139 : vector<8x1xf32> to vector<8x1xf32>
    %1141 = vector.broadcast %1140 : vector<8x1xf32> to vector<8x16xf32>
    %1142 = arith.select %14, %1138, %1141 : vector<8x16xi1>, vector<8x16xf32>
    %1143 = vector.extract_strided_slice %1121 {offsets = [0, 1], sizes = [8, 1], strides = [1, 1]} : vector<8x4xf32> to vector<8x1xf32>
    %1144 = vector.shape_cast %1143 : vector<8x1xf32> to vector<8x1xf32>
    %1145 = vector.broadcast %1144 : vector<8x1xf32> to vector<8x16xf32>
    %1146 = vector.extract_strided_slice %1119 {offsets = [0, 1], sizes = [8, 1], strides = [1, 1]} : vector<8x4xf32> to vector<8x1xf32>
    %1147 = vector.shape_cast %1146 : vector<8x1xf32> to vector<8x1xf32>
    %1148 = vector.broadcast %1147 : vector<8x1xf32> to vector<8x16xf32>
    %1149 = arith.select %14, %1145, %1148 : vector<8x16xi1>, vector<8x16xf32>
    %1150 = vector.extract_strided_slice %1120 {offsets = [0, 2], sizes = [8, 1], strides = [1, 1]} : vector<8x4xf32> to vector<8x1xf32>
    %1151 = vector.shape_cast %1150 : vector<8x1xf32> to vector<8x1xf32>
    %1152 = vector.broadcast %1151 : vector<8x1xf32> to vector<8x16xf32>
    %1153 = vector.extract_strided_slice %1116 {offsets = [0, 2], sizes = [8, 1], strides = [1, 1]} : vector<8x4xf32> to vector<8x1xf32>
    %1154 = vector.shape_cast %1153 : vector<8x1xf32> to vector<8x1xf32>
    %1155 = vector.broadcast %1154 : vector<8x1xf32> to vector<8x16xf32>
    %1156 = arith.select %19, %1152, %1155 : vector<8x16xi1>, vector<8x16xf32>
    %1157 = vector.extract_strided_slice %1121 {offsets = [0, 2], sizes = [8, 1], strides = [1, 1]} : vector<8x4xf32> to vector<8x1xf32>
    %1158 = vector.shape_cast %1157 : vector<8x1xf32> to vector<8x1xf32>
    %1159 = vector.broadcast %1158 : vector<8x1xf32> to vector<8x16xf32>
    %1160 = vector.extract_strided_slice %1119 {offsets = [0, 2], sizes = [8, 1], strides = [1, 1]} : vector<8x4xf32> to vector<8x1xf32>
    %1161 = vector.shape_cast %1160 : vector<8x1xf32> to vector<8x1xf32>
    %1162 = vector.broadcast %1161 : vector<8x1xf32> to vector<8x16xf32>
    %1163 = arith.select %19, %1159, %1162 : vector<8x16xi1>, vector<8x16xf32>
    %1164 = vector.extract_strided_slice %1120 {offsets = [0, 3], sizes = [8, 1], strides = [1, 1]} : vector<8x4xf32> to vector<8x1xf32>
    %1165 = vector.shape_cast %1164 : vector<8x1xf32> to vector<8x1xf32>
    %1166 = vector.broadcast %1165 : vector<8x1xf32> to vector<8x16xf32>
    %1167 = vector.extract_strided_slice %1116 {offsets = [0, 3], sizes = [8, 1], strides = [1, 1]} : vector<8x4xf32> to vector<8x1xf32>
    %1168 = vector.shape_cast %1167 : vector<8x1xf32> to vector<8x1xf32>
    %1169 = vector.broadcast %1168 : vector<8x1xf32> to vector<8x16xf32>
    %1170 = arith.select %24, %1166, %1169 : vector<8x16xi1>, vector<8x16xf32>
    %1171 = vector.extract_strided_slice %1121 {offsets = [0, 3], sizes = [8, 1], strides = [1, 1]} : vector<8x4xf32> to vector<8x1xf32>
    %1172 = vector.shape_cast %1171 : vector<8x1xf32> to vector<8x1xf32>
    %1173 = vector.broadcast %1172 : vector<8x1xf32> to vector<8x16xf32>
    %1174 = vector.extract_strided_slice %1119 {offsets = [0, 3], sizes = [8, 1], strides = [1, 1]} : vector<8x4xf32> to vector<8x1xf32>
    %1175 = vector.shape_cast %1174 : vector<8x1xf32> to vector<8x1xf32>
    %1176 = vector.broadcast %1175 : vector<8x1xf32> to vector<8x16xf32>
    %1177 = arith.select %24, %1173, %1176 : vector<8x16xi1>, vector<8x16xf32>
    %1178 = arith.mulf %1128, %1142 : vector<8x16xf32>
    %1179 = arith.mulf %1135, %1149 : vector<8x16xf32>
    %1180 = arith.subf %1178, %1179 : vector<8x16xf32>
    %1181 = arith.mulf %1128, %1149 : vector<8x16xf32>
    %1182 = arith.mulf %1135, %1142 : vector<8x16xf32>
    %1183 = arith.addf %1181, %1182 : vector<8x16xf32>
    %1184 = arith.mulf %1156, %1170 : vector<8x16xf32>
    %1185 = arith.mulf %1163, %1177 : vector<8x16xf32>
    %1186 = arith.subf %1184, %1185 : vector<8x16xf32>
    %1187 = arith.mulf %1156, %1177 : vector<8x16xf32>
    %1188 = arith.mulf %1163, %1170 : vector<8x16xf32>
    %1189 = arith.addf %1187, %1188 : vector<8x16xf32>
    %1190 = arith.mulf %1180, %1186 : vector<8x16xf32>
    %1191 = arith.mulf %1183, %1189 : vector<8x16xf32>
    %1192 = arith.subf %1190, %1191 : vector<8x16xf32>
    %1193 = arith.mulf %1180, %1189 : vector<8x16xf32>
    %1194 = arith.mulf %1183, %1186 : vector<8x16xf32>
    %1195 = arith.addf %1193, %1194 : vector<8x16xf32>
    %1196 = tpu.concatenate %1192, %1195 in 1 : vector<8x16xf32>, vector<8x16xf32> -> vector<8x32xf32>
    %cst_160 = arith.constant dense<0.000000e+00> : vector<8x128xf32>
    %1197 = tpu.matmul %1196, %1, %cst_160 {dimension_numbers = #tpu.dot_dimension_numbers<[1], [0], [0], [1], [0, 0, 1, 1], [], []>} : vector<8x32xf32>, vector<32x128xf32>, vector<8x128xf32> -> vector<8x128xf32>
    %1198 = arith.mulf %1197, %1197 : vector<8x128xf32>
    %cst_161 = arith.constant dense<0.000000e+00> : vector<8x16xf32>
    %1199 = tpu.matmul %1198, %2, %cst_161 {dimension_numbers = #tpu.dot_dimension_numbers<[1], [0], [0], [1], [0, 0, 1, 1], [], []>} : vector<8x128xf32>, vector<128x16xf32>, vector<8x16xf32> -> vector<8x16xf32>
    %cst_162 = arith.constant 0.000000e+00 : f32
    %1200 = vector.broadcast %cst_162 : f32 to vector<8x16xf32>
    %1201 = arith.subf %1200, %1199 : vector<8x16xf32>
    %1202 = math.exp %1201 : vector<8x16xf32>
    %cst_163 = arith.constant 1.000000e+00 : f32
    %1203 = vector.broadcast %cst_163 : f32 to vector<8x16xf32>
    %1204 = arith.addf %1203, %1202 : vector<8x16xf32>
    %1205 = tpu.reciprocal %1204 {approx = true} : vector<8x16xf32> -> vector<8x16xf32>
    %1206 = arith.mulf %1204, %1205 : vector<8x16xf32>
    %cst_164 = arith.constant 2.000000e+00 : f32
    %1207 = vector.broadcast %cst_164 : f32 to vector<8x16xf32>
    %1208 = arith.subf %1207, %1206 : vector<8x16xf32>
    %1209 = arith.mulf %1205, %1208 : vector<8x16xf32>
    %1210 = vector.extract_strided_slice %1209 {offsets = [0, 0], sizes = [8, 4], strides = [1, 1]} : vector<8x16xf32> to vector<8x4xf32>
    %1211 = vector.extract_strided_slice %1209 {offsets = [0, 4], sizes = [8, 4], strides = [1, 1]} : vector<8x16xf32> to vector<8x4xf32>
    %1212 = vector.extract_strided_slice %1209 {offsets = [0, 8], sizes = [8, 4], strides = [1, 1]} : vector<8x16xf32> to vector<8x4xf32>
    %cst_165 = arith.constant 2.000000e+00 : f32
    %1213 = vector.broadcast %cst_165 : f32 to vector<8x4xf32>
    %1214 = arith.mulf %1213, %1212 : vector<8x4xf32>
    %cst_166 = arith.constant 1.000000e+00 : f32
    %1215 = vector.broadcast %cst_166 : f32 to vector<8x4xf32>
    %1216 = arith.subf %1214, %1215 : vector<8x4xf32>
    %1217 = vector.extract_strided_slice %1209 {offsets = [0, 12], sizes = [8, 4], strides = [1, 1]} : vector<8x16xf32> to vector<8x4xf32>
    %1218 = arith.mulf %1210, %957 : vector<8x4xf32>
    %1219 = arith.mulf %1211, %1216 : vector<8x4xf32>
    %1220 = arith.addf %1218, %1219 : vector<8x4xf32>
    %1221 = math.tanh %1220 : vector<8x4xf32>
    %1222 = arith.mulf %1217, %1221 : vector<8x4xf32>
    %1223 = arith.mulf %1222, %1222 : vector<8x4xf32>
    %1224 = tpu.concatenate %1222, %1223 in 1 : vector<8x4xf32>, vector<8x4xf32> -> vector<8x8xf32>
    %1225 = arith.mulf %1224, %1224 : vector<8x8xf32>
    %cst_167 = arith.constant 1.000000e+00 : f32
    %1226 = vector.broadcast %cst_167 : f32 to vector<8x8xf32>
    %1227 = arith.addf %1226, %1225 : vector<8x8xf32>
    %1228 = math.rsqrt %1227 : vector<8x8xf32>
    %cst_168 = arith.constant 1.000000e+00 : f32
    %1229 = vector.broadcast %cst_168 : f32 to vector<8x8xf32>
    %1230 = arith.addf %1229, %1228 : vector<8x8xf32>
    %cst_169 = arith.constant 5.000000e-01 : f32
    %1231 = vector.broadcast %cst_169 : f32 to vector<8x8xf32>
    %1232 = arith.mulf %1230, %1231 : vector<8x8xf32>
    %cst_170 = arith.constant 1.000000e+00 : f32
    %1233 = vector.broadcast %cst_170 : f32 to vector<8x8xf32>
    %1234 = arith.subf %1233, %1228 : vector<8x8xf32>
    %cst_171 = arith.constant 5.000000e-01 : f32
    %1235 = vector.broadcast %cst_171 : f32 to vector<8x8xf32>
    %1236 = arith.mulf %1234, %1235 : vector<8x8xf32>
    %cst_172 = arith.constant 0.000000e+00 : f32
    %1237 = vector.broadcast %cst_172 : f32 to vector<8x8xf32>
    %1238 = arith.maximumf %1236, %1237 : vector<8x8xf32>
    %1239 = tpu.concatenate %1232, %1238 in 1 : vector<8x8xf32>, vector<8x8xf32> -> vector<8x16xf32>
    %1240 = math.sqrt %1239 : vector<8x16xf32>
    %1241 = vector.extract_strided_slice %1240 {offsets = [0, 0], sizes = [8, 4], strides = [1, 1]} : vector<8x16xf32> to vector<8x4xf32>
    %1242 = vector.extract_strided_slice %1240 {offsets = [0, 4], sizes = [8, 4], strides = [1, 1]} : vector<8x16xf32> to vector<8x4xf32>
    %cst_173 = arith.constant 0.000000e+00 : f32
    %1243 = vector.broadcast %cst_173 : f32 to vector<8x4xf32>
    %1244 = arith.cmpf oge, %1222, %1243 : vector<8x4xf32>
    %1245 = vector.extract_strided_slice %1240 {offsets = [0, 8], sizes = [8, 4], strides = [1, 1]} : vector<8x16xf32> to vector<8x4xf32>
    %1246 = vector.extract_strided_slice %1240 {offsets = [0, 8], sizes = [8, 4], strides = [1, 1]} : vector<8x16xf32> to vector<8x4xf32>
    %cst_174 = arith.constant 0.000000e+00 : f32
    %1247 = vector.broadcast %cst_174 : f32 to vector<8x4xf32>
    %1248 = arith.subf %1247, %1246 : vector<8x4xf32>
    %1249 = arith.select %1244, %1245, %1248 : vector<8x4xi1>, vector<8x4xf32>
    %1250 = vector.extract_strided_slice %1240 {offsets = [0, 12], sizes = [8, 4], strides = [1, 1]} : vector<8x16xf32> to vector<8x4xf32>
    %1251 = arith.subf %1241, %1249 : vector<8x4xf32>
    %cst_175 = arith.constant 0.707106769 : f32
    %1252 = vector.broadcast %cst_175 : f32 to vector<8x4xf32>
    %1253 = arith.mulf %1251, %1252 : vector<8x4xf32>
    %1254 = arith.addf %1241, %1249 : vector<8x4xf32>
    %cst_176 = arith.constant 0.707106769 : f32
    %1255 = vector.broadcast %cst_176 : f32 to vector<8x4xf32>
    %1256 = arith.mulf %1254, %1255 : vector<8x4xf32>
    %1257 = arith.mulf %1253, %1242 : vector<8x4xf32>
    %1258 = arith.mulf %1253, %1250 : vector<8x4xf32>
    %cst_177 = arith.constant 0.000000e+00 : f32
    %1259 = vector.broadcast %cst_177 : f32 to vector<8x4xf32>
    %1260 = arith.subf %1259, %1258 : vector<8x4xf32>
    %1261 = arith.mulf %1256, %1242 : vector<8x4xf32>
    %1262 = arith.mulf %1256, %1250 : vector<8x4xf32>
    %1263 = vector.extract_strided_slice %1261 {offsets = [0, 0], sizes = [8, 1], strides = [1, 1]} : vector<8x4xf32> to vector<8x1xf32>
    %1264 = vector.shape_cast %1263 : vector<8x1xf32> to vector<8x1xf32>
    %1265 = vector.broadcast %1264 : vector<8x1xf32> to vector<8x16xf32>
    %1266 = vector.extract_strided_slice %1257 {offsets = [0, 0], sizes = [8, 1], strides = [1, 1]} : vector<8x4xf32> to vector<8x1xf32>
    %1267 = vector.shape_cast %1266 : vector<8x1xf32> to vector<8x1xf32>
    %1268 = vector.broadcast %1267 : vector<8x1xf32> to vector<8x16xf32>
    %1269 = arith.select %9, %1265, %1268 : vector<8x16xi1>, vector<8x16xf32>
    %1270 = vector.extract_strided_slice %1262 {offsets = [0, 0], sizes = [8, 1], strides = [1, 1]} : vector<8x4xf32> to vector<8x1xf32>
    %1271 = vector.shape_cast %1270 : vector<8x1xf32> to vector<8x1xf32>
    %1272 = vector.broadcast %1271 : vector<8x1xf32> to vector<8x16xf32>
    %1273 = vector.extract_strided_slice %1260 {offsets = [0, 0], sizes = [8, 1], strides = [1, 1]} : vector<8x4xf32> to vector<8x1xf32>
    %1274 = vector.shape_cast %1273 : vector<8x1xf32> to vector<8x1xf32>
    %1275 = vector.broadcast %1274 : vector<8x1xf32> to vector<8x16xf32>
    %1276 = arith.select %9, %1272, %1275 : vector<8x16xi1>, vector<8x16xf32>
    %1277 = vector.extract_strided_slice %1261 {offsets = [0, 1], sizes = [8, 1], strides = [1, 1]} : vector<8x4xf32> to vector<8x1xf32>
    %1278 = vector.shape_cast %1277 : vector<8x1xf32> to vector<8x1xf32>
    %1279 = vector.broadcast %1278 : vector<8x1xf32> to vector<8x16xf32>
    %1280 = vector.extract_strided_slice %1257 {offsets = [0, 1], sizes = [8, 1], strides = [1, 1]} : vector<8x4xf32> to vector<8x1xf32>
    %1281 = vector.shape_cast %1280 : vector<8x1xf32> to vector<8x1xf32>
    %1282 = vector.broadcast %1281 : vector<8x1xf32> to vector<8x16xf32>
    %1283 = arith.select %14, %1279, %1282 : vector<8x16xi1>, vector<8x16xf32>
    %1284 = vector.extract_strided_slice %1262 {offsets = [0, 1], sizes = [8, 1], strides = [1, 1]} : vector<8x4xf32> to vector<8x1xf32>
    %1285 = vector.shape_cast %1284 : vector<8x1xf32> to vector<8x1xf32>
    %1286 = vector.broadcast %1285 : vector<8x1xf32> to vector<8x16xf32>
    %1287 = vector.extract_strided_slice %1260 {offsets = [0, 1], sizes = [8, 1], strides = [1, 1]} : vector<8x4xf32> to vector<8x1xf32>
    %1288 = vector.shape_cast %1287 : vector<8x1xf32> to vector<8x1xf32>
    %1289 = vector.broadcast %1288 : vector<8x1xf32> to vector<8x16xf32>
    %1290 = arith.select %14, %1286, %1289 : vector<8x16xi1>, vector<8x16xf32>
    %1291 = vector.extract_strided_slice %1261 {offsets = [0, 2], sizes = [8, 1], strides = [1, 1]} : vector<8x4xf32> to vector<8x1xf32>
    %1292 = vector.shape_cast %1291 : vector<8x1xf32> to vector<8x1xf32>
    %1293 = vector.broadcast %1292 : vector<8x1xf32> to vector<8x16xf32>
    %1294 = vector.extract_strided_slice %1257 {offsets = [0, 2], sizes = [8, 1], strides = [1, 1]} : vector<8x4xf32> to vector<8x1xf32>
    %1295 = vector.shape_cast %1294 : vector<8x1xf32> to vector<8x1xf32>
    %1296 = vector.broadcast %1295 : vector<8x1xf32> to vector<8x16xf32>
    %1297 = arith.select %19, %1293, %1296 : vector<8x16xi1>, vector<8x16xf32>
    %1298 = vector.extract_strided_slice %1262 {offsets = [0, 2], sizes = [8, 1], strides = [1, 1]} : vector<8x4xf32> to vector<8x1xf32>
    %1299 = vector.shape_cast %1298 : vector<8x1xf32> to vector<8x1xf32>
    %1300 = vector.broadcast %1299 : vector<8x1xf32> to vector<8x16xf32>
    %1301 = vector.extract_strided_slice %1260 {offsets = [0, 2], sizes = [8, 1], strides = [1, 1]} : vector<8x4xf32> to vector<8x1xf32>
    %1302 = vector.shape_cast %1301 : vector<8x1xf32> to vector<8x1xf32>
    %1303 = vector.broadcast %1302 : vector<8x1xf32> to vector<8x16xf32>
    %1304 = arith.select %19, %1300, %1303 : vector<8x16xi1>, vector<8x16xf32>
    %1305 = vector.extract_strided_slice %1261 {offsets = [0, 3], sizes = [8, 1], strides = [1, 1]} : vector<8x4xf32> to vector<8x1xf32>
    %1306 = vector.shape_cast %1305 : vector<8x1xf32> to vector<8x1xf32>
    %1307 = vector.broadcast %1306 : vector<8x1xf32> to vector<8x16xf32>
    %1308 = vector.extract_strided_slice %1257 {offsets = [0, 3], sizes = [8, 1], strides = [1, 1]} : vector<8x4xf32> to vector<8x1xf32>
    %1309 = vector.shape_cast %1308 : vector<8x1xf32> to vector<8x1xf32>
    %1310 = vector.broadcast %1309 : vector<8x1xf32> to vector<8x16xf32>
    %1311 = arith.select %24, %1307, %1310 : vector<8x16xi1>, vector<8x16xf32>
    %1312 = vector.extract_strided_slice %1262 {offsets = [0, 3], sizes = [8, 1], strides = [1, 1]} : vector<8x4xf32> to vector<8x1xf32>
    %1313 = vector.shape_cast %1312 : vector<8x1xf32> to vector<8x1xf32>
    %1314 = vector.broadcast %1313 : vector<8x1xf32> to vector<8x16xf32>
    %1315 = vector.extract_strided_slice %1260 {offsets = [0, 3], sizes = [8, 1], strides = [1, 1]} : vector<8x4xf32> to vector<8x1xf32>
    %1316 = vector.shape_cast %1315 : vector<8x1xf32> to vector<8x1xf32>
    %1317 = vector.broadcast %1316 : vector<8x1xf32> to vector<8x16xf32>
    %1318 = arith.select %24, %1314, %1317 : vector<8x16xi1>, vector<8x16xf32>
    %1319 = arith.mulf %1269, %1283 : vector<8x16xf32>
    %1320 = arith.mulf %1276, %1290 : vector<8x16xf32>
    %1321 = arith.subf %1319, %1320 : vector<8x16xf32>
    %1322 = arith.mulf %1269, %1290 : vector<8x16xf32>
    %1323 = arith.mulf %1276, %1283 : vector<8x16xf32>
    %1324 = arith.addf %1322, %1323 : vector<8x16xf32>
    %1325 = arith.mulf %1297, %1311 : vector<8x16xf32>
    %1326 = arith.mulf %1304, %1318 : vector<8x16xf32>
    %1327 = arith.subf %1325, %1326 : vector<8x16xf32>
    %1328 = arith.mulf %1297, %1318 : vector<8x16xf32>
    %1329 = arith.mulf %1304, %1311 : vector<8x16xf32>
    %1330 = arith.addf %1328, %1329 : vector<8x16xf32>
    %1331 = arith.mulf %1321, %1327 : vector<8x16xf32>
    %1332 = arith.mulf %1324, %1330 : vector<8x16xf32>
    %1333 = arith.subf %1331, %1332 : vector<8x16xf32>
    %1334 = arith.mulf %1321, %1330 : vector<8x16xf32>
    %1335 = arith.mulf %1324, %1327 : vector<8x16xf32>
    %1336 = arith.addf %1334, %1335 : vector<8x16xf32>
    %1337 = tpu.concatenate %1333, %1336 in 1 : vector<8x16xf32>, vector<8x16xf32> -> vector<8x32xf32>
    %cst_178 = arith.constant dense<0.000000e+00> : vector<8x64xf32>
    %1338 = tpu.matmul %1337, %3, %cst_178 {dimension_numbers = #tpu.dot_dimension_numbers<[1], [0], [0], [1], [0, 0, 1, 1], [], []>} : vector<8x32xf32>, vector<32x64xf32>, vector<8x64xf32> -> vector<8x64xf32>
    %1339 = arith.mulf %1338, %1338 : vector<8x64xf32>
    %cst_179 = arith.constant dense<0.000000e+00> : vector<8x5xf32>
    %1340 = tpu.matmul %1339, %4, %cst_179 {dimension_numbers = #tpu.dot_dimension_numbers<[1], [0], [0], [1], [0, 0, 1, 1], [], []>} : vector<8x64xf32>, vector<64x5xf32>, vector<8x5xf32> -> vector<8x5xf32>
    %1341 = vector.extract_strided_slice %1340 {offsets = [0, 0], sizes = [8, 4], strides = [1, 1]} : vector<8x5xf32> to vector<8x4xf32>
    %c5 = arith.constant 5 : index
    %c0_180 = arith.constant 0 : index
    %c0_181 = arith.constant 0 : index
    %1342 = vector.load %arg0[%c5, %c0_180, %c0_181] : memref<8x8x4xf32, #tpu.memory_space<vmem>>, vector<1x8x4xf32>
    %1343 = vector.shape_cast %1342 : vector<1x8x4xf32> to vector<8x4xf32>
    %1344 = arith.addf %1343, %1341 : vector<8x4xf32>
    %1345 = arith.mulf %1344, %1344 : vector<8x4xf32>
    %1346 = tpu.concatenate %1344, %1345 in 1 : vector<8x4xf32>, vector<8x4xf32> -> vector<8x8xf32>
    %1347 = arith.mulf %1346, %1346 : vector<8x8xf32>
    %cst_182 = arith.constant 1.000000e+00 : f32
    %1348 = vector.broadcast %cst_182 : f32 to vector<8x8xf32>
    %1349 = arith.addf %1348, %1347 : vector<8x8xf32>
    %1350 = math.rsqrt %1349 : vector<8x8xf32>
    %cst_183 = arith.constant 1.000000e+00 : f32
    %1351 = vector.broadcast %cst_183 : f32 to vector<8x8xf32>
    %1352 = arith.addf %1351, %1350 : vector<8x8xf32>
    %cst_184 = arith.constant 5.000000e-01 : f32
    %1353 = vector.broadcast %cst_184 : f32 to vector<8x8xf32>
    %1354 = arith.mulf %1352, %1353 : vector<8x8xf32>
    %cst_185 = arith.constant 1.000000e+00 : f32
    %1355 = vector.broadcast %cst_185 : f32 to vector<8x8xf32>
    %1356 = arith.subf %1355, %1350 : vector<8x8xf32>
    %cst_186 = arith.constant 5.000000e-01 : f32
    %1357 = vector.broadcast %cst_186 : f32 to vector<8x8xf32>
    %1358 = arith.mulf %1356, %1357 : vector<8x8xf32>
    %cst_187 = arith.constant 0.000000e+00 : f32
    %1359 = vector.broadcast %cst_187 : f32 to vector<8x8xf32>
    %1360 = arith.maximumf %1358, %1359 : vector<8x8xf32>
    %1361 = tpu.concatenate %1354, %1360 in 1 : vector<8x8xf32>, vector<8x8xf32> -> vector<8x16xf32>
    %1362 = math.sqrt %1361 : vector<8x16xf32>
    %1363 = vector.extract_strided_slice %1362 {offsets = [0, 0], sizes = [8, 4], strides = [1, 1]} : vector<8x16xf32> to vector<8x4xf32>
    %1364 = vector.extract_strided_slice %1362 {offsets = [0, 4], sizes = [8, 4], strides = [1, 1]} : vector<8x16xf32> to vector<8x4xf32>
    %cst_188 = arith.constant 0.000000e+00 : f32
    %1365 = vector.broadcast %cst_188 : f32 to vector<8x4xf32>
    %1366 = arith.cmpf oge, %1344, %1365 : vector<8x4xf32>
    %1367 = vector.extract_strided_slice %1362 {offsets = [0, 8], sizes = [8, 4], strides = [1, 1]} : vector<8x16xf32> to vector<8x4xf32>
    %1368 = vector.extract_strided_slice %1362 {offsets = [0, 8], sizes = [8, 4], strides = [1, 1]} : vector<8x16xf32> to vector<8x4xf32>
    %cst_189 = arith.constant 0.000000e+00 : f32
    %1369 = vector.broadcast %cst_189 : f32 to vector<8x4xf32>
    %1370 = arith.subf %1369, %1368 : vector<8x4xf32>
    %1371 = arith.select %1366, %1367, %1370 : vector<8x4xi1>, vector<8x4xf32>
    %1372 = vector.extract_strided_slice %1362 {offsets = [0, 12], sizes = [8, 4], strides = [1, 1]} : vector<8x16xf32> to vector<8x4xf32>
    %1373 = arith.subf %1363, %1371 : vector<8x4xf32>
    %cst_190 = arith.constant 0.707106769 : f32
    %1374 = vector.broadcast %cst_190 : f32 to vector<8x4xf32>
    %1375 = arith.mulf %1373, %1374 : vector<8x4xf32>
    %1376 = arith.addf %1363, %1371 : vector<8x4xf32>
    %cst_191 = arith.constant 0.707106769 : f32
    %1377 = vector.broadcast %cst_191 : f32 to vector<8x4xf32>
    %1378 = arith.mulf %1376, %1377 : vector<8x4xf32>
    %1379 = arith.mulf %1375, %1364 : vector<8x4xf32>
    %1380 = arith.mulf %1375, %1372 : vector<8x4xf32>
    %cst_192 = arith.constant 0.000000e+00 : f32
    %1381 = vector.broadcast %cst_192 : f32 to vector<8x4xf32>
    %1382 = arith.subf %1381, %1380 : vector<8x4xf32>
    %1383 = arith.mulf %1378, %1364 : vector<8x4xf32>
    %1384 = arith.mulf %1378, %1372 : vector<8x4xf32>
    %1385 = vector.extract_strided_slice %1383 {offsets = [0, 0], sizes = [8, 1], strides = [1, 1]} : vector<8x4xf32> to vector<8x1xf32>
    %1386 = vector.shape_cast %1385 : vector<8x1xf32> to vector<8x1xf32>
    %1387 = vector.broadcast %1386 : vector<8x1xf32> to vector<8x16xf32>
    %1388 = vector.extract_strided_slice %1379 {offsets = [0, 0], sizes = [8, 1], strides = [1, 1]} : vector<8x4xf32> to vector<8x1xf32>
    %1389 = vector.shape_cast %1388 : vector<8x1xf32> to vector<8x1xf32>
    %1390 = vector.broadcast %1389 : vector<8x1xf32> to vector<8x16xf32>
    %1391 = arith.select %9, %1387, %1390 : vector<8x16xi1>, vector<8x16xf32>
    %1392 = vector.extract_strided_slice %1384 {offsets = [0, 0], sizes = [8, 1], strides = [1, 1]} : vector<8x4xf32> to vector<8x1xf32>
    %1393 = vector.shape_cast %1392 : vector<8x1xf32> to vector<8x1xf32>
    %1394 = vector.broadcast %1393 : vector<8x1xf32> to vector<8x16xf32>
    %1395 = vector.extract_strided_slice %1382 {offsets = [0, 0], sizes = [8, 1], strides = [1, 1]} : vector<8x4xf32> to vector<8x1xf32>
    %1396 = vector.shape_cast %1395 : vector<8x1xf32> to vector<8x1xf32>
    %1397 = vector.broadcast %1396 : vector<8x1xf32> to vector<8x16xf32>
    %1398 = arith.select %9, %1394, %1397 : vector<8x16xi1>, vector<8x16xf32>
    %1399 = vector.extract_strided_slice %1383 {offsets = [0, 1], sizes = [8, 1], strides = [1, 1]} : vector<8x4xf32> to vector<8x1xf32>
    %1400 = vector.shape_cast %1399 : vector<8x1xf32> to vector<8x1xf32>
    %1401 = vector.broadcast %1400 : vector<8x1xf32> to vector<8x16xf32>
    %1402 = vector.extract_strided_slice %1379 {offsets = [0, 1], sizes = [8, 1], strides = [1, 1]} : vector<8x4xf32> to vector<8x1xf32>
    %1403 = vector.shape_cast %1402 : vector<8x1xf32> to vector<8x1xf32>
    %1404 = vector.broadcast %1403 : vector<8x1xf32> to vector<8x16xf32>
    %1405 = arith.select %14, %1401, %1404 : vector<8x16xi1>, vector<8x16xf32>
    %1406 = vector.extract_strided_slice %1384 {offsets = [0, 1], sizes = [8, 1], strides = [1, 1]} : vector<8x4xf32> to vector<8x1xf32>
    %1407 = vector.shape_cast %1406 : vector<8x1xf32> to vector<8x1xf32>
    %1408 = vector.broadcast %1407 : vector<8x1xf32> to vector<8x16xf32>
    %1409 = vector.extract_strided_slice %1382 {offsets = [0, 1], sizes = [8, 1], strides = [1, 1]} : vector<8x4xf32> to vector<8x1xf32>
    %1410 = vector.shape_cast %1409 : vector<8x1xf32> to vector<8x1xf32>
    %1411 = vector.broadcast %1410 : vector<8x1xf32> to vector<8x16xf32>
    %1412 = arith.select %14, %1408, %1411 : vector<8x16xi1>, vector<8x16xf32>
    %1413 = vector.extract_strided_slice %1383 {offsets = [0, 2], sizes = [8, 1], strides = [1, 1]} : vector<8x4xf32> to vector<8x1xf32>
    %1414 = vector.shape_cast %1413 : vector<8x1xf32> to vector<8x1xf32>
    %1415 = vector.broadcast %1414 : vector<8x1xf32> to vector<8x16xf32>
    %1416 = vector.extract_strided_slice %1379 {offsets = [0, 2], sizes = [8, 1], strides = [1, 1]} : vector<8x4xf32> to vector<8x1xf32>
    %1417 = vector.shape_cast %1416 : vector<8x1xf32> to vector<8x1xf32>
    %1418 = vector.broadcast %1417 : vector<8x1xf32> to vector<8x16xf32>
    %1419 = arith.select %19, %1415, %1418 : vector<8x16xi1>, vector<8x16xf32>
    %1420 = vector.extract_strided_slice %1384 {offsets = [0, 2], sizes = [8, 1], strides = [1, 1]} : vector<8x4xf32> to vector<8x1xf32>
    %1421 = vector.shape_cast %1420 : vector<8x1xf32> to vector<8x1xf32>
    %1422 = vector.broadcast %1421 : vector<8x1xf32> to vector<8x16xf32>
    %1423 = vector.extract_strided_slice %1382 {offsets = [0, 2], sizes = [8, 1], strides = [1, 1]} : vector<8x4xf32> to vector<8x1xf32>
    %1424 = vector.shape_cast %1423 : vector<8x1xf32> to vector<8x1xf32>
    %1425 = vector.broadcast %1424 : vector<8x1xf32> to vector<8x16xf32>
    %1426 = arith.select %19, %1422, %1425 : vector<8x16xi1>, vector<8x16xf32>
    %1427 = vector.extract_strided_slice %1383 {offsets = [0, 3], sizes = [8, 1], strides = [1, 1]} : vector<8x4xf32> to vector<8x1xf32>
    %1428 = vector.shape_cast %1427 : vector<8x1xf32> to vector<8x1xf32>
    %1429 = vector.broadcast %1428 : vector<8x1xf32> to vector<8x16xf32>
    %1430 = vector.extract_strided_slice %1379 {offsets = [0, 3], sizes = [8, 1], strides = [1, 1]} : vector<8x4xf32> to vector<8x1xf32>
    %1431 = vector.shape_cast %1430 : vector<8x1xf32> to vector<8x1xf32>
    %1432 = vector.broadcast %1431 : vector<8x1xf32> to vector<8x16xf32>
    %1433 = arith.select %24, %1429, %1432 : vector<8x16xi1>, vector<8x16xf32>
    %1434 = vector.extract_strided_slice %1384 {offsets = [0, 3], sizes = [8, 1], strides = [1, 1]} : vector<8x4xf32> to vector<8x1xf32>
    %1435 = vector.shape_cast %1434 : vector<8x1xf32> to vector<8x1xf32>
    %1436 = vector.broadcast %1435 : vector<8x1xf32> to vector<8x16xf32>
    %1437 = vector.extract_strided_slice %1382 {offsets = [0, 3], sizes = [8, 1], strides = [1, 1]} : vector<8x4xf32> to vector<8x1xf32>
    %1438 = vector.shape_cast %1437 : vector<8x1xf32> to vector<8x1xf32>
    %1439 = vector.broadcast %1438 : vector<8x1xf32> to vector<8x16xf32>
    %1440 = arith.select %24, %1436, %1439 : vector<8x16xi1>, vector<8x16xf32>
    %1441 = arith.mulf %1391, %1405 : vector<8x16xf32>
    %1442 = arith.mulf %1398, %1412 : vector<8x16xf32>
    %1443 = arith.subf %1441, %1442 : vector<8x16xf32>
    %1444 = arith.mulf %1391, %1412 : vector<8x16xf32>
    %1445 = arith.mulf %1398, %1405 : vector<8x16xf32>
    %1446 = arith.addf %1444, %1445 : vector<8x16xf32>
    %1447 = arith.mulf %1419, %1433 : vector<8x16xf32>
    %1448 = arith.mulf %1426, %1440 : vector<8x16xf32>
    %1449 = arith.subf %1447, %1448 : vector<8x16xf32>
    %1450 = arith.mulf %1419, %1440 : vector<8x16xf32>
    %1451 = arith.mulf %1426, %1433 : vector<8x16xf32>
    %1452 = arith.addf %1450, %1451 : vector<8x16xf32>
    %1453 = arith.mulf %1443, %1449 : vector<8x16xf32>
    %1454 = arith.mulf %1446, %1452 : vector<8x16xf32>
    %1455 = arith.subf %1453, %1454 : vector<8x16xf32>
    %1456 = arith.mulf %1443, %1452 : vector<8x16xf32>
    %1457 = arith.mulf %1446, %1449 : vector<8x16xf32>
    %1458 = arith.addf %1456, %1457 : vector<8x16xf32>
    %1459 = tpu.concatenate %1455, %1458 in 1 : vector<8x16xf32>, vector<8x16xf32> -> vector<8x32xf32>
    %cst_193 = arith.constant dense<0.000000e+00> : vector<8x128xf32>
    %1460 = tpu.matmul %1459, %1, %cst_193 {dimension_numbers = #tpu.dot_dimension_numbers<[1], [0], [0], [1], [0, 0, 1, 1], [], []>} : vector<8x32xf32>, vector<32x128xf32>, vector<8x128xf32> -> vector<8x128xf32>
    %1461 = arith.mulf %1460, %1460 : vector<8x128xf32>
    %cst_194 = arith.constant dense<0.000000e+00> : vector<8x16xf32>
    %1462 = tpu.matmul %1461, %2, %cst_194 {dimension_numbers = #tpu.dot_dimension_numbers<[1], [0], [0], [1], [0, 0, 1, 1], [], []>} : vector<8x128xf32>, vector<128x16xf32>, vector<8x16xf32> -> vector<8x16xf32>
    %cst_195 = arith.constant 0.000000e+00 : f32
    %1463 = vector.broadcast %cst_195 : f32 to vector<8x16xf32>
    %1464 = arith.subf %1463, %1462 : vector<8x16xf32>
    %1465 = math.exp %1464 : vector<8x16xf32>
    %cst_196 = arith.constant 1.000000e+00 : f32
    %1466 = vector.broadcast %cst_196 : f32 to vector<8x16xf32>
    %1467 = arith.addf %1466, %1465 : vector<8x16xf32>
    %1468 = tpu.reciprocal %1467 {approx = true} : vector<8x16xf32> -> vector<8x16xf32>
    %1469 = arith.mulf %1467, %1468 : vector<8x16xf32>
    %cst_197 = arith.constant 2.000000e+00 : f32
    %1470 = vector.broadcast %cst_197 : f32 to vector<8x16xf32>
    %1471 = arith.subf %1470, %1469 : vector<8x16xf32>
    %1472 = arith.mulf %1468, %1471 : vector<8x16xf32>
    %1473 = vector.extract_strided_slice %1472 {offsets = [0, 0], sizes = [8, 4], strides = [1, 1]} : vector<8x16xf32> to vector<8x4xf32>
    %1474 = vector.extract_strided_slice %1472 {offsets = [0, 4], sizes = [8, 4], strides = [1, 1]} : vector<8x16xf32> to vector<8x4xf32>
    %1475 = vector.extract_strided_slice %1472 {offsets = [0, 8], sizes = [8, 4], strides = [1, 1]} : vector<8x16xf32> to vector<8x4xf32>
    %cst_198 = arith.constant 2.000000e+00 : f32
    %1476 = vector.broadcast %cst_198 : f32 to vector<8x4xf32>
    %1477 = arith.mulf %1476, %1475 : vector<8x4xf32>
    %cst_199 = arith.constant 1.000000e+00 : f32
    %1478 = vector.broadcast %cst_199 : f32 to vector<8x4xf32>
    %1479 = arith.subf %1477, %1478 : vector<8x4xf32>
    %1480 = vector.extract_strided_slice %1472 {offsets = [0, 12], sizes = [8, 4], strides = [1, 1]} : vector<8x16xf32> to vector<8x4xf32>
    %1481 = arith.mulf %1473, %1220 : vector<8x4xf32>
    %1482 = arith.mulf %1474, %1479 : vector<8x4xf32>
    %1483 = arith.addf %1481, %1482 : vector<8x4xf32>
    %1484 = math.tanh %1483 : vector<8x4xf32>
    %1485 = arith.mulf %1480, %1484 : vector<8x4xf32>
    %1486 = arith.mulf %1485, %1485 : vector<8x4xf32>
    %1487 = tpu.concatenate %1485, %1486 in 1 : vector<8x4xf32>, vector<8x4xf32> -> vector<8x8xf32>
    %1488 = arith.mulf %1487, %1487 : vector<8x8xf32>
    %cst_200 = arith.constant 1.000000e+00 : f32
    %1489 = vector.broadcast %cst_200 : f32 to vector<8x8xf32>
    %1490 = arith.addf %1489, %1488 : vector<8x8xf32>
    %1491 = math.rsqrt %1490 : vector<8x8xf32>
    %cst_201 = arith.constant 1.000000e+00 : f32
    %1492 = vector.broadcast %cst_201 : f32 to vector<8x8xf32>
    %1493 = arith.addf %1492, %1491 : vector<8x8xf32>
    %cst_202 = arith.constant 5.000000e-01 : f32
    %1494 = vector.broadcast %cst_202 : f32 to vector<8x8xf32>
    %1495 = arith.mulf %1493, %1494 : vector<8x8xf32>
    %cst_203 = arith.constant 1.000000e+00 : f32
    %1496 = vector.broadcast %cst_203 : f32 to vector<8x8xf32>
    %1497 = arith.subf %1496, %1491 : vector<8x8xf32>
    %cst_204 = arith.constant 5.000000e-01 : f32
    %1498 = vector.broadcast %cst_204 : f32 to vector<8x8xf32>
    %1499 = arith.mulf %1497, %1498 : vector<8x8xf32>
    %cst_205 = arith.constant 0.000000e+00 : f32
    %1500 = vector.broadcast %cst_205 : f32 to vector<8x8xf32>
    %1501 = arith.maximumf %1499, %1500 : vector<8x8xf32>
    %1502 = tpu.concatenate %1495, %1501 in 1 : vector<8x8xf32>, vector<8x8xf32> -> vector<8x16xf32>
    %1503 = math.sqrt %1502 : vector<8x16xf32>
    %1504 = vector.extract_strided_slice %1503 {offsets = [0, 0], sizes = [8, 4], strides = [1, 1]} : vector<8x16xf32> to vector<8x4xf32>
    %1505 = vector.extract_strided_slice %1503 {offsets = [0, 4], sizes = [8, 4], strides = [1, 1]} : vector<8x16xf32> to vector<8x4xf32>
    %cst_206 = arith.constant 0.000000e+00 : f32
    %1506 = vector.broadcast %cst_206 : f32 to vector<8x4xf32>
    %1507 = arith.cmpf oge, %1485, %1506 : vector<8x4xf32>
    %1508 = vector.extract_strided_slice %1503 {offsets = [0, 8], sizes = [8, 4], strides = [1, 1]} : vector<8x16xf32> to vector<8x4xf32>
    %1509 = vector.extract_strided_slice %1503 {offsets = [0, 8], sizes = [8, 4], strides = [1, 1]} : vector<8x16xf32> to vector<8x4xf32>
    %cst_207 = arith.constant 0.000000e+00 : f32
    %1510 = vector.broadcast %cst_207 : f32 to vector<8x4xf32>
    %1511 = arith.subf %1510, %1509 : vector<8x4xf32>
    %1512 = arith.select %1507, %1508, %1511 : vector<8x4xi1>, vector<8x4xf32>
    %1513 = vector.extract_strided_slice %1503 {offsets = [0, 12], sizes = [8, 4], strides = [1, 1]} : vector<8x16xf32> to vector<8x4xf32>
    %1514 = arith.subf %1504, %1512 : vector<8x4xf32>
    %cst_208 = arith.constant 0.707106769 : f32
    %1515 = vector.broadcast %cst_208 : f32 to vector<8x4xf32>
    %1516 = arith.mulf %1514, %1515 : vector<8x4xf32>
    %1517 = arith.addf %1504, %1512 : vector<8x4xf32>
    %cst_209 = arith.constant 0.707106769 : f32
    %1518 = vector.broadcast %cst_209 : f32 to vector<8x4xf32>
    %1519 = arith.mulf %1517, %1518 : vector<8x4xf32>
    %1520 = arith.mulf %1516, %1505 : vector<8x4xf32>
    %1521 = arith.mulf %1516, %1513 : vector<8x4xf32>
    %cst_210 = arith.constant 0.000000e+00 : f32
    %1522 = vector.broadcast %cst_210 : f32 to vector<8x4xf32>
    %1523 = arith.subf %1522, %1521 : vector<8x4xf32>
    %1524 = arith.mulf %1519, %1505 : vector<8x4xf32>
    %1525 = arith.mulf %1519, %1513 : vector<8x4xf32>
    %1526 = vector.extract_strided_slice %1524 {offsets = [0, 0], sizes = [8, 1], strides = [1, 1]} : vector<8x4xf32> to vector<8x1xf32>
    %1527 = vector.shape_cast %1526 : vector<8x1xf32> to vector<8x1xf32>
    %1528 = vector.broadcast %1527 : vector<8x1xf32> to vector<8x16xf32>
    %1529 = vector.extract_strided_slice %1520 {offsets = [0, 0], sizes = [8, 1], strides = [1, 1]} : vector<8x4xf32> to vector<8x1xf32>
    %1530 = vector.shape_cast %1529 : vector<8x1xf32> to vector<8x1xf32>
    %1531 = vector.broadcast %1530 : vector<8x1xf32> to vector<8x16xf32>
    %1532 = arith.select %9, %1528, %1531 : vector<8x16xi1>, vector<8x16xf32>
    %1533 = vector.extract_strided_slice %1525 {offsets = [0, 0], sizes = [8, 1], strides = [1, 1]} : vector<8x4xf32> to vector<8x1xf32>
    %1534 = vector.shape_cast %1533 : vector<8x1xf32> to vector<8x1xf32>
    %1535 = vector.broadcast %1534 : vector<8x1xf32> to vector<8x16xf32>
    %1536 = vector.extract_strided_slice %1523 {offsets = [0, 0], sizes = [8, 1], strides = [1, 1]} : vector<8x4xf32> to vector<8x1xf32>
    %1537 = vector.shape_cast %1536 : vector<8x1xf32> to vector<8x1xf32>
    %1538 = vector.broadcast %1537 : vector<8x1xf32> to vector<8x16xf32>
    %1539 = arith.select %9, %1535, %1538 : vector<8x16xi1>, vector<8x16xf32>
    %1540 = vector.extract_strided_slice %1524 {offsets = [0, 1], sizes = [8, 1], strides = [1, 1]} : vector<8x4xf32> to vector<8x1xf32>
    %1541 = vector.shape_cast %1540 : vector<8x1xf32> to vector<8x1xf32>
    %1542 = vector.broadcast %1541 : vector<8x1xf32> to vector<8x16xf32>
    %1543 = vector.extract_strided_slice %1520 {offsets = [0, 1], sizes = [8, 1], strides = [1, 1]} : vector<8x4xf32> to vector<8x1xf32>
    %1544 = vector.shape_cast %1543 : vector<8x1xf32> to vector<8x1xf32>
    %1545 = vector.broadcast %1544 : vector<8x1xf32> to vector<8x16xf32>
    %1546 = arith.select %14, %1542, %1545 : vector<8x16xi1>, vector<8x16xf32>
    %1547 = vector.extract_strided_slice %1525 {offsets = [0, 1], sizes = [8, 1], strides = [1, 1]} : vector<8x4xf32> to vector<8x1xf32>
    %1548 = vector.shape_cast %1547 : vector<8x1xf32> to vector<8x1xf32>
    %1549 = vector.broadcast %1548 : vector<8x1xf32> to vector<8x16xf32>
    %1550 = vector.extract_strided_slice %1523 {offsets = [0, 1], sizes = [8, 1], strides = [1, 1]} : vector<8x4xf32> to vector<8x1xf32>
    %1551 = vector.shape_cast %1550 : vector<8x1xf32> to vector<8x1xf32>
    %1552 = vector.broadcast %1551 : vector<8x1xf32> to vector<8x16xf32>
    %1553 = arith.select %14, %1549, %1552 : vector<8x16xi1>, vector<8x16xf32>
    %1554 = vector.extract_strided_slice %1524 {offsets = [0, 2], sizes = [8, 1], strides = [1, 1]} : vector<8x4xf32> to vector<8x1xf32>
    %1555 = vector.shape_cast %1554 : vector<8x1xf32> to vector<8x1xf32>
    %1556 = vector.broadcast %1555 : vector<8x1xf32> to vector<8x16xf32>
    %1557 = vector.extract_strided_slice %1520 {offsets = [0, 2], sizes = [8, 1], strides = [1, 1]} : vector<8x4xf32> to vector<8x1xf32>
    %1558 = vector.shape_cast %1557 : vector<8x1xf32> to vector<8x1xf32>
    %1559 = vector.broadcast %1558 : vector<8x1xf32> to vector<8x16xf32>
    %1560 = arith.select %19, %1556, %1559 : vector<8x16xi1>, vector<8x16xf32>
    %1561 = vector.extract_strided_slice %1525 {offsets = [0, 2], sizes = [8, 1], strides = [1, 1]} : vector<8x4xf32> to vector<8x1xf32>
    %1562 = vector.shape_cast %1561 : vector<8x1xf32> to vector<8x1xf32>
    %1563 = vector.broadcast %1562 : vector<8x1xf32> to vector<8x16xf32>
    %1564 = vector.extract_strided_slice %1523 {offsets = [0, 2], sizes = [8, 1], strides = [1, 1]} : vector<8x4xf32> to vector<8x1xf32>
    %1565 = vector.shape_cast %1564 : vector<8x1xf32> to vector<8x1xf32>
    %1566 = vector.broadcast %1565 : vector<8x1xf32> to vector<8x16xf32>
    %1567 = arith.select %19, %1563, %1566 : vector<8x16xi1>, vector<8x16xf32>
    %1568 = vector.extract_strided_slice %1524 {offsets = [0, 3], sizes = [8, 1], strides = [1, 1]} : vector<8x4xf32> to vector<8x1xf32>
    %1569 = vector.shape_cast %1568 : vector<8x1xf32> to vector<8x1xf32>
    %1570 = vector.broadcast %1569 : vector<8x1xf32> to vector<8x16xf32>
    %1571 = vector.extract_strided_slice %1520 {offsets = [0, 3], sizes = [8, 1], strides = [1, 1]} : vector<8x4xf32> to vector<8x1xf32>
    %1572 = vector.shape_cast %1571 : vector<8x1xf32> to vector<8x1xf32>
    %1573 = vector.broadcast %1572 : vector<8x1xf32> to vector<8x16xf32>
    %1574 = arith.select %24, %1570, %1573 : vector<8x16xi1>, vector<8x16xf32>
    %1575 = vector.extract_strided_slice %1525 {offsets = [0, 3], sizes = [8, 1], strides = [1, 1]} : vector<8x4xf32> to vector<8x1xf32>
    %1576 = vector.shape_cast %1575 : vector<8x1xf32> to vector<8x1xf32>
    %1577 = vector.broadcast %1576 : vector<8x1xf32> to vector<8x16xf32>
    %1578 = vector.extract_strided_slice %1523 {offsets = [0, 3], sizes = [8, 1], strides = [1, 1]} : vector<8x4xf32> to vector<8x1xf32>
    %1579 = vector.shape_cast %1578 : vector<8x1xf32> to vector<8x1xf32>
    %1580 = vector.broadcast %1579 : vector<8x1xf32> to vector<8x16xf32>
    %1581 = arith.select %24, %1577, %1580 : vector<8x16xi1>, vector<8x16xf32>
    %1582 = arith.mulf %1532, %1546 : vector<8x16xf32>
    %1583 = arith.mulf %1539, %1553 : vector<8x16xf32>
    %1584 = arith.subf %1582, %1583 : vector<8x16xf32>
    %1585 = arith.mulf %1532, %1553 : vector<8x16xf32>
    %1586 = arith.mulf %1539, %1546 : vector<8x16xf32>
    %1587 = arith.addf %1585, %1586 : vector<8x16xf32>
    %1588 = arith.mulf %1560, %1574 : vector<8x16xf32>
    %1589 = arith.mulf %1567, %1581 : vector<8x16xf32>
    %1590 = arith.subf %1588, %1589 : vector<8x16xf32>
    %1591 = arith.mulf %1560, %1581 : vector<8x16xf32>
    %1592 = arith.mulf %1567, %1574 : vector<8x16xf32>
    %1593 = arith.addf %1591, %1592 : vector<8x16xf32>
    %1594 = arith.mulf %1584, %1590 : vector<8x16xf32>
    %1595 = arith.mulf %1587, %1593 : vector<8x16xf32>
    %1596 = arith.subf %1594, %1595 : vector<8x16xf32>
    %1597 = arith.mulf %1584, %1593 : vector<8x16xf32>
    %1598 = arith.mulf %1587, %1590 : vector<8x16xf32>
    %1599 = arith.addf %1597, %1598 : vector<8x16xf32>
    %1600 = tpu.concatenate %1596, %1599 in 1 : vector<8x16xf32>, vector<8x16xf32> -> vector<8x32xf32>
    %cst_211 = arith.constant dense<0.000000e+00> : vector<8x64xf32>
    %1601 = tpu.matmul %1600, %3, %cst_211 {dimension_numbers = #tpu.dot_dimension_numbers<[1], [0], [0], [1], [0, 0, 1, 1], [], []>} : vector<8x32xf32>, vector<32x64xf32>, vector<8x64xf32> -> vector<8x64xf32>
    %1602 = arith.mulf %1601, %1601 : vector<8x64xf32>
    %cst_212 = arith.constant dense<0.000000e+00> : vector<8x5xf32>
    %1603 = tpu.matmul %1602, %4, %cst_212 {dimension_numbers = #tpu.dot_dimension_numbers<[1], [0], [0], [1], [0, 0, 1, 1], [], []>} : vector<8x64xf32>, vector<64x5xf32>, vector<8x5xf32> -> vector<8x5xf32>
    %1604 = vector.extract_strided_slice %1603 {offsets = [0, 0], sizes = [8, 4], strides = [1, 1]} : vector<8x5xf32> to vector<8x4xf32>
    %c6 = arith.constant 6 : index
    %c0_213 = arith.constant 0 : index
    %c0_214 = arith.constant 0 : index
    %1605 = vector.load %arg0[%c6, %c0_213, %c0_214] : memref<8x8x4xf32, #tpu.memory_space<vmem>>, vector<1x8x4xf32>
    %1606 = vector.shape_cast %1605 : vector<1x8x4xf32> to vector<8x4xf32>
    %1607 = arith.addf %1606, %1604 : vector<8x4xf32>
    %1608 = arith.mulf %1607, %1607 : vector<8x4xf32>
    %1609 = tpu.concatenate %1607, %1608 in 1 : vector<8x4xf32>, vector<8x4xf32> -> vector<8x8xf32>
    %1610 = arith.mulf %1609, %1609 : vector<8x8xf32>
    %cst_215 = arith.constant 1.000000e+00 : f32
    %1611 = vector.broadcast %cst_215 : f32 to vector<8x8xf32>
    %1612 = arith.addf %1611, %1610 : vector<8x8xf32>
    %1613 = math.rsqrt %1612 : vector<8x8xf32>
    %cst_216 = arith.constant 1.000000e+00 : f32
    %1614 = vector.broadcast %cst_216 : f32 to vector<8x8xf32>
    %1615 = arith.addf %1614, %1613 : vector<8x8xf32>
    %cst_217 = arith.constant 5.000000e-01 : f32
    %1616 = vector.broadcast %cst_217 : f32 to vector<8x8xf32>
    %1617 = arith.mulf %1615, %1616 : vector<8x8xf32>
    %cst_218 = arith.constant 1.000000e+00 : f32
    %1618 = vector.broadcast %cst_218 : f32 to vector<8x8xf32>
    %1619 = arith.subf %1618, %1613 : vector<8x8xf32>
    %cst_219 = arith.constant 5.000000e-01 : f32
    %1620 = vector.broadcast %cst_219 : f32 to vector<8x8xf32>
    %1621 = arith.mulf %1619, %1620 : vector<8x8xf32>
    %cst_220 = arith.constant 0.000000e+00 : f32
    %1622 = vector.broadcast %cst_220 : f32 to vector<8x8xf32>
    %1623 = arith.maximumf %1621, %1622 : vector<8x8xf32>
    %1624 = tpu.concatenate %1617, %1623 in 1 : vector<8x8xf32>, vector<8x8xf32> -> vector<8x16xf32>
    %1625 = math.sqrt %1624 : vector<8x16xf32>
    %1626 = vector.extract_strided_slice %1625 {offsets = [0, 0], sizes = [8, 4], strides = [1, 1]} : vector<8x16xf32> to vector<8x4xf32>
    %1627 = vector.extract_strided_slice %1625 {offsets = [0, 4], sizes = [8, 4], strides = [1, 1]} : vector<8x16xf32> to vector<8x4xf32>
    %cst_221 = arith.constant 0.000000e+00 : f32
    %1628 = vector.broadcast %cst_221 : f32 to vector<8x4xf32>
    %1629 = arith.cmpf oge, %1607, %1628 : vector<8x4xf32>
    %1630 = vector.extract_strided_slice %1625 {offsets = [0, 8], sizes = [8, 4], strides = [1, 1]} : vector<8x16xf32> to vector<8x4xf32>
    %1631 = vector.extract_strided_slice %1625 {offsets = [0, 8], sizes = [8, 4], strides = [1, 1]} : vector<8x16xf32> to vector<8x4xf32>
    %cst_222 = arith.constant 0.000000e+00 : f32
    %1632 = vector.broadcast %cst_222 : f32 to vector<8x4xf32>
    %1633 = arith.subf %1632, %1631 : vector<8x4xf32>
    %1634 = arith.select %1629, %1630, %1633 : vector<8x4xi1>, vector<8x4xf32>
    %1635 = vector.extract_strided_slice %1625 {offsets = [0, 12], sizes = [8, 4], strides = [1, 1]} : vector<8x16xf32> to vector<8x4xf32>
    %1636 = arith.subf %1626, %1634 : vector<8x4xf32>
    %cst_223 = arith.constant 0.707106769 : f32
    %1637 = vector.broadcast %cst_223 : f32 to vector<8x4xf32>
    %1638 = arith.mulf %1636, %1637 : vector<8x4xf32>
    %1639 = arith.addf %1626, %1634 : vector<8x4xf32>
    %cst_224 = arith.constant 0.707106769 : f32
    %1640 = vector.broadcast %cst_224 : f32 to vector<8x4xf32>
    %1641 = arith.mulf %1639, %1640 : vector<8x4xf32>
    %1642 = arith.mulf %1638, %1627 : vector<8x4xf32>
    %1643 = arith.mulf %1638, %1635 : vector<8x4xf32>
    %cst_225 = arith.constant 0.000000e+00 : f32
    %1644 = vector.broadcast %cst_225 : f32 to vector<8x4xf32>
    %1645 = arith.subf %1644, %1643 : vector<8x4xf32>
    %1646 = arith.mulf %1641, %1627 : vector<8x4xf32>
    %1647 = arith.mulf %1641, %1635 : vector<8x4xf32>
    %1648 = vector.extract_strided_slice %1646 {offsets = [0, 0], sizes = [8, 1], strides = [1, 1]} : vector<8x4xf32> to vector<8x1xf32>
    %1649 = vector.shape_cast %1648 : vector<8x1xf32> to vector<8x1xf32>
    %1650 = vector.broadcast %1649 : vector<8x1xf32> to vector<8x16xf32>
    %1651 = vector.extract_strided_slice %1642 {offsets = [0, 0], sizes = [8, 1], strides = [1, 1]} : vector<8x4xf32> to vector<8x1xf32>
    %1652 = vector.shape_cast %1651 : vector<8x1xf32> to vector<8x1xf32>
    %1653 = vector.broadcast %1652 : vector<8x1xf32> to vector<8x16xf32>
    %1654 = arith.select %9, %1650, %1653 : vector<8x16xi1>, vector<8x16xf32>
    %1655 = vector.extract_strided_slice %1647 {offsets = [0, 0], sizes = [8, 1], strides = [1, 1]} : vector<8x4xf32> to vector<8x1xf32>
    %1656 = vector.shape_cast %1655 : vector<8x1xf32> to vector<8x1xf32>
    %1657 = vector.broadcast %1656 : vector<8x1xf32> to vector<8x16xf32>
    %1658 = vector.extract_strided_slice %1645 {offsets = [0, 0], sizes = [8, 1], strides = [1, 1]} : vector<8x4xf32> to vector<8x1xf32>
    %1659 = vector.shape_cast %1658 : vector<8x1xf32> to vector<8x1xf32>
    %1660 = vector.broadcast %1659 : vector<8x1xf32> to vector<8x16xf32>
    %1661 = arith.select %9, %1657, %1660 : vector<8x16xi1>, vector<8x16xf32>
    %1662 = vector.extract_strided_slice %1646 {offsets = [0, 1], sizes = [8, 1], strides = [1, 1]} : vector<8x4xf32> to vector<8x1xf32>
    %1663 = vector.shape_cast %1662 : vector<8x1xf32> to vector<8x1xf32>
    %1664 = vector.broadcast %1663 : vector<8x1xf32> to vector<8x16xf32>
    %1665 = vector.extract_strided_slice %1642 {offsets = [0, 1], sizes = [8, 1], strides = [1, 1]} : vector<8x4xf32> to vector<8x1xf32>
    %1666 = vector.shape_cast %1665 : vector<8x1xf32> to vector<8x1xf32>
    %1667 = vector.broadcast %1666 : vector<8x1xf32> to vector<8x16xf32>
    %1668 = arith.select %14, %1664, %1667 : vector<8x16xi1>, vector<8x16xf32>
    %1669 = vector.extract_strided_slice %1647 {offsets = [0, 1], sizes = [8, 1], strides = [1, 1]} : vector<8x4xf32> to vector<8x1xf32>
    %1670 = vector.shape_cast %1669 : vector<8x1xf32> to vector<8x1xf32>
    %1671 = vector.broadcast %1670 : vector<8x1xf32> to vector<8x16xf32>
    %1672 = vector.extract_strided_slice %1645 {offsets = [0, 1], sizes = [8, 1], strides = [1, 1]} : vector<8x4xf32> to vector<8x1xf32>
    %1673 = vector.shape_cast %1672 : vector<8x1xf32> to vector<8x1xf32>
    %1674 = vector.broadcast %1673 : vector<8x1xf32> to vector<8x16xf32>
    %1675 = arith.select %14, %1671, %1674 : vector<8x16xi1>, vector<8x16xf32>
    %1676 = vector.extract_strided_slice %1646 {offsets = [0, 2], sizes = [8, 1], strides = [1, 1]} : vector<8x4xf32> to vector<8x1xf32>
    %1677 = vector.shape_cast %1676 : vector<8x1xf32> to vector<8x1xf32>
    %1678 = vector.broadcast %1677 : vector<8x1xf32> to vector<8x16xf32>
    %1679 = vector.extract_strided_slice %1642 {offsets = [0, 2], sizes = [8, 1], strides = [1, 1]} : vector<8x4xf32> to vector<8x1xf32>
    %1680 = vector.shape_cast %1679 : vector<8x1xf32> to vector<8x1xf32>
    %1681 = vector.broadcast %1680 : vector<8x1xf32> to vector<8x16xf32>
    %1682 = arith.select %19, %1678, %1681 : vector<8x16xi1>, vector<8x16xf32>
    %1683 = vector.extract_strided_slice %1647 {offsets = [0, 2], sizes = [8, 1], strides = [1, 1]} : vector<8x4xf32> to vector<8x1xf32>
    %1684 = vector.shape_cast %1683 : vector<8x1xf32> to vector<8x1xf32>
    %1685 = vector.broadcast %1684 : vector<8x1xf32> to vector<8x16xf32>
    %1686 = vector.extract_strided_slice %1645 {offsets = [0, 2], sizes = [8, 1], strides = [1, 1]} : vector<8x4xf32> to vector<8x1xf32>
    %1687 = vector.shape_cast %1686 : vector<8x1xf32> to vector<8x1xf32>
    %1688 = vector.broadcast %1687 : vector<8x1xf32> to vector<8x16xf32>
    %1689 = arith.select %19, %1685, %1688 : vector<8x16xi1>, vector<8x16xf32>
    %1690 = vector.extract_strided_slice %1646 {offsets = [0, 3], sizes = [8, 1], strides = [1, 1]} : vector<8x4xf32> to vector<8x1xf32>
    %1691 = vector.shape_cast %1690 : vector<8x1xf32> to vector<8x1xf32>
    %1692 = vector.broadcast %1691 : vector<8x1xf32> to vector<8x16xf32>
    %1693 = vector.extract_strided_slice %1642 {offsets = [0, 3], sizes = [8, 1], strides = [1, 1]} : vector<8x4xf32> to vector<8x1xf32>
    %1694 = vector.shape_cast %1693 : vector<8x1xf32> to vector<8x1xf32>
    %1695 = vector.broadcast %1694 : vector<8x1xf32> to vector<8x16xf32>
    %1696 = arith.select %24, %1692, %1695 : vector<8x16xi1>, vector<8x16xf32>
    %1697 = vector.extract_strided_slice %1647 {offsets = [0, 3], sizes = [8, 1], strides = [1, 1]} : vector<8x4xf32> to vector<8x1xf32>
    %1698 = vector.shape_cast %1697 : vector<8x1xf32> to vector<8x1xf32>
    %1699 = vector.broadcast %1698 : vector<8x1xf32> to vector<8x16xf32>
    %1700 = vector.extract_strided_slice %1645 {offsets = [0, 3], sizes = [8, 1], strides = [1, 1]} : vector<8x4xf32> to vector<8x1xf32>
    %1701 = vector.shape_cast %1700 : vector<8x1xf32> to vector<8x1xf32>
    %1702 = vector.broadcast %1701 : vector<8x1xf32> to vector<8x16xf32>
    %1703 = arith.select %24, %1699, %1702 : vector<8x16xi1>, vector<8x16xf32>
    %1704 = arith.mulf %1654, %1668 : vector<8x16xf32>
    %1705 = arith.mulf %1661, %1675 : vector<8x16xf32>
    %1706 = arith.subf %1704, %1705 : vector<8x16xf32>
    %1707 = arith.mulf %1654, %1675 : vector<8x16xf32>
    %1708 = arith.mulf %1661, %1668 : vector<8x16xf32>
    %1709 = arith.addf %1707, %1708 : vector<8x16xf32>
    %1710 = arith.mulf %1682, %1696 : vector<8x16xf32>
    %1711 = arith.mulf %1689, %1703 : vector<8x16xf32>
    %1712 = arith.subf %1710, %1711 : vector<8x16xf32>
    %1713 = arith.mulf %1682, %1703 : vector<8x16xf32>
    %1714 = arith.mulf %1689, %1696 : vector<8x16xf32>
    %1715 = arith.addf %1713, %1714 : vector<8x16xf32>
    %1716 = arith.mulf %1706, %1712 : vector<8x16xf32>
    %1717 = arith.mulf %1709, %1715 : vector<8x16xf32>
    %1718 = arith.subf %1716, %1717 : vector<8x16xf32>
    %1719 = arith.mulf %1706, %1715 : vector<8x16xf32>
    %1720 = arith.mulf %1709, %1712 : vector<8x16xf32>
    %1721 = arith.addf %1719, %1720 : vector<8x16xf32>
    %1722 = tpu.concatenate %1718, %1721 in 1 : vector<8x16xf32>, vector<8x16xf32> -> vector<8x32xf32>
    %cst_226 = arith.constant dense<0.000000e+00> : vector<8x128xf32>
    %1723 = tpu.matmul %1722, %1, %cst_226 {dimension_numbers = #tpu.dot_dimension_numbers<[1], [0], [0], [1], [0, 0, 1, 1], [], []>} : vector<8x32xf32>, vector<32x128xf32>, vector<8x128xf32> -> vector<8x128xf32>
    %1724 = arith.mulf %1723, %1723 : vector<8x128xf32>
    %cst_227 = arith.constant dense<0.000000e+00> : vector<8x16xf32>
    %1725 = tpu.matmul %1724, %2, %cst_227 {dimension_numbers = #tpu.dot_dimension_numbers<[1], [0], [0], [1], [0, 0, 1, 1], [], []>} : vector<8x128xf32>, vector<128x16xf32>, vector<8x16xf32> -> vector<8x16xf32>
    %cst_228 = arith.constant 0.000000e+00 : f32
    %1726 = vector.broadcast %cst_228 : f32 to vector<8x16xf32>
    %1727 = arith.subf %1726, %1725 : vector<8x16xf32>
    %1728 = math.exp %1727 : vector<8x16xf32>
    %cst_229 = arith.constant 1.000000e+00 : f32
    %1729 = vector.broadcast %cst_229 : f32 to vector<8x16xf32>
    %1730 = arith.addf %1729, %1728 : vector<8x16xf32>
    %1731 = tpu.reciprocal %1730 {approx = true} : vector<8x16xf32> -> vector<8x16xf32>
    %1732 = arith.mulf %1730, %1731 : vector<8x16xf32>
    %cst_230 = arith.constant 2.000000e+00 : f32
    %1733 = vector.broadcast %cst_230 : f32 to vector<8x16xf32>
    %1734 = arith.subf %1733, %1732 : vector<8x16xf32>
    %1735 = arith.mulf %1731, %1734 : vector<8x16xf32>
    %1736 = vector.extract_strided_slice %1735 {offsets = [0, 0], sizes = [8, 4], strides = [1, 1]} : vector<8x16xf32> to vector<8x4xf32>
    %1737 = vector.extract_strided_slice %1735 {offsets = [0, 4], sizes = [8, 4], strides = [1, 1]} : vector<8x16xf32> to vector<8x4xf32>
    %1738 = vector.extract_strided_slice %1735 {offsets = [0, 8], sizes = [8, 4], strides = [1, 1]} : vector<8x16xf32> to vector<8x4xf32>
    %cst_231 = arith.constant 2.000000e+00 : f32
    %1739 = vector.broadcast %cst_231 : f32 to vector<8x4xf32>
    %1740 = arith.mulf %1739, %1738 : vector<8x4xf32>
    %cst_232 = arith.constant 1.000000e+00 : f32
    %1741 = vector.broadcast %cst_232 : f32 to vector<8x4xf32>
    %1742 = arith.subf %1740, %1741 : vector<8x4xf32>
    %1743 = vector.extract_strided_slice %1735 {offsets = [0, 12], sizes = [8, 4], strides = [1, 1]} : vector<8x16xf32> to vector<8x4xf32>
    %1744 = arith.mulf %1736, %1483 : vector<8x4xf32>
    %1745 = arith.mulf %1737, %1742 : vector<8x4xf32>
    %1746 = arith.addf %1744, %1745 : vector<8x4xf32>
    %1747 = math.tanh %1746 : vector<8x4xf32>
    %1748 = arith.mulf %1743, %1747 : vector<8x4xf32>
    %1749 = arith.mulf %1748, %1748 : vector<8x4xf32>
    %1750 = tpu.concatenate %1748, %1749 in 1 : vector<8x4xf32>, vector<8x4xf32> -> vector<8x8xf32>
    %1751 = arith.mulf %1750, %1750 : vector<8x8xf32>
    %cst_233 = arith.constant 1.000000e+00 : f32
    %1752 = vector.broadcast %cst_233 : f32 to vector<8x8xf32>
    %1753 = arith.addf %1752, %1751 : vector<8x8xf32>
    %1754 = math.rsqrt %1753 : vector<8x8xf32>
    %cst_234 = arith.constant 1.000000e+00 : f32
    %1755 = vector.broadcast %cst_234 : f32 to vector<8x8xf32>
    %1756 = arith.addf %1755, %1754 : vector<8x8xf32>
    %cst_235 = arith.constant 5.000000e-01 : f32
    %1757 = vector.broadcast %cst_235 : f32 to vector<8x8xf32>
    %1758 = arith.mulf %1756, %1757 : vector<8x8xf32>
    %cst_236 = arith.constant 1.000000e+00 : f32
    %1759 = vector.broadcast %cst_236 : f32 to vector<8x8xf32>
    %1760 = arith.subf %1759, %1754 : vector<8x8xf32>
    %cst_237 = arith.constant 5.000000e-01 : f32
    %1761 = vector.broadcast %cst_237 : f32 to vector<8x8xf32>
    %1762 = arith.mulf %1760, %1761 : vector<8x8xf32>
    %cst_238 = arith.constant 0.000000e+00 : f32
    %1763 = vector.broadcast %cst_238 : f32 to vector<8x8xf32>
    %1764 = arith.maximumf %1762, %1763 : vector<8x8xf32>
    %1765 = tpu.concatenate %1758, %1764 in 1 : vector<8x8xf32>, vector<8x8xf32> -> vector<8x16xf32>
    %1766 = math.sqrt %1765 : vector<8x16xf32>
    %1767 = vector.extract_strided_slice %1766 {offsets = [0, 0], sizes = [8, 4], strides = [1, 1]} : vector<8x16xf32> to vector<8x4xf32>
    %1768 = vector.extract_strided_slice %1766 {offsets = [0, 4], sizes = [8, 4], strides = [1, 1]} : vector<8x16xf32> to vector<8x4xf32>
    %cst_239 = arith.constant 0.000000e+00 : f32
    %1769 = vector.broadcast %cst_239 : f32 to vector<8x4xf32>
    %1770 = arith.cmpf oge, %1748, %1769 : vector<8x4xf32>
    %1771 = vector.extract_strided_slice %1766 {offsets = [0, 8], sizes = [8, 4], strides = [1, 1]} : vector<8x16xf32> to vector<8x4xf32>
    %1772 = vector.extract_strided_slice %1766 {offsets = [0, 8], sizes = [8, 4], strides = [1, 1]} : vector<8x16xf32> to vector<8x4xf32>
    %cst_240 = arith.constant 0.000000e+00 : f32
    %1773 = vector.broadcast %cst_240 : f32 to vector<8x4xf32>
    %1774 = arith.subf %1773, %1772 : vector<8x4xf32>
    %1775 = arith.select %1770, %1771, %1774 : vector<8x4xi1>, vector<8x4xf32>
    %1776 = vector.extract_strided_slice %1766 {offsets = [0, 12], sizes = [8, 4], strides = [1, 1]} : vector<8x16xf32> to vector<8x4xf32>
    %1777 = arith.subf %1767, %1775 : vector<8x4xf32>
    %cst_241 = arith.constant 0.707106769 : f32
    %1778 = vector.broadcast %cst_241 : f32 to vector<8x4xf32>
    %1779 = arith.mulf %1777, %1778 : vector<8x4xf32>
    %1780 = arith.addf %1767, %1775 : vector<8x4xf32>
    %cst_242 = arith.constant 0.707106769 : f32
    %1781 = vector.broadcast %cst_242 : f32 to vector<8x4xf32>
    %1782 = arith.mulf %1780, %1781 : vector<8x4xf32>
    %1783 = arith.mulf %1779, %1768 : vector<8x4xf32>
    %1784 = arith.mulf %1779, %1776 : vector<8x4xf32>
    %cst_243 = arith.constant 0.000000e+00 : f32
    %1785 = vector.broadcast %cst_243 : f32 to vector<8x4xf32>
    %1786 = arith.subf %1785, %1784 : vector<8x4xf32>
    %1787 = arith.mulf %1782, %1768 : vector<8x4xf32>
    %1788 = arith.mulf %1782, %1776 : vector<8x4xf32>
    %1789 = vector.extract_strided_slice %1787 {offsets = [0, 0], sizes = [8, 1], strides = [1, 1]} : vector<8x4xf32> to vector<8x1xf32>
    %1790 = vector.shape_cast %1789 : vector<8x1xf32> to vector<8x1xf32>
    %1791 = vector.broadcast %1790 : vector<8x1xf32> to vector<8x16xf32>
    %1792 = vector.extract_strided_slice %1783 {offsets = [0, 0], sizes = [8, 1], strides = [1, 1]} : vector<8x4xf32> to vector<8x1xf32>
    %1793 = vector.shape_cast %1792 : vector<8x1xf32> to vector<8x1xf32>
    %1794 = vector.broadcast %1793 : vector<8x1xf32> to vector<8x16xf32>
    %1795 = arith.select %9, %1791, %1794 : vector<8x16xi1>, vector<8x16xf32>
    %1796 = vector.extract_strided_slice %1788 {offsets = [0, 0], sizes = [8, 1], strides = [1, 1]} : vector<8x4xf32> to vector<8x1xf32>
    %1797 = vector.shape_cast %1796 : vector<8x1xf32> to vector<8x1xf32>
    %1798 = vector.broadcast %1797 : vector<8x1xf32> to vector<8x16xf32>
    %1799 = vector.extract_strided_slice %1786 {offsets = [0, 0], sizes = [8, 1], strides = [1, 1]} : vector<8x4xf32> to vector<8x1xf32>
    %1800 = vector.shape_cast %1799 : vector<8x1xf32> to vector<8x1xf32>
    %1801 = vector.broadcast %1800 : vector<8x1xf32> to vector<8x16xf32>
    %1802 = arith.select %9, %1798, %1801 : vector<8x16xi1>, vector<8x16xf32>
    %1803 = vector.extract_strided_slice %1787 {offsets = [0, 1], sizes = [8, 1], strides = [1, 1]} : vector<8x4xf32> to vector<8x1xf32>
    %1804 = vector.shape_cast %1803 : vector<8x1xf32> to vector<8x1xf32>
    %1805 = vector.broadcast %1804 : vector<8x1xf32> to vector<8x16xf32>
    %1806 = vector.extract_strided_slice %1783 {offsets = [0, 1], sizes = [8, 1], strides = [1, 1]} : vector<8x4xf32> to vector<8x1xf32>
    %1807 = vector.shape_cast %1806 : vector<8x1xf32> to vector<8x1xf32>
    %1808 = vector.broadcast %1807 : vector<8x1xf32> to vector<8x16xf32>
    %1809 = arith.select %14, %1805, %1808 : vector<8x16xi1>, vector<8x16xf32>
    %1810 = vector.extract_strided_slice %1788 {offsets = [0, 1], sizes = [8, 1], strides = [1, 1]} : vector<8x4xf32> to vector<8x1xf32>
    %1811 = vector.shape_cast %1810 : vector<8x1xf32> to vector<8x1xf32>
    %1812 = vector.broadcast %1811 : vector<8x1xf32> to vector<8x16xf32>
    %1813 = vector.extract_strided_slice %1786 {offsets = [0, 1], sizes = [8, 1], strides = [1, 1]} : vector<8x4xf32> to vector<8x1xf32>
    %1814 = vector.shape_cast %1813 : vector<8x1xf32> to vector<8x1xf32>
    %1815 = vector.broadcast %1814 : vector<8x1xf32> to vector<8x16xf32>
    %1816 = arith.select %14, %1812, %1815 : vector<8x16xi1>, vector<8x16xf32>
    %1817 = vector.extract_strided_slice %1787 {offsets = [0, 2], sizes = [8, 1], strides = [1, 1]} : vector<8x4xf32> to vector<8x1xf32>
    %1818 = vector.shape_cast %1817 : vector<8x1xf32> to vector<8x1xf32>
    %1819 = vector.broadcast %1818 : vector<8x1xf32> to vector<8x16xf32>
    %1820 = vector.extract_strided_slice %1783 {offsets = [0, 2], sizes = [8, 1], strides = [1, 1]} : vector<8x4xf32> to vector<8x1xf32>
    %1821 = vector.shape_cast %1820 : vector<8x1xf32> to vector<8x1xf32>
    %1822 = vector.broadcast %1821 : vector<8x1xf32> to vector<8x16xf32>
    %1823 = arith.select %19, %1819, %1822 : vector<8x16xi1>, vector<8x16xf32>
    %1824 = vector.extract_strided_slice %1788 {offsets = [0, 2], sizes = [8, 1], strides = [1, 1]} : vector<8x4xf32> to vector<8x1xf32>
    %1825 = vector.shape_cast %1824 : vector<8x1xf32> to vector<8x1xf32>
    %1826 = vector.broadcast %1825 : vector<8x1xf32> to vector<8x16xf32>
    %1827 = vector.extract_strided_slice %1786 {offsets = [0, 2], sizes = [8, 1], strides = [1, 1]} : vector<8x4xf32> to vector<8x1xf32>
    %1828 = vector.shape_cast %1827 : vector<8x1xf32> to vector<8x1xf32>
    %1829 = vector.broadcast %1828 : vector<8x1xf32> to vector<8x16xf32>
    %1830 = arith.select %19, %1826, %1829 : vector<8x16xi1>, vector<8x16xf32>
    %1831 = vector.extract_strided_slice %1787 {offsets = [0, 3], sizes = [8, 1], strides = [1, 1]} : vector<8x4xf32> to vector<8x1xf32>
    %1832 = vector.shape_cast %1831 : vector<8x1xf32> to vector<8x1xf32>
    %1833 = vector.broadcast %1832 : vector<8x1xf32> to vector<8x16xf32>
    %1834 = vector.extract_strided_slice %1783 {offsets = [0, 3], sizes = [8, 1], strides = [1, 1]} : vector<8x4xf32> to vector<8x1xf32>
    %1835 = vector.shape_cast %1834 : vector<8x1xf32> to vector<8x1xf32>
    %1836 = vector.broadcast %1835 : vector<8x1xf32> to vector<8x16xf32>
    %1837 = arith.select %24, %1833, %1836 : vector<8x16xi1>, vector<8x16xf32>
    %1838 = vector.extract_strided_slice %1788 {offsets = [0, 3], sizes = [8, 1], strides = [1, 1]} : vector<8x4xf32> to vector<8x1xf32>
    %1839 = vector.shape_cast %1838 : vector<8x1xf32> to vector<8x1xf32>
    %1840 = vector.broadcast %1839 : vector<8x1xf32> to vector<8x16xf32>
    %1841 = vector.extract_strided_slice %1786 {offsets = [0, 3], sizes = [8, 1], strides = [1, 1]} : vector<8x4xf32> to vector<8x1xf32>
    %1842 = vector.shape_cast %1841 : vector<8x1xf32> to vector<8x1xf32>
    %1843 = vector.broadcast %1842 : vector<8x1xf32> to vector<8x16xf32>
    %1844 = arith.select %24, %1840, %1843 : vector<8x16xi1>, vector<8x16xf32>
    %1845 = arith.mulf %1795, %1809 : vector<8x16xf32>
    %1846 = arith.mulf %1802, %1816 : vector<8x16xf32>
    %1847 = arith.subf %1845, %1846 : vector<8x16xf32>
    %1848 = arith.mulf %1795, %1816 : vector<8x16xf32>
    %1849 = arith.mulf %1802, %1809 : vector<8x16xf32>
    %1850 = arith.addf %1848, %1849 : vector<8x16xf32>
    %1851 = arith.mulf %1823, %1837 : vector<8x16xf32>
    %1852 = arith.mulf %1830, %1844 : vector<8x16xf32>
    %1853 = arith.subf %1851, %1852 : vector<8x16xf32>
    %1854 = arith.mulf %1823, %1844 : vector<8x16xf32>
    %1855 = arith.mulf %1830, %1837 : vector<8x16xf32>
    %1856 = arith.addf %1854, %1855 : vector<8x16xf32>
    %1857 = arith.mulf %1847, %1853 : vector<8x16xf32>
    %1858 = arith.mulf %1850, %1856 : vector<8x16xf32>
    %1859 = arith.subf %1857, %1858 : vector<8x16xf32>
    %1860 = arith.mulf %1847, %1856 : vector<8x16xf32>
    %1861 = arith.mulf %1850, %1853 : vector<8x16xf32>
    %1862 = arith.addf %1860, %1861 : vector<8x16xf32>
    %1863 = tpu.concatenate %1859, %1862 in 1 : vector<8x16xf32>, vector<8x16xf32> -> vector<8x32xf32>
    %cst_244 = arith.constant dense<0.000000e+00> : vector<8x64xf32>
    %1864 = tpu.matmul %1863, %3, %cst_244 {dimension_numbers = #tpu.dot_dimension_numbers<[1], [0], [0], [1], [0, 0, 1, 1], [], []>} : vector<8x32xf32>, vector<32x64xf32>, vector<8x64xf32> -> vector<8x64xf32>
    %1865 = arith.mulf %1864, %1864 : vector<8x64xf32>
    %cst_245 = arith.constant dense<0.000000e+00> : vector<8x5xf32>
    %1866 = tpu.matmul %1865, %4, %cst_245 {dimension_numbers = #tpu.dot_dimension_numbers<[1], [0], [0], [1], [0, 0, 1, 1], [], []>} : vector<8x64xf32>, vector<64x5xf32>, vector<8x5xf32> -> vector<8x5xf32>
    %1867 = vector.extract_strided_slice %1866 {offsets = [0, 0], sizes = [8, 4], strides = [1, 1]} : vector<8x5xf32> to vector<8x4xf32>
    %c7 = arith.constant 7 : index
    %c0_246 = arith.constant 0 : index
    %c0_247 = arith.constant 0 : index
    %1868 = vector.load %arg0[%c7, %c0_246, %c0_247] : memref<8x8x4xf32, #tpu.memory_space<vmem>>, vector<1x8x4xf32>
    %1869 = vector.shape_cast %1868 : vector<1x8x4xf32> to vector<8x4xf32>
    %1870 = arith.addf %1869, %1867 : vector<8x4xf32>
    %1871 = arith.mulf %1870, %1870 : vector<8x4xf32>
    %1872 = tpu.concatenate %1870, %1871 in 1 : vector<8x4xf32>, vector<8x4xf32> -> vector<8x8xf32>
    %1873 = arith.mulf %1872, %1872 : vector<8x8xf32>
    %cst_248 = arith.constant 1.000000e+00 : f32
    %1874 = vector.broadcast %cst_248 : f32 to vector<8x8xf32>
    %1875 = arith.addf %1874, %1873 : vector<8x8xf32>
    %1876 = math.rsqrt %1875 : vector<8x8xf32>
    %cst_249 = arith.constant 1.000000e+00 : f32
    %1877 = vector.broadcast %cst_249 : f32 to vector<8x8xf32>
    %1878 = arith.addf %1877, %1876 : vector<8x8xf32>
    %cst_250 = arith.constant 5.000000e-01 : f32
    %1879 = vector.broadcast %cst_250 : f32 to vector<8x8xf32>
    %1880 = arith.mulf %1878, %1879 : vector<8x8xf32>
    %cst_251 = arith.constant 1.000000e+00 : f32
    %1881 = vector.broadcast %cst_251 : f32 to vector<8x8xf32>
    %1882 = arith.subf %1881, %1876 : vector<8x8xf32>
    %cst_252 = arith.constant 5.000000e-01 : f32
    %1883 = vector.broadcast %cst_252 : f32 to vector<8x8xf32>
    %1884 = arith.mulf %1882, %1883 : vector<8x8xf32>
    %cst_253 = arith.constant 0.000000e+00 : f32
    %1885 = vector.broadcast %cst_253 : f32 to vector<8x8xf32>
    %1886 = arith.maximumf %1884, %1885 : vector<8x8xf32>
    %1887 = tpu.concatenate %1880, %1886 in 1 : vector<8x8xf32>, vector<8x8xf32> -> vector<8x16xf32>
    %1888 = math.sqrt %1887 : vector<8x16xf32>
    %1889 = vector.extract_strided_slice %1888 {offsets = [0, 0], sizes = [8, 4], strides = [1, 1]} : vector<8x16xf32> to vector<8x4xf32>
    %1890 = vector.extract_strided_slice %1888 {offsets = [0, 4], sizes = [8, 4], strides = [1, 1]} : vector<8x16xf32> to vector<8x4xf32>
    %cst_254 = arith.constant 0.000000e+00 : f32
    %1891 = vector.broadcast %cst_254 : f32 to vector<8x4xf32>
    %1892 = arith.cmpf oge, %1870, %1891 : vector<8x4xf32>
    %1893 = vector.extract_strided_slice %1888 {offsets = [0, 8], sizes = [8, 4], strides = [1, 1]} : vector<8x16xf32> to vector<8x4xf32>
    %1894 = vector.extract_strided_slice %1888 {offsets = [0, 8], sizes = [8, 4], strides = [1, 1]} : vector<8x16xf32> to vector<8x4xf32>
    %cst_255 = arith.constant 0.000000e+00 : f32
    %1895 = vector.broadcast %cst_255 : f32 to vector<8x4xf32>
    %1896 = arith.subf %1895, %1894 : vector<8x4xf32>
    %1897 = arith.select %1892, %1893, %1896 : vector<8x4xi1>, vector<8x4xf32>
    %1898 = vector.extract_strided_slice %1888 {offsets = [0, 12], sizes = [8, 4], strides = [1, 1]} : vector<8x16xf32> to vector<8x4xf32>
    %1899 = arith.subf %1889, %1897 : vector<8x4xf32>
    %cst_256 = arith.constant 0.707106769 : f32
    %1900 = vector.broadcast %cst_256 : f32 to vector<8x4xf32>
    %1901 = arith.mulf %1899, %1900 : vector<8x4xf32>
    %1902 = arith.addf %1889, %1897 : vector<8x4xf32>
    %cst_257 = arith.constant 0.707106769 : f32
    %1903 = vector.broadcast %cst_257 : f32 to vector<8x4xf32>
    %1904 = arith.mulf %1902, %1903 : vector<8x4xf32>
    %1905 = arith.mulf %1901, %1890 : vector<8x4xf32>
    %1906 = arith.mulf %1901, %1898 : vector<8x4xf32>
    %cst_258 = arith.constant 0.000000e+00 : f32
    %1907 = vector.broadcast %cst_258 : f32 to vector<8x4xf32>
    %1908 = arith.subf %1907, %1906 : vector<8x4xf32>
    %1909 = arith.mulf %1904, %1890 : vector<8x4xf32>
    %1910 = arith.mulf %1904, %1898 : vector<8x4xf32>
    %1911 = vector.extract_strided_slice %1909 {offsets = [0, 0], sizes = [8, 1], strides = [1, 1]} : vector<8x4xf32> to vector<8x1xf32>
    %1912 = vector.shape_cast %1911 : vector<8x1xf32> to vector<8x1xf32>
    %1913 = vector.broadcast %1912 : vector<8x1xf32> to vector<8x16xf32>
    %1914 = vector.extract_strided_slice %1905 {offsets = [0, 0], sizes = [8, 1], strides = [1, 1]} : vector<8x4xf32> to vector<8x1xf32>
    %1915 = vector.shape_cast %1914 : vector<8x1xf32> to vector<8x1xf32>
    %1916 = vector.broadcast %1915 : vector<8x1xf32> to vector<8x16xf32>
    %1917 = arith.select %9, %1913, %1916 : vector<8x16xi1>, vector<8x16xf32>
    %1918 = vector.extract_strided_slice %1910 {offsets = [0, 0], sizes = [8, 1], strides = [1, 1]} : vector<8x4xf32> to vector<8x1xf32>
    %1919 = vector.shape_cast %1918 : vector<8x1xf32> to vector<8x1xf32>
    %1920 = vector.broadcast %1919 : vector<8x1xf32> to vector<8x16xf32>
    %1921 = vector.extract_strided_slice %1908 {offsets = [0, 0], sizes = [8, 1], strides = [1, 1]} : vector<8x4xf32> to vector<8x1xf32>
    %1922 = vector.shape_cast %1921 : vector<8x1xf32> to vector<8x1xf32>
    %1923 = vector.broadcast %1922 : vector<8x1xf32> to vector<8x16xf32>
    %1924 = arith.select %9, %1920, %1923 : vector<8x16xi1>, vector<8x16xf32>
    %1925 = vector.extract_strided_slice %1909 {offsets = [0, 1], sizes = [8, 1], strides = [1, 1]} : vector<8x4xf32> to vector<8x1xf32>
    %1926 = vector.shape_cast %1925 : vector<8x1xf32> to vector<8x1xf32>
    %1927 = vector.broadcast %1926 : vector<8x1xf32> to vector<8x16xf32>
    %1928 = vector.extract_strided_slice %1905 {offsets = [0, 1], sizes = [8, 1], strides = [1, 1]} : vector<8x4xf32> to vector<8x1xf32>
    %1929 = vector.shape_cast %1928 : vector<8x1xf32> to vector<8x1xf32>
    %1930 = vector.broadcast %1929 : vector<8x1xf32> to vector<8x16xf32>
    %1931 = arith.select %14, %1927, %1930 : vector<8x16xi1>, vector<8x16xf32>
    %1932 = vector.extract_strided_slice %1910 {offsets = [0, 1], sizes = [8, 1], strides = [1, 1]} : vector<8x4xf32> to vector<8x1xf32>
    %1933 = vector.shape_cast %1932 : vector<8x1xf32> to vector<8x1xf32>
    %1934 = vector.broadcast %1933 : vector<8x1xf32> to vector<8x16xf32>
    %1935 = vector.extract_strided_slice %1908 {offsets = [0, 1], sizes = [8, 1], strides = [1, 1]} : vector<8x4xf32> to vector<8x1xf32>
    %1936 = vector.shape_cast %1935 : vector<8x1xf32> to vector<8x1xf32>
    %1937 = vector.broadcast %1936 : vector<8x1xf32> to vector<8x16xf32>
    %1938 = arith.select %14, %1934, %1937 : vector<8x16xi1>, vector<8x16xf32>
    %1939 = vector.extract_strided_slice %1909 {offsets = [0, 2], sizes = [8, 1], strides = [1, 1]} : vector<8x4xf32> to vector<8x1xf32>
    %1940 = vector.shape_cast %1939 : vector<8x1xf32> to vector<8x1xf32>
    %1941 = vector.broadcast %1940 : vector<8x1xf32> to vector<8x16xf32>
    %1942 = vector.extract_strided_slice %1905 {offsets = [0, 2], sizes = [8, 1], strides = [1, 1]} : vector<8x4xf32> to vector<8x1xf32>
    %1943 = vector.shape_cast %1942 : vector<8x1xf32> to vector<8x1xf32>
    %1944 = vector.broadcast %1943 : vector<8x1xf32> to vector<8x16xf32>
    %1945 = arith.select %19, %1941, %1944 : vector<8x16xi1>, vector<8x16xf32>
    %1946 = vector.extract_strided_slice %1910 {offsets = [0, 2], sizes = [8, 1], strides = [1, 1]} : vector<8x4xf32> to vector<8x1xf32>
    %1947 = vector.shape_cast %1946 : vector<8x1xf32> to vector<8x1xf32>
    %1948 = vector.broadcast %1947 : vector<8x1xf32> to vector<8x16xf32>
    %1949 = vector.extract_strided_slice %1908 {offsets = [0, 2], sizes = [8, 1], strides = [1, 1]} : vector<8x4xf32> to vector<8x1xf32>
    %1950 = vector.shape_cast %1949 : vector<8x1xf32> to vector<8x1xf32>
    %1951 = vector.broadcast %1950 : vector<8x1xf32> to vector<8x16xf32>
    %1952 = arith.select %19, %1948, %1951 : vector<8x16xi1>, vector<8x16xf32>
    %1953 = vector.extract_strided_slice %1909 {offsets = [0, 3], sizes = [8, 1], strides = [1, 1]} : vector<8x4xf32> to vector<8x1xf32>
    %1954 = vector.shape_cast %1953 : vector<8x1xf32> to vector<8x1xf32>
    %1955 = vector.broadcast %1954 : vector<8x1xf32> to vector<8x16xf32>
    %1956 = vector.extract_strided_slice %1905 {offsets = [0, 3], sizes = [8, 1], strides = [1, 1]} : vector<8x4xf32> to vector<8x1xf32>
    %1957 = vector.shape_cast %1956 : vector<8x1xf32> to vector<8x1xf32>
    %1958 = vector.broadcast %1957 : vector<8x1xf32> to vector<8x16xf32>
    %1959 = arith.select %24, %1955, %1958 : vector<8x16xi1>, vector<8x16xf32>
    %1960 = vector.extract_strided_slice %1910 {offsets = [0, 3], sizes = [8, 1], strides = [1, 1]} : vector<8x4xf32> to vector<8x1xf32>
    %1961 = vector.shape_cast %1960 : vector<8x1xf32> to vector<8x1xf32>
    %1962 = vector.broadcast %1961 : vector<8x1xf32> to vector<8x16xf32>
    %1963 = vector.extract_strided_slice %1908 {offsets = [0, 3], sizes = [8, 1], strides = [1, 1]} : vector<8x4xf32> to vector<8x1xf32>
    %1964 = vector.shape_cast %1963 : vector<8x1xf32> to vector<8x1xf32>
    %1965 = vector.broadcast %1964 : vector<8x1xf32> to vector<8x16xf32>
    %1966 = arith.select %24, %1962, %1965 : vector<8x16xi1>, vector<8x16xf32>
    %1967 = arith.mulf %1917, %1931 : vector<8x16xf32>
    %1968 = arith.mulf %1924, %1938 : vector<8x16xf32>
    %1969 = arith.subf %1967, %1968 : vector<8x16xf32>
    %1970 = arith.mulf %1917, %1938 : vector<8x16xf32>
    %1971 = arith.mulf %1924, %1931 : vector<8x16xf32>
    %1972 = arith.addf %1970, %1971 : vector<8x16xf32>
    %1973 = arith.mulf %1945, %1959 : vector<8x16xf32>
    %1974 = arith.mulf %1952, %1966 : vector<8x16xf32>
    %1975 = arith.subf %1973, %1974 : vector<8x16xf32>
    %1976 = arith.mulf %1945, %1966 : vector<8x16xf32>
    %1977 = arith.mulf %1952, %1959 : vector<8x16xf32>
    %1978 = arith.addf %1976, %1977 : vector<8x16xf32>
    %1979 = arith.mulf %1969, %1975 : vector<8x16xf32>
    %1980 = arith.mulf %1972, %1978 : vector<8x16xf32>
    %1981 = arith.subf %1979, %1980 : vector<8x16xf32>
    %1982 = arith.mulf %1969, %1978 : vector<8x16xf32>
    %1983 = arith.mulf %1972, %1975 : vector<8x16xf32>
    %1984 = arith.addf %1982, %1983 : vector<8x16xf32>
    %1985 = tpu.concatenate %1981, %1984 in 1 : vector<8x16xf32>, vector<8x16xf32> -> vector<8x32xf32>
    %cst_259 = arith.constant dense<0.000000e+00> : vector<8x128xf32>
    %1986 = tpu.matmul %1985, %1, %cst_259 {dimension_numbers = #tpu.dot_dimension_numbers<[1], [0], [0], [1], [0, 0, 1, 1], [], []>} : vector<8x32xf32>, vector<32x128xf32>, vector<8x128xf32> -> vector<8x128xf32>
    %1987 = arith.mulf %1986, %1986 : vector<8x128xf32>
    %cst_260 = arith.constant dense<0.000000e+00> : vector<8x16xf32>
    %1988 = tpu.matmul %1987, %2, %cst_260 {dimension_numbers = #tpu.dot_dimension_numbers<[1], [0], [0], [1], [0, 0, 1, 1], [], []>} : vector<8x128xf32>, vector<128x16xf32>, vector<8x16xf32> -> vector<8x16xf32>
    %cst_261 = arith.constant 0.000000e+00 : f32
    %1989 = vector.broadcast %cst_261 : f32 to vector<8x16xf32>
    %1990 = arith.subf %1989, %1988 : vector<8x16xf32>
    %1991 = math.exp %1990 : vector<8x16xf32>
    %cst_262 = arith.constant 1.000000e+00 : f32
    %1992 = vector.broadcast %cst_262 : f32 to vector<8x16xf32>
    %1993 = arith.addf %1992, %1991 : vector<8x16xf32>
    %1994 = tpu.reciprocal %1993 {approx = true} : vector<8x16xf32> -> vector<8x16xf32>
    %1995 = arith.mulf %1993, %1994 : vector<8x16xf32>
    %cst_263 = arith.constant 2.000000e+00 : f32
    %1996 = vector.broadcast %cst_263 : f32 to vector<8x16xf32>
    %1997 = arith.subf %1996, %1995 : vector<8x16xf32>
    %1998 = arith.mulf %1994, %1997 : vector<8x16xf32>
    %1999 = vector.extract_strided_slice %1998 {offsets = [0, 0], sizes = [8, 4], strides = [1, 1]} : vector<8x16xf32> to vector<8x4xf32>
    %2000 = vector.extract_strided_slice %1998 {offsets = [0, 4], sizes = [8, 4], strides = [1, 1]} : vector<8x16xf32> to vector<8x4xf32>
    %2001 = vector.extract_strided_slice %1998 {offsets = [0, 8], sizes = [8, 4], strides = [1, 1]} : vector<8x16xf32> to vector<8x4xf32>
    %cst_264 = arith.constant 2.000000e+00 : f32
    %2002 = vector.broadcast %cst_264 : f32 to vector<8x4xf32>
    %2003 = arith.mulf %2002, %2001 : vector<8x4xf32>
    %cst_265 = arith.constant 1.000000e+00 : f32
    %2004 = vector.broadcast %cst_265 : f32 to vector<8x4xf32>
    %2005 = arith.subf %2003, %2004 : vector<8x4xf32>
    %2006 = vector.extract_strided_slice %1998 {offsets = [0, 12], sizes = [8, 4], strides = [1, 1]} : vector<8x16xf32> to vector<8x4xf32>
    %2007 = arith.mulf %1999, %1746 : vector<8x4xf32>
    %2008 = arith.mulf %2000, %2005 : vector<8x4xf32>
    %2009 = arith.addf %2007, %2008 : vector<8x4xf32>
    %2010 = math.tanh %2009 : vector<8x4xf32>
    %2011 = arith.mulf %2006, %2010 : vector<8x4xf32>
    %2012 = arith.mulf %2011, %2011 : vector<8x4xf32>
    %2013 = tpu.concatenate %2011, %2012 in 1 : vector<8x4xf32>, vector<8x4xf32> -> vector<8x8xf32>
    %2014 = arith.mulf %2013, %2013 : vector<8x8xf32>
    %cst_266 = arith.constant 1.000000e+00 : f32
    %2015 = vector.broadcast %cst_266 : f32 to vector<8x8xf32>
    %2016 = arith.addf %2015, %2014 : vector<8x8xf32>
    %2017 = math.rsqrt %2016 : vector<8x8xf32>
    %cst_267 = arith.constant 1.000000e+00 : f32
    %2018 = vector.broadcast %cst_267 : f32 to vector<8x8xf32>
    %2019 = arith.addf %2018, %2017 : vector<8x8xf32>
    %cst_268 = arith.constant 5.000000e-01 : f32
    %2020 = vector.broadcast %cst_268 : f32 to vector<8x8xf32>
    %2021 = arith.mulf %2019, %2020 : vector<8x8xf32>
    %cst_269 = arith.constant 1.000000e+00 : f32
    %2022 = vector.broadcast %cst_269 : f32 to vector<8x8xf32>
    %2023 = arith.subf %2022, %2017 : vector<8x8xf32>
    %cst_270 = arith.constant 5.000000e-01 : f32
    %2024 = vector.broadcast %cst_270 : f32 to vector<8x8xf32>
    %2025 = arith.mulf %2023, %2024 : vector<8x8xf32>
    %cst_271 = arith.constant 0.000000e+00 : f32
    %2026 = vector.broadcast %cst_271 : f32 to vector<8x8xf32>
    %2027 = arith.maximumf %2025, %2026 : vector<8x8xf32>
    %2028 = tpu.concatenate %2021, %2027 in 1 : vector<8x8xf32>, vector<8x8xf32> -> vector<8x16xf32>
    %2029 = math.sqrt %2028 : vector<8x16xf32>
    %2030 = vector.extract_strided_slice %2029 {offsets = [0, 0], sizes = [8, 4], strides = [1, 1]} : vector<8x16xf32> to vector<8x4xf32>
    %2031 = vector.extract_strided_slice %2029 {offsets = [0, 4], sizes = [8, 4], strides = [1, 1]} : vector<8x16xf32> to vector<8x4xf32>
    %cst_272 = arith.constant 0.000000e+00 : f32
    %2032 = vector.broadcast %cst_272 : f32 to vector<8x4xf32>
    %2033 = arith.cmpf oge, %2011, %2032 : vector<8x4xf32>
    %2034 = vector.extract_strided_slice %2029 {offsets = [0, 8], sizes = [8, 4], strides = [1, 1]} : vector<8x16xf32> to vector<8x4xf32>
    %2035 = vector.extract_strided_slice %2029 {offsets = [0, 8], sizes = [8, 4], strides = [1, 1]} : vector<8x16xf32> to vector<8x4xf32>
    %cst_273 = arith.constant 0.000000e+00 : f32
    %2036 = vector.broadcast %cst_273 : f32 to vector<8x4xf32>
    %2037 = arith.subf %2036, %2035 : vector<8x4xf32>
    %2038 = arith.select %2033, %2034, %2037 : vector<8x4xi1>, vector<8x4xf32>
    %2039 = vector.extract_strided_slice %2029 {offsets = [0, 12], sizes = [8, 4], strides = [1, 1]} : vector<8x16xf32> to vector<8x4xf32>
    %2040 = arith.subf %2030, %2038 : vector<8x4xf32>
    %cst_274 = arith.constant 0.707106769 : f32
    %2041 = vector.broadcast %cst_274 : f32 to vector<8x4xf32>
    %2042 = arith.mulf %2040, %2041 : vector<8x4xf32>
    %2043 = arith.addf %2030, %2038 : vector<8x4xf32>
    %cst_275 = arith.constant 0.707106769 : f32
    %2044 = vector.broadcast %cst_275 : f32 to vector<8x4xf32>
    %2045 = arith.mulf %2043, %2044 : vector<8x4xf32>
    %2046 = arith.mulf %2042, %2031 : vector<8x4xf32>
    %2047 = arith.mulf %2042, %2039 : vector<8x4xf32>
    %cst_276 = arith.constant 0.000000e+00 : f32
    %2048 = vector.broadcast %cst_276 : f32 to vector<8x4xf32>
    %2049 = arith.subf %2048, %2047 : vector<8x4xf32>
    %2050 = arith.mulf %2045, %2031 : vector<8x4xf32>
    %2051 = arith.mulf %2045, %2039 : vector<8x4xf32>
    %2052 = vector.extract_strided_slice %2050 {offsets = [0, 0], sizes = [8, 1], strides = [1, 1]} : vector<8x4xf32> to vector<8x1xf32>
    %2053 = vector.shape_cast %2052 : vector<8x1xf32> to vector<8x1xf32>
    %2054 = vector.broadcast %2053 : vector<8x1xf32> to vector<8x16xf32>
    %2055 = vector.extract_strided_slice %2046 {offsets = [0, 0], sizes = [8, 1], strides = [1, 1]} : vector<8x4xf32> to vector<8x1xf32>
    %2056 = vector.shape_cast %2055 : vector<8x1xf32> to vector<8x1xf32>
    %2057 = vector.broadcast %2056 : vector<8x1xf32> to vector<8x16xf32>
    %2058 = arith.select %9, %2054, %2057 : vector<8x16xi1>, vector<8x16xf32>
    %2059 = vector.extract_strided_slice %2051 {offsets = [0, 0], sizes = [8, 1], strides = [1, 1]} : vector<8x4xf32> to vector<8x1xf32>
    %2060 = vector.shape_cast %2059 : vector<8x1xf32> to vector<8x1xf32>
    %2061 = vector.broadcast %2060 : vector<8x1xf32> to vector<8x16xf32>
    %2062 = vector.extract_strided_slice %2049 {offsets = [0, 0], sizes = [8, 1], strides = [1, 1]} : vector<8x4xf32> to vector<8x1xf32>
    %2063 = vector.shape_cast %2062 : vector<8x1xf32> to vector<8x1xf32>
    %2064 = vector.broadcast %2063 : vector<8x1xf32> to vector<8x16xf32>
    %2065 = arith.select %9, %2061, %2064 : vector<8x16xi1>, vector<8x16xf32>
    %2066 = vector.extract_strided_slice %2050 {offsets = [0, 1], sizes = [8, 1], strides = [1, 1]} : vector<8x4xf32> to vector<8x1xf32>
    %2067 = vector.shape_cast %2066 : vector<8x1xf32> to vector<8x1xf32>
    %2068 = vector.broadcast %2067 : vector<8x1xf32> to vector<8x16xf32>
    %2069 = vector.extract_strided_slice %2046 {offsets = [0, 1], sizes = [8, 1], strides = [1, 1]} : vector<8x4xf32> to vector<8x1xf32>
    %2070 = vector.shape_cast %2069 : vector<8x1xf32> to vector<8x1xf32>
    %2071 = vector.broadcast %2070 : vector<8x1xf32> to vector<8x16xf32>
    %2072 = arith.select %14, %2068, %2071 : vector<8x16xi1>, vector<8x16xf32>
    %2073 = vector.extract_strided_slice %2051 {offsets = [0, 1], sizes = [8, 1], strides = [1, 1]} : vector<8x4xf32> to vector<8x1xf32>
    %2074 = vector.shape_cast %2073 : vector<8x1xf32> to vector<8x1xf32>
    %2075 = vector.broadcast %2074 : vector<8x1xf32> to vector<8x16xf32>
    %2076 = vector.extract_strided_slice %2049 {offsets = [0, 1], sizes = [8, 1], strides = [1, 1]} : vector<8x4xf32> to vector<8x1xf32>
    %2077 = vector.shape_cast %2076 : vector<8x1xf32> to vector<8x1xf32>
    %2078 = vector.broadcast %2077 : vector<8x1xf32> to vector<8x16xf32>
    %2079 = arith.select %14, %2075, %2078 : vector<8x16xi1>, vector<8x16xf32>
    %2080 = vector.extract_strided_slice %2050 {offsets = [0, 2], sizes = [8, 1], strides = [1, 1]} : vector<8x4xf32> to vector<8x1xf32>
    %2081 = vector.shape_cast %2080 : vector<8x1xf32> to vector<8x1xf32>
    %2082 = vector.broadcast %2081 : vector<8x1xf32> to vector<8x16xf32>
    %2083 = vector.extract_strided_slice %2046 {offsets = [0, 2], sizes = [8, 1], strides = [1, 1]} : vector<8x4xf32> to vector<8x1xf32>
    %2084 = vector.shape_cast %2083 : vector<8x1xf32> to vector<8x1xf32>
    %2085 = vector.broadcast %2084 : vector<8x1xf32> to vector<8x16xf32>
    %2086 = arith.select %19, %2082, %2085 : vector<8x16xi1>, vector<8x16xf32>
    %2087 = vector.extract_strided_slice %2051 {offsets = [0, 2], sizes = [8, 1], strides = [1, 1]} : vector<8x4xf32> to vector<8x1xf32>
    %2088 = vector.shape_cast %2087 : vector<8x1xf32> to vector<8x1xf32>
    %2089 = vector.broadcast %2088 : vector<8x1xf32> to vector<8x16xf32>
    %2090 = vector.extract_strided_slice %2049 {offsets = [0, 2], sizes = [8, 1], strides = [1, 1]} : vector<8x4xf32> to vector<8x1xf32>
    %2091 = vector.shape_cast %2090 : vector<8x1xf32> to vector<8x1xf32>
    %2092 = vector.broadcast %2091 : vector<8x1xf32> to vector<8x16xf32>
    %2093 = arith.select %19, %2089, %2092 : vector<8x16xi1>, vector<8x16xf32>
    %2094 = vector.extract_strided_slice %2050 {offsets = [0, 3], sizes = [8, 1], strides = [1, 1]} : vector<8x4xf32> to vector<8x1xf32>
    %2095 = vector.shape_cast %2094 : vector<8x1xf32> to vector<8x1xf32>
    %2096 = vector.broadcast %2095 : vector<8x1xf32> to vector<8x16xf32>
    %2097 = vector.extract_strided_slice %2046 {offsets = [0, 3], sizes = [8, 1], strides = [1, 1]} : vector<8x4xf32> to vector<8x1xf32>
    %2098 = vector.shape_cast %2097 : vector<8x1xf32> to vector<8x1xf32>
    %2099 = vector.broadcast %2098 : vector<8x1xf32> to vector<8x16xf32>
    %2100 = arith.select %24, %2096, %2099 : vector<8x16xi1>, vector<8x16xf32>
    %2101 = vector.extract_strided_slice %2051 {offsets = [0, 3], sizes = [8, 1], strides = [1, 1]} : vector<8x4xf32> to vector<8x1xf32>
    %2102 = vector.shape_cast %2101 : vector<8x1xf32> to vector<8x1xf32>
    %2103 = vector.broadcast %2102 : vector<8x1xf32> to vector<8x16xf32>
    %2104 = vector.extract_strided_slice %2049 {offsets = [0, 3], sizes = [8, 1], strides = [1, 1]} : vector<8x4xf32> to vector<8x1xf32>
    %2105 = vector.shape_cast %2104 : vector<8x1xf32> to vector<8x1xf32>
    %2106 = vector.broadcast %2105 : vector<8x1xf32> to vector<8x16xf32>
    %2107 = arith.select %24, %2103, %2106 : vector<8x16xi1>, vector<8x16xf32>
    %2108 = arith.mulf %2058, %2072 : vector<8x16xf32>
    %2109 = arith.mulf %2065, %2079 : vector<8x16xf32>
    %2110 = arith.subf %2108, %2109 : vector<8x16xf32>
    %2111 = arith.mulf %2058, %2079 : vector<8x16xf32>
    %2112 = arith.mulf %2065, %2072 : vector<8x16xf32>
    %2113 = arith.addf %2111, %2112 : vector<8x16xf32>
    %2114 = arith.mulf %2086, %2100 : vector<8x16xf32>
    %2115 = arith.mulf %2093, %2107 : vector<8x16xf32>
    %2116 = arith.subf %2114, %2115 : vector<8x16xf32>
    %2117 = arith.mulf %2086, %2107 : vector<8x16xf32>
    %2118 = arith.mulf %2093, %2100 : vector<8x16xf32>
    %2119 = arith.addf %2117, %2118 : vector<8x16xf32>
    %2120 = arith.mulf %2110, %2116 : vector<8x16xf32>
    %2121 = arith.mulf %2113, %2119 : vector<8x16xf32>
    %2122 = arith.subf %2120, %2121 : vector<8x16xf32>
    %2123 = arith.mulf %2110, %2119 : vector<8x16xf32>
    %2124 = arith.mulf %2113, %2116 : vector<8x16xf32>
    %2125 = arith.addf %2123, %2124 : vector<8x16xf32>
    %2126 = tpu.concatenate %2122, %2125 in 1 : vector<8x16xf32>, vector<8x16xf32> -> vector<8x32xf32>
    %cst_277 = arith.constant dense<0.000000e+00> : vector<8x64xf32>
    %2127 = tpu.matmul %2126, %3, %cst_277 {dimension_numbers = #tpu.dot_dimension_numbers<[1], [0], [0], [1], [0, 0, 1, 1], [], []>} : vector<8x32xf32>, vector<32x64xf32>, vector<8x64xf32> -> vector<8x64xf32>
    %2128 = arith.mulf %2127, %2127 : vector<8x64xf32>
    %cst_278 = arith.constant dense<0.000000e+00> : vector<8x5xf32>
    %2129 = tpu.matmul %2128, %4, %cst_278 {dimension_numbers = #tpu.dot_dimension_numbers<[1], [0], [0], [1], [0, 0, 1, 1], [], []>} : vector<8x64xf32>, vector<64x5xf32>, vector<8x5xf32> -> vector<8x5xf32>
    %2130 = vector.extract_strided_slice %2129 {offsets = [0, 4], sizes = [8, 1], strides = [1, 1]} : vector<8x5xf32> to vector<8x1xf32>
    %c0_279 = arith.constant 0 : index
    %c0_280 = arith.constant 0 : index
    %2131 = vector.load %arg6[%c0_279, %c0_280] : memref<1x1xf32, #tpu.memory_space<vmem>>, vector<1x1xf32>
    %2132 = vector.broadcast %2131 : vector<1x1xf32> to vector<8x1xf32>
    %2133 = arith.addf %2130, %2132 : vector<8x1xf32>
    %c0_281 = arith.constant 0 : index
    %c0_282 = arith.constant 0 : index
    %2134 = vector.load %arg7[%c0_281, %c0_282] : memref<8x1xf32, #tpu.memory_space<vmem>>, vector<8x1xf32>
    tpu.vector_store %arg7[%c0_281, %c0_282], %2133 {strides = array<i32>} : memref<8x1xf32, #tpu.memory_space<vmem>>, vector<8x1xf32>,
    return
  }
}

</mosaic_0001>

<bundles_post_ra>
// kernel: tpu_custom_call.1
= control target key start
LH: loop header
LB: loop body
LE: loop exit
PB: predicated region body
PF: predicated region fallthrough
CT: control target
= control target key end

     0   :  { %s6799_s26 = smov 4   ;;  %vm88_vm0 = vcmask 31744   ;;  %s6800_s27 = smov 8   ;;  %vm102_vm1 = vcmask 64512   ;;  %v6801_v17 = vmov 0   ;;  %v6805_v33 = vmov 1   ;;  %s8056_s0 = inlined_call_operand.vmem [shape: f32[8,8,4], index: 0, kind: input, shape index: {}]   ;;  %s8057_s2 = inlined_call_operand.vmem [shape: f32[32,128], index: 2, kind: input, shape index: {}]   ;;  %s8058_s1 = inlined_call_operand.vmem [shape: f32[4,16], index: 1, kind: input, shape index: {}]   ;;  %s8059_s3 = inlined_call_operand.vmem [shape: f32[128,16], index: 3, kind: input, shape index: {}]   ;;  %s8060_s4 = inlined_call_operand.vmem [shape: f32[32,64], index: 4, kind: input, shape index: {}]   ;;  %s8061_s5 = inlined_call_operand.vmem [shape: f32[64,5], index: 5, kind: input, shape index: {}]   ;;  %s8062_s6 = inlined_call_operand.<no memory space> [shape: f32[1,1], index: 6, kind: input, shape index: {}]   ;;  %s8063_s7 = inlined_call_operand.vmem [shape: f32[8,1], index: 7, kind: output, shape index: {}]  }
   0x1   :  { %v81_v0 = vld [vmem:[%s8056_s0] sm:$0xff]  ;;  %6488 = vset.pattern.permute.xlu1 %v6801_v17  ;;  %6487 = vset.pattern.permute.xlu0 %v6801_v17  ;;  %s6802_s28 = smov 116   ;;  %s6803_s29 = smov 120   ;;  %v6806_v35 = vmov 2   ;;  %v6807_v37 = vmov 3   ;;  %v6808_v38 = vmov 0.0|0.0   ;;  %v61_v52 = vlaneseq }
   0x2   :  { %v83_v1 = vmul.f32 %v81_v0, %v81_v0  ;;  %s6804_s30 = smov 124   ;;  %vm111_vm4 = vcmp.ge.f32.partialorder %v81_v0, 0.0  ;;  %6089 = vmatprep.subr.bf16.mxu0 %v6808_v38  ;;  %v29_v39 = vld [vmem:[%s8057_s2] sm:$0xff]  ;;  %v30_v40 = vld [vmem:[%s8057_s2 + $0x8] sm:$0xff]  ;;  %v31_v41 = vld [vmem:[%s8057_s2 + $0x10] sm:$0xff]  ;;  %6095 = vmatprep.subr.bf16.mxu1 %v6808_v38  ;;  %vm6809_vm9 = vmmov 0  }
   0x3   :  { %v6889_v42 = vpack.c.bf16 %v30_v40, %v29_v39  ;;  %v32_v43 = vld [vmem:[%s8057_s2 + $0x18] sm:$0xff]  ;;  %v62_v55 = vshrl.u32 %v61_v52, 7  ;;  %v28_v61 = vld [vmem:[%s8058_s1] sm:$0xf]  ;;  %s6811_s14 = smov 16   ;;  %vm235_vm10 = vcmask 130048  }
   0x4   :  { %85 = vrot.lane.b32.xlu0 %v83_v1, %s6799_s26  ;;  %v6895_v44 = vpack.c.bf16 %v32_v43, %v31_v41  ;;  %vm237_vm11 = vcmask 261120   ;;  %vm642_vm15 = vcmask 523264  }
   0x5   :  { %6091 = vmatpush3.bf16.msra.mxu0 %v6889_v42  ;;  %v68_v56 = vsub.s32 1, %v62_v55  ;;  %v63_v59 = vsub.s32 0, %v62_v55  ;;  %v78_v60 = vsub.s32 3, %v62_v55  ;;  %v73_v63 = vsub.s32 2, %v62_v55  ;;  %v42_v55 = vld [vmem:[%s8059_s3 + $0x48] sm:$0xff] }
   0x6   :  { %6092 = vmatprep.subr.bf16.mxu0 %v6808_v38 }
   0x7   :  { %v6903_v62 = vrot.slane %v28_v61, %v68_v56 }
   0x9   :  { %6094 = vmatpush3.bf16.msra.mxu0 %v6895_v44  ;;  %vm70_vm5 = vcmp.gt.f32.partialorder %v6903_v62, 0.5 }
   0xa   :  { %6119 = vmatprep.subr.bf16.mxu0 %v6808_v38 }
  0x76   :  { %v86_v2 = vpop.permute.xlu0 %85 }
  0x77   :  { %v89_v3 = vsel %vm88_vm0, %v81_v0, %v86_v2  ;;  %v6905_v0 = vrot.slane %v28_v61, %v63_v59  ;;  %v6907_v2 = vrot.slane %v28_v61, %v78_v60  ;;  %v45_v60 = vld [vmem:[%s8059_s3 + $0x60] sm:$0xff] }
  0x78   :  { %v90_v4 = vmul.f32 %v89_v3, %v89_v3 }
  0x79   :  { %vm65_vm6 = vcmp.gt.f32.partialorder %v6905_v0, 0.5  ;;  %vm80_vm7 = vcmp.gt.f32.partialorder %v6907_v2, 0.5 }
  0x7a   :  { %v91_v5 = vadd.f32 1.0, %v90_v4  ;;  %v6910_v4 = vrot.slane %v28_v61, %v73_v63  ;;  %v46_v61 = vld [vmem:[%s8059_s3 + $0x68] sm:$0xff] }
  0x7b   :  { %v7001_v63 = vpack.c.bf16 %v46_v61, %v45_v60 }
  0x7c   :  { %6687 = vrsqrt.f32 %v91_v5  ;;  %vm75_vm8 = vcmp.gt.f32.partialorder %v6910_v4, 0.5 }
  0x86   :  { %v6688_v6 = vpop.eup %6687 }
  0x87   :  { %v95_v7 = vsub.f32 1.0, %v6688_v6  ;;  %v93_v10 = vadd.f32 1.0, %v6688_v6 }
  0x89   :  { %v96_v8 = vmul.f32 0.5, %v95_v7  ;;  %v94_v11 = vmul.f32 0.5, %v93_v10 }
  0x8b   :  { %v97_v9 = vmax.f32 %v96_v8, 0.0 }
  0x8d   :  { %99 = vrot.lane.b32.xlu0 %v97_v9, %s6800_s27  ;;  %v6810_v9 = vmov 0.0  }
  0x8e   :  { %5489 = vmatprep.mubr.msk.f32.mxu0 %vm6809_vm9, %v6810_v9  ;;  %5524 = vmatprep.mubr.msk.f32.mxu1 %vm6809_vm9, %v6810_v9 }
  0xff   :  { %v100_v12 = vpop.permute.xlu0 %99 }
 0x100   :  { %v103_v13 = vsel %vm102_vm1, %v94_v11, %v100_v12 }
 0x101   :  { %6689 = vrsqrt.f32 %v103_v13  ;;  %vm106_vm2 = vcmp.eq.f32.partialorder %v103_v13, inf  ;;  %v109_v16 = vand.u32 2147483648, %v103_v13  ;;  %vm108_vm3 = vcmp.eq.f32.partialorder %v103_v13, 0.0 }
 0x10b   :  { %v6690_v14 = vpop.eup %6689 }
 0x10c   :  { %v105_v15 = vmul.f32 %v6690_v14, %v103_v13  ;;  %v33_v14 = vld [vmem:[%s8059_s3] sm:$0xff] }
 0x10e   :  { %v107_v18 = vsel %vm106_vm2, %v103_v13, %v105_v15  ;;  %v34_v15 = vld [vmem:[%s8059_s3 + $0x8] sm:$0xff] }
 0x10f   :  { %v110_v19 = vsel %vm108_vm3, %v109_v16, %v107_v18  ;;  %v35_v16 = vld [vmem:[%s8059_s3 + $0x10] sm:$0xff] }
 0x110   :  { %130 = vrot.lane.b32.xlu0 %v110_v19, %s6802_s28  ;;  %114 = vrot.lane.b32.xlu1 %v110_v19, %s6803_s29  ;;  %v112_v20 = vsub.f32 0.0, %v110_v19 }
 0x114   :  { %118 = vrot.lane.b32.xlu1 %v112_v20, %s6803_s29 }
 0x118   :  { %126 = vrot.lane.b32.xlu1 %v110_v19, %s6804_s30 }
 0x182   :  { %v115_v21 = vpop.permute.xlu1 %114  ;;  %v131_v31 = vpop.permute.xlu0 %130 }
 0x186   :  { %v119_v22 = vpop.permute.xlu1 %118 }
 0x187   :  { %v121_v23 = vsel %vm111_vm4, %v115_v21, %v119_v22  ;;  %v6940_v22 = vpack.c.bf16 %v34_v15, %v33_v14 }
 0x188   :  { %v122_v24 = vsub.f32 %v110_v19, %v121_v23  ;;  %v124_v25 = vadd.f32 %v121_v23, %v110_v19  ;;  %v36_v23 = vld [vmem:[%s8059_s3 + $0x18] sm:$0xff] }
 0x189   :  { %6097 = vmatpush3.bf16.msra.mxu1 %v6940_v22 }
 0x18a   :  { %v123_v26 = vmul.f32 0.70710677, %v122_v24  ;;  %v125_v27 = vmul.f32 0.70710677, %v124_v25  ;;  %v127_v28 = vpop.permute.xlu1 %126  ;;  %6098 = vmatprep.subr.bf16.mxu1 %v6808_v38 }
 0x18c   :  { %v129_v29 = vmul.f32 %v127_v28, %v123_v26  ;;  %v135_v30 = vmul.f32 %v127_v28, %v125_v27  ;;  %v136_v32 = vmul.f32 %v131_v31, %v125_v27  ;;  %v133_v34 = vmul.f32 %v131_v31, %v123_v26 }
 0x18d   :  { %v6950_v31 = vpack.c.bf16 %v36_v23, %v35_v16 }
 0x18e   :  { %139 = vperm.xlu0 %6487, %v135_v30   ;;  %144 = vperm.xlu1 %6488, %v129_v29   ;;  %v134_v36 = vsub.f32 0.0, %v133_v34  ;;  %v38_v34 = vld [vmem:[%s8059_s3 + $0x28] sm:$0xff] }
 0x18f   :  { %6100 = vmatpush3.bf16.msra.mxu1 %v6950_v31 }
 0x190   :  { %6101 = vmatprep.subr.bf16.mxu1 %v6808_v38 }
 0x192   :  { %6490 = vset.pattern.permute.xlu0 %v6805_v33  ;;  %150 = vperm.xlu1 %6488, %v136_v32  }
 0x193   :  { %164 = vperm.xlu0 %6490, %v129_v29  }
 0x196   :  { %6489 = vset.pattern.permute.xlu1 %v6805_v33 }
 0x197   :  { %6491 = vset.pattern.permute.xlu0 %v6806_v35  ;;  %160 = vperm.xlu1 %6489, %v135_v30  }
 0x198   :  { %178 = vperm.xlu0 %6491, %v135_v30  }
 0x19b   :  { %169 = vperm.xlu1 %6489, %v136_v32  }
 0x19c   :  { %6494 = vset.pattern.permute.xlu0 %v6801_v17 }
 0x19d   :  { %155 = vperm.xlu0 %6494, %v134_v36  }
 0x19f   :  { %6492 = vset.pattern.permute.xlu1 %v6806_v35 }
 0x1a0   :  { %182 = vperm.xlu1 %6492, %v129_v29  }
 0x1a1   :  { %6496 = vset.pattern.permute.xlu0 %v6806_v35 }
 0x1a2   :  { %191 = vperm.xlu0 %6496, %v134_v36  }
 0x1a4   :  { %187 = vperm.xlu1 %6492, %v136_v32  }
 0x1a6   :  { %6497 = vset.pattern.permute.xlu0 %v6807_v37 }
 0x1a7   :  { %200 = vperm.xlu0 %6497, %v129_v29  }
 0x1a8   :  { %6493 = vset.pattern.permute.xlu1 %v6807_v37 }
 0x1a9   :  { %196 = vperm.xlu1 %6493, %v135_v30  }
 0x1ab   :  { %6499 = vset.pattern.permute.xlu0 %v6801_v17 }
 0x1ad   :  { %6495 = vset.pattern.permute.xlu1 %v6805_v33 }
 0x1ae   :  { %173 = vperm.xlu1 %6495, %v134_v36  }
 0x1b2   :  { %6498 = vset.pattern.permute.xlu1 %v6807_v37 }
 0x1b3   :  { %205 = vperm.xlu1 %6498, %v136_v32   ;;  %v37_v32 = vld [vmem:[%s8059_s3 + $0x20] sm:$0xff] }
 0x1b4   :  { %v6959_v43 = vpack.c.bf16 %v38_v34, %v37_v32 }
 0x1b6   :  { %6103 = vmatpush3.bf16.msra.mxu1 %v6959_v43 }
 0x1b7   :  { %209 = vperm.xlu1 %6498, %v134_v36   ;;  %6104 = vmatprep.subr.bf16.mxu1 %v6808_v38 }
 0x1bb   :  { %6500 = vset.pattern.permute.xlu1 %v6801_v17 }
 0x20d   :  { %v145_v45 = vpop.permute.xlu1 %144  ;;  %v140_v47 = vpop.permute.xlu0 %139 }
 0x20e   :  { %v147_v10 = vsel %vm65_vm6, %v140_v47, %v145_v45 }
 0x211   :  { %v151_v46 = vpop.permute.xlu1 %150 }
 0x212   :  { %v165_v50 = vpop.permute.xlu0 %164 }
 0x216   :  { %v161_v48 = vpop.permute.xlu1 %160 }
 0x217   :  { %v179_v53 = vpop.permute.xlu0 %178  ;;  %v167_v5 = vsel %vm70_vm5, %v161_v48, %v165_v50  ;;  %v40_v50 = vld [vmem:[%s8059_s3 + $0x38] sm:$0xff] }
 0x218   :  { %v213_v13 = vmul.f32 %v167_v5, %v147_v10 }
 0x21a   :  { %v170_v49 = vpop.permute.xlu1 %169 }
 0x21c   :  { %v156_v57 = vpop.permute.xlu0 %155 }
 0x21d   :  { %v158_v11 = vsel %vm65_vm6, %v151_v46, %v156_v57  ;;  %v43_v57 = vld [vmem:[%s8059_s3 + $0x50] sm:$0xff] }
 0x21e   :  { %v217_v24 = vmul.f32 %v167_v5, %v158_v11  ;;  %v47_v5 = vld [vmem:[%s8059_s3 + $0x70] sm:$0xff] }
 0x21f   :  { %v183_v51 = vpop.permute.xlu1 %182 }
 0x220   :  { %v185_v18 = vsel %vm75_vm8, %v179_v53, %v183_v51 }
 0x221   :  { %v192_v1 = vpop.permute.xlu0 %191 }
 0x223   :  { %v188_v54 = vpop.permute.xlu1 %187 }
 0x224   :  { %v194_v25 = vsel %vm75_vm8, %v188_v54, %v192_v1  ;;  %v41_v54 = vld [vmem:[%s8059_s3 + $0x40] sm:$0xff] }
 0x225   :  { %v6981_v56 = vpack.c.bf16 %v42_v55, %v41_v54 }
 0x226   :  { %v201_v7 = vpop.permute.xlu0 %200 }
 0x228   :  { %v197_v58 = vpop.permute.xlu1 %196 }
 0x229   :  { %v203_v12 = vsel %vm80_vm7, %v197_v58, %v201_v7  ;;  %v44_v58 = vld [vmem:[%s8059_s3 + $0x58] sm:$0xff] }
 0x22a   :  { %v219_v26 = vmul.f32 %v203_v12, %v185_v18  ;;  %v223_v28 = vmul.f32 %v203_v12, %v194_v25  ;;  %v6991_v59 = vpack.c.bf16 %v44_v58, %v43_v57 }
 0x22d   :  { %v174_v3 = vpop.permute.xlu1 %173 }
 0x22e   :  { %v176_v8 = vsel %vm70_vm5, %v170_v49, %v174_v3  ;;  %v39_v49 = vld [vmem:[%s8059_s3 + $0x30] sm:$0xff] }
 0x22f   :  { %v214_v19 = vmul.f32 %v176_v8, %v158_v11  ;;  %v216_v20 = vmul.f32 %v176_v8, %v147_v10  ;;  %v6971_v53 = vpack.c.bf16 %v40_v50, %v39_v49 }
 0x231   :  { %v215_v36 = vsub.f32 %v213_v13, %v214_v19  ;;  %v218_v39 = vadd.f32 %v217_v24, %v216_v20  ;;  %6106 = vmatpush3.bf16.msra.mxu1 %v6971_v53 }
 0x232   :  { %v206_v6 = vpop.permute.xlu1 %205  ;;  %6107 = vmatprep.subr.bf16.mxu1 %v6808_v38 }
 0x235   :  { %6109 = vmatpush3.bf16.msra.mxu1 %v6981_v56 }
 0x236   :  { %v210_v21 = vpop.permute.xlu1 %209  ;;  %6110 = vmatprep.subr.bf16.mxu1 %v6808_v38 }
 0x237   :  { %v212_v27 = vsel %vm80_vm7, %v206_v6, %v210_v21  ;;  %v48_v6 = vld [vmem:[%s8059_s3 + $0x78] sm:$0xff]  ;;  %s6812_s3 = smov 12  }
 0x238   :  { %v220_v29 = vmul.f32 %v212_v27, %v194_v25  ;;  %v222_v30 = vmul.f32 %v212_v27, %v185_v18  ;;  %v7016_v7 = vpack.c.bf16 %v48_v6, %v47_v5 }
 0x239   :  { %6112 = vmatpush3.bf16.msra.mxu1 %v6991_v59 }
 0x23a   :  { %v221_v40 = vsub.f32 %v219_v26, %v220_v29  ;;  %v224_v41 = vadd.f32 %v223_v28, %v222_v30  ;;  %6113 = vmatprep.subr.bf16.mxu1 %v6808_v38 }
 0x23c   :  { %v225_v45 = vmul.f32 %v221_v40, %v215_v36  ;;  %v226_v46 = vmul.f32 %v224_v41, %v218_v39  ;;  %v228_v47 = vmul.f32 %v224_v41, %v215_v36  ;;  %v229_v48 = vmul.f32 %v221_v40, %v218_v39 }
 0x23d   :  { %6115 = vmatpush3.bf16.msra.mxu1 %v7001_v63 }
 0x23e   :  { %v230_v51 = vadd.f32 %v229_v48, %v228_v47  ;;  %v227_v52 = vsub.f32 %v225_v45, %v226_v46  ;;  %6116 = vmatprep.subr.bf16.mxu1 %v6808_v38 }
 0x240   :  { %232 = vrot.lane.b32.xlu0 %v230_v51, %s6811_s14 }
 0x241   :  { %6118 = vmatpush3.bf16.msra.mxu1 %v7016_v7 }
 0x242   :  { %6143 = vmatprep.subr.bf16.mxu1 %v6808_v38 }
 0x2b2   :  { %v233_v1 = vpop.permute.xlu0 %232 }
 0x2b3   :  { %v236_v3 = vsel %vm235_vm10, %v227_v52, %v233_v1 }
 0x2b4   :  { %5490 = vmatmul.mubr.msk.f32.vlgmr.msra.gmra.mrb[0].mxu0 %vm237_vm11, %v236_v3 }
 0x2b5   :  { %5535 = vmatprep.mubr.msk.f32.mxu0 %vm6809_vm9, %v6810_v9 }
 0x387   :  { %v307_v8 = vpop.f32.mrb[0].mxu0 }
 0x388   :  { %v311_v10 = vmul.f32 %v307_v8, %v307_v8  ;;  %v5491_v11 = vpop.f32.mrb[1].mxu0 }
 0x38a   :  { %5525 = vmatmul.mubr.f32.vlgmr.msra.gmra.mrb[0].mxu1 %v311_v10 }
 0x38b   :  { %6145 = vmatpush3.bf16.msra.mxu1 %v6940_v22  ;;  %5600 = vmatprep.mubr.msk.f32.mxu1 %vm6809_vm9, %v6810_v9 }
 0x38c   :  { %6146 = vmatprep.subr.bf16.mxu1 %v6808_v38 }
 0x38f   :  { %6148 = vmatpush3.bf16.msra.mxu1 %v6950_v31 }
 0x390   :  { %6149 = vmatprep.subr.bf16.mxu1 %v6808_v38 }
 0x393   :  { %6151 = vmatpush3.bf16.msra.mxu1 %v6959_v43 }
 0x394   :  { %6152 = vmatprep.subr.bf16.mxu1 %v6808_v38 }
 0x397   :  { %6154 = vmatpush3.bf16.msra.mxu1 %v6971_v53 }
 0x398   :  { %6155 = vmatprep.subr.bf16.mxu1 %v6808_v38 }
 0x39b   :  { %6157 = vmatpush3.bf16.msra.mxu1 %v6981_v56 }
 0x39c   :  { %6158 = vmatprep.subr.bf16.mxu1 %v6808_v38 }
 0x39f   :  { %6160 = vmatpush3.bf16.msra.mxu1 %v6991_v59 }
 0x3a0   :  { %6161 = vmatprep.subr.bf16.mxu1 %v6808_v38 }
 0x3a3   :  { %6163 = vmatpush3.bf16.msra.mxu1 %v7001_v63 }
 0x3a4   :  { %6164 = vmatprep.subr.bf16.mxu1 %v6808_v38 }
 0x3a7   :  { %6166 = vmatpush3.bf16.msra.mxu1 %v7016_v7 }
 0x3a8   :  { %6191 = vmatprep.subr.bf16.mxu1 %v6808_v38 }
 0x45d   :  { %v378_v12 = vpop.f32.mrb[0].mxu1 }
 0x45e   :  { %v382_v13 = vsub.f32 0.0, %v378_v12  ;;  %v5526_v14 = vpop.f32.mrb[1].mxu1 }
 0x460   :  { %v383_v15 = vmul.f32 1.442695, %v382_v13 }
 0x462   :  { %6691 = vpow2.f32 %v383_v15 }
 0x46c   :  { %v6692_v16 = vpop.eup %6691 }
 0x46d   :  { %v385_v18 = vadd.f32 1.0, %v6692_v16 }
 0x46f   :  { %6693 = vrcp.f32 %v385_v18 }
 0x479   :  { %v6694_v19 = vpop.eup %6693 }
 0x47a   :  { %v387_v20 = vmul.f32 %v6694_v19, %v385_v18 }
 0x47c   :  { %v388_v21 = vsub.f32 2.0, %v387_v20 }
 0x47e   :  { %v389_v23 = vmul.f32 %v6694_v19, %v388_v21 }
 0x480   :  { %v390_v24 = vmul.f32 2.0, %v389_v23  ;;  %v392_v28 = vmul.f32 0.0, %v389_v23 }
 0x482   :  { %v5154_v25 = vadd.f32 -1.0, %v390_v24 }
 0x484   :  { %394 = vrot.lane.b32.xlu1 %v5154_v25, %s6804_s30  ;;  %v49_v25 = vld [vmem:[%s8060_s4] sm:$0xff] }
 0x4f6   :  { %v395_v26 = vpop.permute.xlu1 %394 }
 0x4f7   :  { %v397_v27 = vmul.f32 %v395_v26, %v389_v23  ;;  %v50_v26 = vld [vmem:[%s8060_s4 + $0x8] sm:$0xff] }
 0x4f9   :  { %399 = vrot.lane.b32.xlu0 %v397_v27, %s6804_s30  ;;  %v51_v27 = vld [vmem:[%s8060_s4 + $0x10] sm:$0xff] }
 0x56b   :  { %v400_v29 = vpop.permute.xlu0 %399 }
 0x56c   :  { %v7040_v30 = vadd.f32 %v400_v29, %v392_v28  ;;  %v7075_v28 = vpack.c.bf16 %v50_v26, %v49_v25  ;;  %v52_v29 = vld [vmem:[%s8060_s4 + $0x18] sm:$0xff] }
 0x56e   :  { %6695 = vtanh.f32 %v7040_v30  ;;  %6121 = vmatpush3.bf16.msra.mxu0 %v7075_v28 }
 0x56f   :  { %6122 = vmatprep.subr.bf16.mxu0 %v6808_v38 }
 0x578   :  { %v6696_v32 = vpop.eup %6695 }
 0x579   :  { %405 = vrot.lane.b32.xlu1 %v6696_v32, %s6812_s3  ;;  %v7081_v32 = vpack.c.bf16 %v52_v29, %v51_v27 }
 0x57b   :  { %6124 = vmatpush3.bf16.msra.mxu0 %v7081_v32 }
 0x57c   :  { %6125 = vmatprep.subr.bf16.mxu0 %v6808_v38 }
 0x5eb   :  { %v406_v34 = vpop.permute.xlu1 %405 }
 0x5ec   :  { %v408_v36 = vmul.f32 %v406_v34, %v389_v23 }
 0x5ee   :  { %411 = vrot.lane.b32.xlu0 %v408_v36, %s6802_s28  ;;  %v409_v39 = vmul.f32 %v408_v36, %v408_v36  ;;  %vm439_vm14 = vcmp.ge.f32.partialorder %v408_v36, 0.0 }
 0x5f0   :  { %415 = vrot.lane.b32.xlu1 %v409_v39, %s6803_s29 }
 0x660   :  { %v412_v40 = vpop.permute.xlu0 %411 }
 0x662   :  { %v416_v41 = vpop.permute.xlu1 %415 }
 0x663   :  { %v418_v45 = vsel %vm88_vm0, %v412_v40, %v416_v41 }
 0x664   :  { %v419_v46 = vmul.f32 %v418_v45, %v418_v45 }
 0x666   :  { %v420_v47 = vadd.f32 1.0, %v419_v46 }
 0x668   :  { %6697 = vrsqrt.f32 %v420_v47 }
 0x672   :  { %v6698_v48 = vpop.eup %6697 }
 0x673   :  { %v424_v49 = vsub.f32 1.0, %v6698_v48  ;;  %v422_v52 = vadd.f32 1.0, %v6698_v48 }
 0x675   :  { %v425_v50 = vmul.f32 0.5, %v424_v49  ;;  %v423_v54 = vmul.f32 0.5, %v422_v52 }
 0x677   :  { %v426_v51 = vmax.f32 %v425_v50, 0.0 }
 0x679   :  { %428 = vrot.lane.b32.xlu0 %v426_v51, %s6800_s27 }
 0x6eb   :  { %v429_v55 = vpop.permute.xlu0 %428 }
 0x6ec   :  { %v431_v57 = vsel %vm102_vm1, %v423_v54, %v429_v55 }
 0x6ed   :  { %6699 = vrsqrt.f32 %v431_v57  ;;  %vm434_vm12 = vcmp.eq.f32.partialorder %v431_v57, inf  ;;  %v437_v61 = vand.u32 2147483648, %v431_v57  ;;  %vm436_vm13 = vcmp.eq.f32.partialorder %v431_v57, 0.0 }
 0x6f7   :  { %v6700_v58 = vpop.eup %6699 }
 0x6f8   :  { %v433_v60 = vmul.f32 %v6700_v58, %v431_v57 }
 0x6fa   :  { %v435_v1 = vsel %vm434_vm12, %v431_v57, %v433_v60 }
 0x6fb   :  { %v438_v3 = vsel %vm436_vm13, %v437_v61, %v435_v1 }
 0x6fc   :  { %442 = vrot.lane.b32.xlu1 %v438_v3, %s6799_s26  ;;  %v440_v5 = vsub.f32 0.0, %v438_v3 }
 0x6fe   :  { %446 = vrot.lane.b32.xlu0 %v440_v5, %s6799_s26 }
 0x702   :  { %462 = vrot.lane.b32.xlu0 %v438_v3, %s6802_s28 }
 0x76e   :  { %v443_v6 = vpop.permute.xlu1 %442 }
 0x770   :  { %v447_v8 = vpop.permute.xlu0 %446 }
 0x771   :  { %v449_v10 = vsel %vm439_vm14, %v443_v6, %v447_v8 }
 0x772   :  { %451 = vrot.lane.b32.xlu1 %v449_v10, %s6802_s28 }
 0x774   :  { %v463_v20 = vpop.permute.xlu0 %462 }
 0x776   :  { %458 = vrot.lane.b32.xlu1 %v438_v3, %s6804_s30 }
 0x7e4   :  { %v452_v11 = vpop.permute.xlu1 %451 }
 0x7e5   :  { %v454_v12 = vsub.f32 %v438_v3, %v452_v11  ;;  %v456_v13 = vadd.f32 %v452_v11, %v438_v3 }
 0x7e7   :  { %v455_v14 = vmul.f32 0.70710677, %v454_v12  ;;  %v457_v15 = vmul.f32 0.70710677, %v456_v13 }
 0x7e8   :  { %v459_v16 = vpop.permute.xlu1 %458 }
 0x7e9   :  { %v461_v18 = vmul.f32 %v459_v16, %v455_v14  ;;  %v467_v19 = vmul.f32 %v459_v16, %v457_v15  ;;  %v468_v21 = vmul.f32 %v463_v20, %v457_v15  ;;  %v465_v23 = vmul.f32 %v463_v20, %v455_v14 }
 0x7eb   :  { %471 = vperm.xlu0 %6499, %v467_v19   ;;  %476 = vperm.xlu1 %6500, %v461_v18   ;;  %v466_v24 = vsub.f32 0.0, %v465_v23 }
 0x7ef   :  { %6502 = vset.pattern.permute.xlu0 %v6805_v33  ;;  %482 = vperm.xlu1 %6500, %v468_v21  }
 0x7f0   :  { %496 = vperm.xlu0 %6502, %v461_v18  }
 0x7f3   :  { %6501 = vset.pattern.permute.xlu1 %v6805_v33 }
 0x7f4   :  { %6503 = vset.pattern.permute.xlu0 %v6806_v35  ;;  %492 = vperm.xlu1 %6501, %v467_v19  }
 0x7f5   :  { %510 = vperm.xlu0 %6503, %v467_v19  }
 0x7f8   :  { %501 = vperm.xlu1 %6501, %v468_v21  }
 0x7f9   :  { %6506 = vset.pattern.permute.xlu0 %v6801_v17 }
 0x7fa   :  { %487 = vperm.xlu0 %6506, %v466_v24  }
 0x7fc   :  { %6504 = vset.pattern.permute.xlu1 %v6806_v35 }
 0x7fd   :  { %514 = vperm.xlu1 %6504, %v461_v18  }
 0x7fe   :  { %6508 = vset.pattern.permute.xlu0 %v6806_v35 }
 0x7ff   :  { %523 = vperm.xlu0 %6508, %v466_v24  }
 0x801   :  { %519 = vperm.xlu1 %6504, %v468_v21  }
 0x803   :  { %6509 = vset.pattern.permute.xlu0 %v6807_v37 }
 0x804   :  { %532 = vperm.xlu0 %6509, %v461_v18  }
 0x805   :  { %6505 = vset.pattern.permute.xlu1 %v6807_v37 }
 0x806   :  { %528 = vperm.xlu1 %6505, %v467_v19  }
 0x808   :  { %6512 = vset.pattern.permute.xlu0 %v6801_v17 }
 0x80a   :  { %6507 = vset.pattern.permute.xlu1 %v6805_v33 }
 0x80b   :  { %505 = vperm.xlu1 %6507, %v466_v24  }
 0x80f   :  { %6510 = vset.pattern.permute.xlu1 %v6807_v37 }
 0x810   :  { %537 = vperm.xlu1 %6510, %v468_v21  }
 0x814   :  { %541 = vperm.xlu1 %6510, %v466_v24  }
 0x818   :  { %6511 = vset.pattern.permute.xlu1 %v6801_v17 }
 0x86a   :  { %v477_v34 = vpop.permute.xlu1 %476  ;;  %v472_v39 = vpop.permute.xlu0 %471 }
 0x86b   :  { %v479_v61 = vsel %vm65_vm6, %v472_v39, %v477_v34  ;;  %v54_v39 = vld [vmem:[%s8061_s5 + $0x8] sm:$0xff] }
 0x86e   :  { %v483_v36 = vpop.permute.xlu1 %482 }
 0x86f   :  { %v497_v45 = vpop.permute.xlu0 %496 }
 0x873   :  { %v493_v40 = vpop.permute.xlu1 %492 }
 0x874   :  { %v511_v47 = vpop.permute.xlu0 %510  ;;  %v499_v55 = vsel %vm70_vm5, %v493_v40, %v497_v45  ;;  %v55_v45 = vld [vmem:[%s8061_s5 + $0x10] sm:$0xff] }
 0x875   :  { %v545_v3 = vmul.f32 %v499_v55, %v479_v61 }
 0x877   :  { %v502_v41 = vpop.permute.xlu1 %501 }
 0x879   :  { %v488_v49 = vpop.permute.xlu0 %487 }
 0x87a   :  { %v490_v58 = vsel %vm65_vm6, %v483_v36, %v488_v49  ;;  %v53_v36 = vld [vmem:[%s8061_s5] sm:$0xff] }
 0x87b   :  { %v549_v10 = vmul.f32 %v499_v55, %v490_v58  ;;  %v7109_v40 = vpack.c.bf16 %v54_v39, %v53_v36  ;;  %v57_v49 = vld [vmem:[%s8061_s5 + $0x20] sm:$0xff] }
 0x87c   :  { %v515_v46 = vpop.permute.xlu1 %514 }
 0x87d   :  { %v517_v11 = vsel %vm75_vm8, %v511_v47, %v515_v46  ;;  %v56_v46 = vld [vmem:[%s8061_s5 + $0x18] sm:$0xff] }
 0x87e   :  { %v524_v52 = vpop.permute.xlu0 %523 }
 0x880   :  { %v520_v48 = vpop.permute.xlu1 %519 }
 0x881   :  { %v526_v12 = vsel %vm75_vm8, %v520_v48, %v524_v52  ;;  %v7120_v48 = vpack.c.bf16 %v56_v46, %v55_v45  ;;  %v59_v52 = vld [vmem:[%s8061_s5 + $0x30] sm:$0xff] }
 0x883   :  { %v533_v60 = vpop.permute.xlu0 %532 }
 0x885   :  { %v529_v50 = vpop.permute.xlu1 %528 }
 0x886   :  { %v535_v1 = vsel %vm80_vm7, %v529_v50, %v533_v60  ;;  %v58_v50 = vld [vmem:[%s8061_s5 + $0x28] sm:$0xff] }
 0x887   :  { %v551_v14 = vmul.f32 %v535_v1, %v517_v11  ;;  %v555_v15 = vmul.f32 %v535_v1, %v526_v12 }
 0x88a   :  { %v506_v51 = vpop.permute.xlu1 %505 }
 0x88b   :  { %v508_v57 = vsel %vm70_vm5, %v502_v41, %v506_v51  ;;  %v7132_v51 = vpack.c.bf16 %v58_v50, %v57_v49 }
 0x88c   :  { %v546_v5 = vmul.f32 %v508_v57, %v490_v58  ;;  %v548_v6 = vmul.f32 %v508_v57, %v479_v61  ;;  %v5157_v61 = vld [vmem:[%s8056_s0 + $0x8] sm:$0xff] }
 0x88e   :  { %v547_v19 = vsub.f32 %v545_v3, %v546_v5  ;;  %v550_v20 = vadd.f32 %v549_v10, %v548_v6 }
 0x88f   :  { %v538_v54 = vpop.permute.xlu1 %537 }
 0x893   :  { %v542_v8 = vpop.permute.xlu1 %541 }
 0x894   :  { %v544_v13 = vsel %vm80_vm7, %v538_v54, %v542_v8  ;;  %v60_v54 = vld [vmem:[%s8061_s5 + $0x38] sm:$0xff] }
 0x895   :  { %v552_v16 = vmul.f32 %v544_v13, %v526_v12  ;;  %v554_v18 = vmul.f32 %v544_v13, %v517_v11  ;;  %v7143_v55 = vpack.c.bf16 %v60_v54, %v59_v52 }
 0x897   :  { %v553_v21 = vsub.f32 %v551_v14, %v552_v16  ;;  %v556_v23 = vadd.f32 %v555_v15, %v554_v18 }
 0x899   :  { %v557_v24 = vmul.f32 %v553_v21, %v547_v19  ;;  %v558_v25 = vmul.f32 %v556_v23, %v550_v20  ;;  %v560_v26 = vmul.f32 %v556_v23, %v547_v19  ;;  %v561_v27 = vmul.f32 %v553_v21, %v550_v20 }
 0x89b   :  { %v562_v29 = vadd.f32 %v561_v27, %v560_v26  ;;  %v559_v34 = vsub.f32 %v557_v24, %v558_v25 }
 0x89d   :  { %564 = vrot.lane.b32.xlu0 %v562_v29, %s6811_s14 }
 0x90f   :  { %v565_v41 = vpop.permute.xlu0 %564 }
 0x910   :  { %v567_v47 = vsel %vm235_vm10, %v559_v34, %v565_v41 }
 0x911   :  { %5536 = vmatmul.mubr.msk.f32.vlgmr.msra.gmra.mrb[2].mxu0 %vm237_vm11, %v567_v47 }
 0x912   :  { %6127 = vmatpush3.bf16.msra.mxu0 %v7109_v40  ;;  %5554 = vmatprep.mubr.msk.f32.mxu0 %vm6809_vm9, %v6810_v9 }
 0x913   :  { %6128 = vmatprep.subr.bf16.mxu0 %v6808_v38 }
 0x916   :  { %6130 = vmatpush3.bf16.msra.mxu0 %v7120_v48 }
 0x917   :  { %6131 = vmatprep.subr.bf16.mxu0 %v6808_v38 }
 0x91a   :  { %6133 = vmatpush3.bf16.msra.mxu0 %v7132_v51 }
 0x91b   :  { %6134 = vmatprep.subr.bf16.mxu0 %v6808_v38 }
 0x91e   :  { %6136 = vmatpush3.bf16.msra.mxu0 %v7143_v55 }
 0x91f   :  { %6137 = vmatprep.subr.bf16.mxu0 %v6808_v38 }
 0x9e4   :  { %v637_v57 = vpop.f32.mrb[2].mxu0 }
 0x9e5   :  { %v641_v58 = vmul.f32 %v637_v57, %v637_v57  ;;  %v5537_v60 = vpop.f32.mrb[3].mxu0 }
 0x9e7   :  { %5555 = vmatmul.mubr.msk.f32.vlgmr.msra.gmra.mrb[4].mxu0 %vm642_vm15, %v641_v58 }
 0x9e8   :  { %6139 = vmatpush3.bf16.msra.mxu0 %v6889_v42  ;;  %5565 = vmatprep.mubr.msk.f32.mxu0 %vm6809_vm9, %v6810_v9 }
 0x9e9   :  { %6140 = vmatprep.subr.bf16.mxu0 %v6808_v38 }
 0x9ec   :  { %6142 = vmatpush3.bf16.msra.mxu0 %v6895_v44 }
 0x9ed   :  { %6167 = vmatprep.subr.bf16.mxu0 %v6808_v38 }
 0xaba   :  { %v712_v1 = vpop.f32.mrb[4].mxu0 }
 0xabb   :  { %v718_v3 = vadd.f32 %v5157_v61, %v712_v1  ;;  %v5556_v5 = vpop.f32.mrb[5].mxu0 }
 0xabd   :  { %v719_v6 = vmul.f32 %v718_v3, %v718_v3  ;;  %vm745_vm4 = vcmp.ge.f32.partialorder %v718_v3, 0.0 }
 0xabf   :  { %721 = vrot.lane.b32.xlu1 %v719_v6, %s6799_s26 }
 0xb31   :  { %v722_v8 = vpop.permute.xlu1 %721 }
 0xb32   :  { %v724_v10 = vsel %vm88_vm0, %v718_v3, %v722_v8 }
 0xb33   :  { %v725_v11 = vmul.f32 %v724_v10, %v724_v10 }
 0xb35   :  { %v726_v12 = vadd.f32 1.0, %v725_v11 }
 0xb37   :  { %6701 = vrsqrt.f32 %v726_v12 }
 0xb41   :  { %v6702_v13 = vpop.eup %6701 }
 0xb42   :  { %v730_v14 = vsub.f32 1.0, %v6702_v13  ;;  %v728_v18 = vadd.f32 1.0, %v6702_v13 }
 0xb44   :  { %v731_v15 = vmul.f32 0.5, %v730_v14  ;;  %v729_v19 = vmul.f32 0.5, %v728_v18 }
 0xb46   :  { %v732_v16 = vmax.f32 %v731_v15, 0.0 }
 0xb48   :  { %734 = vrot.lane.b32.xlu0 %v732_v16, %s6800_s27 }
 0xbba   :  { %v735_v20 = vpop.permute.xlu0 %734 }
 0xbbb   :  { %v737_v21 = vsel %vm102_vm1, %v729_v19, %v735_v20 }
 0xbbc   :  { %6703 = vrsqrt.f32 %v737_v21  ;;  %vm740_vm2 = vcmp.eq.f32.partialorder %v737_v21, inf  ;;  %v743_v25 = vand.u32 2147483648, %v737_v21  ;;  %vm742_vm3 = vcmp.eq.f32.partialorder %v737_v21, 0.0 }
 0xbc6   :  { %v6704_v23 = vpop.eup %6703 }
 0xbc7   :  { %v739_v24 = vmul.f32 %v6704_v23, %v737_v21 }
 0xbc9   :  { %v741_v26 = vsel %vm740_vm2, %v737_v21, %v739_v24 }
 0xbca   :  { %v744_v27 = vsel %vm742_vm3, %v743_v25, %v741_v26 }
 0xbcb   :  { %748 = vrot.lane.b32.xlu1 %v744_v27, %s6803_s29  ;;  %v746_v29 = vsub.f32 0.0, %v744_v27 }
 0xbcd   :  { %752 = vrot.lane.b32.xlu0 %v746_v29, %s6803_s29 }
 0xbcf   :  { %764 = vrot.lane.b32.xlu1 %v744_v27, %s6802_s28 }
 0xbd1   :  { %760 = vrot.lane.b32.xlu0 %v744_v27, %s6804_s30 }
 0xc3d   :  { %v749_v34 = vpop.permute.xlu1 %748 }
 0xc3f   :  { %v753_v36 = vpop.permute.xlu0 %752 }
 0xc40   :  { %v755_v39 = vsel %vm745_vm4, %v749_v34, %v753_v36 }
 0xc41   :  { %v756_v41 = vsub.f32 %v744_v27, %v755_v39  ;;  %v758_v45 = vadd.f32 %v755_v39, %v744_v27  ;;  %v765_v54 = vpop.permute.xlu1 %764 }
 0xc43   :  { %v757_v46 = vmul.f32 0.70710677, %v756_v41  ;;  %v759_v47 = vmul.f32 0.70710677, %v758_v45  ;;  %v761_v49 = vpop.permute.xlu0 %760 }
 0xc45   :  { %v763_v50 = vmul.f32 %v761_v49, %v757_v46  ;;  %v769_v52 = vmul.f32 %v761_v49, %v759_v47  ;;  %v770_v57 = vmul.f32 %v765_v54, %v759_v47  ;;  %v767_v58 = vmul.f32 %v765_v54, %v757_v46 }
 0xc47   :  { %773 = vperm.xlu1 %6511, %v769_v52   ;;  %778 = vperm.xlu0 %6512, %v763_v50   ;;  %v768_v60 = vsub.f32 0.0, %v767_v58 }
 0xc4b   :  { %784 = vperm.xlu1 %6511, %v770_v57   ;;  %6513 = vset.pattern.permute.xlu0 %v6805_v33 }
 0xc4c   :  { %794 = vperm.xlu0 %6513, %v769_v52  }
 0xc4f   :  { %6514 = vset.pattern.permute.xlu1 %v6805_v33 }
 0xc50   :  { %798 = vperm.xlu1 %6514, %v763_v50   ;;  %6516 = vset.pattern.permute.xlu0 %v6806_v35 }
 0xc51   :  { %816 = vperm.xlu0 %6516, %v763_v50  }
 0xc54   :  { %803 = vperm.xlu1 %6514, %v770_v57  }
 0xc55   :  { %6517 = vset.pattern.permute.xlu0 %v6807_v37 }
 0xc56   :  { %830 = vperm.xlu0 %6517, %v769_v52  }
 0xc58   :  { %6515 = vset.pattern.permute.xlu1 %v6806_v35 }
 0xc59   :  { %812 = vperm.xlu1 %6515, %v769_v52  }
 0xc5a   :  { %6520 = vset.pattern.permute.xlu0 %v6805_v33 }
 0xc5b   :  { %807 = vperm.xlu0 %6520, %v768_v60  }
 0xc5d   :  { %821 = vperm.xlu1 %6515, %v770_v57  }
 0xc5f   :  { %6523 = vset.pattern.permute.xlu0 %v6807_v37 }
 0xc60   :  { %843 = vperm.xlu0 %6523, %v768_v60  }
 0xc61   :  { %6518 = vset.pattern.permute.xlu1 %v6807_v37 }
 0xc62   :  { %834 = vperm.xlu1 %6518, %v763_v50  }
 0xc64   :  { %6525 = vset.pattern.permute.xlu0 %v6801_v17 }
 0xc66   :  { %6519 = vset.pattern.permute.xlu1 %v6801_v17 }
 0xc67   :  { %789 = vperm.xlu1 %6519, %v768_v60  }
 0xc6b   :  { %6521 = vset.pattern.permute.xlu1 %v6806_v35 }
 0xc6c   :  { %825 = vperm.xlu1 %6521, %v768_v60  }
 0xc70   :  { %6522 = vset.pattern.permute.xlu1 %v6807_v37 }
 0xc71   :  { %839 = vperm.xlu1 %6522, %v770_v57  }
 0xc75   :  { %6524 = vset.pattern.permute.xlu1 %v6801_v17 }
 0xcc6   :  { %v774_v61 = vpop.permute.xlu1 %773  ;;  %v779_v5 = vpop.permute.xlu0 %778 }
 0xcc7   :  { %v781_v25 = vsel %vm65_vm6, %v774_v61, %v779_v5 }
 0xcca   :  { %v785_v1 = vpop.permute.xlu1 %784 }
 0xccb   :  { %v795_v8 = vpop.permute.xlu0 %794 }
 0xccf   :  { %v799_v3 = vpop.permute.xlu1 %798 }
 0xcd0   :  { %v817_v12 = vpop.permute.xlu0 %816  ;;  %v801_v20 = vsel %vm70_vm5, %v795_v8, %v799_v3 }
 0xcd1   :  { %v847_v36 = vmul.f32 %v801_v20, %v781_v25 }
 0xcd3   :  { %v804_v6 = vpop.permute.xlu1 %803 }
 0xcd5   :  { %v831_v14 = vpop.permute.xlu0 %830 }
 0xcd8   :  { %v813_v10 = vpop.permute.xlu1 %812 }
 0xcd9   :  { %v819_v39 = vsel %vm75_vm8, %v813_v10, %v817_v12 }
 0xcda   :  { %v808_v16 = vpop.permute.xlu0 %807 }
 0xcdb   :  { %v810_v21 = vsel %vm70_vm5, %v804_v6, %v808_v16 }
 0xcdc   :  { %v822_v11 = vpop.permute.xlu1 %821  ;;  %v850_v41 = vmul.f32 %v810_v21, %v781_v25 }
 0xcdf   :  { %v844_v26 = vpop.permute.xlu0 %843 }
 0xce1   :  { %v835_v13 = vpop.permute.xlu1 %834 }
 0xce2   :  { %v837_v23 = vsel %vm80_vm7, %v831_v14, %v835_v13 }
 0xce3   :  { %v853_v46 = vmul.f32 %v837_v23, %v819_v39 }
 0xce6   :  { %v790_v15 = vpop.permute.xlu1 %789 }
 0xce7   :  { %v792_v19 = vsel %vm65_vm6, %v785_v1, %v790_v15 }
 0xce8   :  { %v848_v27 = vmul.f32 %v810_v21, %v792_v19  ;;  %v851_v29 = vmul.f32 %v801_v20, %v792_v19 }
 0xcea   :  { %v849_v52 = vsub.f32 %v847_v36, %v848_v27  ;;  %v852_v54 = vadd.f32 %v851_v29, %v850_v41 }
 0xceb   :  { %v826_v18 = vpop.permute.xlu1 %825 }
 0xcec   :  { %v828_v24 = vsel %vm75_vm8, %v822_v11, %v826_v18 }
 0xced   :  { %v857_v47 = vmul.f32 %v837_v23, %v828_v24 }
 0xcf0   :  { %v840_v34 = vpop.permute.xlu1 %839 }
 0xcf1   :  { %v846_v45 = vsel %vm80_vm7, %v840_v34, %v844_v26 }
 0xcf2   :  { %v854_v49 = vmul.f32 %v846_v45, %v828_v24  ;;  %v856_v50 = vmul.f32 %v846_v45, %v819_v39 }
 0xcf4   :  { %v855_v57 = vsub.f32 %v853_v46, %v854_v49  ;;  %v858_v58 = vadd.f32 %v857_v47, %v856_v50 }
 0xcf6   :  { %v859_v60 = vmul.f32 %v855_v57, %v849_v52  ;;  %v860_v61 = vmul.f32 %v858_v58, %v852_v54  ;;  %v862_v1 = vmul.f32 %v858_v58, %v849_v52  ;;  %v863_v3 = vmul.f32 %v855_v57, %v852_v54 }
 0xcf8   :  { %v864_v5 = vadd.f32 %v863_v3, %v862_v1  ;;  %v861_v6 = vsub.f32 %v859_v60, %v860_v61 }
 0xcfa   :  { %866 = vrot.lane.b32.xlu1 %v864_v5, %s6811_s14 }
 0xd6c   :  { %v867_v8 = vpop.permute.xlu1 %866 }
 0xd6d   :  { %v869_v10 = vsel %vm235_vm10, %v861_v6, %v867_v8 }
 0xd6e   :  { %5566 = vmatmul.mubr.msk.f32.vlgmr.msra.gmra.mrb[6].mxu0 %vm237_vm11, %v869_v10 }
 0xd6f   :  { %6169 = vmatpush3.bf16.msra.mxu0 %v7075_v28  ;;  %5611 = vmatprep.mubr.msk.f32.mxu0 %vm6809_vm9, %v6810_v9 }
 0xd70   :  { %6170 = vmatprep.subr.bf16.mxu0 %v6808_v38 }
 0xd73   :  { %6172 = vmatpush3.bf16.msra.mxu0 %v7081_v32 }
 0xd74   :  { %6173 = vmatprep.subr.bf16.mxu0 %v6808_v38 }
 0xe41   :  { %v939_v11 = vpop.f32.mrb[6].mxu0 }
 0xe42   :  { %v943_v12 = vmul.f32 %v939_v11, %v939_v11  ;;  %v5567_v13 = vpop.f32.mrb[7].mxu0 }
 0xe44   :  { %5601 = vmatmul.mubr.f32.vlgmr.msra.gmra.mrb[2].mxu1 %v943_v12 }
 0xe45   :  { %6193 = vmatpush3.bf16.msra.mxu1 %v6940_v22  ;;  %5676 = vmatprep.mubr.msk.f32.mxu1 %vm6809_vm9, %v6810_v9 }
 0xe46   :  { %6194 = vmatprep.subr.bf16.mxu1 %v6808_v38 }
 0xe49   :  { %6196 = vmatpush3.bf16.msra.mxu1 %v6950_v31 }
 0xe4a   :  { %6197 = vmatprep.subr.bf16.mxu1 %v6808_v38 }
 0xe4d   :  { %6199 = vmatpush3.bf16.msra.mxu1 %v6959_v43 }
 0xe4e   :  { %6200 = vmatprep.subr.bf16.mxu1 %v6808_v38 }
 0xe51   :  { %6202 = vmatpush3.bf16.msra.mxu1 %v6971_v53 }
 0xe52   :  { %6203 = vmatprep.subr.bf16.mxu1 %v6808_v38 }
 0xe55   :  { %6205 = vmatpush3.bf16.msra.mxu1 %v6981_v56 }
 0xe56   :  { %6206 = vmatprep.subr.bf16.mxu1 %v6808_v38 }
 0xe59   :  { %6208 = vmatpush3.bf16.msra.mxu1 %v6991_v59 }
 0xe5a   :  { %6209 = vmatprep.subr.bf16.mxu1 %v6808_v38 }
 0xe5d   :  { %6211 = vmatpush3.bf16.msra.mxu1 %v7001_v63 }
 0xe5e   :  { %6212 = vmatprep.subr.bf16.mxu1 %v6808_v38 }
 0xe61   :  { %6214 = vmatpush3.bf16.msra.mxu1 %v7016_v7 }
 0xe62   :  { %6239 = vmatprep.subr.bf16.mxu1 %v6808_v38 }
 0xf17   :  { %v1010_v14 = vpop.f32.mrb[2].mxu1 }
 0xf18   :  { %v1014_v15 = vsub.f32 0.0, %v1010_v14  ;;  %v5602_v16 = vpop.f32.mrb[3].mxu1 }
 0xf1a   :  { %v1015_v18 = vmul.f32 1.442695, %v1014_v15 }
 0xf1c   :  { %6705 = vpow2.f32 %v1015_v18 }
 0xf26   :  { %v6706_v19 = vpop.eup %6705 }
 0xf27   :  { %v1017_v20 = vadd.f32 1.0, %v6706_v19 }
 0xf29   :  { %6707 = vrcp.f32 %v1017_v20 }
 0xf33   :  { %v6708_v21 = vpop.eup %6707 }
 0xf34   :  { %v1019_v23 = vmul.f32 %v6708_v21, %v1017_v20 }
 0xf36   :  { %v1020_v24 = vsub.f32 2.0, %v1019_v23 }
 0xf38   :  { %v1021_v25 = vmul.f32 %v6708_v21, %v1020_v24 }
 0xf3a   :  { %v1022_v26 = vmul.f32 2.0, %v1021_v25  ;;  %v1024_v36 = vmul.f32 %v1021_v25, %v7040_v30 }
 0xf3c   :  { %v5159_v27 = vadd.f32 -1.0, %v1022_v26 }
 0xf3e   :  { %1026 = vrot.lane.b32.xlu0 %v5159_v27, %s6804_s30 }
 0xfb0   :  { %v1027_v29 = vpop.permute.xlu0 %1026 }
 0xfb1   :  { %v1029_v34 = vmul.f32 %v1027_v29, %v1021_v25 }
 0xfb3   :  { %1031 = vrot.lane.b32.xlu1 %v1029_v34, %s6804_s30 }
0x1025   :  { %v1032_v39 = vpop.permute.xlu1 %1031 }
0x1026   :  { %v7224_v41 = vadd.f32 %v1032_v39, %v1024_v36 }
0x1028   :  { %6709 = vtanh.f32 %v7224_v41 }
0x1032   :  { %v6710_v45 = vpop.eup %6709 }
0x1033   :  { %1037 = vrot.lane.b32.xlu0 %v6710_v45, %s6812_s3 }
0x10a5   :  { %v1038_v46 = vpop.permute.xlu0 %1037 }
0x10a6   :  { %v1040_v47 = vmul.f32 %v1038_v46, %v1021_v25 }
0x10a8   :  { %1043 = vrot.lane.b32.xlu1 %v1040_v47, %s6802_s28  ;;  %v1041_v49 = vmul.f32 %v1040_v47, %v1040_v47  ;;  %vm1071_vm14 = vcmp.ge.f32.partialorder %v1040_v47, 0.0 }
0x10aa   :  { %1047 = vrot.lane.b32.xlu0 %v1041_v49, %s6803_s29 }
0x111a   :  { %v1044_v50 = vpop.permute.xlu1 %1043 }
0x111c   :  { %v1048_v52 = vpop.permute.xlu0 %1047 }
0x111d   :  { %v1050_v54 = vsel %vm88_vm0, %v1044_v50, %v1048_v52 }
0x111e   :  { %v1051_v30 = vmul.f32 %v1050_v54, %v1050_v54 }
0x1120   :  { %v1052_v57 = vadd.f32 1.0, %v1051_v30 }
0x1122   :  { %6711 = vrsqrt.f32 %v1052_v57 }
0x112c   :  { %v6712_v58 = vpop.eup %6711 }
0x112d   :  { %v1056_v60 = vsub.f32 1.0, %v6712_v58  ;;  %v1054_v3 = vadd.f32 1.0, %v6712_v58 }
0x112f   :  { %v1057_v61 = vmul.f32 0.5, %v1056_v60  ;;  %v1055_v5 = vmul.f32 0.5, %v1054_v3 }
0x1131   :  { %v1058_v1 = vmax.f32 %v1057_v61, 0.0 }
0x1133   :  { %1060 = vrot.lane.b32.xlu1 %v1058_v1, %s6800_s27 }
0x11a5   :  { %v1061_v6 = vpop.permute.xlu1 %1060 }
0x11a6   :  { %v1063_v8 = vsel %vm102_vm1, %v1055_v5, %v1061_v6 }
0x11a7   :  { %6713 = vrsqrt.f32 %v1063_v8  ;;  %vm1066_vm12 = vcmp.eq.f32.partialorder %v1063_v8, inf  ;;  %v1069_v12 = vand.u32 2147483648, %v1063_v8  ;;  %vm1068_vm13 = vcmp.eq.f32.partialorder %v1063_v8, 0.0 }
0x11b1   :  { %v6714_v10 = vpop.eup %6713 }
0x11b2   :  { %v1065_v11 = vmul.f32 %v6714_v10, %v1063_v8 }
0x11b4   :  { %v1067_v13 = vsel %vm1066_vm12, %v1063_v8, %v1065_v11 }
0x11b5   :  { %v1070_v14 = vsel %vm1068_vm13, %v1069_v12, %v1067_v13 }
0x11b6   :  { %1074 = vrot.lane.b32.xlu0 %v1070_v14, %s6799_s26  ;;  %v1072_v15 = vsub.f32 0.0, %v1070_v14 }
0x11b8   :  { %1078 = vrot.lane.b32.xlu1 %v1072_v15, %s6799_s26 }
0x11bc   :  { %1094 = vrot.lane.b32.xlu1 %v1070_v14, %s6802_s28 }
0x1228   :  { %v1075_v16 = vpop.permute.xlu0 %1074 }
0x122a   :  { %v1079_v18 = vpop.permute.xlu1 %1078 }
0x122b   :  { %v1081_v19 = vsel %vm1071_vm14, %v1075_v16, %v1079_v18 }
0x122c   :  { %1083 = vrot.lane.b32.xlu0 %v1081_v19, %s6802_s28 }
0x122e   :  { %v1095_v34 = vpop.permute.xlu1 %1094 }
0x1230   :  { %1090 = vrot.lane.b32.xlu0 %v1070_v14, %s6804_s30 }
0x129e   :  { %v1084_v20 = vpop.permute.xlu0 %1083 }
0x129f   :  { %v1086_v21 = vsub.f32 %v1070_v14, %v1084_v20  ;;  %v1088_v23 = vadd.f32 %v1084_v20, %v1070_v14 }
0x12a1   :  { %v1087_v24 = vmul.f32 0.70710677, %v1086_v21  ;;  %v1089_v25 = vmul.f32 0.70710677, %v1088_v23 }
0x12a2   :  { %v1091_v26 = vpop.permute.xlu0 %1090 }
0x12a3   :  { %v1093_v27 = vmul.f32 %v1091_v26, %v1087_v24  ;;  %v1099_v29 = vmul.f32 %v1091_v26, %v1089_v25  ;;  %v1100_v36 = vmul.f32 %v1095_v34, %v1089_v25  ;;  %v1097_v39 = vmul.f32 %v1095_v34, %v1087_v24 }
0x12a5   :  { %1103 = vperm.xlu1 %6524, %v1099_v29   ;;  %1108 = vperm.xlu0 %6525, %v1093_v27   ;;  %v1098_v45 = vsub.f32 0.0, %v1097_v39 }
0x12a9   :  { %6526 = vset.pattern.permute.xlu0 %v6805_v33  ;;  %1114 = vperm.xlu1 %6524, %v1100_v36  }
0x12aa   :  { %1124 = vperm.xlu0 %6526, %v1099_v29  }
0x12ad   :  { %6527 = vset.pattern.permute.xlu1 %v6805_v33 }
0x12ae   :  { %6529 = vset.pattern.permute.xlu0 %v6806_v35  ;;  %1128 = vperm.xlu1 %6527, %v1093_v27  }
0x12af   :  { %1146 = vperm.xlu0 %6529, %v1093_v27  }
0x12b2   :  { %1133 = vperm.xlu1 %6527, %v1100_v36  }
0x12b3   :  { %6530 = vset.pattern.permute.xlu0 %v6807_v37 }
0x12b4   :  { %1160 = vperm.xlu0 %6530, %v1099_v29  }
0x12b6   :  { %6528 = vset.pattern.permute.xlu1 %v6806_v35 }
0x12b7   :  { %1142 = vperm.xlu1 %6528, %v1099_v29  }
0x12b8   :  { %6533 = vset.pattern.permute.xlu0 %v6805_v33 }
0x12b9   :  { %1137 = vperm.xlu0 %6533, %v1098_v45  }
0x12bb   :  { %1151 = vperm.xlu1 %6528, %v1100_v36  }
0x12bd   :  { %6536 = vset.pattern.permute.xlu0 %v6807_v37 }
0x12be   :  { %1173 = vperm.xlu0 %6536, %v1098_v45  }
0x12bf   :  { %6531 = vset.pattern.permute.xlu1 %v6807_v37 }
0x12c0   :  { %1164 = vperm.xlu1 %6531, %v1093_v27  }
0x12c2   :  { %6537 = vset.pattern.permute.xlu0 %v6801_v17 }
0x12c4   :  { %6532 = vset.pattern.permute.xlu1 %v6801_v17 }
0x12c5   :  { %1119 = vperm.xlu1 %6532, %v1098_v45  }
0x12c9   :  { %6534 = vset.pattern.permute.xlu1 %v6806_v35 }
0x12ca   :  { %1155 = vperm.xlu1 %6534, %v1098_v45  }
0x12ce   :  { %6535 = vset.pattern.permute.xlu1 %v6807_v37 }
0x12cf   :  { %1169 = vperm.xlu1 %6535, %v1100_v36  }
0x12d3   :  { %6538 = vset.pattern.permute.xlu1 %v6801_v17 }
0x1324   :  { %v1104_v46 = vpop.permute.xlu1 %1103  ;;  %v1109_v50 = vpop.permute.xlu0 %1108 }
0x1325   :  { %v1111_v13 = vsel %vm65_vm6, %v1104_v46, %v1109_v50 }
0x1328   :  { %v1115_v47 = vpop.permute.xlu1 %1114 }
0x1329   :  { %v1125_v54 = vpop.permute.xlu0 %1124 }
0x132d   :  { %v1129_v49 = vpop.permute.xlu1 %1128 }
0x132e   :  { %v1147_v58 = vpop.permute.xlu0 %1146  ;;  %v1131_v8 = vsel %vm70_vm5, %v1125_v54, %v1129_v49 }
0x132f   :  { %v1177_v19 = vmul.f32 %v1131_v8, %v1111_v13 }
0x1331   :  { %v1134_v52 = vpop.permute.xlu1 %1133 }
0x1333   :  { %v1161_v61 = vpop.permute.xlu0 %1160 }
0x1336   :  { %v1143_v30 = vpop.permute.xlu1 %1142 }
0x1337   :  { %v1149_v20 = vsel %vm75_vm8, %v1143_v30, %v1147_v58 }
0x1338   :  { %v1138_v3 = vpop.permute.xlu0 %1137 }
0x1339   :  { %v1140_v10 = vsel %vm70_vm5, %v1134_v52, %v1138_v3 }
0x133a   :  { %v1152_v57 = vpop.permute.xlu1 %1151  ;;  %v1180_v21 = vmul.f32 %v1140_v10, %v1111_v13 }
0x133d   :  { %v1174_v14 = vpop.permute.xlu0 %1173 }
0x133f   :  { %v1165_v60 = vpop.permute.xlu1 %1164 }
0x1340   :  { %v1167_v11 = vsel %vm80_vm7, %v1161_v61, %v1165_v60  ;;  %v5162_v61 = vld [vmem:[%s8056_s0 + $0x10] sm:$0xff] }
0x1341   :  { %v1183_v24 = vmul.f32 %v1167_v11, %v1149_v20 }
0x1344   :  { %v1120_v1 = vpop.permute.xlu1 %1119 }
0x1345   :  { %v1122_v6 = vsel %vm65_vm6, %v1115_v47, %v1120_v1 }
0x1346   :  { %v1178_v15 = vmul.f32 %v1140_v10, %v1122_v6  ;;  %v1181_v16 = vmul.f32 %v1131_v8, %v1122_v6 }
0x1348   :  { %v1179_v29 = vsub.f32 %v1177_v19, %v1178_v15  ;;  %v1182_v34 = vadd.f32 %v1181_v16, %v1180_v21 }
0x1349   :  { %v1156_v5 = vpop.permute.xlu1 %1155 }
0x134a   :  { %v1158_v12 = vsel %vm75_vm8, %v1152_v57, %v1156_v5 }
0x134b   :  { %v1187_v25 = vmul.f32 %v1167_v11, %v1158_v12 }
0x134e   :  { %v1170_v18 = vpop.permute.xlu1 %1169 }
0x134f   :  { %v1176_v23 = vsel %vm80_vm7, %v1170_v18, %v1174_v14 }
0x1350   :  { %v1184_v26 = vmul.f32 %v1176_v23, %v1158_v12  ;;  %v1186_v27 = vmul.f32 %v1176_v23, %v1149_v20 }
0x1352   :  { %v1185_v36 = vsub.f32 %v1183_v24, %v1184_v26  ;;  %v1188_v39 = vadd.f32 %v1187_v25, %v1186_v27 }
0x1354   :  { %v1189_v45 = vmul.f32 %v1185_v36, %v1179_v29  ;;  %v1190_v46 = vmul.f32 %v1188_v39, %v1182_v34  ;;  %v1192_v47 = vmul.f32 %v1188_v39, %v1179_v29  ;;  %v1193_v49 = vmul.f32 %v1185_v36, %v1182_v34 }
0x1356   :  { %v1194_v50 = vadd.f32 %v1193_v49, %v1192_v47  ;;  %v1191_v52 = vsub.f32 %v1189_v45, %v1190_v46 }
0x1358   :  { %1196 = vrot.lane.b32.xlu1 %v1194_v50, %s6811_s14 }
0x13ca   :  { %v1197_v54 = vpop.permute.xlu1 %1196 }
0x13cb   :  { %v1199_v30 = vsel %vm235_vm10, %v1191_v52, %v1197_v54 }
0x13cc   :  { %5612 = vmatmul.mubr.msk.f32.vlgmr.msra.gmra.mrb[8].mxu0 %vm237_vm11, %v1199_v30 }
0x13cd   :  { %6175 = vmatpush3.bf16.msra.mxu0 %v7109_v40  ;;  %5630 = vmatprep.mubr.msk.f32.mxu0 %vm6809_vm9, %v6810_v9 }
0x13ce   :  { %6176 = vmatprep.subr.bf16.mxu0 %v6808_v38 }
0x13d1   :  { %6178 = vmatpush3.bf16.msra.mxu0 %v7120_v48 }
0x13d2   :  { %6179 = vmatprep.subr.bf16.mxu0 %v6808_v38 }
0x13d5   :  { %6181 = vmatpush3.bf16.msra.mxu0 %v7132_v51 }
0x13d6   :  { %6182 = vmatprep.subr.bf16.mxu0 %v6808_v38 }
0x13d9   :  { %6184 = vmatpush3.bf16.msra.mxu0 %v7143_v55 }
0x13da   :  { %6185 = vmatprep.subr.bf16.mxu0 %v6808_v38 }
0x149f   :  { %v1269_v57 = vpop.f32.mrb[8].mxu0 }
0x14a0   :  { %v1273_v58 = vmul.f32 %v1269_v57, %v1269_v57  ;;  %v5613_v60 = vpop.f32.mrb[9].mxu0 }
0x14a2   :  { %5631 = vmatmul.mubr.msk.f32.vlgmr.msra.gmra.mrb[10].mxu0 %vm642_vm15, %v1273_v58 }
0x14a3   :  { %6187 = vmatpush3.bf16.msra.mxu0 %v6889_v42  ;;  %5641 = vmatprep.mubr.msk.f32.mxu0 %vm6809_vm9, %v6810_v9 }
0x14a4   :  { %6188 = vmatprep.subr.bf16.mxu0 %v6808_v38 }
0x14a7   :  { %6190 = vmatpush3.bf16.msra.mxu0 %v6895_v44 }
0x14a8   :  { %6215 = vmatprep.subr.bf16.mxu0 %v6808_v38 }
0x1575   :  { %v1343_v1 = vpop.f32.mrb[10].mxu0 }
0x1576   :  { %v1349_v3 = vadd.f32 %v5162_v61, %v1343_v1  ;;  %v5632_v5 = vpop.f32.mrb[11].mxu0 }
0x1578   :  { %v1350_v6 = vmul.f32 %v1349_v3, %v1349_v3  ;;  %vm1376_vm4 = vcmp.ge.f32.partialorder %v1349_v3, 0.0 }
0x157a   :  { %1352 = vrot.lane.b32.xlu0 %v1350_v6, %s6799_s26 }
0x15ec   :  { %v1353_v8 = vpop.permute.xlu0 %1352 }
0x15ed   :  { %v1355_v10 = vsel %vm88_vm0, %v1349_v3, %v1353_v8 }
0x15ee   :  { %v1356_v11 = vmul.f32 %v1355_v10, %v1355_v10 }
0x15f0   :  { %v1357_v12 = vadd.f32 1.0, %v1356_v11 }
0x15f2   :  { %6715 = vrsqrt.f32 %v1357_v12 }
0x15fc   :  { %v6716_v13 = vpop.eup %6715 }
0x15fd   :  { %v1361_v14 = vsub.f32 1.0, %v6716_v13  ;;  %v1359_v18 = vadd.f32 1.0, %v6716_v13 }
0x15ff   :  { %v1362_v15 = vmul.f32 0.5, %v1361_v14  ;;  %v1360_v19 = vmul.f32 0.5, %v1359_v18 }
0x1601   :  { %v1363_v16 = vmax.f32 %v1362_v15, 0.0 }
0x1603   :  { %1365 = vrot.lane.b32.xlu1 %v1363_v16, %s6800_s27 }
0x1675   :  { %v1366_v20 = vpop.permute.xlu1 %1365 }
0x1676   :  { %v1368_v21 = vsel %vm102_vm1, %v1360_v19, %v1366_v20 }
0x1677   :  { %6717 = vrsqrt.f32 %v1368_v21  ;;  %vm1371_vm2 = vcmp.eq.f32.partialorder %v1368_v21, inf  ;;  %v1374_v25 = vand.u32 2147483648, %v1368_v21  ;;  %vm1373_vm3 = vcmp.eq.f32.partialorder %v1368_v21, 0.0 }
0x1681   :  { %v6718_v23 = vpop.eup %6717 }
0x1682   :  { %v1370_v24 = vmul.f32 %v6718_v23, %v1368_v21 }
0x1684   :  { %v1372_v26 = vsel %vm1371_vm2, %v1368_v21, %v1370_v24 }
0x1685   :  { %v1375_v27 = vsel %vm1373_vm3, %v1374_v25, %v1372_v26 }
0x1686   :  { %1379 = vrot.lane.b32.xlu0 %v1375_v27, %s6803_s29  ;;  %v1377_v29 = vsub.f32 0.0, %v1375_v27 }
0x1688   :  { %1383 = vrot.lane.b32.xlu1 %v1377_v29, %s6803_s29 }
0x168a   :  { %1395 = vrot.lane.b32.xlu0 %v1375_v27, %s6802_s28 }
0x168c   :  { %1391 = vrot.lane.b32.xlu1 %v1375_v27, %s6804_s30 }
0x16f8   :  { %v1380_v34 = vpop.permute.xlu0 %1379 }
0x16fa   :  { %v1384_v36 = vpop.permute.xlu1 %1383 }
0x16fb   :  { %v1386_v39 = vsel %vm1376_vm4, %v1380_v34, %v1384_v36 }
0x16fc   :  { %v1387_v45 = vsub.f32 %v1375_v27, %v1386_v39  ;;  %v1389_v46 = vadd.f32 %v1386_v39, %v1375_v27  ;;  %v1396_v30 = vpop.permute.xlu0 %1395 }
0x16fe   :  { %v1388_v47 = vmul.f32 0.70710677, %v1387_v45  ;;  %v1390_v49 = vmul.f32 0.70710677, %v1389_v46  ;;  %v1392_v50 = vpop.permute.xlu1 %1391 }
0x1700   :  { %v1394_v52 = vmul.f32 %v1392_v50, %v1388_v47  ;;  %v1400_v54 = vmul.f32 %v1392_v50, %v1390_v49  ;;  %v1401_v57 = vmul.f32 %v1396_v30, %v1390_v49  ;;  %v1398_v58 = vmul.f32 %v1396_v30, %v1388_v47 }
0x1702   :  { %1404 = vperm.xlu0 %6537, %v1400_v54   ;;  %1409 = vperm.xlu1 %6538, %v1394_v52   ;;  %v1399_v60 = vsub.f32 0.0, %v1398_v58 }
0x1706   :  { %6540 = vset.pattern.permute.xlu0 %v6805_v33  ;;  %1415 = vperm.xlu1 %6538, %v1401_v57  }
0x1707   :  { %1429 = vperm.xlu0 %6540, %v1394_v52  }
0x170a   :  { %6539 = vset.pattern.permute.xlu1 %v6805_v33 }
0x170b   :  { %6541 = vset.pattern.permute.xlu0 %v6806_v35  ;;  %1425 = vperm.xlu1 %6539, %v1400_v54  }
0x170c   :  { %1443 = vperm.xlu0 %6541, %v1400_v54  }
0x170f   :  { %1434 = vperm.xlu1 %6539, %v1401_v57  }
0x1710   :  { %6544 = vset.pattern.permute.xlu0 %v6801_v17 }
0x1711   :  { %1420 = vperm.xlu0 %6544, %v1399_v60  }
0x1713   :  { %6542 = vset.pattern.permute.xlu1 %v6806_v35 }
0x1714   :  { %1447 = vperm.xlu1 %6542, %v1394_v52  }
0x1715   :  { %6546 = vset.pattern.permute.xlu0 %v6806_v35 }
0x1716   :  { %1456 = vperm.xlu0 %6546, %v1399_v60  }
0x1718   :  { %1452 = vperm.xlu1 %6542, %v1401_v57  }
0x171a   :  { %6547 = vset.pattern.permute.xlu0 %v6807_v37 }
0x171b   :  { %1465 = vperm.xlu0 %6547, %v1394_v52  }
0x171c   :  { %6543 = vset.pattern.permute.xlu1 %v6807_v37 }
0x171d   :  { %1461 = vperm.xlu1 %6543, %v1400_v54  }
0x171f   :  { %6549 = vset.pattern.permute.xlu0 %v6801_v17 }
0x1721   :  { %6545 = vset.pattern.permute.xlu1 %v6805_v33 }
0x1722   :  { %1438 = vperm.xlu1 %6545, %v1399_v60  }
0x1726   :  { %6548 = vset.pattern.permute.xlu1 %v6807_v37 }
0x1727   :  { %1470 = vperm.xlu1 %6548, %v1401_v57  }
0x172b   :  { %1474 = vperm.xlu1 %6548, %v1399_v60  }
0x172f   :  { %6550 = vset.pattern.permute.xlu1 %v6801_v17 }
0x1781   :  { %v1410_v61 = vpop.permute.xlu1 %1409  ;;  %v1405_v3 = vpop.permute.xlu0 %1404 }
0x1782   :  { %v1412_v24 = vsel %vm65_vm6, %v1405_v3, %v1410_v61 }
0x1785   :  { %v1416_v1 = vpop.permute.xlu1 %1415 }
0x1786   :  { %v1430_v8 = vpop.permute.xlu0 %1429 }
0x178a   :  { %v1426_v5 = vpop.permute.xlu1 %1425 }
0x178b   :  { %v1444_v11 = vpop.permute.xlu0 %1443  ;;  %v1432_v19 = vsel %vm70_vm5, %v1426_v5, %v1430_v8 }
0x178c   :  { %v1478_v26 = vmul.f32 %v1432_v19, %v1412_v24 }
0x178e   :  { %v1435_v6 = vpop.permute.xlu1 %1434 }
0x1790   :  { %v1421_v13 = vpop.permute.xlu0 %1420 }
0x1791   :  { %v1423_v21 = vsel %vm65_vm6, %v1416_v1, %v1421_v13 }
0x1792   :  { %v1482_v36 = vmul.f32 %v1432_v19, %v1423_v21 }
0x1793   :  { %v1448_v10 = vpop.permute.xlu1 %1447 }
0x1794   :  { %v1450_v39 = vsel %vm75_vm8, %v1444_v11, %v1448_v10 }
0x1795   :  { %v1457_v16 = vpop.permute.xlu0 %1456 }
0x1797   :  { %v1453_v12 = vpop.permute.xlu1 %1452 }
0x1798   :  { %v1459_v45 = vsel %vm75_vm8, %v1453_v12, %v1457_v16 }
0x179a   :  { %v1466_v23 = vpop.permute.xlu0 %1465 }
0x179c   :  { %v1462_v14 = vpop.permute.xlu1 %1461 }
0x179d   :  { %v1468_v25 = vsel %vm80_vm7, %v1462_v14, %v1466_v23 }
0x179e   :  { %v1484_v47 = vmul.f32 %v1468_v25, %v1450_v39  ;;  %v1488_v49 = vmul.f32 %v1468_v25, %v1459_v45 }
0x17a1   :  { %v1439_v15 = vpop.permute.xlu1 %1438 }
0x17a2   :  { %v1441_v20 = vsel %vm70_vm5, %v1435_v6, %v1439_v15 }
0x17a3   :  { %v1479_v27 = vmul.f32 %v1441_v20, %v1423_v21  ;;  %v1481_v29 = vmul.f32 %v1441_v20, %v1412_v24 }
0x17a5   :  { %v1480_v54 = vsub.f32 %v1478_v26, %v1479_v27  ;;  %v1483_v30 = vadd.f32 %v1482_v36, %v1481_v29 }
0x17a6   :  { %v1471_v18 = vpop.permute.xlu1 %1470 }
0x17aa   :  { %v1475_v34 = vpop.permute.xlu1 %1474 }
0x17ab   :  { %v1477_v46 = vsel %vm80_vm7, %v1471_v18, %v1475_v34 }
0x17ac   :  { %v1485_v50 = vmul.f32 %v1477_v46, %v1459_v45  ;;  %v1487_v52 = vmul.f32 %v1477_v46, %v1450_v39 }
0x17ae   :  { %v1486_v57 = vsub.f32 %v1484_v47, %v1485_v50  ;;  %v1489_v58 = vadd.f32 %v1488_v49, %v1487_v52 }
0x17b0   :  { %v1490_v60 = vmul.f32 %v1486_v57, %v1480_v54  ;;  %v1491_v61 = vmul.f32 %v1489_v58, %v1483_v30  ;;  %v1493_v1 = vmul.f32 %v1489_v58, %v1480_v54  ;;  %v1494_v3 = vmul.f32 %v1486_v57, %v1483_v30 }
0x17b2   :  { %v1495_v5 = vadd.f32 %v1494_v3, %v1493_v1  ;;  %v1492_v6 = vsub.f32 %v1490_v60, %v1491_v61 }
0x17b4   :  { %1497 = vrot.lane.b32.xlu0 %v1495_v5, %s6811_s14 }
0x1826   :  { %v1498_v8 = vpop.permute.xlu0 %1497 }
0x1827   :  { %v1500_v10 = vsel %vm235_vm10, %v1492_v6, %v1498_v8 }
0x1828   :  { %5642 = vmatmul.mubr.msk.f32.vlgmr.msra.gmra.mrb[12].mxu0 %vm237_vm11, %v1500_v10 }
0x1829   :  { %6217 = vmatpush3.bf16.msra.mxu0 %v7075_v28  ;;  %5687 = vmatprep.mubr.msk.f32.mxu0 %vm6809_vm9, %v6810_v9 }
0x182a   :  { %6218 = vmatprep.subr.bf16.mxu0 %v6808_v38 }
0x182d   :  { %6220 = vmatpush3.bf16.msra.mxu0 %v7081_v32 }
0x182e   :  { %6221 = vmatprep.subr.bf16.mxu0 %v6808_v38 }
0x18fb   :  { %v1570_v11 = vpop.f32.mrb[12].mxu0 }
0x18fc   :  { %v1574_v12 = vmul.f32 %v1570_v11, %v1570_v11  ;;  %v5643_v13 = vpop.f32.mrb[13].mxu0 }
0x18fe   :  { %5677 = vmatmul.mubr.f32.vlgmr.msra.gmra.mrb[4].mxu1 %v1574_v12 }
0x18ff   :  { %6241 = vmatpush3.bf16.msra.mxu1 %v6940_v22  ;;  %5752 = vmatprep.mubr.msk.f32.mxu1 %vm6809_vm9, %v6810_v9 }
0x1900   :  { %6242 = vmatprep.subr.bf16.mxu1 %v6808_v38 }
0x1903   :  { %6244 = vmatpush3.bf16.msra.mxu1 %v6950_v31 }
0x1904   :  { %6245 = vmatprep.subr.bf16.mxu1 %v6808_v38 }
0x1907   :  { %6247 = vmatpush3.bf16.msra.mxu1 %v6959_v43 }
0x1908   :  { %6248 = vmatprep.subr.bf16.mxu1 %v6808_v38 }
0x190b   :  { %6250 = vmatpush3.bf16.msra.mxu1 %v6971_v53 }
0x190c   :  { %6251 = vmatprep.subr.bf16.mxu1 %v6808_v38 }
0x190f   :  { %6253 = vmatpush3.bf16.msra.mxu1 %v6981_v56 }
0x1910   :  { %6254 = vmatprep.subr.bf16.mxu1 %v6808_v38 }
0x1913   :  { %6256 = vmatpush3.bf16.msra.mxu1 %v6991_v59 }
0x1914   :  { %6257 = vmatprep.subr.bf16.mxu1 %v6808_v38 }
0x1917   :  { %6259 = vmatpush3.bf16.msra.mxu1 %v7001_v63 }
0x1918   :  { %6260 = vmatprep.subr.bf16.mxu1 %v6808_v38 }
0x191b   :  { %6262 = vmatpush3.bf16.msra.mxu1 %v7016_v7 }
0x191c   :  { %6287 = vmatprep.subr.bf16.mxu1 %v6808_v38 }
0x19d1   :  { %v1641_v14 = vpop.f32.mrb[4].mxu1 }
0x19d2   :  { %v1645_v15 = vsub.f32 0.0, %v1641_v14  ;;  %v5678_v16 = vpop.f32.mrb[5].mxu1 }
0x19d4   :  { %v1646_v18 = vmul.f32 1.442695, %v1645_v15 }
0x19d6   :  { %6719 = vpow2.f32 %v1646_v18 }
0x19e0   :  { %v6720_v19 = vpop.eup %6719 }
0x19e1   :  { %v1648_v20 = vadd.f32 1.0, %v6720_v19 }
0x19e3   :  { %6721 = vrcp.f32 %v1648_v20 }
0x19ed   :  { %v6722_v21 = vpop.eup %6721 }
0x19ee   :  { %v1650_v23 = vmul.f32 %v6722_v21, %v1648_v20 }
0x19f0   :  { %v1651_v24 = vsub.f32 2.0, %v1650_v23 }
0x19f2   :  { %v1652_v25 = vmul.f32 %v6722_v21, %v1651_v24 }
0x19f4   :  { %v1653_v26 = vmul.f32 2.0, %v1652_v25  ;;  %v1655_v36 = vmul.f32 %v1652_v25, %v7224_v41 }
0x19f6   :  { %v5164_v27 = vadd.f32 -1.0, %v1653_v26 }
0x19f8   :  { %1657 = vrot.lane.b32.xlu1 %v5164_v27, %s6804_s30 }
0x1a6a   :  { %v1658_v29 = vpop.permute.xlu1 %1657 }
0x1a6b   :  { %v1660_v34 = vmul.f32 %v1658_v29, %v1652_v25 }
0x1a6d   :  { %1662 = vrot.lane.b32.xlu0 %v1660_v34, %s6804_s30 }
0x1adf   :  { %v1663_v39 = vpop.permute.xlu0 %1662 }
0x1ae0   :  { %v7356_v45 = vadd.f32 %v1663_v39, %v1655_v36 }
0x1ae2   :  { %6723 = vtanh.f32 %v7356_v45 }
0x1aec   :  { %v6724_v46 = vpop.eup %6723 }
0x1aed   :  { %1668 = vrot.lane.b32.xlu1 %v6724_v46, %s6812_s3 }
0x1b5f   :  { %v1669_v47 = vpop.permute.xlu1 %1668 }
0x1b60   :  { %v1671_v49 = vmul.f32 %v1669_v47, %v1652_v25 }
0x1b62   :  { %v1672_v50 = vmul.f32 %v1671_v49, %v1671_v49  ;;  %1674 = vrot.lane.b32.xlu0 %v1671_v49, %s6802_s28  ;;  %vm1702_vm14 = vcmp.ge.f32.partialorder %v1671_v49, 0.0 }
0x1b64   :  { %1678 = vrot.lane.b32.xlu1 %v1672_v50, %s6803_s29 }
0x1bd4   :  { %v1675_v52 = vpop.permute.xlu0 %1674 }
0x1bd6   :  { %v1679_v54 = vpop.permute.xlu1 %1678 }
0x1bd7   :  { %v1681_v30 = vsel %vm88_vm0, %v1675_v52, %v1679_v54 }
0x1bd8   :  { %v1682_v41 = vmul.f32 %v1681_v30, %v1681_v30 }
0x1bda   :  { %v1683_v57 = vadd.f32 1.0, %v1682_v41 }
0x1bdc   :  { %6725 = vrsqrt.f32 %v1683_v57 }
0x1be6   :  { %v6726_v58 = vpop.eup %6725 }
0x1be7   :  { %v1687_v60 = vsub.f32 1.0, %v6726_v58  ;;  %v1685_v3 = vadd.f32 1.0, %v6726_v58 }
0x1be9   :  { %v1688_v61 = vmul.f32 0.5, %v1687_v60  ;;  %v1686_v5 = vmul.f32 0.5, %v1685_v3 }
0x1beb   :  { %v1689_v1 = vmax.f32 %v1688_v61, 0.0 }
0x1bed   :  { %1691 = vrot.lane.b32.xlu0 %v1689_v1, %s6800_s27 }
0x1c5f   :  { %v1692_v6 = vpop.permute.xlu0 %1691 }
0x1c60   :  { %v1694_v8 = vsel %vm102_vm1, %v1686_v5, %v1692_v6 }
0x1c61   :  { %6727 = vrsqrt.f32 %v1694_v8  ;;  %vm1697_vm12 = vcmp.eq.f32.partialorder %v1694_v8, inf  ;;  %v1700_v12 = vand.u32 2147483648, %v1694_v8  ;;  %vm1699_vm13 = vcmp.eq.f32.partialorder %v1694_v8, 0.0 }
0x1c6b   :  { %v6728_v10 = vpop.eup %6727 }
0x1c6c   :  { %v1696_v11 = vmul.f32 %v6728_v10, %v1694_v8 }
0x1c6e   :  { %v1698_v13 = vsel %vm1697_vm12, %v1694_v8, %v1696_v11 }
0x1c6f   :  { %v1701_v14 = vsel %vm1699_vm13, %v1700_v12, %v1698_v13 }
0x1c70   :  { %1705 = vrot.lane.b32.xlu1 %v1701_v14, %s6799_s26  ;;  %v1703_v15 = vsub.f32 0.0, %v1701_v14 }
0x1c72   :  { %1709 = vrot.lane.b32.xlu0 %v1703_v15, %s6799_s26 }
0x1c76   :  { %1725 = vrot.lane.b32.xlu0 %v1701_v14, %s6802_s28 }
0x1ce2   :  { %v1706_v16 = vpop.permute.xlu1 %1705 }
0x1ce4   :  { %v1710_v18 = vpop.permute.xlu0 %1709 }
0x1ce5   :  { %v1712_v19 = vsel %vm1702_vm14, %v1706_v16, %v1710_v18 }
0x1ce6   :  { %1714 = vrot.lane.b32.xlu1 %v1712_v19, %s6802_s28 }
0x1ce8   :  { %v1726_v34 = vpop.permute.xlu0 %1725 }
0x1cea   :  { %1721 = vrot.lane.b32.xlu1 %v1701_v14, %s6804_s30 }
0x1d58   :  { %v1715_v20 = vpop.permute.xlu1 %1714 }
0x1d59   :  { %v1717_v21 = vsub.f32 %v1701_v14, %v1715_v20  ;;  %v1719_v23 = vadd.f32 %v1715_v20, %v1701_v14 }
0x1d5b   :  { %v1718_v24 = vmul.f32 0.70710677, %v1717_v21  ;;  %v1720_v25 = vmul.f32 0.70710677, %v1719_v23 }
0x1d5c   :  { %v1722_v26 = vpop.permute.xlu1 %1721 }
0x1d5d   :  { %v1724_v27 = vmul.f32 %v1722_v26, %v1718_v24  ;;  %v1730_v29 = vmul.f32 %v1722_v26, %v1720_v25  ;;  %v1731_v36 = vmul.f32 %v1726_v34, %v1720_v25  ;;  %v1728_v39 = vmul.f32 %v1726_v34, %v1718_v24 }
0x1d5f   :  { %1734 = vperm.xlu0 %6549, %v1730_v29   ;;  %1739 = vperm.xlu1 %6550, %v1724_v27   ;;  %v1729_v46 = vsub.f32 0.0, %v1728_v39 }
0x1d63   :  { %6552 = vset.pattern.permute.xlu0 %v6805_v33  ;;  %1745 = vperm.xlu1 %6550, %v1731_v36  }
0x1d64   :  { %1759 = vperm.xlu0 %6552, %v1724_v27  }
0x1d67   :  { %6551 = vset.pattern.permute.xlu1 %v6805_v33 }
0x1d68   :  { %6553 = vset.pattern.permute.xlu0 %v6806_v35  ;;  %1755 = vperm.xlu1 %6551, %v1730_v29  }
0x1d69   :  { %1773 = vperm.xlu0 %6553, %v1730_v29  }
0x1d6c   :  { %1764 = vperm.xlu1 %6551, %v1731_v36  }
0x1d6d   :  { %6556 = vset.pattern.permute.xlu0 %v6801_v17 }
0x1d6e   :  { %1750 = vperm.xlu0 %6556, %v1729_v46  }
0x1d70   :  { %6554 = vset.pattern.permute.xlu1 %v6806_v35 }
0x1d71   :  { %1777 = vperm.xlu1 %6554, %v1724_v27  }
0x1d72   :  { %6558 = vset.pattern.permute.xlu0 %v6806_v35 }
0x1d73   :  { %1786 = vperm.xlu0 %6558, %v1729_v46  }
0x1d75   :  { %1782 = vperm.xlu1 %6554, %v1731_v36  }
0x1d77   :  { %6559 = vset.pattern.permute.xlu0 %v6807_v37 }
0x1d78   :  { %1795 = vperm.xlu0 %6559, %v1724_v27  }
0x1d79   :  { %6555 = vset.pattern.permute.xlu1 %v6807_v37 }
0x1d7a   :  { %1791 = vperm.xlu1 %6555, %v1730_v29  }
0x1d7c   :  { %6562 = vset.pattern.permute.xlu0 %v6801_v17 }
0x1d7e   :  { %6557 = vset.pattern.permute.xlu1 %v6805_v33 }
0x1d7f   :  { %1768 = vperm.xlu1 %6557, %v1729_v46  }
0x1d83   :  { %6560 = vset.pattern.permute.xlu1 %v6807_v37 }
0x1d84   :  { %1800 = vperm.xlu1 %6560, %v1731_v36  }
0x1d88   :  { %1804 = vperm.xlu1 %6560, %v1729_v46  }
0x1d8c   :  { %6561 = vset.pattern.permute.xlu1 %v6801_v17 }
0x1dde   :  { %v1740_v47 = vpop.permute.xlu1 %1739  ;;  %v1735_v50 = vpop.permute.xlu0 %1734 }
0x1ddf   :  { %v1742_v12 = vsel %vm65_vm6, %v1735_v50, %v1740_v47 }
0x1de2   :  { %v1746_v49 = vpop.permute.xlu1 %1745 }
0x1de3   :  { %v1760_v30 = vpop.permute.xlu0 %1759 }
0x1de7   :  { %v1756_v52 = vpop.permute.xlu1 %1755 }
0x1de8   :  { %v1774_v57 = vpop.permute.xlu0 %1773  ;;  %v1762_v6 = vsel %vm70_vm5, %v1756_v52, %v1760_v30 }
0x1de9   :  { %v1808_v14 = vmul.f32 %v1762_v6, %v1742_v12 }
0x1deb   :  { %v1765_v54 = vpop.permute.xlu1 %1764 }
0x1ded   :  { %v1751_v60 = vpop.permute.xlu0 %1750 }
0x1dee   :  { %v1753_v10 = vsel %vm65_vm6, %v1746_v49, %v1751_v60 }
0x1def   :  { %v1812_v19 = vmul.f32 %v1762_v6, %v1753_v10 }
0x1df0   :  { %v1778_v41 = vpop.permute.xlu1 %1777 }
0x1df1   :  { %v1780_v20 = vsel %vm75_vm8, %v1774_v57, %v1778_v41 }
0x1df2   :  { %v1787_v3 = vpop.permute.xlu0 %1786 }
0x1df4   :  { %v1783_v58 = vpop.permute.xlu1 %1782 }
0x1df5   :  { %v1789_v21 = vsel %vm75_vm8, %v1783_v58, %v1787_v3 }
0x1df7   :  { %v1796_v11 = vpop.permute.xlu0 %1795 }
0x1df9   :  { %v1792_v61 = vpop.permute.xlu1 %1791 }
0x1dfa   :  { %v1798_v13 = vsel %vm80_vm7, %v1792_v61, %v1796_v11  ;;  %v5167_v61 = vld [vmem:[%s8056_s0 + $0x18] sm:$0xff] }
0x1dfb   :  { %v1814_v24 = vmul.f32 %v1798_v13, %v1780_v20  ;;  %v1818_v25 = vmul.f32 %v1798_v13, %v1789_v21 }
0x1dfe   :  { %v1769_v1 = vpop.permute.xlu1 %1768 }
0x1dff   :  { %v1771_v8 = vsel %vm70_vm5, %v1765_v54, %v1769_v1 }
0x1e00   :  { %v1809_v15 = vmul.f32 %v1771_v8, %v1753_v10  ;;  %v1811_v16 = vmul.f32 %v1771_v8, %v1742_v12 }
0x1e02   :  { %v1810_v29 = vsub.f32 %v1808_v14, %v1809_v15  ;;  %v1813_v34 = vadd.f32 %v1812_v19, %v1811_v16 }
0x1e03   :  { %v1801_v5 = vpop.permute.xlu1 %1800 }
0x1e07   :  { %v1805_v18 = vpop.permute.xlu1 %1804 }
0x1e08   :  { %v1807_v23 = vsel %vm80_vm7, %v1801_v5, %v1805_v18 }
0x1e09   :  { %v1815_v26 = vmul.f32 %v1807_v23, %v1789_v21  ;;  %v1817_v27 = vmul.f32 %v1807_v23, %v1780_v20 }
0x1e0b   :  { %v1816_v36 = vsub.f32 %v1814_v24, %v1815_v26  ;;  %v1819_v39 = vadd.f32 %v1818_v25, %v1817_v27 }
0x1e0d   :  { %v1820_v46 = vmul.f32 %v1816_v36, %v1810_v29  ;;  %v1821_v47 = vmul.f32 %v1819_v39, %v1813_v34  ;;  %v1823_v49 = vmul.f32 %v1819_v39, %v1810_v29  ;;  %v1824_v50 = vmul.f32 %v1816_v36, %v1813_v34 }
0x1e0f   :  { %v1825_v52 = vadd.f32 %v1824_v50, %v1823_v49  ;;  %v1822_v54 = vsub.f32 %v1820_v46, %v1821_v47 }
0x1e11   :  { %1827 = vrot.lane.b32.xlu0 %v1825_v52, %s6811_s14 }
0x1e83   :  { %v1828_v30 = vpop.permute.xlu0 %1827 }
0x1e84   :  { %v1830_v41 = vsel %vm235_vm10, %v1822_v54, %v1828_v30 }
0x1e85   :  { %5688 = vmatmul.mubr.msk.f32.vlgmr.msra.gmra.mrb[14].mxu0 %vm237_vm11, %v1830_v41 }
0x1e86   :  { %6223 = vmatpush3.bf16.msra.mxu0 %v7109_v40  ;;  %5706 = vmatprep.mubr.msk.f32.mxu0 %vm6809_vm9, %v6810_v9 }
0x1e87   :  { %6224 = vmatprep.subr.bf16.mxu0 %v6808_v38 }
0x1e8a   :  { %6226 = vmatpush3.bf16.msra.mxu0 %v7120_v48 }
0x1e8b   :  { %6227 = vmatprep.subr.bf16.mxu0 %v6808_v38 }
0x1e8e   :  { %6229 = vmatpush3.bf16.msra.mxu0 %v7132_v51 }
0x1e8f   :  { %6230 = vmatprep.subr.bf16.mxu0 %v6808_v38 }
0x1e92   :  { %6232 = vmatpush3.bf16.msra.mxu0 %v7143_v55 }
0x1e93   :  { %6233 = vmatprep.subr.bf16.mxu0 %v6808_v38 }
0x1f58   :  { %v1900_v57 = vpop.f32.mrb[14].mxu0 }
0x1f59   :  { %v1904_v58 = vmul.f32 %v1900_v57, %v1900_v57  ;;  %v5689_v60 = vpop.f32.mrb[15].mxu0 }
0x1f5b   :  { %5707 = vmatmul.mubr.msk.f32.vlgmr.msra.gmra.mrb[16].mxu0 %vm642_vm15, %v1904_v58 }
0x1f5c   :  { %6235 = vmatpush3.bf16.msra.mxu0 %v6889_v42  ;;  %5717 = vmatprep.mubr.msk.f32.mxu0 %vm6809_vm9, %v6810_v9 }
0x1f5d   :  { %6236 = vmatprep.subr.bf16.mxu0 %v6808_v38 }
0x1f60   :  { %6238 = vmatpush3.bf16.msra.mxu0 %v6895_v44 }
0x1f61   :  { %6263 = vmatprep.subr.bf16.mxu0 %v6808_v38 }
0x202e   :  { %v1974_v1 = vpop.f32.mrb[16].mxu0 }
0x202f   :  { %v1980_v3 = vadd.f32 %v5167_v61, %v1974_v1  ;;  %v5708_v5 = vpop.f32.mrb[17].mxu0 }
0x2031   :  { %v1981_v6 = vmul.f32 %v1980_v3, %v1980_v3  ;;  %vm2007_vm4 = vcmp.ge.f32.partialorder %v1980_v3, 0.0 }
0x2033   :  { %1983 = vrot.lane.b32.xlu1 %v1981_v6, %s6799_s26 }
0x20a5   :  { %v1984_v8 = vpop.permute.xlu1 %1983 }
0x20a6   :  { %v1986_v10 = vsel %vm88_vm0, %v1980_v3, %v1984_v8 }
0x20a7   :  { %v1987_v11 = vmul.f32 %v1986_v10, %v1986_v10 }
0x20a9   :  { %v1988_v12 = vadd.f32 1.0, %v1987_v11 }
0x20ab   :  { %6729 = vrsqrt.f32 %v1988_v12 }
0x20b5   :  { %v6730_v13 = vpop.eup %6729 }
0x20b6   :  { %v1992_v14 = vsub.f32 1.0, %v6730_v13  ;;  %v1990_v18 = vadd.f32 1.0, %v6730_v13 }
0x20b8   :  { %v1993_v15 = vmul.f32 0.5, %v1992_v14  ;;  %v1991_v19 = vmul.f32 0.5, %v1990_v18 }
0x20ba   :  { %v1994_v16 = vmax.f32 %v1993_v15, 0.0 }
0x20bc   :  { %1996 = vrot.lane.b32.xlu0 %v1994_v16, %s6800_s27 }
0x212e   :  { %v1997_v20 = vpop.permute.xlu0 %1996 }
0x212f   :  { %v1999_v21 = vsel %vm102_vm1, %v1991_v19, %v1997_v20 }
0x2130   :  { %6731 = vrsqrt.f32 %v1999_v21  ;;  %vm2002_vm2 = vcmp.eq.f32.partialorder %v1999_v21, inf  ;;  %v2005_v25 = vand.u32 2147483648, %v1999_v21  ;;  %vm2004_vm3 = vcmp.eq.f32.partialorder %v1999_v21, 0.0 }
0x213a   :  { %v6732_v23 = vpop.eup %6731 }
0x213b   :  { %v2001_v24 = vmul.f32 %v6732_v23, %v1999_v21 }
0x213d   :  { %v2003_v26 = vsel %vm2002_vm2, %v1999_v21, %v2001_v24 }
0x213e   :  { %v2006_v27 = vsel %vm2004_vm3, %v2005_v25, %v2003_v26 }
0x213f   :  { %2010 = vrot.lane.b32.xlu1 %v2006_v27, %s6803_s29  ;;  %v2008_v29 = vsub.f32 0.0, %v2006_v27 }
0x2141   :  { %2014 = vrot.lane.b32.xlu0 %v2008_v29, %s6803_s29 }
0x2143   :  { %2026 = vrot.lane.b32.xlu1 %v2006_v27, %s6802_s28 }
0x2145   :  { %2022 = vrot.lane.b32.xlu0 %v2006_v27, %s6804_s30 }
0x21b1   :  { %v2011_v34 = vpop.permute.xlu1 %2010 }
0x21b3   :  { %v2015_v36 = vpop.permute.xlu0 %2014 }
0x21b4   :  { %v2017_v39 = vsel %vm2007_vm4, %v2011_v34, %v2015_v36 }
0x21b5   :  { %v2018_v46 = vsub.f32 %v2006_v27, %v2017_v39  ;;  %v2020_v47 = vadd.f32 %v2017_v39, %v2006_v27  ;;  %v2027_v41 = vpop.permute.xlu1 %2026 }
0x21b7   :  { %v2019_v49 = vmul.f32 0.70710677, %v2018_v46  ;;  %v2021_v50 = vmul.f32 0.70710677, %v2020_v47  ;;  %v2023_v52 = vpop.permute.xlu0 %2022 }
0x21b9   :  { %v2025_v54 = vmul.f32 %v2023_v52, %v2019_v49  ;;  %v2031_v30 = vmul.f32 %v2023_v52, %v2021_v50  ;;  %v2032_v57 = vmul.f32 %v2027_v41, %v2021_v50  ;;  %v2029_v58 = vmul.f32 %v2027_v41, %v2019_v49 }
0x21bb   :  { %2035 = vperm.xlu1 %6561, %v2031_v30   ;;  %2040 = vperm.xlu0 %6562, %v2025_v54   ;;  %v2030_v60 = vsub.f32 0.0, %v2029_v58 }
0x21bf   :  { %2046 = vperm.xlu1 %6561, %v2032_v57   ;;  %6563 = vset.pattern.permute.xlu0 %v6805_v33 }
0x21c0   :  { %2056 = vperm.xlu0 %6563, %v2031_v30  }
0x21c3   :  { %6564 = vset.pattern.permute.xlu1 %v6805_v33 }
0x21c4   :  { %2060 = vperm.xlu1 %6564, %v2025_v54   ;;  %6566 = vset.pattern.permute.xlu0 %v6806_v35 }
0x21c5   :  { %2078 = vperm.xlu0 %6566, %v2025_v54  }
0x21c8   :  { %2065 = vperm.xlu1 %6564, %v2032_v57  }
0x21c9   :  { %6567 = vset.pattern.permute.xlu0 %v6807_v37 }
0x21ca   :  { %2092 = vperm.xlu0 %6567, %v2031_v30  }
0x21cc   :  { %6565 = vset.pattern.permute.xlu1 %v6806_v35 }
0x21cd   :  { %2074 = vperm.xlu1 %6565, %v2031_v30  }
0x21ce   :  { %6570 = vset.pattern.permute.xlu0 %v6805_v33 }
0x21cf   :  { %2069 = vperm.xlu0 %6570, %v2030_v60  }
0x21d1   :  { %2083 = vperm.xlu1 %6565, %v2032_v57  }
0x21d3   :  { %6573 = vset.pattern.permute.xlu0 %v6807_v37 }
0x21d4   :  { %2105 = vperm.xlu0 %6573, %v2030_v60  }
0x21d5   :  { %6568 = vset.pattern.permute.xlu1 %v6807_v37 }
0x21d6   :  { %2096 = vperm.xlu1 %6568, %v2025_v54  }
0x21d8   :  { %6575 = vset.pattern.permute.xlu0 %v6801_v17 }
0x21da   :  { %6569 = vset.pattern.permute.xlu1 %v6801_v17 }
0x21db   :  { %2051 = vperm.xlu1 %6569, %v2030_v60  }
0x21df   :  { %6571 = vset.pattern.permute.xlu1 %v6806_v35 }
0x21e0   :  { %2087 = vperm.xlu1 %6571, %v2030_v60  }
0x21e4   :  { %6572 = vset.pattern.permute.xlu1 %v6807_v37 }
0x21e5   :  { %2101 = vperm.xlu1 %6572, %v2032_v57  }
0x21e9   :  { %6574 = vset.pattern.permute.xlu1 %v6801_v17 }
0x223a   :  { %v2036_v61 = vpop.permute.xlu1 %2035  ;;  %v2041_v5 = vpop.permute.xlu0 %2040 }
0x223b   :  { %v2043_v25 = vsel %vm65_vm6, %v2036_v61, %v2041_v5 }
0x223e   :  { %v2047_v1 = vpop.permute.xlu1 %2046 }
0x223f   :  { %v2057_v8 = vpop.permute.xlu0 %2056 }
0x2243   :  { %v2061_v3 = vpop.permute.xlu1 %2060 }
0x2244   :  { %v2079_v12 = vpop.permute.xlu0 %2078  ;;  %v2063_v20 = vsel %vm70_vm5, %v2057_v8, %v2061_v3 }
0x2245   :  { %v2109_v36 = vmul.f32 %v2063_v20, %v2043_v25 }
0x2247   :  { %v2066_v6 = vpop.permute.xlu1 %2065 }
0x2249   :  { %v2093_v14 = vpop.permute.xlu0 %2092 }
0x224c   :  { %v2075_v10 = vpop.permute.xlu1 %2074 }
0x224d   :  { %v2081_v39 = vsel %vm75_vm8, %v2075_v10, %v2079_v12 }
0x224e   :  { %v2070_v16 = vpop.permute.xlu0 %2069 }
0x224f   :  { %v2072_v21 = vsel %vm70_vm5, %v2066_v6, %v2070_v16 }
0x2250   :  { %v2084_v11 = vpop.permute.xlu1 %2083  ;;  %v2112_v46 = vmul.f32 %v2072_v21, %v2043_v25 }
0x2253   :  { %v2106_v26 = vpop.permute.xlu0 %2105 }
0x2255   :  { %v2097_v13 = vpop.permute.xlu1 %2096 }
0x2256   :  { %v2099_v23 = vsel %vm80_vm7, %v2093_v14, %v2097_v13 }
0x2257   :  { %v2115_v49 = vmul.f32 %v2099_v23, %v2081_v39 }
0x225a   :  { %v2052_v15 = vpop.permute.xlu1 %2051 }
0x225b   :  { %v2054_v19 = vsel %vm65_vm6, %v2047_v1, %v2052_v15 }
0x225c   :  { %v2110_v27 = vmul.f32 %v2072_v21, %v2054_v19  ;;  %v2113_v29 = vmul.f32 %v2063_v20, %v2054_v19 }
0x225e   :  { %v2111_v30 = vsub.f32 %v2109_v36, %v2110_v27  ;;  %v2114_v41 = vadd.f32 %v2113_v29, %v2112_v46 }
0x225f   :  { %v2088_v18 = vpop.permute.xlu1 %2087 }
0x2260   :  { %v2090_v24 = vsel %vm75_vm8, %v2084_v11, %v2088_v18 }
0x2261   :  { %v2119_v50 = vmul.f32 %v2099_v23, %v2090_v24 }
0x2264   :  { %v2102_v34 = vpop.permute.xlu1 %2101 }
0x2265   :  { %v2108_v47 = vsel %vm80_vm7, %v2102_v34, %v2106_v26 }
0x2266   :  { %v2116_v52 = vmul.f32 %v2108_v47, %v2090_v24  ;;  %v2118_v54 = vmul.f32 %v2108_v47, %v2081_v39 }
0x2268   :  { %v2117_v57 = vsub.f32 %v2115_v49, %v2116_v52  ;;  %v2120_v58 = vadd.f32 %v2119_v50, %v2118_v54 }
0x226a   :  { %v2121_v60 = vmul.f32 %v2117_v57, %v2111_v30  ;;  %v2122_v61 = vmul.f32 %v2120_v58, %v2114_v41  ;;  %v2124_v1 = vmul.f32 %v2120_v58, %v2111_v30  ;;  %v2125_v3 = vmul.f32 %v2117_v57, %v2114_v41 }
0x226c   :  { %v2126_v5 = vadd.f32 %v2125_v3, %v2124_v1  ;;  %v2123_v6 = vsub.f32 %v2121_v60, %v2122_v61 }
0x226e   :  { %2128 = vrot.lane.b32.xlu1 %v2126_v5, %s6811_s14 }
0x22e0   :  { %v2129_v8 = vpop.permute.xlu1 %2128 }
0x22e1   :  { %v2131_v10 = vsel %vm235_vm10, %v2123_v6, %v2129_v8 }
0x22e2   :  { %5718 = vmatmul.mubr.msk.f32.vlgmr.msra.gmra.mrb[18].mxu0 %vm237_vm11, %v2131_v10 }
0x22e3   :  { %6265 = vmatpush3.bf16.msra.mxu0 %v7075_v28  ;;  %5763 = vmatprep.mubr.msk.f32.mxu0 %vm6809_vm9, %v6810_v9 }
0x22e4   :  { %6266 = vmatprep.subr.bf16.mxu0 %v6808_v38 }
0x22e7   :  { %6268 = vmatpush3.bf16.msra.mxu0 %v7081_v32 }
0x22e8   :  { %6269 = vmatprep.subr.bf16.mxu0 %v6808_v38 }
0x23b5   :  { %v2201_v11 = vpop.f32.mrb[18].mxu0 }
0x23b6   :  { %v2205_v12 = vmul.f32 %v2201_v11, %v2201_v11  ;;  %v5719_v13 = vpop.f32.mrb[19].mxu0 }
0x23b8   :  { %5753 = vmatmul.mubr.f32.vlgmr.msra.gmra.mrb[6].mxu1 %v2205_v12 }
0x23b9   :  { %6289 = vmatpush3.bf16.msra.mxu1 %v6940_v22  ;;  %5828 = vmatprep.mubr.msk.f32.mxu1 %vm6809_vm9, %v6810_v9 }
0x23ba   :  { %6290 = vmatprep.subr.bf16.mxu1 %v6808_v38 }
0x23bd   :  { %6292 = vmatpush3.bf16.msra.mxu1 %v6950_v31 }
0x23be   :  { %6293 = vmatprep.subr.bf16.mxu1 %v6808_v38 }
0x23c1   :  { %6295 = vmatpush3.bf16.msra.mxu1 %v6959_v43 }
0x23c2   :  { %6296 = vmatprep.subr.bf16.mxu1 %v6808_v38 }
0x23c5   :  { %6298 = vmatpush3.bf16.msra.mxu1 %v6971_v53 }
0x23c6   :  { %6299 = vmatprep.subr.bf16.mxu1 %v6808_v38 }
0x23c9   :  { %6301 = vmatpush3.bf16.msra.mxu1 %v6981_v56 }
0x23ca   :  { %6302 = vmatprep.subr.bf16.mxu1 %v6808_v38 }
0x23cd   :  { %6304 = vmatpush3.bf16.msra.mxu1 %v6991_v59 }
0x23ce   :  { %6305 = vmatprep.subr.bf16.mxu1 %v6808_v38 }
0x23d1   :  { %6307 = vmatpush3.bf16.msra.mxu1 %v7001_v63 }
0x23d2   :  { %6308 = vmatprep.subr.bf16.mxu1 %v6808_v38 }
0x23d5   :  { %6310 = vmatpush3.bf16.msra.mxu1 %v7016_v7 }
0x23d6   :  { %6335 = vmatprep.subr.bf16.mxu1 %v6808_v38 }
0x248b   :  { %v2272_v14 = vpop.f32.mrb[6].mxu1 }
0x248c   :  { %v2276_v15 = vsub.f32 0.0, %v2272_v14  ;;  %v5754_v16 = vpop.f32.mrb[7].mxu1 }
0x248e   :  { %v2277_v18 = vmul.f32 1.442695, %v2276_v15 }
0x2490   :  { %6733 = vpow2.f32 %v2277_v18 }
0x249a   :  { %v6734_v19 = vpop.eup %6733 }
0x249b   :  { %v2279_v20 = vadd.f32 1.0, %v6734_v19 }
0x249d   :  { %6735 = vrcp.f32 %v2279_v20 }
0x24a7   :  { %v6736_v21 = vpop.eup %6735 }
0x24a8   :  { %v2281_v23 = vmul.f32 %v6736_v21, %v2279_v20 }
0x24aa   :  { %v2282_v24 = vsub.f32 2.0, %v2281_v23 }
0x24ac   :  { %v2283_v25 = vmul.f32 %v6736_v21, %v2282_v24 }
0x24ae   :  { %v2284_v26 = vmul.f32 2.0, %v2283_v25  ;;  %v2286_v36 = vmul.f32 %v2283_v25, %v7356_v45 }
0x24b0   :  { %v5169_v27 = vadd.f32 -1.0, %v2284_v26 }
0x24b2   :  { %2288 = vrot.lane.b32.xlu0 %v5169_v27, %s6804_s30 }
0x2524   :  { %v2289_v29 = vpop.permute.xlu0 %2288 }
0x2525   :  { %v2291_v34 = vmul.f32 %v2289_v29, %v2283_v25 }
0x2527   :  { %2293 = vrot.lane.b32.xlu1 %v2291_v34, %s6804_s30 }
0x2599   :  { %v2294_v39 = vpop.permute.xlu1 %2293 }
0x259a   :  { %v7488_v46 = vadd.f32 %v2294_v39, %v2286_v36 }
0x259c   :  { %6737 = vtanh.f32 %v7488_v46 }
0x25a6   :  { %v6738_v47 = vpop.eup %6737 }
0x25a7   :  { %2299 = vrot.lane.b32.xlu0 %v6738_v47, %s6812_s3 }
0x2619   :  { %v2300_v49 = vpop.permute.xlu0 %2299 }
0x261a   :  { %v2302_v50 = vmul.f32 %v2300_v49, %v2283_v25 }
0x261c   :  { %v2303_v52 = vmul.f32 %v2302_v50, %v2302_v50  ;;  %2305 = vrot.lane.b32.xlu1 %v2302_v50, %s6802_s28  ;;  %vm2333_vm14 = vcmp.ge.f32.partialorder %v2302_v50, 0.0 }
0x261e   :  { %2309 = vrot.lane.b32.xlu0 %v2303_v52, %s6803_s29 }
0x268e   :  { %v2306_v54 = vpop.permute.xlu1 %2305 }
0x2690   :  { %v2310_v30 = vpop.permute.xlu0 %2309 }
0x2691   :  { %v2312_v41 = vsel %vm88_vm0, %v2306_v54, %v2310_v30 }
0x2692   :  { %v2313_v45 = vmul.f32 %v2312_v41, %v2312_v41 }
0x2694   :  { %v2314_v57 = vadd.f32 1.0, %v2313_v45 }
0x2696   :  { %6739 = vrsqrt.f32 %v2314_v57 }
0x26a0   :  { %v6740_v58 = vpop.eup %6739 }
0x26a1   :  { %v2318_v60 = vsub.f32 1.0, %v6740_v58  ;;  %v2316_v3 = vadd.f32 1.0, %v6740_v58 }
0x26a3   :  { %v2319_v61 = vmul.f32 0.5, %v2318_v60  ;;  %v2317_v5 = vmul.f32 0.5, %v2316_v3 }
0x26a5   :  { %v2320_v1 = vmax.f32 %v2319_v61, 0.0 }
0x26a7   :  { %2322 = vrot.lane.b32.xlu1 %v2320_v1, %s6800_s27 }
0x2719   :  { %v2323_v6 = vpop.permute.xlu1 %2322 }
0x271a   :  { %v2325_v8 = vsel %vm102_vm1, %v2317_v5, %v2323_v6 }
0x271b   :  { %6741 = vrsqrt.f32 %v2325_v8  ;;  %vm2328_vm12 = vcmp.eq.f32.partialorder %v2325_v8, inf  ;;  %v2331_v12 = vand.u32 2147483648, %v2325_v8  ;;  %vm2330_vm13 = vcmp.eq.f32.partialorder %v2325_v8, 0.0 }
0x2725   :  { %v6742_v10 = vpop.eup %6741 }
0x2726   :  { %v2327_v11 = vmul.f32 %v6742_v10, %v2325_v8 }
0x2728   :  { %v2329_v13 = vsel %vm2328_vm12, %v2325_v8, %v2327_v11 }
0x2729   :  { %v2332_v14 = vsel %vm2330_vm13, %v2331_v12, %v2329_v13 }
0x272a   :  { %2336 = vrot.lane.b32.xlu0 %v2332_v14, %s6799_s26  ;;  %v2334_v15 = vsub.f32 0.0, %v2332_v14 }
0x272c   :  { %2340 = vrot.lane.b32.xlu1 %v2334_v15, %s6799_s26 }
0x2730   :  { %2356 = vrot.lane.b32.xlu1 %v2332_v14, %s6802_s28 }
0x279c   :  { %v2337_v16 = vpop.permute.xlu0 %2336 }
0x279e   :  { %v2341_v18 = vpop.permute.xlu1 %2340 }
0x279f   :  { %v2343_v19 = vsel %vm2333_vm14, %v2337_v16, %v2341_v18 }
0x27a0   :  { %2345 = vrot.lane.b32.xlu0 %v2343_v19, %s6802_s28 }
0x27a2   :  { %v2357_v34 = vpop.permute.xlu1 %2356 }
0x27a4   :  { %2352 = vrot.lane.b32.xlu0 %v2332_v14, %s6804_s30 }
0x2812   :  { %v2346_v20 = vpop.permute.xlu0 %2345 }
0x2813   :  { %v2348_v21 = vsub.f32 %v2332_v14, %v2346_v20  ;;  %v2350_v23 = vadd.f32 %v2346_v20, %v2332_v14 }
0x2815   :  { %v2349_v24 = vmul.f32 0.70710677, %v2348_v21  ;;  %v2351_v25 = vmul.f32 0.70710677, %v2350_v23 }
0x2816   :  { %v2353_v26 = vpop.permute.xlu0 %2352 }
0x2817   :  { %v2355_v27 = vmul.f32 %v2353_v26, %v2349_v24  ;;  %v2361_v29 = vmul.f32 %v2353_v26, %v2351_v25  ;;  %v2362_v36 = vmul.f32 %v2357_v34, %v2351_v25  ;;  %v2359_v39 = vmul.f32 %v2357_v34, %v2349_v24 }
0x2819   :  { %2365 = vperm.xlu1 %6574, %v2361_v29   ;;  %2370 = vperm.xlu0 %6575, %v2355_v27   ;;  %v2360_v47 = vsub.f32 0.0, %v2359_v39 }
0x281d   :  { %6576 = vset.pattern.permute.xlu0 %v6805_v33  ;;  %2376 = vperm.xlu1 %6574, %v2362_v36  }
0x281e   :  { %2386 = vperm.xlu0 %6576, %v2361_v29  }
0x2821   :  { %6577 = vset.pattern.permute.xlu1 %v6805_v33 }
0x2822   :  { %6579 = vset.pattern.permute.xlu0 %v6806_v35  ;;  %2390 = vperm.xlu1 %6577, %v2355_v27  }
0x2823   :  { %2408 = vperm.xlu0 %6579, %v2355_v27  }
0x2826   :  { %2395 = vperm.xlu1 %6577, %v2362_v36  }
0x2827   :  { %6580 = vset.pattern.permute.xlu0 %v6807_v37 }
0x2828   :  { %2422 = vperm.xlu0 %6580, %v2361_v29  }
0x282a   :  { %6578 = vset.pattern.permute.xlu1 %v6806_v35 }
0x282b   :  { %2404 = vperm.xlu1 %6578, %v2361_v29  }
0x282c   :  { %6583 = vset.pattern.permute.xlu0 %v6805_v33 }
0x282d   :  { %2399 = vperm.xlu0 %6583, %v2360_v47  }
0x282f   :  { %2413 = vperm.xlu1 %6578, %v2362_v36  }
0x2831   :  { %6586 = vset.pattern.permute.xlu0 %v6807_v37 }
0x2832   :  { %2435 = vperm.xlu0 %6586, %v2360_v47  }
0x2833   :  { %6581 = vset.pattern.permute.xlu1 %v6807_v37 }
0x2834   :  { %2426 = vperm.xlu1 %6581, %v2355_v27  }
0x2836   :  { %6587 = vset.pattern.permute.xlu0 %v6801_v17 }
0x2838   :  { %6582 = vset.pattern.permute.xlu1 %v6801_v17 }
0x2839   :  { %2381 = vperm.xlu1 %6582, %v2360_v47  }
0x283d   :  { %6584 = vset.pattern.permute.xlu1 %v6806_v35 }
0x283e   :  { %2417 = vperm.xlu1 %6584, %v2360_v47  }
0x2842   :  { %6585 = vset.pattern.permute.xlu1 %v6807_v37 }
0x2843   :  { %2431 = vperm.xlu1 %6585, %v2362_v36  }
0x2847   :  { %6588 = vset.pattern.permute.xlu1 %v6801_v17 }
0x2898   :  { %v2366_v49 = vpop.permute.xlu1 %2365  ;;  %v2371_v54 = vpop.permute.xlu0 %2370 }
0x2899   :  { %v2373_v13 = vsel %vm65_vm6, %v2366_v49, %v2371_v54 }
0x289c   :  { %v2377_v50 = vpop.permute.xlu1 %2376 }
0x289d   :  { %v2387_v41 = vpop.permute.xlu0 %2386 }
0x28a1   :  { %v2391_v52 = vpop.permute.xlu1 %2390 }
0x28a2   :  { %v2409_v58 = vpop.permute.xlu0 %2408  ;;  %v2393_v8 = vsel %vm70_vm5, %v2387_v41, %v2391_v52 }
0x28a3   :  { %v2439_v19 = vmul.f32 %v2393_v8, %v2373_v13 }
0x28a5   :  { %v2396_v30 = vpop.permute.xlu1 %2395 }
0x28a7   :  { %v2423_v61 = vpop.permute.xlu0 %2422 }
0x28aa   :  { %v2405_v45 = vpop.permute.xlu1 %2404 }
0x28ab   :  { %v2411_v20 = vsel %vm75_vm8, %v2405_v45, %v2409_v58 }
0x28ac   :  { %v2400_v3 = vpop.permute.xlu0 %2399 }
0x28ad   :  { %v2402_v10 = vsel %vm70_vm5, %v2396_v30, %v2400_v3 }
0x28ae   :  { %v2414_v57 = vpop.permute.xlu1 %2413  ;;  %v2442_v21 = vmul.f32 %v2402_v10, %v2373_v13 }
0x28b1   :  { %v2436_v14 = vpop.permute.xlu0 %2435 }
0x28b3   :  { %v2427_v60 = vpop.permute.xlu1 %2426 }
0x28b4   :  { %v2429_v11 = vsel %vm80_vm7, %v2423_v61, %v2427_v60  ;;  %v5172_v61 = vld [vmem:[%s8056_s0 + $0x20] sm:$0xff] }
0x28b5   :  { %v2445_v24 = vmul.f32 %v2429_v11, %v2411_v20 }
0x28b8   :  { %v2382_v1 = vpop.permute.xlu1 %2381 }
0x28b9   :  { %v2384_v6 = vsel %vm65_vm6, %v2377_v50, %v2382_v1 }
0x28ba   :  { %v2440_v15 = vmul.f32 %v2402_v10, %v2384_v6  ;;  %v2443_v16 = vmul.f32 %v2393_v8, %v2384_v6 }
0x28bc   :  { %v2441_v29 = vsub.f32 %v2439_v19, %v2440_v15  ;;  %v2444_v34 = vadd.f32 %v2443_v16, %v2442_v21 }
0x28bd   :  { %v2418_v5 = vpop.permute.xlu1 %2417 }
0x28be   :  { %v2420_v12 = vsel %vm75_vm8, %v2414_v57, %v2418_v5 }
0x28bf   :  { %v2449_v25 = vmul.f32 %v2429_v11, %v2420_v12 }
0x28c2   :  { %v2432_v18 = vpop.permute.xlu1 %2431 }
0x28c3   :  { %v2438_v23 = vsel %vm80_vm7, %v2432_v18, %v2436_v14 }
0x28c4   :  { %v2446_v26 = vmul.f32 %v2438_v23, %v2420_v12  ;;  %v2448_v27 = vmul.f32 %v2438_v23, %v2411_v20 }
0x28c6   :  { %v2447_v36 = vsub.f32 %v2445_v24, %v2446_v26  ;;  %v2450_v39 = vadd.f32 %v2449_v25, %v2448_v27 }
0x28c8   :  { %v2451_v47 = vmul.f32 %v2447_v36, %v2441_v29  ;;  %v2452_v49 = vmul.f32 %v2450_v39, %v2444_v34  ;;  %v2454_v50 = vmul.f32 %v2450_v39, %v2441_v29  ;;  %v2455_v52 = vmul.f32 %v2447_v36, %v2444_v34 }
0x28ca   :  { %v2456_v54 = vadd.f32 %v2455_v52, %v2454_v50  ;;  %v2453_v30 = vsub.f32 %v2451_v47, %v2452_v49 }
0x28cc   :  { %2458 = vrot.lane.b32.xlu1 %v2456_v54, %s6811_s14 }
0x293e   :  { %v2459_v41 = vpop.permute.xlu1 %2458 }
0x293f   :  { %v2461_v45 = vsel %vm235_vm10, %v2453_v30, %v2459_v41 }
0x2940   :  { %5764 = vmatmul.mubr.msk.f32.vlgmr.msra.gmra.mrb[20].mxu0 %vm237_vm11, %v2461_v45 }
0x2941   :  { %6271 = vmatpush3.bf16.msra.mxu0 %v7109_v40  ;;  %5782 = vmatprep.mubr.msk.f32.mxu0 %vm6809_vm9, %v6810_v9 }
0x2942   :  { %6272 = vmatprep.subr.bf16.mxu0 %v6808_v38 }
0x2945   :  { %6274 = vmatpush3.bf16.msra.mxu0 %v7120_v48 }
0x2946   :  { %6275 = vmatprep.subr.bf16.mxu0 %v6808_v38 }
0x2949   :  { %6277 = vmatpush3.bf16.msra.mxu0 %v7132_v51 }
0x294a   :  { %6278 = vmatprep.subr.bf16.mxu0 %v6808_v38 }
0x294d   :  { %6280 = vmatpush3.bf16.msra.mxu0 %v7143_v55 }
0x294e   :  { %6281 = vmatprep.subr.bf16.mxu0 %v6808_v38 }
0x2a13   :  { %v2531_v57 = vpop.f32.mrb[20].mxu0 }
0x2a14   :  { %v2535_v58 = vmul.f32 %v2531_v57, %v2531_v57  ;;  %v5765_v60 = vpop.f32.mrb[21].mxu0 }
0x2a16   :  { %5783 = vmatmul.mubr.msk.f32.vlgmr.msra.gmra.mrb[22].mxu0 %vm642_vm15, %v2535_v58 }
0x2a17   :  { %6283 = vmatpush3.bf16.msra.mxu0 %v6889_v42  ;;  %5793 = vmatprep.mubr.msk.f32.mxu0 %vm6809_vm9, %v6810_v9 }
0x2a18   :  { %6284 = vmatprep.subr.bf16.mxu0 %v6808_v38 }
0x2a1b   :  { %6286 = vmatpush3.bf16.msra.mxu0 %v6895_v44 }
0x2a1c   :  { %6311 = vmatprep.subr.bf16.mxu0 %v6808_v38 }
0x2ae9   :  { %v2605_v1 = vpop.f32.mrb[22].mxu0 }
0x2aea   :  { %v2611_v3 = vadd.f32 %v5172_v61, %v2605_v1  ;;  %v5784_v5 = vpop.f32.mrb[23].mxu0 }
0x2aec   :  { %v2612_v6 = vmul.f32 %v2611_v3, %v2611_v3  ;;  %vm2638_vm4 = vcmp.ge.f32.partialorder %v2611_v3, 0.0 }
0x2aee   :  { %2614 = vrot.lane.b32.xlu0 %v2612_v6, %s6799_s26 }
0x2b60   :  { %v2615_v8 = vpop.permute.xlu0 %2614 }
0x2b61   :  { %v2617_v10 = vsel %vm88_vm0, %v2611_v3, %v2615_v8 }
0x2b62   :  { %v2618_v11 = vmul.f32 %v2617_v10, %v2617_v10 }
0x2b64   :  { %v2619_v12 = vadd.f32 1.0, %v2618_v11 }
0x2b66   :  { %6743 = vrsqrt.f32 %v2619_v12 }
0x2b70   :  { %v6744_v13 = vpop.eup %6743 }
0x2b71   :  { %v2623_v14 = vsub.f32 1.0, %v6744_v13  ;;  %v2621_v18 = vadd.f32 1.0, %v6744_v13 }
0x2b73   :  { %v2624_v15 = vmul.f32 0.5, %v2623_v14  ;;  %v2622_v19 = vmul.f32 0.5, %v2621_v18 }
0x2b75   :  { %v2625_v16 = vmax.f32 %v2624_v15, 0.0 }
0x2b77   :  { %2627 = vrot.lane.b32.xlu1 %v2625_v16, %s6800_s27 }
0x2be9   :  { %v2628_v20 = vpop.permute.xlu1 %2627 }
0x2bea   :  { %v2630_v21 = vsel %vm102_vm1, %v2622_v19, %v2628_v20 }
0x2beb   :  { %6745 = vrsqrt.f32 %v2630_v21  ;;  %vm2633_vm2 = vcmp.eq.f32.partialorder %v2630_v21, inf  ;;  %v2636_v25 = vand.u32 2147483648, %v2630_v21  ;;  %vm2635_vm3 = vcmp.eq.f32.partialorder %v2630_v21, 0.0 }
0x2bf5   :  { %v6746_v23 = vpop.eup %6745 }
0x2bf6   :  { %v2632_v24 = vmul.f32 %v6746_v23, %v2630_v21 }
0x2bf8   :  { %v2634_v26 = vsel %vm2633_vm2, %v2630_v21, %v2632_v24 }
0x2bf9   :  { %v2637_v27 = vsel %vm2635_vm3, %v2636_v25, %v2634_v26 }
0x2bfa   :  { %2641 = vrot.lane.b32.xlu0 %v2637_v27, %s6803_s29  ;;  %v2639_v29 = vsub.f32 0.0, %v2637_v27 }
0x2bfc   :  { %2645 = vrot.lane.b32.xlu1 %v2639_v29, %s6803_s29 }
0x2bfe   :  { %2657 = vrot.lane.b32.xlu0 %v2637_v27, %s6802_s28 }
0x2c00   :  { %2653 = vrot.lane.b32.xlu1 %v2637_v27, %s6804_s30 }
0x2c6c   :  { %v2642_v34 = vpop.permute.xlu0 %2641 }
0x2c6e   :  { %v2646_v36 = vpop.permute.xlu1 %2645 }
0x2c6f   :  { %v2648_v39 = vsel %vm2638_vm4, %v2642_v34, %v2646_v36 }
0x2c70   :  { %v2649_v47 = vsub.f32 %v2637_v27, %v2648_v39  ;;  %v2651_v49 = vadd.f32 %v2648_v39, %v2637_v27  ;;  %v2658_v45 = vpop.permute.xlu0 %2657 }
0x2c72   :  { %v2650_v50 = vmul.f32 0.70710677, %v2649_v47  ;;  %v2652_v52 = vmul.f32 0.70710677, %v2651_v49  ;;  %v2654_v54 = vpop.permute.xlu1 %2653 }
0x2c74   :  { %v2656_v30 = vmul.f32 %v2654_v54, %v2650_v50  ;;  %v2662_v41 = vmul.f32 %v2654_v54, %v2652_v52  ;;  %v2663_v57 = vmul.f32 %v2658_v45, %v2652_v52  ;;  %v2660_v58 = vmul.f32 %v2658_v45, %v2650_v50 }
0x2c76   :  { %2666 = vperm.xlu0 %6587, %v2662_v41   ;;  %2671 = vperm.xlu1 %6588, %v2656_v30   ;;  %v2661_v60 = vsub.f32 0.0, %v2660_v58 }
0x2c7a   :  { %6590 = vset.pattern.permute.xlu0 %v6805_v33  ;;  %2677 = vperm.xlu1 %6588, %v2663_v57  }
0x2c7b   :  { %2691 = vperm.xlu0 %6590, %v2656_v30  }
0x2c7e   :  { %6589 = vset.pattern.permute.xlu1 %v6805_v33 }
0x2c7f   :  { %6591 = vset.pattern.permute.xlu0 %v6806_v35  ;;  %2687 = vperm.xlu1 %6589, %v2662_v41  }
0x2c80   :  { %2705 = vperm.xlu0 %6591, %v2662_v41  }
0x2c83   :  { %2696 = vperm.xlu1 %6589, %v2663_v57  }
0x2c84   :  { %6594 = vset.pattern.permute.xlu0 %v6801_v17 }
0x2c85   :  { %2682 = vperm.xlu0 %6594, %v2661_v60  }
0x2c87   :  { %6592 = vset.pattern.permute.xlu1 %v6806_v35 }
0x2c88   :  { %2709 = vperm.xlu1 %6592, %v2656_v30  }
0x2c89   :  { %6596 = vset.pattern.permute.xlu0 %v6806_v35 }
0x2c8a   :  { %2718 = vperm.xlu0 %6596, %v2661_v60  }
0x2c8c   :  { %2714 = vperm.xlu1 %6592, %v2663_v57  }
0x2c8e   :  { %6597 = vset.pattern.permute.xlu0 %v6807_v37 }
0x2c8f   :  { %2727 = vperm.xlu0 %6597, %v2656_v30  }
0x2c90   :  { %6593 = vset.pattern.permute.xlu1 %v6807_v37 }
0x2c91   :  { %2723 = vperm.xlu1 %6593, %v2662_v41  }
0x2c93   :  { %6599 = vset.pattern.permute.xlu0 %v6801_v17 }
0x2c95   :  { %6595 = vset.pattern.permute.xlu1 %v6805_v33 }
0x2c96   :  { %2700 = vperm.xlu1 %6595, %v2661_v60  }
0x2c9a   :  { %6598 = vset.pattern.permute.xlu1 %v6807_v37 }
0x2c9b   :  { %2732 = vperm.xlu1 %6598, %v2663_v57  }
0x2c9f   :  { %2736 = vperm.xlu1 %6598, %v2661_v60  }
0x2ca3   :  { %6600 = vset.pattern.permute.xlu1 %v6801_v17 }
0x2cf5   :  { %v2672_v61 = vpop.permute.xlu1 %2671  ;;  %v2667_v3 = vpop.permute.xlu0 %2666 }
0x2cf6   :  { %v2674_v24 = vsel %vm65_vm6, %v2667_v3, %v2672_v61 }
0x2cf9   :  { %v2678_v1 = vpop.permute.xlu1 %2677 }
0x2cfa   :  { %v2692_v8 = vpop.permute.xlu0 %2691 }
0x2cfe   :  { %v2688_v5 = vpop.permute.xlu1 %2687 }
0x2cff   :  { %v2706_v11 = vpop.permute.xlu0 %2705  ;;  %v2694_v19 = vsel %vm70_vm5, %v2688_v5, %v2692_v8 }
0x2d00   :  { %v2740_v26 = vmul.f32 %v2694_v19, %v2674_v24 }
0x2d02   :  { %v2697_v6 = vpop.permute.xlu1 %2696 }
0x2d04   :  { %v2683_v13 = vpop.permute.xlu0 %2682 }
0x2d05   :  { %v2685_v21 = vsel %vm65_vm6, %v2678_v1, %v2683_v13 }
0x2d06   :  { %v2744_v36 = vmul.f32 %v2694_v19, %v2685_v21 }
0x2d07   :  { %v2710_v10 = vpop.permute.xlu1 %2709 }
0x2d08   :  { %v2712_v39 = vsel %vm75_vm8, %v2706_v11, %v2710_v10 }
0x2d09   :  { %v2719_v16 = vpop.permute.xlu0 %2718 }
0x2d0b   :  { %v2715_v12 = vpop.permute.xlu1 %2714 }
0x2d0c   :  { %v2721_v47 = vsel %vm75_vm8, %v2715_v12, %v2719_v16 }
0x2d0e   :  { %v2728_v23 = vpop.permute.xlu0 %2727 }
0x2d10   :  { %v2724_v14 = vpop.permute.xlu1 %2723 }
0x2d11   :  { %v2730_v25 = vsel %vm80_vm7, %v2724_v14, %v2728_v23 }
0x2d12   :  { %v2746_v50 = vmul.f32 %v2730_v25, %v2712_v39  ;;  %v2750_v52 = vmul.f32 %v2730_v25, %v2721_v47 }
0x2d15   :  { %v2701_v15 = vpop.permute.xlu1 %2700 }
0x2d16   :  { %v2703_v20 = vsel %vm70_vm5, %v2697_v6, %v2701_v15 }
0x2d17   :  { %v2741_v27 = vmul.f32 %v2703_v20, %v2685_v21  ;;  %v2743_v29 = vmul.f32 %v2703_v20, %v2674_v24 }
0x2d19   :  { %v2742_v41 = vsub.f32 %v2740_v26, %v2741_v27  ;;  %v2745_v45 = vadd.f32 %v2744_v36, %v2743_v29 }
0x2d1a   :  { %v2733_v18 = vpop.permute.xlu1 %2732 }
0x2d1e   :  { %v2737_v34 = vpop.permute.xlu1 %2736 }
0x2d1f   :  { %v2739_v49 = vsel %vm80_vm7, %v2733_v18, %v2737_v34 }
0x2d20   :  { %v2747_v54 = vmul.f32 %v2739_v49, %v2721_v47  ;;  %v2749_v30 = vmul.f32 %v2739_v49, %v2712_v39 }
0x2d22   :  { %v2748_v57 = vsub.f32 %v2746_v50, %v2747_v54  ;;  %v2751_v58 = vadd.f32 %v2750_v52, %v2749_v30 }
0x2d24   :  { %v2752_v60 = vmul.f32 %v2748_v57, %v2742_v41  ;;  %v2753_v61 = vmul.f32 %v2751_v58, %v2745_v45  ;;  %v2755_v1 = vmul.f32 %v2751_v58, %v2742_v41  ;;  %v2756_v3 = vmul.f32 %v2748_v57, %v2745_v45 }
0x2d26   :  { %v2757_v5 = vadd.f32 %v2756_v3, %v2755_v1  ;;  %v2754_v6 = vsub.f32 %v2752_v60, %v2753_v61 }
0x2d28   :  { %2759 = vrot.lane.b32.xlu0 %v2757_v5, %s6811_s14 }
0x2d9a   :  { %v2760_v8 = vpop.permute.xlu0 %2759 }
0x2d9b   :  { %v2762_v10 = vsel %vm235_vm10, %v2754_v6, %v2760_v8 }
0x2d9c   :  { %5794 = vmatmul.mubr.msk.f32.vlgmr.msra.gmra.mrb[24].mxu0 %vm237_vm11, %v2762_v10 }
0x2d9d   :  { %6313 = vmatpush3.bf16.msra.mxu0 %v7075_v28  ;;  %5839 = vmatprep.mubr.msk.f32.mxu0 %vm6809_vm9, %v6810_v9 }
0x2d9e   :  { %6314 = vmatprep.subr.bf16.mxu0 %v6808_v38 }
0x2da1   :  { %6316 = vmatpush3.bf16.msra.mxu0 %v7081_v32 }
0x2da2   :  { %6317 = vmatprep.subr.bf16.mxu0 %v6808_v38 }
0x2e6f   :  { %v2832_v11 = vpop.f32.mrb[24].mxu0 }
0x2e70   :  { %v2836_v12 = vmul.f32 %v2832_v11, %v2832_v11  ;;  %v5795_v13 = vpop.f32.mrb[25].mxu0 }
0x2e72   :  { %5829 = vmatmul.mubr.f32.vlgmr.msra.gmra.mrb[8].mxu1 %v2836_v12 }
0x2e73   :  { %6337 = vmatpush3.bf16.msra.mxu1 %v6940_v22  ;;  %5904 = vmatprep.mubr.msk.f32.mxu1 %vm6809_vm9, %v6810_v9 }
0x2e74   :  { %6338 = vmatprep.subr.bf16.mxu1 %v6808_v38 }
0x2e77   :  { %6340 = vmatpush3.bf16.msra.mxu1 %v6950_v31 }
0x2e78   :  { %6341 = vmatprep.subr.bf16.mxu1 %v6808_v38 }
0x2e7b   :  { %6343 = vmatpush3.bf16.msra.mxu1 %v6959_v43 }
0x2e7c   :  { %6344 = vmatprep.subr.bf16.mxu1 %v6808_v38 }
0x2e7f   :  { %6346 = vmatpush3.bf16.msra.mxu1 %v6971_v53 }
0x2e80   :  { %6347 = vmatprep.subr.bf16.mxu1 %v6808_v38 }
0x2e83   :  { %6349 = vmatpush3.bf16.msra.mxu1 %v6981_v56 }
0x2e84   :  { %6350 = vmatprep.subr.bf16.mxu1 %v6808_v38 }
0x2e87   :  { %6352 = vmatpush3.bf16.msra.mxu1 %v6991_v59 }
0x2e88   :  { %6353 = vmatprep.subr.bf16.mxu1 %v6808_v38 }
0x2e8b   :  { %6355 = vmatpush3.bf16.msra.mxu1 %v7001_v63 }
0x2e8c   :  { %6356 = vmatprep.subr.bf16.mxu1 %v6808_v38 }
0x2e8f   :  { %6358 = vmatpush3.bf16.msra.mxu1 %v7016_v7 }
0x2e90   :  { %6383 = vmatprep.subr.bf16.mxu1 %v6808_v38 }
0x2f45   :  { %v2903_v14 = vpop.f32.mrb[8].mxu1 }
0x2f46   :  { %v2907_v15 = vsub.f32 0.0, %v2903_v14  ;;  %v5830_v16 = vpop.f32.mrb[9].mxu1 }
0x2f48   :  { %v2908_v18 = vmul.f32 1.442695, %v2907_v15 }
0x2f4a   :  { %6747 = vpow2.f32 %v2908_v18 }
0x2f54   :  { %v6748_v19 = vpop.eup %6747 }
0x2f55   :  { %v2910_v20 = vadd.f32 1.0, %v6748_v19 }
0x2f57   :  { %6749 = vrcp.f32 %v2910_v20 }
0x2f61   :  { %v6750_v21 = vpop.eup %6749 }
0x2f62   :  { %v2912_v23 = vmul.f32 %v6750_v21, %v2910_v20 }
0x2f64   :  { %v2913_v24 = vsub.f32 2.0, %v2912_v23 }
0x2f66   :  { %v2914_v25 = vmul.f32 %v6750_v21, %v2913_v24 }
0x2f68   :  { %v2915_v26 = vmul.f32 2.0, %v2914_v25  ;;  %v2917_v36 = vmul.f32 %v2914_v25, %v7488_v46 }
0x2f6a   :  { %v5174_v27 = vadd.f32 -1.0, %v2915_v26 }
0x2f6c   :  { %2919 = vrot.lane.b32.xlu1 %v5174_v27, %s6804_s30 }
0x2fde   :  { %v2920_v29 = vpop.permute.xlu1 %2919 }
0x2fdf   :  { %v2922_v34 = vmul.f32 %v2920_v29, %v2914_v25 }
0x2fe1   :  { %2924 = vrot.lane.b32.xlu0 %v2922_v34, %s6804_s30 }
0x3053   :  { %v2925_v39 = vpop.permute.xlu0 %2924 }
0x3054   :  { %v7620_v47 = vadd.f32 %v2925_v39, %v2917_v36 }
0x3056   :  { %6751 = vtanh.f32 %v7620_v47 }
0x3060   :  { %v6752_v49 = vpop.eup %6751 }
0x3061   :  { %2930 = vrot.lane.b32.xlu1 %v6752_v49, %s6812_s3 }
0x30d3   :  { %v2931_v50 = vpop.permute.xlu1 %2930 }
0x30d4   :  { %v2933_v52 = vmul.f32 %v2931_v50, %v2914_v25 }
0x30d6   :  { %v2934_v54 = vmul.f32 %v2933_v52, %v2933_v52  ;;  %2936 = vrot.lane.b32.xlu0 %v2933_v52, %s6802_s28  ;;  %vm2964_vm14 = vcmp.ge.f32.partialorder %v2933_v52, 0.0 }
0x30d8   :  { %2940 = vrot.lane.b32.xlu1 %v2934_v54, %s6803_s29 }
0x3148   :  { %v2937_v30 = vpop.permute.xlu0 %2936 }
0x314a   :  { %v2941_v41 = vpop.permute.xlu1 %2940 }
0x314b   :  { %v2943_v45 = vsel %vm88_vm0, %v2937_v30, %v2941_v41 }
0x314c   :  { %v2944_v46 = vmul.f32 %v2943_v45, %v2943_v45 }
0x314e   :  { %v2945_v57 = vadd.f32 1.0, %v2944_v46 }
0x3150   :  { %6753 = vrsqrt.f32 %v2945_v57 }
0x315a   :  { %v6754_v58 = vpop.eup %6753 }
0x315b   :  { %v2949_v60 = vsub.f32 1.0, %v6754_v58  ;;  %v2947_v3 = vadd.f32 1.0, %v6754_v58 }
0x315d   :  { %v2950_v61 = vmul.f32 0.5, %v2949_v60  ;;  %v2948_v5 = vmul.f32 0.5, %v2947_v3 }
0x315f   :  { %v2951_v1 = vmax.f32 %v2950_v61, 0.0 }
0x3161   :  { %2953 = vrot.lane.b32.xlu0 %v2951_v1, %s6800_s27 }
0x31d3   :  { %v2954_v6 = vpop.permute.xlu0 %2953 }
0x31d4   :  { %v2956_v8 = vsel %vm102_vm1, %v2948_v5, %v2954_v6 }
0x31d5   :  { %6755 = vrsqrt.f32 %v2956_v8  ;;  %vm2959_vm12 = vcmp.eq.f32.partialorder %v2956_v8, inf  ;;  %v2962_v12 = vand.u32 2147483648, %v2956_v8  ;;  %vm2961_vm13 = vcmp.eq.f32.partialorder %v2956_v8, 0.0 }
0x31df   :  { %v6756_v10 = vpop.eup %6755 }
0x31e0   :  { %v2958_v11 = vmul.f32 %v6756_v10, %v2956_v8 }
0x31e2   :  { %v2960_v13 = vsel %vm2959_vm12, %v2956_v8, %v2958_v11 }
0x31e3   :  { %v2963_v14 = vsel %vm2961_vm13, %v2962_v12, %v2960_v13 }
0x31e4   :  { %2967 = vrot.lane.b32.xlu1 %v2963_v14, %s6799_s26  ;;  %v2965_v15 = vsub.f32 0.0, %v2963_v14 }
0x31e6   :  { %2971 = vrot.lane.b32.xlu0 %v2965_v15, %s6799_s26 }
0x31ea   :  { %2987 = vrot.lane.b32.xlu0 %v2963_v14, %s6802_s28 }
0x3256   :  { %v2968_v16 = vpop.permute.xlu1 %2967 }
0x3258   :  { %v2972_v18 = vpop.permute.xlu0 %2971 }
0x3259   :  { %v2974_v19 = vsel %vm2964_vm14, %v2968_v16, %v2972_v18 }
0x325a   :  { %2976 = vrot.lane.b32.xlu1 %v2974_v19, %s6802_s28 }
0x325c   :  { %v2988_v34 = vpop.permute.xlu0 %2987 }
0x325e   :  { %2983 = vrot.lane.b32.xlu1 %v2963_v14, %s6804_s30 }
0x32cc   :  { %v2977_v20 = vpop.permute.xlu1 %2976 }
0x32cd   :  { %v2979_v21 = vsub.f32 %v2963_v14, %v2977_v20  ;;  %v2981_v23 = vadd.f32 %v2977_v20, %v2963_v14 }
0x32cf   :  { %v2980_v24 = vmul.f32 0.70710677, %v2979_v21  ;;  %v2982_v25 = vmul.f32 0.70710677, %v2981_v23 }
0x32d0   :  { %v2984_v26 = vpop.permute.xlu1 %2983 }
0x32d1   :  { %v2986_v27 = vmul.f32 %v2984_v26, %v2980_v24  ;;  %v2992_v29 = vmul.f32 %v2984_v26, %v2982_v25  ;;  %v2993_v36 = vmul.f32 %v2988_v34, %v2982_v25  ;;  %v2990_v39 = vmul.f32 %v2988_v34, %v2980_v24 }
0x32d3   :  { %2996 = vperm.xlu0 %6599, %v2992_v29   ;;  %3001 = vperm.xlu1 %6600, %v2986_v27   ;;  %v2991_v49 = vsub.f32 0.0, %v2990_v39 }
0x32d7   :  { %6602 = vset.pattern.permute.xlu0 %v6805_v33  ;;  %3007 = vperm.xlu1 %6600, %v2993_v36  }
0x32d8   :  { %3021 = vperm.xlu0 %6602, %v2986_v27  }
0x32db   :  { %6601 = vset.pattern.permute.xlu1 %v6805_v33 }
0x32dc   :  { %6603 = vset.pattern.permute.xlu0 %v6806_v35  ;;  %3017 = vperm.xlu1 %6601, %v2992_v29  }
0x32dd   :  { %3035 = vperm.xlu0 %6603, %v2992_v29  }
0x32e0   :  { %3026 = vperm.xlu1 %6601, %v2993_v36  }
0x32e1   :  { %6606 = vset.pattern.permute.xlu0 %v6801_v17 }
0x32e2   :  { %3012 = vperm.xlu0 %6606, %v2991_v49  }
0x32e4   :  { %6604 = vset.pattern.permute.xlu1 %v6806_v35 }
0x32e5   :  { %3039 = vperm.xlu1 %6604, %v2986_v27  }
0x32e6   :  { %6608 = vset.pattern.permute.xlu0 %v6806_v35 }
0x32e7   :  { %3048 = vperm.xlu0 %6608, %v2991_v49  }
0x32e9   :  { %3044 = vperm.xlu1 %6604, %v2993_v36  }
0x32eb   :  { %6609 = vset.pattern.permute.xlu0 %v6807_v37 }
0x32ec   :  { %3057 = vperm.xlu0 %6609, %v2986_v27  }
0x32ed   :  { %6605 = vset.pattern.permute.xlu1 %v6807_v37 }
0x32ee   :  { %3053 = vperm.xlu1 %6605, %v2992_v29  }
0x32f0   :  { %6612 = vset.pattern.permute.xlu0 %v6801_v17 }
0x32f2   :  { %6607 = vset.pattern.permute.xlu1 %v6805_v33 }
0x32f3   :  { %3030 = vperm.xlu1 %6607, %v2991_v49  }
0x32f7   :  { %6610 = vset.pattern.permute.xlu1 %v6807_v37 }
0x32f8   :  { %3062 = vperm.xlu1 %6610, %v2993_v36  }
0x32fc   :  { %3066 = vperm.xlu1 %6610, %v2991_v49  }
0x3300   :  { %6611 = vset.pattern.permute.xlu1 %v6801_v17 }
0x3352   :  { %v3002_v50 = vpop.permute.xlu1 %3001  ;;  %v2997_v54 = vpop.permute.xlu0 %2996 }
0x3353   :  { %v3004_v12 = vsel %vm65_vm6, %v2997_v54, %v3002_v50 }
0x3356   :  { %v3008_v52 = vpop.permute.xlu1 %3007 }
0x3357   :  { %v3022_v45 = vpop.permute.xlu0 %3021 }
0x335b   :  { %v3018_v30 = vpop.permute.xlu1 %3017 }
0x335c   :  { %v3036_v57 = vpop.permute.xlu0 %3035  ;;  %v3024_v6 = vsel %vm70_vm5, %v3018_v30, %v3022_v45 }
0x335d   :  { %v3070_v14 = vmul.f32 %v3024_v6, %v3004_v12 }
0x335f   :  { %v3027_v41 = vpop.permute.xlu1 %3026 }
0x3361   :  { %v3013_v60 = vpop.permute.xlu0 %3012 }
0x3362   :  { %v3015_v10 = vsel %vm65_vm6, %v3008_v52, %v3013_v60 }
0x3363   :  { %v3074_v19 = vmul.f32 %v3024_v6, %v3015_v10 }
0x3364   :  { %v3040_v46 = vpop.permute.xlu1 %3039 }
0x3365   :  { %v3042_v20 = vsel %vm75_vm8, %v3036_v57, %v3040_v46 }
0x3366   :  { %v3049_v3 = vpop.permute.xlu0 %3048 }
0x3368   :  { %v3045_v58 = vpop.permute.xlu1 %3044 }
0x3369   :  { %v3051_v21 = vsel %vm75_vm8, %v3045_v58, %v3049_v3 }
0x336b   :  { %v3058_v11 = vpop.permute.xlu0 %3057 }
0x336d   :  { %v3054_v61 = vpop.permute.xlu1 %3053 }
0x336e   :  { %v3060_v13 = vsel %vm80_vm7, %v3054_v61, %v3058_v11  ;;  %v5177_v61 = vld [vmem:[%s8056_s0 + $0x28] sm:$0xff] }
0x336f   :  { %v3076_v24 = vmul.f32 %v3060_v13, %v3042_v20  ;;  %v3080_v25 = vmul.f32 %v3060_v13, %v3051_v21 }
0x3372   :  { %v3031_v1 = vpop.permute.xlu1 %3030 }
0x3373   :  { %v3033_v8 = vsel %vm70_vm5, %v3027_v41, %v3031_v1 }
0x3374   :  { %v3071_v15 = vmul.f32 %v3033_v8, %v3015_v10  ;;  %v3073_v16 = vmul.f32 %v3033_v8, %v3004_v12 }
0x3376   :  { %v3072_v29 = vsub.f32 %v3070_v14, %v3071_v15  ;;  %v3075_v34 = vadd.f32 %v3074_v19, %v3073_v16 }
0x3377   :  { %v3063_v5 = vpop.permute.xlu1 %3062 }
0x337b   :  { %v3067_v18 = vpop.permute.xlu1 %3066 }
0x337c   :  { %v3069_v23 = vsel %vm80_vm7, %v3063_v5, %v3067_v18 }
0x337d   :  { %v3077_v26 = vmul.f32 %v3069_v23, %v3051_v21  ;;  %v3079_v27 = vmul.f32 %v3069_v23, %v3042_v20 }
0x337f   :  { %v3078_v36 = vsub.f32 %v3076_v24, %v3077_v26  ;;  %v3081_v39 = vadd.f32 %v3080_v25, %v3079_v27 }
0x3381   :  { %v3082_v49 = vmul.f32 %v3078_v36, %v3072_v29  ;;  %v3083_v50 = vmul.f32 %v3081_v39, %v3075_v34  ;;  %v3085_v52 = vmul.f32 %v3081_v39, %v3072_v29  ;;  %v3086_v54 = vmul.f32 %v3078_v36, %v3075_v34 }
0x3383   :  { %v3087_v30 = vadd.f32 %v3086_v54, %v3085_v52  ;;  %v3084_v41 = vsub.f32 %v3082_v49, %v3083_v50 }
0x3385   :  { %3089 = vrot.lane.b32.xlu0 %v3087_v30, %s6811_s14 }
0x33f7   :  { %v3090_v45 = vpop.permute.xlu0 %3089 }
0x33f8   :  { %v3092_v46 = vsel %vm235_vm10, %v3084_v41, %v3090_v45 }
0x33f9   :  { %5840 = vmatmul.mubr.msk.f32.vlgmr.msra.gmra.mrb[26].mxu0 %vm237_vm11, %v3092_v46 }
0x33fa   :  { %6319 = vmatpush3.bf16.msra.mxu0 %v7109_v40  ;;  %5858 = vmatprep.mubr.msk.f32.mxu0 %vm6809_vm9, %v6810_v9 }
0x33fb   :  { %6320 = vmatprep.subr.bf16.mxu0 %v6808_v38 }
0x33fe   :  { %6322 = vmatpush3.bf16.msra.mxu0 %v7120_v48 }
0x33ff   :  { %6323 = vmatprep.subr.bf16.mxu0 %v6808_v38 }
0x3402   :  { %6325 = vmatpush3.bf16.msra.mxu0 %v7132_v51 }
0x3403   :  { %6326 = vmatprep.subr.bf16.mxu0 %v6808_v38 }
0x3406   :  { %6328 = vmatpush3.bf16.msra.mxu0 %v7143_v55 }
0x3407   :  { %6329 = vmatprep.subr.bf16.mxu0 %v6808_v38 }
0x34cc   :  { %v3162_v57 = vpop.f32.mrb[26].mxu0 }
0x34cd   :  { %v3166_v58 = vmul.f32 %v3162_v57, %v3162_v57  ;;  %v5841_v60 = vpop.f32.mrb[27].mxu0 }
0x34cf   :  { %5859 = vmatmul.mubr.msk.f32.vlgmr.msra.gmra.mrb[28].mxu0 %vm642_vm15, %v3166_v58 }
0x34d0   :  { %6331 = vmatpush3.bf16.msra.mxu0 %v6889_v42  ;;  %5869 = vmatprep.mubr.msk.f32.mxu0 %vm6809_vm9, %v6810_v9 }
0x34d1   :  { %6332 = vmatprep.subr.bf16.mxu0 %v6808_v38 }
0x34d4   :  { %6334 = vmatpush3.bf16.msra.mxu0 %v6895_v44 }
0x34d5   :  { %6359 = vmatprep.subr.bf16.mxu0 %v6808_v38 }
0x35a2   :  { %v3236_v1 = vpop.f32.mrb[28].mxu0 }
0x35a3   :  { %v3242_v3 = vadd.f32 %v5177_v61, %v3236_v1  ;;  %v5860_v5 = vpop.f32.mrb[29].mxu0 }
0x35a5   :  { %v3243_v6 = vmul.f32 %v3242_v3, %v3242_v3  ;;  %vm3269_vm4 = vcmp.ge.f32.partialorder %v3242_v3, 0.0 }
0x35a7   :  { %3245 = vrot.lane.b32.xlu1 %v3243_v6, %s6799_s26 }
0x3619   :  { %v3246_v8 = vpop.permute.xlu1 %3245 }
0x361a   :  { %v3248_v10 = vsel %vm88_vm0, %v3242_v3, %v3246_v8 }
0x361b   :  { %v3249_v11 = vmul.f32 %v3248_v10, %v3248_v10 }
0x361d   :  { %v3250_v12 = vadd.f32 1.0, %v3249_v11 }
0x361f   :  { %6757 = vrsqrt.f32 %v3250_v12 }
0x3629   :  { %v6758_v13 = vpop.eup %6757 }
0x362a   :  { %v3254_v14 = vsub.f32 1.0, %v6758_v13  ;;  %v3252_v18 = vadd.f32 1.0, %v6758_v13 }
0x362c   :  { %v3255_v15 = vmul.f32 0.5, %v3254_v14  ;;  %v3253_v19 = vmul.f32 0.5, %v3252_v18 }
0x362e   :  { %v3256_v16 = vmax.f32 %v3255_v15, 0.0 }
0x3630   :  { %3258 = vrot.lane.b32.xlu0 %v3256_v16, %s6800_s27 }
0x36a2   :  { %v3259_v20 = vpop.permute.xlu0 %3258 }
0x36a3   :  { %v3261_v21 = vsel %vm102_vm1, %v3253_v19, %v3259_v20 }
0x36a4   :  { %6759 = vrsqrt.f32 %v3261_v21  ;;  %vm3264_vm2 = vcmp.eq.f32.partialorder %v3261_v21, inf  ;;  %v3267_v25 = vand.u32 2147483648, %v3261_v21  ;;  %vm3266_vm3 = vcmp.eq.f32.partialorder %v3261_v21, 0.0 }
0x36ae   :  { %v6760_v23 = vpop.eup %6759 }
0x36af   :  { %v3263_v24 = vmul.f32 %v6760_v23, %v3261_v21 }
0x36b1   :  { %v3265_v26 = vsel %vm3264_vm2, %v3261_v21, %v3263_v24 }
0x36b2   :  { %v3268_v27 = vsel %vm3266_vm3, %v3267_v25, %v3265_v26 }
0x36b3   :  { %3272 = vrot.lane.b32.xlu1 %v3268_v27, %s6803_s29  ;;  %v3270_v29 = vsub.f32 0.0, %v3268_v27 }
0x36b5   :  { %3276 = vrot.lane.b32.xlu0 %v3270_v29, %s6803_s29 }
0x36b7   :  { %3288 = vrot.lane.b32.xlu1 %v3268_v27, %s6802_s28 }
0x36b9   :  { %3284 = vrot.lane.b32.xlu0 %v3268_v27, %s6804_s30 }
0x3725   :  { %v3273_v34 = vpop.permute.xlu1 %3272 }
0x3727   :  { %v3277_v36 = vpop.permute.xlu0 %3276 }
0x3728   :  { %v3279_v39 = vsel %vm3269_vm4, %v3273_v34, %v3277_v36 }
0x3729   :  { %v3280_v49 = vsub.f32 %v3268_v27, %v3279_v39  ;;  %v3282_v50 = vadd.f32 %v3279_v39, %v3268_v27  ;;  %v3289_v46 = vpop.permute.xlu1 %3288 }
0x372b   :  { %v3281_v52 = vmul.f32 0.70710677, %v3280_v49  ;;  %v3283_v54 = vmul.f32 0.70710677, %v3282_v50  ;;  %v3285_v30 = vpop.permute.xlu0 %3284 }
0x372d   :  { %v3287_v41 = vmul.f32 %v3285_v30, %v3281_v52  ;;  %v3293_v45 = vmul.f32 %v3285_v30, %v3283_v54  ;;  %v3294_v57 = vmul.f32 %v3289_v46, %v3283_v54  ;;  %v3291_v58 = vmul.f32 %v3289_v46, %v3281_v52 }
0x372f   :  { %3297 = vperm.xlu1 %6611, %v3293_v45   ;;  %3302 = vperm.xlu0 %6612, %v3287_v41   ;;  %v3292_v60 = vsub.f32 0.0, %v3291_v58 }
0x3733   :  { %3308 = vperm.xlu1 %6611, %v3294_v57   ;;  %6613 = vset.pattern.permute.xlu0 %v6805_v33 }
0x3734   :  { %3318 = vperm.xlu0 %6613, %v3293_v45  }
0x3737   :  { %6614 = vset.pattern.permute.xlu1 %v6805_v33 }
0x3738   :  { %3322 = vperm.xlu1 %6614, %v3287_v41   ;;  %6616 = vset.pattern.permute.xlu0 %v6806_v35 }
0x3739   :  { %3340 = vperm.xlu0 %6616, %v3287_v41  }
0x373c   :  { %3327 = vperm.xlu1 %6614, %v3294_v57  }
0x373d   :  { %6617 = vset.pattern.permute.xlu0 %v6807_v37 }
0x373e   :  { %3354 = vperm.xlu0 %6617, %v3293_v45  }
0x3740   :  { %6615 = vset.pattern.permute.xlu1 %v6806_v35 }
0x3741   :  { %3336 = vperm.xlu1 %6615, %v3293_v45  }
0x3742   :  { %6620 = vset.pattern.permute.xlu0 %v6805_v33 }
0x3743   :  { %3331 = vperm.xlu0 %6620, %v3292_v60  }
0x3745   :  { %3345 = vperm.xlu1 %6615, %v3294_v57  }
0x3747   :  { %6623 = vset.pattern.permute.xlu0 %v6807_v37 }
0x3748   :  { %3367 = vperm.xlu0 %6623, %v3292_v60  }
0x3749   :  { %6618 = vset.pattern.permute.xlu1 %v6807_v37 }
0x374a   :  { %3358 = vperm.xlu1 %6618, %v3287_v41  }
0x374c   :  { %6625 = vset.pattern.permute.xlu0 %v6801_v17 }
0x374e   :  { %6619 = vset.pattern.permute.xlu1 %v6801_v17 }
0x374f   :  { %3313 = vperm.xlu1 %6619, %v3292_v60  }
0x3753   :  { %6621 = vset.pattern.permute.xlu1 %v6806_v35 }
0x3754   :  { %3349 = vperm.xlu1 %6621, %v3292_v60  }
0x3758   :  { %6622 = vset.pattern.permute.xlu1 %v6807_v37 }
0x3759   :  { %3363 = vperm.xlu1 %6622, %v3294_v57  }
0x375d   :  { %6624 = vset.pattern.permute.xlu1 %v6801_v17 }
0x37ae   :  { %v3298_v61 = vpop.permute.xlu1 %3297  ;;  %v3303_v5 = vpop.permute.xlu0 %3302 }
0x37af   :  { %v3305_v25 = vsel %vm65_vm6, %v3298_v61, %v3303_v5 }
0x37b2   :  { %v3309_v1 = vpop.permute.xlu1 %3308 }
0x37b3   :  { %v3319_v8 = vpop.permute.xlu0 %3318 }
0x37b7   :  { %v3323_v3 = vpop.permute.xlu1 %3322 }
0x37b8   :  { %v3341_v12 = vpop.permute.xlu0 %3340  ;;  %v3325_v20 = vsel %vm70_vm5, %v3319_v8, %v3323_v3 }
0x37b9   :  { %v3371_v36 = vmul.f32 %v3325_v20, %v3305_v25 }
0x37bb   :  { %v3328_v6 = vpop.permute.xlu1 %3327 }
0x37bd   :  { %v3355_v14 = vpop.permute.xlu0 %3354 }
0x37c0   :  { %v3337_v10 = vpop.permute.xlu1 %3336 }
0x37c1   :  { %v3343_v39 = vsel %vm75_vm8, %v3337_v10, %v3341_v12 }
0x37c2   :  { %v3332_v16 = vpop.permute.xlu0 %3331 }
0x37c3   :  { %v3334_v21 = vsel %vm70_vm5, %v3328_v6, %v3332_v16 }
0x37c4   :  { %v3346_v11 = vpop.permute.xlu1 %3345  ;;  %v3374_v49 = vmul.f32 %v3334_v21, %v3305_v25 }
0x37c7   :  { %v3368_v26 = vpop.permute.xlu0 %3367 }
0x37c9   :  { %v3359_v13 = vpop.permute.xlu1 %3358 }
0x37ca   :  { %v3361_v23 = vsel %vm80_vm7, %v3355_v14, %v3359_v13 }
0x37cb   :  { %v3377_v52 = vmul.f32 %v3361_v23, %v3343_v39 }
0x37ce   :  { %v3314_v15 = vpop.permute.xlu1 %3313 }
0x37cf   :  { %v3316_v19 = vsel %vm65_vm6, %v3309_v1, %v3314_v15 }
0x37d0   :  { %v3372_v27 = vmul.f32 %v3334_v21, %v3316_v19  ;;  %v3375_v29 = vmul.f32 %v3325_v20, %v3316_v19 }
0x37d2   :  { %v3373_v45 = vsub.f32 %v3371_v36, %v3372_v27  ;;  %v3376_v46 = vadd.f32 %v3375_v29, %v3374_v49 }
0x37d3   :  { %v3350_v18 = vpop.permute.xlu1 %3349 }
0x37d4   :  { %v3352_v24 = vsel %vm75_vm8, %v3346_v11, %v3350_v18 }
0x37d5   :  { %v3381_v54 = vmul.f32 %v3361_v23, %v3352_v24 }
0x37d8   :  { %v3364_v34 = vpop.permute.xlu1 %3363 }
0x37d9   :  { %v3370_v50 = vsel %vm80_vm7, %v3364_v34, %v3368_v26 }
0x37da   :  { %v3378_v30 = vmul.f32 %v3370_v50, %v3352_v24  ;;  %v3380_v41 = vmul.f32 %v3370_v50, %v3343_v39 }
0x37dc   :  { %v3379_v57 = vsub.f32 %v3377_v52, %v3378_v30  ;;  %v3382_v58 = vadd.f32 %v3381_v54, %v3380_v41 }
0x37de   :  { %v3383_v60 = vmul.f32 %v3379_v57, %v3373_v45  ;;  %v3384_v61 = vmul.f32 %v3382_v58, %v3376_v46  ;;  %v3386_v1 = vmul.f32 %v3382_v58, %v3373_v45  ;;  %v3387_v3 = vmul.f32 %v3379_v57, %v3376_v46 }
0x37e0   :  { %v3388_v5 = vadd.f32 %v3387_v3, %v3386_v1  ;;  %v3385_v6 = vsub.f32 %v3383_v60, %v3384_v61 }
0x37e2   :  { %3390 = vrot.lane.b32.xlu1 %v3388_v5, %s6811_s14 }
0x3854   :  { %v3391_v8 = vpop.permute.xlu1 %3390 }
0x3855   :  { %v3393_v10 = vsel %vm235_vm10, %v3385_v6, %v3391_v8 }
0x3856   :  { %5870 = vmatmul.mubr.msk.f32.vlgmr.msra.gmra.mrb[30].mxu0 %vm237_vm11, %v3393_v10 }
0x3857   :  { %6361 = vmatpush3.bf16.msra.mxu0 %v7075_v28  ;;  %5915 = vmatprep.mubr.msk.f32.mxu0 %vm6809_vm9, %v6810_v9 }
0x3858   :  { %6362 = vmatprep.subr.bf16.mxu0 %v6808_v38 }
0x385b   :  { %6364 = vmatpush3.bf16.msra.mxu0 %v7081_v32 }
0x385c   :  { %6365 = vmatprep.subr.bf16.mxu0 %v6808_v38 }
0x3929   :  { %v3463_v11 = vpop.f32.mrb[30].mxu0 }
0x392a   :  { %v3467_v12 = vmul.f32 %v3463_v11, %v3463_v11  ;;  %v5871_v13 = vpop.f32.mrb[31].mxu0 }
0x392c   :  { %5905 = vmatmul.mubr.f32.vlgmr.msra.gmra.mrb[10].mxu1 %v3467_v12 }
0x392d   :  { %6385 = vmatpush3.bf16.msra.mxu1 %v6940_v22  ;;  %5980 = vmatprep.mubr.msk.f32.mxu1 %vm6809_vm9, %v6810_v9 }
0x392e   :  { %6386 = vmatprep.subr.bf16.mxu1 %v6808_v38 }
0x3931   :  { %6388 = vmatpush3.bf16.msra.mxu1 %v6950_v31 }
0x3932   :  { %6389 = vmatprep.subr.bf16.mxu1 %v6808_v38 }
0x3935   :  { %6391 = vmatpush3.bf16.msra.mxu1 %v6959_v43 }
0x3936   :  { %6392 = vmatprep.subr.bf16.mxu1 %v6808_v38 }
0x3939   :  { %6394 = vmatpush3.bf16.msra.mxu1 %v6971_v53 }
0x393a   :  { %6395 = vmatprep.subr.bf16.mxu1 %v6808_v38 }
0x393d   :  { %6397 = vmatpush3.bf16.msra.mxu1 %v6981_v56 }
0x393e   :  { %6398 = vmatprep.subr.bf16.mxu1 %v6808_v38 }
0x3941   :  { %6400 = vmatpush3.bf16.msra.mxu1 %v6991_v59 }
0x3942   :  { %6401 = vmatprep.subr.bf16.mxu1 %v6808_v38 }
0x3945   :  { %6403 = vmatpush3.bf16.msra.mxu1 %v7001_v63 }
0x3946   :  { %6404 = vmatprep.subr.bf16.mxu1 %v6808_v38 }
0x3949   :  { %6406 = vmatpush3.bf16.msra.mxu1 %v7016_v7 }
0x394a   :  { %6431 = vmatprep.subr.bf16.mxu1 %v6808_v38 }
0x39ff   :  { %v3534_v14 = vpop.f32.mrb[10].mxu1 }
0x3a00   :  { %v3538_v15 = vsub.f32 0.0, %v3534_v14  ;;  %v5906_v16 = vpop.f32.mrb[11].mxu1 }
0x3a02   :  { %v3539_v18 = vmul.f32 1.442695, %v3538_v15 }
0x3a04   :  { %6761 = vpow2.f32 %v3539_v18 }
0x3a0e   :  { %v6762_v19 = vpop.eup %6761 }
0x3a0f   :  { %v3541_v20 = vadd.f32 1.0, %v6762_v19 }
0x3a11   :  { %6763 = vrcp.f32 %v3541_v20 }
0x3a1b   :  { %v6764_v21 = vpop.eup %6763 }
0x3a1c   :  { %v3543_v23 = vmul.f32 %v6764_v21, %v3541_v20 }
0x3a1e   :  { %v3544_v24 = vsub.f32 2.0, %v3543_v23 }
0x3a20   :  { %v3545_v25 = vmul.f32 %v6764_v21, %v3544_v24 }
0x3a22   :  { %v3546_v26 = vmul.f32 2.0, %v3545_v25  ;;  %v3548_v36 = vmul.f32 %v3545_v25, %v7620_v47 }
0x3a24   :  { %v5179_v27 = vadd.f32 -1.0, %v3546_v26 }
0x3a26   :  { %3550 = vrot.lane.b32.xlu0 %v5179_v27, %s6804_s30 }
0x3a98   :  { %v3551_v29 = vpop.permute.xlu0 %3550 }
0x3a99   :  { %v3553_v34 = vmul.f32 %v3551_v29, %v3545_v25 }
0x3a9b   :  { %3555 = vrot.lane.b32.xlu1 %v3553_v34, %s6804_s30 }
0x3b0d   :  { %v3556_v39 = vpop.permute.xlu1 %3555 }
0x3b0e   :  { %v7752_v49 = vadd.f32 %v3556_v39, %v3548_v36 }
0x3b10   :  { %6765 = vtanh.f32 %v7752_v49 }
0x3b1a   :  { %v6766_v50 = vpop.eup %6765 }
0x3b1b   :  { %3561 = vrot.lane.b32.xlu0 %v6766_v50, %s6812_s3 }
0x3b8d   :  { %v3562_v52 = vpop.permute.xlu0 %3561 }
0x3b8e   :  { %v3564_v54 = vmul.f32 %v3562_v52, %v3545_v25 }
0x3b90   :  { %v3565_v30 = vmul.f32 %v3564_v54, %v3564_v54  ;;  %3567 = vrot.lane.b32.xlu1 %v3564_v54, %s6802_s28  ;;  %vm3595_vm14 = vcmp.ge.f32.partialorder %v3564_v54, 0.0 }
0x3b92   :  { %3571 = vrot.lane.b32.xlu0 %v3565_v30, %s6803_s29 }
0x3c02   :  { %v3568_v41 = vpop.permute.xlu1 %3567 }
0x3c04   :  { %v3572_v45 = vpop.permute.xlu0 %3571 }
0x3c05   :  { %v3574_v46 = vsel %vm88_vm0, %v3568_v41, %v3572_v45 }
0x3c06   :  { %v3575_v47 = vmul.f32 %v3574_v46, %v3574_v46 }
0x3c08   :  { %v3576_v57 = vadd.f32 1.0, %v3575_v47 }
0x3c0a   :  { %6767 = vrsqrt.f32 %v3576_v57 }
0x3c14   :  { %v6768_v58 = vpop.eup %6767 }
0x3c15   :  { %v3580_v60 = vsub.f32 1.0, %v6768_v58  ;;  %v3578_v3 = vadd.f32 1.0, %v6768_v58 }
0x3c17   :  { %v3581_v61 = vmul.f32 0.5, %v3580_v60  ;;  %v3579_v5 = vmul.f32 0.5, %v3578_v3 }
0x3c19   :  { %v3582_v1 = vmax.f32 %v3581_v61, 0.0 }
0x3c1b   :  { %3584 = vrot.lane.b32.xlu1 %v3582_v1, %s6800_s27 }
0x3c8d   :  { %v3585_v6 = vpop.permute.xlu1 %3584 }
0x3c8e   :  { %v3587_v8 = vsel %vm102_vm1, %v3579_v5, %v3585_v6 }
0x3c8f   :  { %6769 = vrsqrt.f32 %v3587_v8  ;;  %vm3590_vm12 = vcmp.eq.f32.partialorder %v3587_v8, inf  ;;  %v3593_v12 = vand.u32 2147483648, %v3587_v8  ;;  %vm3592_vm13 = vcmp.eq.f32.partialorder %v3587_v8, 0.0 }
0x3c99   :  { %v6770_v10 = vpop.eup %6769 }
0x3c9a   :  { %v3589_v11 = vmul.f32 %v6770_v10, %v3587_v8 }
0x3c9c   :  { %v3591_v13 = vsel %vm3590_vm12, %v3587_v8, %v3589_v11 }
0x3c9d   :  { %v3594_v14 = vsel %vm3592_vm13, %v3593_v12, %v3591_v13 }
0x3c9e   :  { %3598 = vrot.lane.b32.xlu0 %v3594_v14, %s6799_s26  ;;  %v3596_v15 = vsub.f32 0.0, %v3594_v14 }
0x3ca0   :  { %3602 = vrot.lane.b32.xlu1 %v3596_v15, %s6799_s26 }
0x3ca4   :  { %3618 = vrot.lane.b32.xlu1 %v3594_v14, %s6802_s28 }
0x3d10   :  { %v3599_v16 = vpop.permute.xlu0 %3598 }
0x3d12   :  { %v3603_v18 = vpop.permute.xlu1 %3602 }
0x3d13   :  { %v3605_v19 = vsel %vm3595_vm14, %v3599_v16, %v3603_v18 }
0x3d14   :  { %3607 = vrot.lane.b32.xlu0 %v3605_v19, %s6802_s28 }
0x3d16   :  { %v3619_v34 = vpop.permute.xlu1 %3618 }
0x3d18   :  { %3614 = vrot.lane.b32.xlu0 %v3594_v14, %s6804_s30 }
0x3d86   :  { %v3608_v20 = vpop.permute.xlu0 %3607 }
0x3d87   :  { %v3610_v21 = vsub.f32 %v3594_v14, %v3608_v20  ;;  %v3612_v23 = vadd.f32 %v3608_v20, %v3594_v14 }
0x3d89   :  { %v3611_v24 = vmul.f32 0.70710677, %v3610_v21  ;;  %v3613_v25 = vmul.f32 0.70710677, %v3612_v23 }
0x3d8a   :  { %v3615_v26 = vpop.permute.xlu0 %3614 }
0x3d8b   :  { %v3617_v27 = vmul.f32 %v3615_v26, %v3611_v24  ;;  %v3623_v29 = vmul.f32 %v3615_v26, %v3613_v25  ;;  %v3624_v36 = vmul.f32 %v3619_v34, %v3613_v25  ;;  %v3621_v39 = vmul.f32 %v3619_v34, %v3611_v24 }
0x3d8d   :  { %3627 = vperm.xlu1 %6624, %v3623_v29   ;;  %3632 = vperm.xlu0 %6625, %v3617_v27   ;;  %v3622_v50 = vsub.f32 0.0, %v3621_v39 }
0x3d91   :  { %6626 = vset.pattern.permute.xlu0 %v6805_v33  ;;  %3638 = vperm.xlu1 %6624, %v3624_v36  }
0x3d92   :  { %3648 = vperm.xlu0 %6626, %v3623_v29  }
0x3d95   :  { %6627 = vset.pattern.permute.xlu1 %v6805_v33 }
0x3d96   :  { %6629 = vset.pattern.permute.xlu0 %v6806_v35  ;;  %3652 = vperm.xlu1 %6627, %v3617_v27  }
0x3d97   :  { %3670 = vperm.xlu0 %6629, %v3617_v27  }
0x3d9a   :  { %3657 = vperm.xlu1 %6627, %v3624_v36  }
0x3d9b   :  { %6630 = vset.pattern.permute.xlu0 %v6807_v37 }
0x3d9c   :  { %3684 = vperm.xlu0 %6630, %v3623_v29  }
0x3d9e   :  { %6628 = vset.pattern.permute.xlu1 %v6806_v35 }
0x3d9f   :  { %3666 = vperm.xlu1 %6628, %v3623_v29  }
0x3da0   :  { %6633 = vset.pattern.permute.xlu0 %v6805_v33 }
0x3da1   :  { %3661 = vperm.xlu0 %6633, %v3622_v50  }
0x3da3   :  { %3675 = vperm.xlu1 %6628, %v3624_v36  }
0x3da5   :  { %6636 = vset.pattern.permute.xlu0 %v6807_v37 }
0x3da6   :  { %3697 = vperm.xlu0 %6636, %v3622_v50  }
0x3da7   :  { %6631 = vset.pattern.permute.xlu1 %v6807_v37 }
0x3da8   :  { %3688 = vperm.xlu1 %6631, %v3617_v27  }
0x3daa   :  { %6637 = vset.pattern.permute.xlu0 %v6801_v17 }
0x3dac   :  { %6632 = vset.pattern.permute.xlu1 %v6801_v17 }
0x3dad   :  { %3643 = vperm.xlu1 %6632, %v3622_v50  }
0x3db1   :  { %6634 = vset.pattern.permute.xlu1 %v6806_v35 }
0x3db2   :  { %3679 = vperm.xlu1 %6634, %v3622_v50  }
0x3db6   :  { %6635 = vset.pattern.permute.xlu1 %v6807_v37 }
0x3db7   :  { %3693 = vperm.xlu1 %6635, %v3624_v36  }
0x3dbb   :  { %6638 = vset.pattern.permute.xlu1 %v6801_v17 }
0x3e0c   :  { %v3628_v52 = vpop.permute.xlu1 %3627  ;;  %v3633_v41 = vpop.permute.xlu0 %3632 }
0x3e0d   :  { %v3635_v13 = vsel %vm65_vm6, %v3628_v52, %v3633_v41 }
0x3e10   :  { %v3639_v54 = vpop.permute.xlu1 %3638 }
0x3e11   :  { %v3649_v46 = vpop.permute.xlu0 %3648 }
0x3e15   :  { %v3653_v30 = vpop.permute.xlu1 %3652 }
0x3e16   :  { %v3671_v58 = vpop.permute.xlu0 %3670  ;;  %v3655_v8 = vsel %vm70_vm5, %v3649_v46, %v3653_v30 }
0x3e17   :  { %v3701_v19 = vmul.f32 %v3655_v8, %v3635_v13 }
0x3e19   :  { %v3658_v45 = vpop.permute.xlu1 %3657 }
0x3e1b   :  { %v3685_v61 = vpop.permute.xlu0 %3684 }
0x3e1e   :  { %v3667_v47 = vpop.permute.xlu1 %3666 }
0x3e1f   :  { %v3673_v20 = vsel %vm75_vm8, %v3667_v47, %v3671_v58 }
0x3e20   :  { %v3662_v3 = vpop.permute.xlu0 %3661 }
0x3e21   :  { %v3664_v10 = vsel %vm70_vm5, %v3658_v45, %v3662_v3 }
0x3e22   :  { %v3676_v57 = vpop.permute.xlu1 %3675  ;;  %v3704_v21 = vmul.f32 %v3664_v10, %v3635_v13 }
0x3e25   :  { %v3698_v14 = vpop.permute.xlu0 %3697 }
0x3e27   :  { %v3689_v60 = vpop.permute.xlu1 %3688 }
0x3e28   :  { %v3691_v11 = vsel %vm80_vm7, %v3685_v61, %v3689_v60  ;;  %v5182_v61 = vld [vmem:[%s8056_s0 + $0x30] sm:$0xff] }
0x3e29   :  { %v3707_v24 = vmul.f32 %v3691_v11, %v3673_v20 }
0x3e2c   :  { %v3644_v1 = vpop.permute.xlu1 %3643 }
0x3e2d   :  { %v3646_v6 = vsel %vm65_vm6, %v3639_v54, %v3644_v1 }
0x3e2e   :  { %v3702_v15 = vmul.f32 %v3664_v10, %v3646_v6  ;;  %v3705_v16 = vmul.f32 %v3655_v8, %v3646_v6 }
0x3e30   :  { %v3703_v29 = vsub.f32 %v3701_v19, %v3702_v15  ;;  %v3706_v34 = vadd.f32 %v3705_v16, %v3704_v21 }
0x3e31   :  { %v3680_v5 = vpop.permute.xlu1 %3679 }
0x3e32   :  { %v3682_v12 = vsel %vm75_vm8, %v3676_v57, %v3680_v5 }
0x3e33   :  { %v3711_v25 = vmul.f32 %v3691_v11, %v3682_v12 }
0x3e36   :  { %v3694_v18 = vpop.permute.xlu1 %3693 }
0x3e37   :  { %v3700_v23 = vsel %vm80_vm7, %v3694_v18, %v3698_v14 }
0x3e38   :  { %v3708_v26 = vmul.f32 %v3700_v23, %v3682_v12  ;;  %v3710_v27 = vmul.f32 %v3700_v23, %v3673_v20 }
0x3e3a   :  { %v3709_v36 = vsub.f32 %v3707_v24, %v3708_v26  ;;  %v3712_v39 = vadd.f32 %v3711_v25, %v3710_v27 }
0x3e3c   :  { %v3713_v50 = vmul.f32 %v3709_v36, %v3703_v29  ;;  %v3714_v52 = vmul.f32 %v3712_v39, %v3706_v34  ;;  %v3716_v54 = vmul.f32 %v3712_v39, %v3703_v29  ;;  %v3717_v30 = vmul.f32 %v3709_v36, %v3706_v34 }
0x3e3e   :  { %v3718_v41 = vadd.f32 %v3717_v30, %v3716_v54  ;;  %v3715_v45 = vsub.f32 %v3713_v50, %v3714_v52 }
0x3e40   :  { %3720 = vrot.lane.b32.xlu1 %v3718_v41, %s6811_s14 }
0x3eb2   :  { %v3721_v46 = vpop.permute.xlu1 %3720 }
0x3eb3   :  { %v3723_v47 = vsel %vm235_vm10, %v3715_v45, %v3721_v46 }
0x3eb4   :  { %5916 = vmatmul.mubr.msk.f32.vlgmr.msra.gmra.mrb[32].mxu0 %vm237_vm11, %v3723_v47 }
0x3eb5   :  { %6367 = vmatpush3.bf16.msra.mxu0 %v7109_v40  ;;  %5934 = vmatprep.mubr.msk.f32.mxu0 %vm6809_vm9, %v6810_v9 }
0x3eb6   :  { %6368 = vmatprep.subr.bf16.mxu0 %v6808_v38 }
0x3eb9   :  { %6370 = vmatpush3.bf16.msra.mxu0 %v7120_v48 }
0x3eba   :  { %6371 = vmatprep.subr.bf16.mxu0 %v6808_v38 }
0x3ebd   :  { %6373 = vmatpush3.bf16.msra.mxu0 %v7132_v51 }
0x3ebe   :  { %6374 = vmatprep.subr.bf16.mxu0 %v6808_v38 }
0x3ec1   :  { %6376 = vmatpush3.bf16.msra.mxu0 %v7143_v55 }
0x3ec2   :  { %6377 = vmatprep.subr.bf16.mxu0 %v6808_v38 }
0x3f87   :  { %v3793_v57 = vpop.f32.mrb[32].mxu0 }
0x3f88   :  { %v3797_v58 = vmul.f32 %v3793_v57, %v3793_v57  ;;  %v5917_v60 = vpop.f32.mrb[33].mxu0 }
0x3f8a   :  { %5935 = vmatmul.mubr.msk.f32.vlgmr.msra.gmra.mrb[34].mxu0 %vm642_vm15, %v3797_v58 }
0x3f8b   :  { %6379 = vmatpush3.bf16.msra.mxu0 %v6889_v42  ;;  %5945 = vmatprep.mubr.msk.f32.mxu0 %vm6809_vm9, %v6810_v9 }
0x3f8c   :  { %6380 = vmatprep.subr.bf16.mxu0 %v6808_v38 }
0x3f8f   :  { %6382 = vmatpush3.bf16.msra.mxu0 %v6895_v44 }
0x3f90   :  { %6407 = vmatprep.subr.bf16.mxu0 %v6808_v38 }
0x405d   :  { %v3867_v1 = vpop.f32.mrb[34].mxu0 }
0x405e   :  { %v3873_v3 = vadd.f32 %v5182_v61, %v3867_v1  ;;  %v5936_v5 = vpop.f32.mrb[35].mxu0 }
0x4060   :  { %v3874_v6 = vmul.f32 %v3873_v3, %v3873_v3  ;;  %vm3900_vm4 = vcmp.ge.f32.partialorder %v3873_v3, 0.0 }
0x4062   :  { %3876 = vrot.lane.b32.xlu0 %v3874_v6, %s6799_s26 }
0x40d4   :  { %v3877_v8 = vpop.permute.xlu0 %3876 }
0x40d5   :  { %v3879_v10 = vsel %vm88_vm0, %v3873_v3, %v3877_v8 }
0x40d6   :  { %v3880_v11 = vmul.f32 %v3879_v10, %v3879_v10 }
0x40d8   :  { %v3881_v12 = vadd.f32 1.0, %v3880_v11 }
0x40da   :  { %6771 = vrsqrt.f32 %v3881_v12 }
0x40e4   :  { %v6772_v13 = vpop.eup %6771 }
0x40e5   :  { %v3885_v14 = vsub.f32 1.0, %v6772_v13  ;;  %v3883_v18 = vadd.f32 1.0, %v6772_v13 }
0x40e7   :  { %v3886_v15 = vmul.f32 0.5, %v3885_v14  ;;  %v3884_v19 = vmul.f32 0.5, %v3883_v18 }
0x40e9   :  { %v3887_v16 = vmax.f32 %v3886_v15, 0.0 }
0x40eb   :  { %3889 = vrot.lane.b32.xlu1 %v3887_v16, %s6800_s27 }
0x415d   :  { %v3890_v20 = vpop.permute.xlu1 %3889 }
0x415e   :  { %v3892_v21 = vsel %vm102_vm1, %v3884_v19, %v3890_v20 }
0x415f   :  { %6773 = vrsqrt.f32 %v3892_v21  ;;  %vm3895_vm2 = vcmp.eq.f32.partialorder %v3892_v21, inf  ;;  %v3898_v25 = vand.u32 2147483648, %v3892_v21  ;;  %vm3897_vm3 = vcmp.eq.f32.partialorder %v3892_v21, 0.0 }
0x4169   :  { %v6774_v23 = vpop.eup %6773 }
0x416a   :  { %v3894_v24 = vmul.f32 %v6774_v23, %v3892_v21 }
0x416c   :  { %v3896_v26 = vsel %vm3895_vm2, %v3892_v21, %v3894_v24 }
0x416d   :  { %v3899_v27 = vsel %vm3897_vm3, %v3898_v25, %v3896_v26 }
0x416e   :  { %3903 = vrot.lane.b32.xlu0 %v3899_v27, %s6803_s29  ;;  %v3901_v29 = vsub.f32 0.0, %v3899_v27 }
0x4170   :  { %3907 = vrot.lane.b32.xlu1 %v3901_v29, %s6803_s29 }
0x4172   :  { %3919 = vrot.lane.b32.xlu0 %v3899_v27, %s6802_s28 }
0x4174   :  { %3915 = vrot.lane.b32.xlu1 %v3899_v27, %s6804_s30 }
0x41e0   :  { %v3904_v34 = vpop.permute.xlu0 %3903 }
0x41e2   :  { %v3908_v36 = vpop.permute.xlu1 %3907 }
0x41e3   :  { %v3910_v39 = vsel %vm3900_vm4, %v3904_v34, %v3908_v36 }
0x41e4   :  { %v3911_v50 = vsub.f32 %v3899_v27, %v3910_v39  ;;  %v3913_v52 = vadd.f32 %v3910_v39, %v3899_v27  ;;  %v3920_v47 = vpop.permute.xlu0 %3919 }
0x41e6   :  { %v3912_v54 = vmul.f32 0.70710677, %v3911_v50  ;;  %v3914_v30 = vmul.f32 0.70710677, %v3913_v52  ;;  %v3916_v41 = vpop.permute.xlu1 %3915 }
0x41e8   :  { %v3918_v45 = vmul.f32 %v3916_v41, %v3912_v54  ;;  %v3924_v46 = vmul.f32 %v3916_v41, %v3914_v30  ;;  %v3925_v57 = vmul.f32 %v3920_v47, %v3914_v30  ;;  %v3922_v58 = vmul.f32 %v3920_v47, %v3912_v54 }
0x41ea   :  { %3928 = vperm.xlu0 %6637, %v3924_v46   ;;  %3933 = vperm.xlu1 %6638, %v3918_v45   ;;  %v3923_v60 = vsub.f32 0.0, %v3922_v58 }
0x41ee   :  { %6640 = vset.pattern.permute.xlu0 %v6805_v33  ;;  %3939 = vperm.xlu1 %6638, %v3925_v57  }
0x41ef   :  { %3953 = vperm.xlu0 %6640, %v3918_v45  }
0x41f2   :  { %6639 = vset.pattern.permute.xlu1 %v6805_v33 }
0x41f3   :  { %6641 = vset.pattern.permute.xlu0 %v6806_v35  ;;  %3949 = vperm.xlu1 %6639, %v3924_v46  }
0x41f4   :  { %3967 = vperm.xlu0 %6641, %v3924_v46  }
0x41f7   :  { %3958 = vperm.xlu1 %6639, %v3925_v57  }
0x41f8   :  { %6644 = vset.pattern.permute.xlu0 %v6801_v17 }
0x41f9   :  { %3944 = vperm.xlu0 %6644, %v3923_v60  }
0x41fb   :  { %6642 = vset.pattern.permute.xlu1 %v6806_v35 }
0x41fc   :  { %3971 = vperm.xlu1 %6642, %v3918_v45  }
0x41fd   :  { %6646 = vset.pattern.permute.xlu0 %v6806_v35 }
0x41fe   :  { %3980 = vperm.xlu0 %6646, %v3923_v60  }
0x4200   :  { %3976 = vperm.xlu1 %6642, %v3925_v57  }
0x4202   :  { %6647 = vset.pattern.permute.xlu0 %v6807_v37 }
0x4203   :  { %3989 = vperm.xlu0 %6647, %v3918_v45  }
0x4204   :  { %6643 = vset.pattern.permute.xlu1 %v6807_v37 }
0x4205   :  { %3985 = vperm.xlu1 %6643, %v3924_v46  }
0x4207   :  { %6649 = vset.pattern.permute.xlu0 %v6801_v17 }
0x4209   :  { %6645 = vset.pattern.permute.xlu1 %v6805_v33 }
0x420a   :  { %3962 = vperm.xlu1 %6645, %v3923_v60  }
0x420e   :  { %6648 = vset.pattern.permute.xlu1 %v6807_v37 }
0x420f   :  { %3994 = vperm.xlu1 %6648, %v3925_v57  }
0x4213   :  { %3998 = vperm.xlu1 %6648, %v3923_v60  }
0x4217   :  { %6650 = vset.pattern.permute.xlu1 %v6801_v17 }
0x4269   :  { %v3934_v61 = vpop.permute.xlu1 %3933  ;;  %v3929_v3 = vpop.permute.xlu0 %3928 }
0x426a   :  { %v3936_v24 = vsel %vm65_vm6, %v3929_v3, %v3934_v61 }
0x426d   :  { %v3940_v1 = vpop.permute.xlu1 %3939 }
0x426e   :  { %v3954_v8 = vpop.permute.xlu0 %3953 }
0x4272   :  { %v3950_v5 = vpop.permute.xlu1 %3949 }
0x4273   :  { %v3968_v11 = vpop.permute.xlu0 %3967  ;;  %v3956_v19 = vsel %vm70_vm5, %v3950_v5, %v3954_v8 }
0x4274   :  { %v4002_v26 = vmul.f32 %v3956_v19, %v3936_v24 }
0x4276   :  { %v3959_v6 = vpop.permute.xlu1 %3958 }
0x4278   :  { %v3945_v13 = vpop.permute.xlu0 %3944 }
0x4279   :  { %v3947_v21 = vsel %vm65_vm6, %v3940_v1, %v3945_v13 }
0x427a   :  { %v4006_v36 = vmul.f32 %v3956_v19, %v3947_v21 }
0x427b   :  { %v3972_v10 = vpop.permute.xlu1 %3971 }
0x427c   :  { %v3974_v39 = vsel %vm75_vm8, %v3968_v11, %v3972_v10 }
0x427d   :  { %v3981_v16 = vpop.permute.xlu0 %3980 }
0x427f   :  { %v3977_v12 = vpop.permute.xlu1 %3976 }
0x4280   :  { %v3983_v50 = vsel %vm75_vm8, %v3977_v12, %v3981_v16 }
0x4282   :  { %v3990_v23 = vpop.permute.xlu0 %3989 }
0x4284   :  { %v3986_v14 = vpop.permute.xlu1 %3985 }
0x4285   :  { %v3992_v25 = vsel %vm80_vm7, %v3986_v14, %v3990_v23 }
0x4286   :  { %v4008_v54 = vmul.f32 %v3992_v25, %v3974_v39  ;;  %v4012_v30 = vmul.f32 %v3992_v25, %v3983_v50 }
0x4289   :  { %v3963_v15 = vpop.permute.xlu1 %3962 }
0x428a   :  { %v3965_v20 = vsel %vm70_vm5, %v3959_v6, %v3963_v15 }
0x428b   :  { %v4003_v27 = vmul.f32 %v3965_v20, %v3947_v21  ;;  %v4005_v29 = vmul.f32 %v3965_v20, %v3936_v24 }
0x428d   :  { %v4004_v46 = vsub.f32 %v4002_v26, %v4003_v27  ;;  %v4007_v47 = vadd.f32 %v4006_v36, %v4005_v29 }
0x428e   :  { %v3995_v18 = vpop.permute.xlu1 %3994 }
0x4292   :  { %v3999_v34 = vpop.permute.xlu1 %3998 }
0x4293   :  { %v4001_v52 = vsel %vm80_vm7, %v3995_v18, %v3999_v34 }
0x4294   :  { %v4009_v41 = vmul.f32 %v4001_v52, %v3983_v50  ;;  %v4011_v45 = vmul.f32 %v4001_v52, %v3974_v39 }
0x4296   :  { %v4010_v57 = vsub.f32 %v4008_v54, %v4009_v41  ;;  %v4013_v58 = vadd.f32 %v4012_v30, %v4011_v45 }
0x4298   :  { %v4014_v60 = vmul.f32 %v4010_v57, %v4004_v46  ;;  %v4015_v61 = vmul.f32 %v4013_v58, %v4007_v47  ;;  %v4017_v1 = vmul.f32 %v4013_v58, %v4004_v46  ;;  %v4018_v3 = vmul.f32 %v4010_v57, %v4007_v47 }
0x429a   :  { %v4019_v5 = vadd.f32 %v4018_v3, %v4017_v1  ;;  %v4016_v6 = vsub.f32 %v4014_v60, %v4015_v61 }
0x429c   :  { %4021 = vrot.lane.b32.xlu0 %v4019_v5, %s6811_s14 }
0x430e   :  { %v4022_v8 = vpop.permute.xlu0 %4021 }
0x430f   :  { %v4024_v10 = vsel %vm235_vm10, %v4016_v6, %v4022_v8 }
0x4310   :  { %5946 = vmatmul.mubr.msk.f32.vlgmr.msra.gmra.mrb[36].mxu0 %vm237_vm11, %v4024_v10 }
0x4311   :  { %6409 = vmatpush3.bf16.msra.mxu0 %v7075_v28  ;;  %5991 = vmatprep.mubr.msk.f32.mxu0 %vm6809_vm9, %v6810_v9 }
0x4312   :  { %6410 = vmatprep.subr.bf16.mxu0 %v6808_v38 }
0x4315   :  { %6412 = vmatpush3.bf16.msra.mxu0 %v7081_v32 }
0x4316   :  { %6413 = vmatprep.subr.bf16.mxu0 %v6808_v38 }
0x43e3   :  { %v4094_v11 = vpop.f32.mrb[36].mxu0 }
0x43e4   :  { %v4098_v12 = vmul.f32 %v4094_v11, %v4094_v11  ;;  %v5947_v13 = vpop.f32.mrb[37].mxu0 }
0x43e6   :  { %5981 = vmatmul.mubr.f32.vlgmr.msra.gmra.mrb[12].mxu1 %v4098_v12 }
0x43e7   :  { %6433 = vmatpush3.bf16.msra.mxu1 %v6940_v22  ;;  %6056 = vmatprep.mubr.msk.f32.mxu1 %vm6809_vm9, %v6810_v9 }
0x43e8   :  { %6434 = vmatprep.subr.bf16.mxu1 %v6808_v38 }
0x43eb   :  { %6436 = vmatpush3.bf16.msra.mxu1 %v6950_v31 }
0x43ec   :  { %6437 = vmatprep.subr.bf16.mxu1 %v6808_v38 }
0x43ef   :  { %6439 = vmatpush3.bf16.msra.mxu1 %v6959_v43 }
0x43f0   :  { %6440 = vmatprep.subr.bf16.mxu1 %v6808_v38 }
0x43f3   :  { %6442 = vmatpush3.bf16.msra.mxu1 %v6971_v53 }
0x43f4   :  { %6443 = vmatprep.subr.bf16.mxu1 %v6808_v38 }
0x43f7   :  { %6445 = vmatpush3.bf16.msra.mxu1 %v6981_v56 }
0x43f8   :  { %6446 = vmatprep.subr.bf16.mxu1 %v6808_v38 }
0x43fb   :  { %6448 = vmatpush3.bf16.msra.mxu1 %v6991_v59 }
0x43fc   :  { %6449 = vmatprep.subr.bf16.mxu1 %v6808_v38 }
0x43ff   :  { %6451 = vmatpush3.bf16.msra.mxu1 %v7001_v63 }
0x4400   :  { %6452 = vmatprep.subr.bf16.mxu1 %v6808_v38 }
0x4403   :  { %6454 = vmatpush3.bf16.msra.mxu1 %v7016_v7 }
0x44b9   :  { %v4165_v22 = vpop.f32.mrb[12].mxu1 }
0x44ba   :  { %v4169_v31 = vsub.f32 0.0, %v4165_v22  ;;  %v5982_v43 = vpop.f32.mrb[13].mxu1 }
0x44bc   :  { %v4170_v53 = vmul.f32 1.442695, %v4169_v31 }
0x44be   :  { %6775 = vpow2.f32 %v4170_v53 }
0x44c8   :  { %v6776_v14 = vpop.eup %6775 }
0x44c9   :  { %v4172_v15 = vadd.f32 1.0, %v6776_v14 }
0x44cb   :  { %6777 = vrcp.f32 %v4172_v15 }
0x44d5   :  { %v6778_v56 = vpop.eup %6777 }
0x44d6   :  { %v4174_v16 = vmul.f32 %v6778_v56, %v4172_v15 }
0x44d8   :  { %v4175_v18 = vsub.f32 2.0, %v4174_v16 }
0x44da   :  { %v4176_v59 = vmul.f32 %v6778_v56, %v4175_v18 }
0x44dc   :  { %v4177_v19 = vmul.f32 2.0, %v4176_v59  ;;  %v4179_v7 = vmul.f32 %v4176_v59, %v7752_v49 }
0x44de   :  { %v5184_v20 = vadd.f32 -1.0, %v4177_v19 }
0x44e0   :  { %4181 = vrot.lane.b32.xlu1 %v5184_v20, %s6804_s30 }
0x4552   :  { %v4182_v63 = vpop.permute.xlu1 %4181 }
0x4553   :  { %v4184_v21 = vmul.f32 %v4182_v63, %v4176_v59 }
0x4555   :  { %4186 = vrot.lane.b32.xlu0 %v4184_v21, %s6804_s30 }
0x45c7   :  { %v4187_v23 = vpop.permute.xlu0 %4186 }
0x45c8   :  { %v7883_v24 = vadd.f32 %v4187_v23, %v4179_v7 }
0x45ca   :  { %6779 = vtanh.f32 %v7883_v24 }
0x45d4   :  { %v6780_v25 = vpop.eup %6779 }
0x45d5   :  { %4192 = vrot.lane.b32.xlu1 %v6780_v25, %s6812_s3 }
0x4647   :  { %v4193_v26 = vpop.permute.xlu1 %4192 }
0x4648   :  { %v4195_v27 = vmul.f32 %v4193_v26, %v4176_v59 }
0x464a   :  { %v4196_v29 = vmul.f32 %v4195_v27, %v4195_v27  ;;  %4198 = vrot.lane.b32.xlu0 %v4195_v27, %s6802_s28  ;;  %vm4226_vm14 = vcmp.ge.f32.partialorder %v4195_v27, 0.0 }
0x464c   :  { %4202 = vrot.lane.b32.xlu1 %v4196_v29, %s6803_s29 }
0x46bc   :  { %v4199_v34 = vpop.permute.xlu0 %4198 }
0x46be   :  { %v4203_v36 = vpop.permute.xlu1 %4202 }
0x46bf   :  { %v4205_v39 = vsel %vm88_vm0, %v4199_v34, %v4203_v36 }
0x46c0   :  { %v4206_v49 = vmul.f32 %v4205_v39, %v4205_v39 }
0x46c2   :  { %v4207_v50 = vadd.f32 1.0, %v4206_v49 }
0x46c4   :  { %6781 = vrsqrt.f32 %v4207_v50 }
0x46ce   :  { %v6782_v52 = vpop.eup %6781 }
0x46cf   :  { %v4211_v54 = vsub.f32 1.0, %v6782_v52  ;;  %v4209_v45 = vadd.f32 1.0, %v6782_v52 }
0x46d1   :  { %v4212_v30 = vmul.f32 0.5, %v4211_v54  ;;  %v4210_v46 = vmul.f32 0.5, %v4209_v45 }
0x46d3   :  { %v4213_v41 = vmax.f32 %v4212_v30, 0.0 }
0x46d5   :  { %4215 = vrot.lane.b32.xlu0 %v4213_v41, %s6800_s27 }
0x4747   :  { %v4216_v47 = vpop.permute.xlu0 %4215 }
0x4748   :  { %v4218_v57 = vsel %vm102_vm1, %v4210_v46, %v4216_v47 }
0x4749   :  { %6783 = vrsqrt.f32 %v4218_v57  ;;  %vm4221_vm12 = vcmp.eq.f32.partialorder %v4218_v57, inf  ;;  %v4224_v61 = vand.u32 2147483648, %v4218_v57  ;;  %vm4223_vm13 = vcmp.eq.f32.partialorder %v4218_v57, 0.0 }
0x4753   :  { %v6784_v58 = vpop.eup %6783 }
0x4754   :  { %v4220_v60 = vmul.f32 %v6784_v58, %v4218_v57 }
0x4756   :  { %v4222_v1 = vsel %vm4221_vm12, %v4218_v57, %v4220_v60 }
0x4757   :  { %v4225_v3 = vsel %vm4223_vm13, %v4224_v61, %v4222_v1 }
0x4758   :  { %4229 = vrot.lane.b32.xlu1 %v4225_v3, %s6799_s26  ;;  %v4227_v5 = vsub.f32 0.0, %v4225_v3 }
0x475a   :  { %4233 = vrot.lane.b32.xlu0 %v4227_v5, %s6799_s26 }
0x475e   :  { %4249 = vrot.lane.b32.xlu0 %v4225_v3, %s6802_s28 }
0x47ca   :  { %v4230_v6 = vpop.permute.xlu1 %4229 }
0x47cc   :  { %v4234_v8 = vpop.permute.xlu0 %4233 }
0x47cd   :  { %v4236_v10 = vsel %vm4226_vm14, %v4230_v6, %v4234_v8 }
0x47ce   :  { %4238 = vrot.lane.b32.xlu1 %v4236_v10, %s6802_s28 }
0x47d0   :  { %v4250_v15 = vpop.permute.xlu0 %4249 }
0x47d2   :  { %4245 = vrot.lane.b32.xlu1 %v4225_v3, %s6804_s30 }
0x4840   :  { %v4239_v11 = vpop.permute.xlu1 %4238 }
0x4841   :  { %v4241_v12 = vsub.f32 %v4225_v3, %v4239_v11  ;;  %v4243_v13 = vadd.f32 %v4239_v11, %v4225_v3 }
0x4843   :  { %v4242_v22 = vmul.f32 0.70710677, %v4241_v12  ;;  %v4244_v31 = vmul.f32 0.70710677, %v4243_v13 }
0x4844   :  { %v4246_v43 = vpop.permute.xlu1 %4245 }
0x4845   :  { %v4248_v53 = vmul.f32 %v4246_v43, %v4242_v22  ;;  %v4254_v14 = vmul.f32 %v4246_v43, %v4244_v31  ;;  %v4255_v56 = vmul.f32 %v4250_v15, %v4244_v31  ;;  %v4252_v16 = vmul.f32 %v4250_v15, %v4242_v22 }
0x4847   :  { %4258 = vperm.xlu0 %6649, %v4254_v14   ;;  %4263 = vperm.xlu1 %6650, %v4248_v53   ;;  %v4253_v18 = vsub.f32 0.0, %v4252_v16 }
0x484b   :  { %6652 = vset.pattern.permute.xlu0 %v6805_v33  ;;  %4269 = vperm.xlu1 %6650, %v4255_v56  }
0x484c   :  { %4283 = vperm.xlu0 %6652, %v4248_v53  }
0x484f   :  { %6651 = vset.pattern.permute.xlu1 %v6805_v33 }
0x4850   :  { %6653 = vset.pattern.permute.xlu0 %v6806_v35  ;;  %4279 = vperm.xlu1 %6651, %v4254_v14  }
0x4851   :  { %4297 = vperm.xlu0 %6653, %v4254_v14  }
0x4854   :  { %4288 = vperm.xlu1 %6651, %v4255_v56  }
0x4855   :  { %6656 = vset.pattern.permute.xlu0 %v6801_v17 }
0x4856   :  { %4274 = vperm.xlu0 %6656, %v4253_v18  }
0x4858   :  { %6654 = vset.pattern.permute.xlu1 %v6806_v35 }
0x4859   :  { %4301 = vperm.xlu1 %6654, %v4248_v53  }
0x485a   :  { %6658 = vset.pattern.permute.xlu0 %v6806_v35 }
0x485b   :  { %4310 = vperm.xlu0 %6658, %v4253_v18  }
0x485d   :  { %4306 = vperm.xlu1 %6654, %v4255_v56  }
0x485f   :  { %6659 = vset.pattern.permute.xlu0 %v6807_v37 }
0x4860   :  { %4319 = vperm.xlu0 %6659, %v4248_v53  }
0x4861   :  { %6655 = vset.pattern.permute.xlu1 %v6807_v37 }
0x4862   :  { %4315 = vperm.xlu1 %6655, %v4254_v14  }
0x4864   :  { %6662 = vset.pattern.permute.xlu0 %v6801_v17 }
0x4866   :  { %6657 = vset.pattern.permute.xlu1 %v6805_v33 }
0x4867   :  { %4292 = vperm.xlu1 %6657, %v4253_v18  }
0x486b   :  { %6660 = vset.pattern.permute.xlu1 %v6807_v37 }
0x486c   :  { %4324 = vperm.xlu1 %6660, %v4255_v56  }
0x4870   :  { %4328 = vperm.xlu1 %6660, %v4253_v18  }
0x4874   :  { %6661 = vset.pattern.permute.xlu1 %v6801_v17 }
0x48c6   :  { %v4264_v59 = vpop.permute.xlu1 %4263  ;;  %v4259_v20 = vpop.permute.xlu0 %4258 }
0x48c7   :  { %v4266_v30 = vsel %vm65_vm6, %v4259_v20, %v4264_v59  ;;  %v5187_v20 = vld [vmem:[%s8056_s0 + $0x38] sm:$0xff] }
0x48ca   :  { %v4270_v19 = vpop.permute.xlu1 %4269 }
0x48cb   :  { %v4284_v7 = vpop.permute.xlu0 %4283 }
0x48cf   :  { %v4280_v63 = vpop.permute.xlu1 %4279 }
0x48d0   :  { %v4298_v25 = vpop.permute.xlu0 %4297  ;;  %v4286_v49 = vsel %vm70_vm5, %v4280_v63, %v4284_v7 }
0x48d1   :  { %v4332_v45 = vmul.f32 %v4286_v49, %v4266_v30 }
0x48d3   :  { %v4289_v21 = vpop.permute.xlu1 %4288 }
0x48d5   :  { %v4275_v27 = vpop.permute.xlu0 %4274 }
0x48d6   :  { %v4277_v52 = vsel %vm65_vm6, %v4270_v19, %v4275_v27 }
0x48d7   :  { %v4336_v58 = vmul.f32 %v4286_v49, %v4277_v52 }
0x48d8   :  { %v4302_v23 = vpop.permute.xlu1 %4301 }
0x48d9   :  { %v4304_v60 = vsel %vm75_vm8, %v4298_v25, %v4302_v23 }
0x48da   :  { %v4311_v36 = vpop.permute.xlu0 %4310 }
0x48dc   :  { %v4307_v26 = vpop.permute.xlu1 %4306 }
0x48dd   :  { %v4313_v61 = vsel %vm75_vm8, %v4307_v26, %v4311_v36 }
0x48df   :  { %v4320_v54 = vpop.permute.xlu0 %4319 }
0x48e1   :  { %v4316_v29 = vpop.permute.xlu1 %4315 }
0x48e2   :  { %v4322_v41 = vsel %vm80_vm7, %v4316_v29, %v4320_v54 }
0x48e3   :  { %v4338_v3 = vmul.f32 %v4322_v41, %v4304_v60  ;;  %v4342_v5 = vmul.f32 %v4322_v41, %v4313_v61 }
0x48e6   :  { %v4293_v34 = vpop.permute.xlu1 %4292 }
0x48e7   :  { %v4295_v50 = vsel %vm70_vm5, %v4289_v21, %v4293_v34 }
0x48e8   :  { %v4333_v46 = vmul.f32 %v4295_v50, %v4277_v52  ;;  %v4335_v47 = vmul.f32 %v4295_v50, %v4266_v30 }
0x48ea   :  { %v4334_v10 = vsub.f32 %v4332_v45, %v4333_v46  ;;  %v4337_v11 = vadd.f32 %v4336_v58, %v4335_v47 }
0x48eb   :  { %v4325_v39 = vpop.permute.xlu1 %4324 }
0x48ef   :  { %v4329_v57 = vpop.permute.xlu1 %4328 }
0x48f0   :  { %v4331_v1 = vsel %vm80_vm7, %v4325_v39, %v4329_v57 }
0x48f1   :  { %v4339_v6 = vmul.f32 %v4331_v1, %v4313_v61  ;;  %v4341_v8 = vmul.f32 %v4331_v1, %v4304_v60 }
0x48f3   :  { %v4340_v12 = vsub.f32 %v4338_v3, %v4339_v6  ;;  %v4343_v13 = vadd.f32 %v4342_v5, %v4341_v8 }
0x48f5   :  { %v4344_v22 = vmul.f32 %v4340_v12, %v4334_v10  ;;  %v4345_v31 = vmul.f32 %v4343_v13, %v4337_v11  ;;  %v4347_v43 = vmul.f32 %v4343_v13, %v4334_v10  ;;  %v4348_v53 = vmul.f32 %v4340_v12, %v4337_v11 }
0x48f7   :  { %v4349_v14 = vadd.f32 %v4348_v53, %v4347_v43  ;;  %v4346_v15 = vsub.f32 %v4344_v22, %v4345_v31 }
0x48f9   :  { %4351 = vrot.lane.b32.xlu0 %v4349_v14, %s6811_s14 }
0x496b   :  { %v4352_v56 = vpop.permute.xlu0 %4351 }
0x496c   :  { %v4354_v16 = vsel %vm235_vm10, %v4346_v15, %v4352_v56 }
0x496d   :  { %5992 = vmatmul.mubr.msk.f32.vlgmr.msra.gmra.mrb[38].mxu0 %vm237_vm11, %v4354_v16 }
0x496e   :  { %6415 = vmatpush3.bf16.msra.mxu0 %v7109_v40  ;;  %6010 = vmatprep.mubr.msk.f32.mxu0 %vm6809_vm9, %v6810_v9 }
0x496f   :  { %6416 = vmatprep.subr.bf16.mxu0 %v6808_v38 }
0x4972   :  { %6418 = vmatpush3.bf16.msra.mxu0 %v7120_v48 }
0x4973   :  { %6419 = vmatprep.subr.bf16.mxu0 %v6808_v38 }
0x4976   :  { %6421 = vmatpush3.bf16.msra.mxu0 %v7132_v51 }
0x4977   :  { %6422 = vmatprep.subr.bf16.mxu0 %v6808_v38 }
0x497a   :  { %6424 = vmatpush3.bf16.msra.mxu0 %v7143_v55 }
0x497b   :  { %6425 = vmatprep.subr.bf16.mxu0 %v6808_v38 }
0x4a40   :  { %v4424_v18 = vpop.f32.mrb[38].mxu0 }
0x4a41   :  { %v4428_v59 = vmul.f32 %v4424_v18, %v4424_v18  ;;  %v5993_v19 = vpop.f32.mrb[39].mxu0 }
0x4a43   :  { %6011 = vmatmul.mubr.msk.f32.vlgmr.msra.gmra.mrb[40].mxu0 %vm642_vm15, %v4428_v59 }
0x4a44   :  { %6427 = vmatpush3.bf16.msra.mxu0 %v6889_v42  ;;  %6021 = vmatprep.mubr.msk.f32.mxu0 %vm6809_vm9, %v6810_v9 }
0x4a45   :  { %6428 = vmatprep.subr.bf16.mxu0 %v6808_v38 }
0x4a48   :  { %6430 = vmatpush3.bf16.msra.mxu0 %v6895_v44 }
0x4a49   :  { %6455 = vmatprep.subr.bf16.mxu0 %v6808_v38 }
0x4b16   :  { %v4498_v63 = vpop.f32.mrb[40].mxu0 }
0x4b17   :  { %v4504_v21 = vadd.f32 %v5187_v20, %v4498_v63  ;;  %v6012_v7 = vpop.f32.mrb[41].mxu0 }
0x4b19   :  { %v4505_v23 = vmul.f32 %v4504_v21, %v4504_v21  ;;  %vm4531_vm4 = vcmp.ge.f32.partialorder %v4504_v21, 0.0 }
0x4b1b   :  { %4507 = vrot.lane.b32.xlu1 %v4505_v23, %s6799_s26 }
0x4b8d   :  { %v4508_v42 = vpop.permute.xlu1 %4507 }
0x4b8e   :  { %v4510_v25 = vsel %vm88_vm0, %v4504_v21, %v4508_v42 }
0x4b8f   :  { %v4511_v26 = vmul.f32 %v4510_v25, %v4510_v25 }
0x4b91   :  { %v4512_v27 = vadd.f32 1.0, %v4511_v26 }
0x4b93   :  { %6785 = vrsqrt.f32 %v4512_v27 }
0x4b9d   :  { %v6786_v29 = vpop.eup %6785 }
0x4b9e   :  { %v4516_v44 = vsub.f32 1.0, %v6786_v29  ;;  %v4514_v39 = vadd.f32 1.0, %v6786_v29 }
0x4ba0   :  { %v4517_v34 = vmul.f32 0.5, %v4516_v44  ;;  %v4515_v49 = vmul.f32 0.5, %v4514_v39 }
0x4ba2   :  { %v4518_v36 = vmax.f32 %v4517_v34, 0.0 }
0x4ba4   :  { %4520 = vrot.lane.b32.xlu0 %v4518_v36, %s6800_s27 }
0x4c16   :  { %v4521_v50 = vpop.permute.xlu0 %4520 }
0x4c17   :  { %v4523_v52 = vsel %vm102_vm1, %v4515_v49, %v4521_v50 }
0x4c18   :  { %6787 = vrsqrt.f32 %v4523_v52  ;;  %vm4526_vm2 = vcmp.eq.f32.partialorder %v4523_v52, inf  ;;  %v4529_v41 = vand.u32 2147483648, %v4523_v52  ;;  %vm4528_vm3 = vcmp.eq.f32.partialorder %v4523_v52, 0.0 }
0x4c22   :  { %v6788_v54 = vpop.eup %6787 }
0x4c23   :  { %v4525_v30 = vmul.f32 %v6788_v54, %v4523_v52 }
0x4c25   :  { %v4527_v45 = vsel %vm4526_vm2, %v4523_v52, %v4525_v30 }
0x4c26   :  { %v4530_v46 = vsel %vm4528_vm3, %v4529_v41, %v4527_v45 }
0x4c27   :  { %4534 = vrot.lane.b32.xlu1 %v4530_v46, %s6803_s29  ;;  %v4532_v47 = vsub.f32 0.0, %v4530_v46 }
0x4c29   :  { %4538 = vrot.lane.b32.xlu0 %v4532_v47, %s6803_s29 }
0x4c2b   :  { %4550 = vrot.lane.b32.xlu1 %v4530_v46, %s6802_s28 }
0x4c2d   :  { %4546 = vrot.lane.b32.xlu0 %v4530_v46, %s6804_s30 }
0x4c99   :  { %v4535_v57 = vpop.permute.xlu1 %4534 }
0x4c9b   :  { %v4539_v58 = vpop.permute.xlu0 %4538 }
0x4c9c   :  { %v4541_v60 = vsel %vm4531_vm4, %v4535_v57, %v4539_v58 }
0x4c9d   :  { %v4542_v61 = vsub.f32 %v4530_v46, %v4541_v60  ;;  %v4544_v1 = vadd.f32 %v4541_v60, %v4530_v46  ;;  %v4551_v11 = vpop.permute.xlu1 %4550 }
0x4c9f   :  { %v4543_v3 = vmul.f32 0.70710677, %v4542_v61  ;;  %v4545_v5 = vmul.f32 0.70710677, %v4544_v1  ;;  %v4547_v6 = vpop.permute.xlu0 %4546 }
0x4ca1   :  { %v4549_v8 = vmul.f32 %v4547_v6, %v4543_v3  ;;  %v4555_v10 = vmul.f32 %v4547_v6, %v4545_v5  ;;  %v4556_v12 = vmul.f32 %v4551_v11, %v4545_v5  ;;  %v4553_v13 = vmul.f32 %v4551_v11, %v4543_v3 }
0x4ca3   :  { %4559 = vperm.xlu1 %6661, %v4555_v10   ;;  %4564 = vperm.xlu0 %6662, %v4549_v8   ;;  %v4554_v22 = vsub.f32 0.0, %v4553_v13 }
0x4ca7   :  { %4570 = vperm.xlu1 %6661, %v4556_v12   ;;  %6663 = vset.pattern.permute.xlu0 %v6805_v33 }
0x4ca8   :  { %4580 = vperm.xlu0 %6663, %v4555_v10  }
0x4cab   :  { %6664 = vset.pattern.permute.xlu1 %v6805_v33 }
0x4cac   :  { %4584 = vperm.xlu1 %6664, %v4549_v8   ;;  %6666 = vset.pattern.permute.xlu0 %v6806_v35 }
0x4cad   :  { %4602 = vperm.xlu0 %6666, %v4549_v8  }
0x4cb0   :  { %4589 = vperm.xlu1 %6664, %v4556_v12  }
0x4cb1   :  { %6667 = vset.pattern.permute.xlu0 %v6807_v37 }
0x4cb2   :  { %4616 = vperm.xlu0 %6667, %v4555_v10  }
0x4cb4   :  { %6665 = vset.pattern.permute.xlu1 %v6806_v35 }
0x4cb5   :  { %4598 = vperm.xlu1 %6665, %v4555_v10  }
0x4cb6   :  { %6670 = vset.pattern.permute.xlu0 %v6805_v33 }
0x4cb7   :  { %4593 = vperm.xlu0 %6670, %v4554_v22  }
0x4cb9   :  { %4607 = vperm.xlu1 %6665, %v4556_v12  }
0x4cbb   :  { %6673 = vset.pattern.permute.xlu0 %v6807_v37 }
0x4cbc   :  { %4629 = vperm.xlu0 %6673, %v4554_v22  }
0x4cbd   :  { %6668 = vset.pattern.permute.xlu1 %v6807_v37 }
0x4cbe   :  { %4620 = vperm.xlu1 %6668, %v4549_v8  }
0x4cc0   :  { %6675 = vset.pattern.permute.xlu0 %v6801_v17 }
0x4cc2   :  { %6669 = vset.pattern.permute.xlu1 %v6801_v17 }
0x4cc3   :  { %4575 = vperm.xlu1 %6669, %v4554_v22  }
0x4cc7   :  { %6671 = vset.pattern.permute.xlu1 %v6806_v35 }
0x4cc8   :  { %4611 = vperm.xlu1 %6671, %v4554_v22  }
0x4ccc   :  { %6672 = vset.pattern.permute.xlu1 %v6807_v37 }
0x4ccd   :  { %4625 = vperm.xlu1 %6672, %v4556_v12  }
0x4cd1   :  { %6674 = vset.pattern.permute.xlu1 %v6801_v17 }
0x4d22   :  { %v4560_v31 = vpop.permute.xlu1 %4559  ;;  %v4565_v14 = vpop.permute.xlu0 %4564 }
0x4d23   :  { %v4567_v29 = vsel %vm65_vm6, %v4560_v31, %v4565_v14 }
0x4d26   :  { %v4571_v43 = vpop.permute.xlu1 %4570 }
0x4d27   :  { %v4581_v56 = vpop.permute.xlu0 %4580 }
0x4d2b   :  { %v4585_v53 = vpop.permute.xlu1 %4584 }
0x4d2c   :  { %v4603_v59 = vpop.permute.xlu0 %4602  ;;  %v4587_v42 = vsel %vm70_vm5, %v4581_v56, %v4585_v53 }
0x4d2d   :  { %v4633_v49 = vmul.f32 %v4587_v42, %v4567_v29 }
0x4d2f   :  { %v4590_v15 = vpop.permute.xlu1 %4589 }
0x4d31   :  { %v4617_v20 = vpop.permute.xlu0 %4616 }
0x4d34   :  { %v4599_v16 = vpop.permute.xlu1 %4598 }
0x4d35   :  { %v4605_v50 = vsel %vm75_vm8, %v4599_v16, %v4603_v59 }
0x4d36   :  { %v4594_v21 = vpop.permute.xlu0 %4593 }
0x4d37   :  { %v4596_v25 = vsel %vm70_vm5, %v4590_v15, %v4594_v21 }
0x4d38   :  { %v4608_v18 = vpop.permute.xlu1 %4607  ;;  %v4636_v52 = vmul.f32 %v4596_v25, %v4567_v29 }
0x4d3b   :  { %v4630_v44 = vpop.permute.xlu0 %4629 }
0x4d3d   :  { %v4621_v19 = vpop.permute.xlu1 %4620 }
0x4d3e   :  { %v4623_v26 = vsel %vm80_vm7, %v4617_v20, %v4621_v19 }
0x4d3f   :  { %v4639_v30 = vmul.f32 %v4623_v26, %v4605_v50 }
0x4d42   :  { %v4576_v63 = vpop.permute.xlu1 %4575 }
0x4d43   :  { %v4578_v23 = vsel %vm65_vm6, %v4571_v43, %v4576_v63 }
0x4d44   :  { %v4634_v34 = vmul.f32 %v4596_v25, %v4578_v23  ;;  %v4637_v36 = vmul.f32 %v4587_v42, %v4578_v23 }
0x4d46   :  { %v4635_v47 = vsub.f32 %v4633_v49, %v4634_v34  ;;  %v4638_v57 = vadd.f32 %v4637_v36, %v4636_v52 }
0x4d47   :  { %v4612_v7 = vpop.permute.xlu1 %4611 }
0x4d48   :  { %v4614_v27 = vsel %vm75_vm8, %v4608_v18, %v4612_v7 }
0x4d49   :  { %v4643_v41 = vmul.f32 %v4623_v26, %v4614_v27 }
0x4d4c   :  { %v4626_v39 = vpop.permute.xlu1 %4625 }
0x4d4d   :  { %v4632_v54 = vsel %vm80_vm7, %v4626_v39, %v4630_v44 }
0x4d4e   :  { %v4640_v45 = vmul.f32 %v4632_v54, %v4614_v27  ;;  %v4642_v46 = vmul.f32 %v4632_v54, %v4605_v50 }
0x4d50   :  { %v4641_v58 = vsub.f32 %v4639_v30, %v4640_v45  ;;  %v4644_v60 = vadd.f32 %v4643_v41, %v4642_v46 }
0x4d52   :  { %v4645_v61 = vmul.f32 %v4641_v58, %v4635_v47  ;;  %v4646_v1 = vmul.f32 %v4644_v60, %v4638_v57  ;;  %v4648_v3 = vmul.f32 %v4644_v60, %v4635_v47  ;;  %v4649_v5 = vmul.f32 %v4641_v58, %v4638_v57 }
0x4d54   :  { %v4650_v6 = vadd.f32 %v4649_v5, %v4648_v3  ;;  %v4647_v8 = vsub.f32 %v4645_v61, %v4646_v1 }
0x4d56   :  { %4652 = vrot.lane.b32.xlu1 %v4650_v6, %s6811_s14 }
0x4dc8   :  { %v4653_v10 = vpop.permute.xlu1 %4652 }
0x4dc9   :  { %v4655_v11 = vsel %vm235_vm10, %v4647_v8, %v4653_v10 }
0x4dca   :  { %6022 = vmatmul.mubr.msk.f32.vlgmr.msra.gmra.mrb[42].mxu0 %vm237_vm11, %v4655_v11 }
0x4dcb   :  { %6457 = vmatpush3.bf16.msra.mxu0 %v7075_v28  ;;  %6067 = vmatprep.mubr.msk.f32.mxu0 %vm6809_vm9, %v6810_v9 }
0x4dcc   :  { %6458 = vmatprep.subr.bf16.mxu0 %v6808_v38 }
0x4dcf   :  { %6460 = vmatpush3.bf16.msra.mxu0 %v7081_v32 }
0x4dd0   :  { %6461 = vmatprep.subr.bf16.mxu0 %v6808_v38 }
0x4e9d   :  { %v4725_v12 = vpop.f32.mrb[42].mxu0 }
0x4e9e   :  { %v4729_v13 = vmul.f32 %v4725_v12, %v4725_v12  ;;  %v6023_v22 = vpop.f32.mrb[43].mxu0 }
0x4ea0   :  { %6057 = vmatmul.mubr.f32.vlgmr.msra.gmra.mrb[14].mxu1 %v4729_v13 }
0x4f73   :  { %v4796_v31 = vpop.f32.mrb[14].mxu1 }
0x4f74   :  { %v4800_v43 = vsub.f32 0.0, %v4796_v31  ;;  %v6058_v53 = vpop.f32.mrb[15].mxu1 }
0x4f76   :  { %v4801_v14 = vmul.f32 1.442695, %v4800_v43 }
0x4f78   :  { %6789 = vpow2.f32 %v4801_v14 }
0x4f82   :  { %v6790_v15 = vpop.eup %6789 }
0x4f83   :  { %v4803_v28 = vadd.f32 1.0, %v6790_v15 }
0x4f85   :  { %6791 = vrcp.f32 %v4803_v28 }
0x4f8f   :  { %v6792_v56 = vpop.eup %6791 }
0x4f90   :  { %v4805_v16 = vmul.f32 %v6792_v56, %v4803_v28 }
0x4f92   :  { %v4806_v18 = vsub.f32 2.0, %v4805_v16 }
0x4f94   :  { %v4807_v59 = vmul.f32 %v6792_v56, %v4806_v18 }
0x4f96   :  { %v4808_v19 = vmul.f32 2.0, %v4807_v59  ;;  %v4810_v21 = vmul.f32 %v4807_v59, %v7883_v24 }
0x4f98   :  { %v5189_v32 = vadd.f32 -1.0, %v4808_v19 }
0x4f9a   :  { %4812 = vrot.lane.b32.xlu0 %v5189_v32, %s6804_s30 }
0x500c   :  { %v4813_v20 = vpop.permute.xlu0 %4812 }
0x500d   :  { %v4815_v63 = vmul.f32 %v4813_v20, %v4807_v59 }
0x500f   :  { %4817 = vrot.lane.b32.xlu1 %v4815_v63, %s6804_s30 }
0x5081   :  { %v4818_v7 = vpop.permute.xlu1 %4817 }
0x5082   :  { %v4820_v23 = vadd.f32 %v4818_v7, %v4810_v21 }
0x5084   :  { %6793 = vtanh.f32 %v4820_v23 }
0x508e   :  { %v6794_v42 = vpop.eup %6793 }
0x508f   :  { %4823 = vrot.lane.b32.xlu0 %v6794_v42, %s6812_s3 }
0x5101   :  { %v4824_v25 = vpop.permute.xlu0 %4823 }
0x5102   :  { %v4826_v26 = vmul.f32 %v4824_v25, %v4807_v59 }
0x5104   :  { %v4827_v27 = vmul.f32 %v4826_v26, %v4826_v26  ;;  %4829 = vrot.lane.b32.xlu1 %v4826_v26, %s6802_s28  ;;  %vm4857_vm13 = vcmp.ge.f32.partialorder %v4826_v26, 0.0 }
0x5106   :  { %4833 = vrot.lane.b32.xlu0 %v4827_v27, %s6803_s29 }
0x5176   :  { %v4830_v29 = vpop.permute.xlu1 %4829 }
0x5178   :  { %v4834_v44 = vpop.permute.xlu0 %4833 }
0x5179   :  { %v4836_v34 = vsel %vm88_vm0, %v4830_v29, %v4834_v44 }
0x517a   :  { %v4837_v36 = vmul.f32 %v4836_v34, %v4836_v34 }
0x517c   :  { %v4838_v39 = vadd.f32 1.0, %v4837_v36 }
0x517e   :  { %6795 = vrsqrt.f32 %v4838_v39 }
0x5188   :  { %v6796_v24 = vpop.eup %6795 }
0x5189   :  { %v4842_v49 = vsub.f32 1.0, %v6796_v24  ;;  %v4840_v54 = vadd.f32 1.0, %v6796_v24 }
0x518b   :  { %v4843_v50 = vmul.f32 0.5, %v4842_v49  ;;  %v4841_v30 = vmul.f32 0.5, %v4840_v54 }
0x518d   :  { %v4844_v52 = vmax.f32 %v4843_v50, 0.0 }
0x518f   :  { %4846 = vrot.lane.b32.xlu1 %v4844_v52, %s6800_s27 }
0x5201   :  { %v4847_v41 = vpop.permute.xlu1 %4846 }
0x5202   :  { %v4849_v45 = vsel %vm102_vm1, %v4841_v30, %v4847_v41  ;;  %vm5147_vm1 = vcmask 7168  }
0x5203   :  { %6797 = vrsqrt.f32 %v4849_v45  ;;  %vm4852_vm12 = vcmp.eq.f32.partialorder %v4849_v45, inf  ;;  %v4855_v57 = vand.u32 2147483648, %v4849_v45  ;;  %vm4854_vm0 = vcmp.eq.f32.partialorder %v4849_v45, 0.0 }
0x520d   :  { %v6798_v46 = vpop.eup %6797 }
0x520e   :  { %v4851_v47 = vmul.f32 %v6798_v46, %v4849_v45 }
0x5210   :  { %v4853_v58 = vsel %vm4852_vm12, %v4849_v45, %v4851_v47 }
0x5211   :  { %v4856_v60 = vsel %vm4854_vm0, %v4855_v57, %v4853_v58 }
0x5212   :  { %4860 = vrot.lane.b32.xlu0 %v4856_v60, %s6799_s26  ;;  %v4858_v61 = vsub.f32 0.0, %v4856_v60 }
0x5214   :  { %4864 = vrot.lane.b32.xlu1 %v4858_v61, %s6799_s26 }
0x5218   :  { %4880 = vrot.lane.b32.xlu1 %v4856_v60, %s6802_s28 }
0x5284   :  { %v4861_v1 = vpop.permute.xlu0 %4860 }
0x5286   :  { %v4865_v3 = vpop.permute.xlu1 %4864 }
0x5287   :  { %v4867_v5 = vsel %vm4857_vm13, %v4861_v1, %v4865_v3  ;;  %v12_v3 = vstv %s8062_s6 }
0x5288   :  { %4869 = vrot.lane.b32.xlu0 %v4867_v5, %s6802_s28  ;;  %13 = vst [vmem:[#allocation2] sm:$0x1] %v12_v3 }
0x528a   :  { %v4881_v43 = vpop.permute.xlu1 %4880 }
0x528c   :  { %4876 = vrot.lane.b32.xlu0 %v4856_v60, %s6804_s30 }
0x52fa   :  { %v4870_v6 = vpop.permute.xlu0 %4869 }
0x52fb   :  { %v4872_v8 = vsub.f32 %v4856_v60, %v4870_v6  ;;  %v4874_v10 = vadd.f32 %v4870_v6, %v4856_v60 }
0x52fd   :  { %v4873_v11 = vmul.f32 0.70710677, %v4872_v8  ;;  %v4875_v12 = vmul.f32 0.70710677, %v4874_v10 }
0x52fe   :  { %v4877_v13 = vpop.permute.xlu0 %4876 }
0x52ff   :  { %v4879_v22 = vmul.f32 %v4877_v13, %v4873_v11  ;;  %v4885_v31 = vmul.f32 %v4877_v13, %v4875_v12  ;;  %v4886_v53 = vmul.f32 %v4881_v43, %v4875_v12  ;;  %v4883_v14 = vmul.f32 %v4881_v43, %v4873_v11 }
0x5301   :  { %4889 = vperm.xlu1 %6674, %v4885_v31   ;;  %4894 = vperm.xlu0 %6675, %v4879_v22   ;;  %v4884_v15 = vsub.f32 0.0, %v4883_v14 }
0x5305   :  { %6676 = vset.pattern.permute.xlu0 %v6805_v33  ;;  %4900 = vperm.xlu1 %6674, %v4886_v53  }
0x5306   :  { %4910 = vperm.xlu0 %6676, %v4885_v31  }
0x5309   :  { %6677 = vset.pattern.permute.xlu1 %v6805_v33 }
0x530a   :  { %6679 = vset.pattern.permute.xlu0 %v6806_v35  ;;  %4914 = vperm.xlu1 %6677, %v4879_v22  }
0x530b   :  { %4932 = vperm.xlu0 %6679, %v4879_v22  }
0x530e   :  { %4919 = vperm.xlu1 %6677, %v4886_v53  }
0x530f   :  { %6680 = vset.pattern.permute.xlu0 %v6807_v37 }
0x5310   :  { %4946 = vperm.xlu0 %6680, %v4885_v31  }
0x5312   :  { %6678 = vset.pattern.permute.xlu1 %v6806_v35 }
0x5313   :  { %4928 = vperm.xlu1 %6678, %v4885_v31  }
0x5314   :  { %6683 = vset.pattern.permute.xlu0 %v6805_v33 }
0x5315   :  { %4923 = vperm.xlu0 %6683, %v4884_v15  }
0x5317   :  { %4937 = vperm.xlu1 %6678, %v4886_v53  }
0x5319   :  { %6686 = vset.pattern.permute.xlu0 %v6807_v37 }
0x531a   :  { %4959 = vperm.xlu0 %6686, %v4884_v15  }
0x531b   :  { %6681 = vset.pattern.permute.xlu1 %v6807_v37 }
0x531c   :  { %4950 = vperm.xlu1 %6681, %v4879_v22  }
0x5320   :  { %6682 = vset.pattern.permute.xlu1 %v6801_v17 }
0x5321   :  { %4905 = vperm.xlu1 %6682, %v4884_v15  }
0x5325   :  { %6684 = vset.pattern.permute.xlu1 %v6806_v35 }
0x5326   :  { %4941 = vperm.xlu1 %6684, %v4884_v15  }
0x532a   :  { %6685 = vset.pattern.permute.xlu1 %v6807_v37 }
0x532b   :  { %4955 = vperm.xlu1 %6685, %v4886_v53  }
0x5380   :  { %v4890_v28 = vpop.permute.xlu1 %4889  ;;  %v4895_v16 = vpop.permute.xlu0 %4894 }
0x5381   :  { %v4897_v27 = vsel %vm65_vm6, %v4890_v28, %v4895_v16 }
0x5384   :  { %v4901_v56 = vpop.permute.xlu1 %4900 }
0x5385   :  { %v4911_v59 = vpop.permute.xlu0 %4910 }
0x5389   :  { %v4915_v33 = vpop.permute.xlu1 %4914 }
0x538a   :  { %v4933_v20 = vpop.permute.xlu0 %4932  ;;  %v4917_v37 = vsel %vm70_vm5, %v4911_v59, %v4915_v33 }
0x538b   :  { %v4963_v39 = vmul.f32 %v4917_v37, %v4897_v27 }
0x538d   :  { %v4920_v18 = vpop.permute.xlu1 %4919 }
0x538f   :  { %v4947_v21 = vpop.permute.xlu0 %4946 }
0x5392   :  { %v4929_v19 = vpop.permute.xlu1 %4928 }
0x5393   :  { %v4935_v24 = vsel %vm75_vm8, %v4929_v19, %v4933_v20 }
0x5394   :  { %v4924_v17 = vpop.permute.xlu0 %4923 }
0x5395   :  { %v4926_v42 = vsel %vm70_vm5, %v4920_v18, %v4924_v17 }
0x5396   :  { %v4938_v32 = vpop.permute.xlu1 %4937  ;;  %v4966_v49 = vmul.f32 %v4926_v42, %v4897_v27 }
0x5399   :  { %v4960_v29 = vpop.permute.xlu0 %4959 }
0x539b   :  { %v4951_v63 = vpop.permute.xlu1 %4950 }
0x539c   :  { %v4953_v25 = vsel %vm80_vm7, %v4947_v21, %v4951_v63 }
0x539d   :  { %v4969_v50 = vmul.f32 %v4953_v25, %v4935_v24 }
0x53a0   :  { %v4906_v7 = vpop.permute.xlu1 %4905 }
0x53a1   :  { %v4908_v35 = vsel %vm65_vm6, %v4901_v56, %v4906_v7 }
0x53a2   :  { %v4964_v44 = vmul.f32 %v4926_v42, %v4908_v35  ;;  %v4967_v34 = vmul.f32 %v4917_v37, %v4908_v35 }
0x53a4   :  { %v4965_v41 = vsub.f32 %v4963_v39, %v4964_v44  ;;  %v4968_v45 = vadd.f32 %v4967_v34, %v4966_v49 }
0x53a5   :  { %v4942_v23 = vpop.permute.xlu1 %4941 }
0x53a6   :  { %v4944_v26 = vsel %vm75_vm8, %v4938_v32, %v4942_v23 }
0x53a7   :  { %v4973_v52 = vmul.f32 %v4953_v25, %v4944_v26 }
0x53aa   :  { %v4956_v36 = vpop.permute.xlu1 %4955 }
0x53ab   :  { %v4962_v62 = vsel %vm80_vm7, %v4956_v36, %v4960_v29 }
0x53ac   :  { %v4970_v54 = vmul.f32 %v4962_v62, %v4944_v26  ;;  %v4972_v30 = vmul.f32 %v4962_v62, %v4935_v24 }
0x53ae   :  { %v4971_v0 = vsub.f32 %v4969_v50, %v4970_v54  ;;  %v4974_v46 = vadd.f32 %v4973_v52, %v4972_v30 }
0x53b0   :  { %v4975_v47 = vmul.f32 %v4971_v0, %v4965_v41  ;;  %v4976_v57 = vmul.f32 %v4974_v46, %v4968_v45  ;;  %v4978_v58 = vmul.f32 %v4974_v46, %v4965_v41  ;;  %v4979_v60 = vmul.f32 %v4971_v0, %v4968_v45 }
0x53b2   :  { %v4980_v61 = vadd.f32 %v4979_v60, %v4978_v58  ;;  %v4977_v1 = vsub.f32 %v4975_v47, %v4976_v57 }
0x53b4   :  { %4982 = vrot.lane.b32.xlu1 %v4980_v61, %s6811_s14 }
0x5426   :  { %v4983_v4 = vpop.permute.xlu1 %4982 }
0x5427   :  { %v4985_v2 = vsel %vm235_vm10, %v4977_v1, %v4983_v4 }
0x5428   :  { %6068 = vmatmul.mubr.msk.f32.vlgmr.msra.gmra.mrb[44].mxu0 %vm237_vm11, %v4985_v2 }
0x5429   :  { %6463 = vmatpush3.bf16.msra.mxu0 %v7109_v40  ;;  %6086 = vmatprep.mubr.msk.f32.mxu0 %vm6809_vm9, %v6810_v9  ;;  %v5192_v40 = vld [vmem:[#allocation2] ss:$0 sm:$0xff] }
0x542a   :  { %6464 = vmatprep.subr.bf16.mxu0 %v6808_v38  ;;  %5139 = vrot.lane.b32.xlu0 %v5192_v40, %s6799_s26 }
0x542d   :  { %6466 = vmatpush3.bf16.msra.mxu0 %v7120_v48 }
0x542e   :  { %6467 = vmatprep.subr.bf16.mxu0 %v6808_v38 }
0x5431   :  { %6469 = vmatpush3.bf16.msra.mxu0 %v7132_v51 }
0x5432   :  { %6470 = vmatprep.subr.bf16.mxu0 %v6808_v38 }
0x5435   :  { %6472 = vmatpush3.bf16.msra.mxu0 %v7143_v55 }
0x549c   :  { %v5140_v48 = vpop.permute.xlu0 %5139 }
0x54fb   :  { %v5055_v9 = vpop.f32.mrb[44].mxu0 }
0x54fc   :  { %v5059_v5 = vmul.f32 %v5055_v9, %v5055_v9  ;;  %v6069_v6 = vpop.f32.mrb[45].mxu0 }
0x54fe   :  { %6087 = vmatmul.mubr.msk.f32.vlgmr.msra.gmra.mrb[46].mxu0 %vm642_vm15, %v5059_v5 }
0x55d1   :  { %v5129_v8 = vpop.f32.mrb[46].mxu0 }
0x55d2   :  { %v5142_v51 = vadd.f32 %v5140_v48, %v5129_v8  ;;  %v6088_v10 = vpop.f32.mrb[47].mxu0 }
0x55d4   :  { %5144 = vrot.lane.b32.xlu1 %v5142_v51, %s6804_s30 }
0x5646   :  { %v5145_v38 = vpop.permute.xlu1 %5144 }
0x5647   :  { %5148 = vst.msk [vmem:[%s8063_s7] sm:$0xff] %vm5147_vm1, %v5145_v38 }

</bundles_post_ra>
